<compile_context>
chip_gen: v7x
topology: tpu7x:2x2x1
jax: 0.10.0
libtpu: 0.0.40
codegen_flags: <defaults>
</compile_context>

<pallas_src>
import functools

import jax
import jax.numpy as jnp
from jax import lax
from jax.experimental import pallas as pl
from jax.experimental.pallas import tpu as pltpu


# ---------------------------------------------------------------------------
# Pallas kernel: 2x2 stride-1 conv over a space-to-depth input (== 4x4/s2 conv)
# ---------------------------------------------------------------------------

def _conv2x2_s2d_kernel(x_ref, w_ref, b_ref, o_ref, *, apply_act, neg_slope):
    """x_ref: (1, Hs, Ws, 4*Cin)  w_ref: (2, 2, 4*Cin, Cout)
    b_ref: (1, Cout)             o_ref: (1, Ho, Wo, Cout)   with Hs=Ho+1, Ws=Wo+1.
    """
    _, _, _, c4 = x_ref.shape
    _, ho, wo, cout = o_ref.shape

    acc = jnp.zeros((ho * wo, cout), jnp.float32)
    for qy in range(2):                     # statically unrolled 4 taps
        for qx in range(2):
            patch = x_ref[0, qy:qy + ho, qx:qx + wo, :].reshape(ho * wo, c4)
            acc = acc + jnp.dot(patch, w_ref[qy, qx],
                                preferred_element_type=jnp.float32)
    acc = acc + b_ref[...]                  # f32 epilogue (v5e has no bf16 VPU)
    if apply_act:
        acc = jnp.where(acc >= 0.0, acc, neg_slope * acc)
    o_ref[...] = acc.reshape(1, ho, wo, cout).astype(o_ref.dtype)


# ---------------------------------------------------------------------------
# Wrapper: Conv2d(kernel_size=4, stride=2, padding=1) [+ LeakyReLU]
# ---------------------------------------------------------------------------

def conv4x4_s2(x_nhwc, w_hwio, b, *, apply_act=True, neg_slope=0.2,
               out_dtype=jnp.bfloat16):
    n, h, w, cin = x_nhwc.shape
    assert h % 2 == 0 and w % 2 == 0, (h, w)
    kh, kw, cin_w, cout = w_hwio.shape
    assert (kh, kw, cin_w) == (4, 4, cin), (w_hwio.shape, cin)

    ho, wo = h // 2, w // 2
    hs, ws = ho + 1, wo + 1
    c4 = 4 * cin

    # zero-pad (padding=1) then 2x2 space-to-depth: channel = (dy*2+dx)*Cin + c
    xp = jnp.pad(x_nhwc, ((0, 0), (1, 1), (1, 1), (0, 0)))
    xs = (xp.reshape(n, hs, 2, ws, 2, cin)
            .transpose(0, 1, 3, 2, 4, 5)
            .reshape(n, hs, ws, c4)
            .astype(jnp.bfloat16))

    # weight (ky,kx,ci,co) with ky=2*qy+ry, kx=2*qx+rx  ->  (qy,qx, (ry*2+rx)*Cin+c, co)
    w_s2d = (w_hwio.reshape(2, 2, 2, 2, cin, cout)
                   .transpose(0, 2, 1, 3, 4, 5)
                   .reshape(2, 2, c4, cout)
                   .astype(jnp.bfloat16))
    bias = b.reshape(1, cout).astype(jnp.float32)

    kernel = functools.partial(_conv2x2_s2d_kernel,
                               apply_act=apply_act, neg_slope=neg_slope)
    return pl.pallas_call(
        kernel,
        out_shape=jax.ShapeDtypeStruct((n, ho, wo, cout), out_dtype),
        grid_spec=pltpu.PrefetchScalarGridSpec(
            num_scalar_prefetch=0,
            grid=(n,),
            in_specs=[
                pl.BlockSpec((1, hs, ws, c4), lambda i: (i, 0, 0, 0)),
                pl.BlockSpec((2, 2, c4, cout), lambda i: (0, 0, 0, 0)),
                pl.BlockSpec((1, cout), lambda i: (0, 0)),
            ],
            out_specs=pl.BlockSpec((1, ho, wo, cout), lambda i: (i, 0, 0, 0)),
        ),
        compiler_params=pltpu.CompilerParams(
            dimension_semantics=("parallel",),
            vmem_limit_bytes=48 * 1024 * 1024,
        ),
    )(xs, w_s2d, bias)


# ---------------------------------------------------------------------------
# FCDiscriminator forward
# ---------------------------------------------------------------------------

_CLS_LANE_PAD = 128  # pad 1-channel classifier output to a lane-dense 128


def fc_discriminator_forward(x_nchw, params):
    x = jnp.transpose(x_nchw, (0, 2, 3, 1))            # NCHW -> NHWC

    x = conv4x4_s2(x, params["w1"], params["b1"], apply_act=True)
    x = conv4x4_s2(x, params["w2"], params["b2"], apply_act=True)
    x = conv4x4_s2(x, params["w3"], params["b3"], apply_act=True)
    x = conv4x4_s2(x, params["w4"], params["b4"], apply_act=True)

    # classifier: Conv2d(ndf*8, 1, 4, 2, 1), no activation.
    # Pad output channels 1 -> 128 (zero weight/bias columns) so the store is
    # lane-dense, then slice the real channel.
    w5 = params["w5"]
    b5 = params["b5"]
    w5p = jnp.pad(w5, ((0, 0), (0, 0), (0, 0), (0, _CLS_LANE_PAD - w5.shape[-1])))
    b5p = jnp.pad(b5, ((0, _CLS_LANE_PAD - b5.shape[0]),))
    out = conv4x4_s2(x, w5p, b5p, apply_act=False, out_dtype=jnp.float32)
    out = out[..., :1]

    return jnp.transpose(out, (0, 3, 1, 2))             # NHWC -> NCHW


# ---------------------------------------------------------------------------
# Pure-JAX reference (same bf16-in / f32-accumulate numerics)
# ---------------------------------------------------------------------------

def _conv_ref(x, w, b, apply_act):
    y = lax.conv_general_dilated(
        x.astype(jnp.bfloat16), w.astype(jnp.bfloat16),
        window_strides=(2, 2), padding=((1, 1), (1, 1)),
        dimension_numbers=("NHWC", "HWIO", "NHWC"),
        preferred_element_type=jnp.float32)
    y = y + b.reshape(1, 1, 1, -1).astype(jnp.float32)
    if apply_act:
        y = jnp.where(y >= 0.0, y, 0.2 * y)
    return y


def fc_discriminator_ref(x_nchw, params):
    x = jnp.transpose(x_nchw, (0, 2, 3, 1))
    for i in range(1, 5):
        x = _conv_ref(x, params[f"w{i}"], params[f"b{i}"], True).astype(jnp.bfloat16)
    y = _conv_ref(x, params["w5"], params["b5"], False)
    return jnp.transpose(y, (0, 3, 1, 2))


# ---------------------------------------------------------------------------
# Deterministic parameter init + driver
# ---------------------------------------------------------------------------

def init_params(key, num_classes, ndf):
    ks = jax.random.split(key, 10)
    chans = [num_classes, ndf, ndf * 2, ndf * 4, ndf * 8, 1]

    def w_init(k, cin, cout):
        fan_in = 4 * 4 * cin
        return jax.random.normal(k, (4, 4, cin, cout), jnp.float32) / jnp.sqrt(fan_in)

    def b_init(k, cout):
        return 0.01 * jax.random.normal(k, (cout,), jnp.float32)

    params = {}
    for i in range(5):
        params[f"w{i + 1}"] = w_init(ks[2 * i], chans[i], chans[i + 1])
        params[f"b{i + 1}"] = b_init(ks[2 * i + 1], chans[i + 1])
    return params


if __name__ == "__main__":
    num_classes = 4
    ndf = 32
    N, H, W = 2, 64, 64   # spatial must be divisible by 32 (5 stride-2 convs)

    key = jax.random.PRNGKey(0)
    k_params, k_x = jax.random.split(key)
    params = init_params(k_params, num_classes, ndf)
    x = jax.random.normal(k_x, (N, num_classes, H, W), jnp.float32)  # NCHW

    fwd = jax.jit(functools.partial(fc_discriminator_forward, params=params))
    out = jax.block_until_ready(fwd(x))

    expected_shape = (N, 1, H // 32, W // 32)
    assert out.shape == expected_shape, (out.shape, expected_shape)
    assert bool(jnp.all(jnp.isfinite(out)))

    ref = jax.jit(functools.partial(fc_discriminator_ref, params=params))(x)
    ref = jax.block_until_ready(ref)
    max_err = float(jnp.max(jnp.abs(out - ref)))
    assert jnp.allclose(out, ref, atol=5e-2, rtol=5e-2), max_err

    print("KERNEL_OK")
</pallas_src>

<mosaic_0001>
module attributes {stable_mosaic.version = 11 : i64} {
  func.func @_conv2x2_s2d_kernel(%arg0: i32, %arg1: memref<1x33x33x16xbf16, #tpu.memory_space<vmem>>, %arg2: memref<2x2x16x32xbf16, #tpu.memory_space<vmem>>, %arg3: memref<1x32xf32, #tpu.memory_space<vmem>>, %arg4: memref<1x32x32x32xbf16, #tpu.memory_space<vmem>>) attributes {dimension_semantics = [#tpu.dimension_semantics<parallel>], iteration_bounds = array<i64: 2>, scalar_prefetch = 0 : i64, scratch_operands = 0 : i64, tpu.core_type = #tpu.core_type<tc>, window_params = [{transform_indices = @transform_0, window_bounds = array<i64: 1, 33, 33, 16>}, {pipeline_mode = #tpu.pipeline_mode<synchronous>, transform_indices = @transform_1, window_bounds = array<i64: 2, 2, 16, 32>}, {pipeline_mode = #tpu.pipeline_mode<synchronous>, transform_indices = @transform_2, window_bounds = array<i64: 1, 32>}, {transform_indices = @transform_3, window_bounds = array<i64: 1, 32, 32, 32>}]} {
    %cst = arith.constant 0.000000e+00 : f32
    %0 = vector.broadcast %cst : f32 to vector<1024x32xf32>
    %c0 = arith.constant 0 : index
    %c0_0 = arith.constant 0 : index
    %c0_1 = arith.constant 0 : index
    %c0_2 = arith.constant 0 : index
    %1 = vector.load %arg1[%c0, %c0_0, %c0_1, %c0_2] : memref<1x33x33x16xbf16, #tpu.memory_space<vmem>>, vector<1x32x32x16xbf16>
    %2 = vector.shape_cast %1 : vector<1x32x32x16xbf16> to vector<32x32x16xbf16>
    %3 = vector.shape_cast %2 : vector<32x32x16xbf16> to vector<1024x16xbf16>
    %c0_3 = arith.constant 0 : index
    %c0_4 = arith.constant 0 : index
    %c0_5 = arith.constant 0 : index
    %c0_6 = arith.constant 0 : index
    %4 = vector.load %arg2[%c0_3, %c0_4, %c0_5, %c0_6] : memref<2x2x16x32xbf16, #tpu.memory_space<vmem>>, vector<1x1x16x32xbf16>
    %5 = vector.shape_cast %4 : vector<1x1x16x32xbf16> to vector<16x32xbf16>
    %cst_7 = arith.constant dense<0.000000e+00> : vector<1024x32xf32>
    %6 = tpu.matmul %3, %5, %cst_7 {dimension_numbers = #tpu.dot_dimension_numbers<[1], [0], [0], [1], [0, 0, 1, 1], [], []>} : vector<1024x16xbf16>, vector<16x32xbf16>, vector<1024x32xf32> -> vector<1024x32xf32>
    %7 = arith.addf %0, %6 : vector<1024x32xf32>
    %c0_8 = arith.constant 0 : index
    %c0_9 = arith.constant 0 : index
    %c1 = arith.constant 1 : index
    %c0_10 = arith.constant 0 : index
    %8 = vector.load %arg1[%c0_8, %c0_9, %c1, %c0_10] : memref<1x33x33x16xbf16, #tpu.memory_space<vmem>>, vector<1x32x32x16xbf16>
    %9 = vector.shape_cast %8 : vector<1x32x32x16xbf16> to vector<32x32x16xbf16>
    %10 = vector.shape_cast %9 : vector<32x32x16xbf16> to vector<1024x16xbf16>
    %c0_11 = arith.constant 0 : index
    %c1_12 = arith.constant 1 : index
    %c0_13 = arith.constant 0 : index
    %c0_14 = arith.constant 0 : index
    %11 = vector.load %arg2[%c0_11, %c1_12, %c0_13, %c0_14] : memref<2x2x16x32xbf16, #tpu.memory_space<vmem>>, vector<1x1x16x32xbf16>
    %12 = vector.shape_cast %11 : vector<1x1x16x32xbf16> to vector<16x32xbf16>
    %cst_15 = arith.constant dense<0.000000e+00> : vector<1024x32xf32>
    %13 = tpu.matmul %10, %12, %cst_15 {dimension_numbers = #tpu.dot_dimension_numbers<[1], [0], [0], [1], [0, 0, 1, 1], [], []>} : vector<1024x16xbf16>, vector<16x32xbf16>, vector<1024x32xf32> -> vector<1024x32xf32>
    %14 = arith.addf %7, %13 : vector<1024x32xf32>
    %c0_16 = arith.constant 0 : index
    %c1_17 = arith.constant 1 : index
    %c0_18 = arith.constant 0 : index
    %c0_19 = arith.constant 0 : index
    %15 = vector.load %arg1[%c0_16, %c1_17, %c0_18, %c0_19] : memref<1x33x33x16xbf16, #tpu.memory_space<vmem>>, vector<1x32x32x16xbf16>
    %16 = vector.shape_cast %15 : vector<1x32x32x16xbf16> to vector<32x32x16xbf16>
    %17 = vector.shape_cast %16 : vector<32x32x16xbf16> to vector<1024x16xbf16>
    %c1_20 = arith.constant 1 : index
    %c0_21 = arith.constant 0 : index
    %c0_22 = arith.constant 0 : index
    %c0_23 = arith.constant 0 : index
    %18 = vector.load %arg2[%c1_20, %c0_21, %c0_22, %c0_23] : memref<2x2x16x32xbf16, #tpu.memory_space<vmem>>, vector<1x1x16x32xbf16>
    %19 = vector.shape_cast %18 : vector<1x1x16x32xbf16> to vector<16x32xbf16>
    %cst_24 = arith.constant dense<0.000000e+00> : vector<1024x32xf32>
    %20 = tpu.matmul %17, %19, %cst_24 {dimension_numbers = #tpu.dot_dimension_numbers<[1], [0], [0], [1], [0, 0, 1, 1], [], []>} : vector<1024x16xbf16>, vector<16x32xbf16>, vector<1024x32xf32> -> vector<1024x32xf32>
    %21 = arith.addf %14, %20 : vector<1024x32xf32>
    %c0_25 = arith.constant 0 : index
    %c1_26 = arith.constant 1 : index
    %c1_27 = arith.constant 1 : index
    %c0_28 = arith.constant 0 : index
    %22 = vector.load %arg1[%c0_25, %c1_26, %c1_27, %c0_28] : memref<1x33x33x16xbf16, #tpu.memory_space<vmem>>, vector<1x32x32x16xbf16>
    %23 = vector.shape_cast %22 : vector<1x32x32x16xbf16> to vector<32x32x16xbf16>
    %24 = vector.shape_cast %23 : vector<32x32x16xbf16> to vector<1024x16xbf16>
    %c1_29 = arith.constant 1 : index
    %c1_30 = arith.constant 1 : index
    %c0_31 = arith.constant 0 : index
    %c0_32 = arith.constant 0 : index
    %25 = vector.load %arg2[%c1_29, %c1_30, %c0_31, %c0_32] : memref<2x2x16x32xbf16, #tpu.memory_space<vmem>>, vector<1x1x16x32xbf16>
    %26 = vector.shape_cast %25 : vector<1x1x16x32xbf16> to vector<16x32xbf16>
    %cst_33 = arith.constant dense<0.000000e+00> : vector<1024x32xf32>
    %27 = tpu.matmul %24, %26, %cst_33 {dimension_numbers = #tpu.dot_dimension_numbers<[1], [0], [0], [1], [0, 0, 1, 1], [], []>} : vector<1024x16xbf16>, vector<16x32xbf16>, vector<1024x32xf32> -> vector<1024x32xf32>
    %28 = arith.addf %21, %27 : vector<1024x32xf32>
    %c0_34 = arith.constant 0 : index
    %c0_35 = arith.constant 0 : index
    %29 = vector.load %arg3[%c0_34, %c0_35] : memref<1x32xf32, #tpu.memory_space<vmem>>, vector<1x32xf32>
    %30 = vector.broadcast %29 : vector<1x32xf32> to vector<1024x32xf32>
    %31 = arith.addf %28, %30 : vector<1024x32xf32>
    %cst_36 = arith.constant 0.000000e+00 : f32
    %32 = vector.broadcast %cst_36 : f32 to vector<1024x32xf32>
    %33 = arith.cmpf oge, %31, %32 : vector<1024x32xf32>
    %cst_37 = arith.constant 2.000000e-01 : f32
    %34 = vector.broadcast %cst_37 : f32 to vector<1024x32xf32>
    %35 = arith.mulf %34, %31 : vector<1024x32xf32>
    %36 = arith.select %33, %31, %35 : vector<1024x32xi1>, vector<1024x32xf32>
    %37 = vector.shape_cast %36 : vector<1024x32xf32> to vector<1x32x32x32xf32>
    %38 = arith.truncf %37 : vector<1x32x32x32xf32> to vector<1x32x32x32xbf16>
    %c0_38 = arith.constant 0 : index
    %c0_39 = arith.constant 0 : index
    %c0_40 = arith.constant 0 : index
    %c0_41 = arith.constant 0 : index
    %39 = vector.load %arg4[%c0_38, %c0_39, %c0_40, %c0_41] : memref<1x32x32x32xbf16, #tpu.memory_space<vmem>>, vector<1x32x32x32xbf16>
    tpu.vector_store %arg4[%c0_38, %c0_39, %c0_40, %c0_41], %38 {strides = array<i32>} : memref<1x32x32x32xbf16, #tpu.memory_space<vmem>>, vector<1x32x32x32xbf16>,
    return
  }
  func.func @transform_0(%arg0: i32) -> (i32, i32, i32, i32) {
    %c0_i32 = arith.constant 0 : i32
    %c0_i32_0 = arith.constant 0 : i32
    %c0_i32_1 = arith.constant 0 : i32
    %c0_i32_2 = arith.constant 0 : i32
    return %arg0, %c0_i32, %c0_i32_0, %c0_i32_1 : i32, i32, i32, i32
  }
  func.func @transform_1(%arg0: i32) -> (i32, i32, i32, i32) {
    %c0_i32 = arith.constant 0 : i32
    %c0_i32_0 = arith.constant 0 : i32
    %c0_i32_1 = arith.constant 0 : i32
    %c0_i32_2 = arith.constant 0 : i32
    %c0_i32_3 = arith.constant 0 : i32
    return %c0_i32, %c0_i32_0, %c0_i32_1, %c0_i32_2 : i32, i32, i32, i32
  }
  func.func @transform_2(%arg0: i32) -> (i32, i32) {
    %c0_i32 = arith.constant 0 : i32
    %c0_i32_0 = arith.constant 0 : i32
    %c0_i32_1 = arith.constant 0 : i32
    return %c0_i32, %c0_i32_0 : i32, i32
  }
  func.func @transform_3(%arg0: i32) -> (i32, i32, i32, i32) {
    %c0_i32 = arith.constant 0 : i32
    %c0_i32_0 = arith.constant 0 : i32
    %c0_i32_1 = arith.constant 0 : i32
    %c0_i32_2 = arith.constant 0 : i32
    return %arg0, %c0_i32, %c0_i32_0, %c0_i32_1 : i32, i32, i32, i32
  }
}

module attributes {stable_mosaic.version = 11 : i64} {
  func.func @_conv2x2_s2d_kernel(%arg0: i32, %arg1: memref<1x17x17x128xbf16, #tpu.memory_space<vmem>>, %arg2: memref<2x2x128x64xbf16, #tpu.memory_space<vmem>>, %arg3: memref<1x64xf32, #tpu.memory_space<vmem>>, %arg4: memref<1x16x16x64xbf16, #tpu.memory_space<vmem>>) attributes {dimension_semantics = [#tpu.dimension_semantics<parallel>], iteration_bounds = array<i64: 2>, scalar_prefetch = 0 : i64, scratch_operands = 0 : i64, tpu.core_type = #tpu.core_type<tc>, window_params = [{transform_indices = @transform_0, window_bounds = array<i64: 1, 17, 17, 128>}, {pipeline_mode = #tpu.pipeline_mode<synchronous>, transform_indices = @transform_1, window_bounds = array<i64: 2, 2, 128, 64>}, {pipeline_mode = #tpu.pipeline_mode<synchronous>, transform_indices = @transform_2, window_bounds = array<i64: 1, 64>}, {transform_indices = @transform_3, window_bounds = array<i64: 1, 16, 16, 64>}]} {
    %cst = arith.constant 0.000000e+00 : f32
    %0 = vector.broadcast %cst : f32 to vector<256x64xf32>
    %c0 = arith.constant 0 : index
    %c0_0 = arith.constant 0 : index
    %c0_1 = arith.constant 0 : index
    %c0_2 = arith.constant 0 : index
    %1 = vector.load %arg1[%c0, %c0_0, %c0_1, %c0_2] : memref<1x17x17x128xbf16, #tpu.memory_space<vmem>>, vector<1x16x16x128xbf16>
    %2 = vector.shape_cast %1 : vector<1x16x16x128xbf16> to vector<16x16x128xbf16>
    %3 = vector.shape_cast %2 : vector<16x16x128xbf16> to vector<256x128xbf16>
    %c0_3 = arith.constant 0 : index
    %c0_4 = arith.constant 0 : index
    %c0_5 = arith.constant 0 : index
    %c0_6 = arith.constant 0 : index
    %4 = vector.load %arg2[%c0_3, %c0_4, %c0_5, %c0_6] : memref<2x2x128x64xbf16, #tpu.memory_space<vmem>>, vector<1x1x128x64xbf16>
    %5 = vector.shape_cast %4 : vector<1x1x128x64xbf16> to vector<128x64xbf16>
    %cst_7 = arith.constant dense<0.000000e+00> : vector<256x64xf32>
    %6 = tpu.matmul %3, %5, %cst_7 {dimension_numbers = #tpu.dot_dimension_numbers<[1], [0], [0], [1], [0, 0, 1, 1], [], []>} : vector<256x128xbf16>, vector<128x64xbf16>, vector<256x64xf32> -> vector<256x64xf32>
    %7 = arith.addf %0, %6 : vector<256x64xf32>
    %c0_8 = arith.constant 0 : index
    %c0_9 = arith.constant 0 : index
    %c1 = arith.constant 1 : index
    %c0_10 = arith.constant 0 : index
    %8 = vector.load %arg1[%c0_8, %c0_9, %c1, %c0_10] : memref<1x17x17x128xbf16, #tpu.memory_space<vmem>>, vector<1x16x16x128xbf16>
    %9 = vector.shape_cast %8 : vector<1x16x16x128xbf16> to vector<16x16x128xbf16>
    %10 = vector.shape_cast %9 : vector<16x16x128xbf16> to vector<256x128xbf16>
    %c0_11 = arith.constant 0 : index
    %c1_12 = arith.constant 1 : index
    %c0_13 = arith.constant 0 : index
    %c0_14 = arith.constant 0 : index
    %11 = vector.load %arg2[%c0_11, %c1_12, %c0_13, %c0_14] : memref<2x2x128x64xbf16, #tpu.memory_space<vmem>>, vector<1x1x128x64xbf16>
    %12 = vector.shape_cast %11 : vector<1x1x128x64xbf16> to vector<128x64xbf16>
    %cst_15 = arith.constant dense<0.000000e+00> : vector<256x64xf32>
    %13 = tpu.matmul %10, %12, %cst_15 {dimension_numbers = #tpu.dot_dimension_numbers<[1], [0], [0], [1], [0, 0, 1, 1], [], []>} : vector<256x128xbf16>, vector<128x64xbf16>, vector<256x64xf32> -> vector<256x64xf32>
    %14 = arith.addf %7, %13 : vector<256x64xf32>
    %c0_16 = arith.constant 0 : index
    %c1_17 = arith.constant 1 : index
    %c0_18 = arith.constant 0 : index
    %c0_19 = arith.constant 0 : index
    %15 = vector.load %arg1[%c0_16, %c1_17, %c0_18, %c0_19] : memref<1x17x17x128xbf16, #tpu.memory_space<vmem>>, vector<1x16x16x128xbf16>
    %16 = vector.shape_cast %15 : vector<1x16x16x128xbf16> to vector<16x16x128xbf16>
    %17 = vector.shape_cast %16 : vector<16x16x128xbf16> to vector<256x128xbf16>
    %c1_20 = arith.constant 1 : index
    %c0_21 = arith.constant 0 : index
    %c0_22 = arith.constant 0 : index
    %c0_23 = arith.constant 0 : index
    %18 = vector.load %arg2[%c1_20, %c0_21, %c0_22, %c0_23] : memref<2x2x128x64xbf16, #tpu.memory_space<vmem>>, vector<1x1x128x64xbf16>
    %19 = vector.shape_cast %18 : vector<1x1x128x64xbf16> to vector<128x64xbf16>
    %cst_24 = arith.constant dense<0.000000e+00> : vector<256x64xf32>
    %20 = tpu.matmul %17, %19, %cst_24 {dimension_numbers = #tpu.dot_dimension_numbers<[1], [0], [0], [1], [0, 0, 1, 1], [], []>} : vector<256x128xbf16>, vector<128x64xbf16>, vector<256x64xf32> -> vector<256x64xf32>
    %21 = arith.addf %14, %20 : vector<256x64xf32>
    %c0_25 = arith.constant 0 : index
    %c1_26 = arith.constant 1 : index
    %c1_27 = arith.constant 1 : index
    %c0_28 = arith.constant 0 : index
    %22 = vector.load %arg1[%c0_25, %c1_26, %c1_27, %c0_28] : memref<1x17x17x128xbf16, #tpu.memory_space<vmem>>, vector<1x16x16x128xbf16>
    %23 = vector.shape_cast %22 : vector<1x16x16x128xbf16> to vector<16x16x128xbf16>
    %24 = vector.shape_cast %23 : vector<16x16x128xbf16> to vector<256x128xbf16>
    %c1_29 = arith.constant 1 : index
    %c1_30 = arith.constant 1 : index
    %c0_31 = arith.constant 0 : index
    %c0_32 = arith.constant 0 : index
    %25 = vector.load %arg2[%c1_29, %c1_30, %c0_31, %c0_32] : memref<2x2x128x64xbf16, #tpu.memory_space<vmem>>, vector<1x1x128x64xbf16>
    %26 = vector.shape_cast %25 : vector<1x1x128x64xbf16> to vector<128x64xbf16>
    %cst_33 = arith.constant dense<0.000000e+00> : vector<256x64xf32>
    %27 = tpu.matmul %24, %26, %cst_33 {dimension_numbers = #tpu.dot_dimension_numbers<[1], [0], [0], [1], [0, 0, 1, 1], [], []>} : vector<256x128xbf16>, vector<128x64xbf16>, vector<256x64xf32> -> vector<256x64xf32>
    %28 = arith.addf %21, %27 : vector<256x64xf32>
    %c0_34 = arith.constant 0 : index
    %c0_35 = arith.constant 0 : index
    %29 = vector.load %arg3[%c0_34, %c0_35] : memref<1x64xf32, #tpu.memory_space<vmem>>, vector<1x64xf32>
    %30 = vector.broadcast %29 : vector<1x64xf32> to vector<256x64xf32>
    %31 = arith.addf %28, %30 : vector<256x64xf32>
    %cst_36 = arith.constant 0.000000e+00 : f32
    %32 = vector.broadcast %cst_36 : f32 to vector<256x64xf32>
    %33 = arith.cmpf oge, %31, %32 : vector<256x64xf32>
    %cst_37 = arith.constant 2.000000e-01 : f32
    %34 = vector.broadcast %cst_37 : f32 to vector<256x64xf32>
    %35 = arith.mulf %34, %31 : vector<256x64xf32>
    %36 = arith.select %33, %31, %35 : vector<256x64xi1>, vector<256x64xf32>
    %37 = vector.shape_cast %36 : vector<256x64xf32> to vector<1x16x16x64xf32>
    %38 = arith.truncf %37 : vector<1x16x16x64xf32> to vector<1x16x16x64xbf16>
    %c0_38 = arith.constant 0 : index
    %c0_39 = arith.constant 0 : index
    %c0_40 = arith.constant 0 : index
    %c0_41 = arith.constant 0 : index
    %39 = vector.load %arg4[%c0_38, %c0_39, %c0_40, %c0_41] : memref<1x16x16x64xbf16, #tpu.memory_space<vmem>>, vector<1x16x16x64xbf16>
    tpu.vector_store %arg4[%c0_38, %c0_39, %c0_40, %c0_41], %38 {strides = array<i32>} : memref<1x16x16x64xbf16, #tpu.memory_space<vmem>>, vector<1x16x16x64xbf16>,
    return
  }
  func.func @transform_0(%arg0: i32) -> (i32, i32, i32, i32) {
    %c0_i32 = arith.constant 0 : i32
    %c0_i32_0 = arith.constant 0 : i32
    %c0_i32_1 = arith.constant 0 : i32
    %c0_i32_2 = arith.constant 0 : i32
    return %arg0, %c0_i32, %c0_i32_0, %c0_i32_1 : i32, i32, i32, i32
  }
  func.func @transform_1(%arg0: i32) -> (i32, i32, i32, i32) {
    %c0_i32 = arith.constant 0 : i32
    %c0_i32_0 = arith.constant 0 : i32
    %c0_i32_1 = arith.constant 0 : i32
    %c0_i32_2 = arith.constant 0 : i32
    %c0_i32_3 = arith.constant 0 : i32
    return %c0_i32, %c0_i32_0, %c0_i32_1, %c0_i32_2 : i32, i32, i32, i32
  }
  func.func @transform_2(%arg0: i32) -> (i32, i32) {
    %c0_i32 = arith.constant 0 : i32
    %c0_i32_0 = arith.constant 0 : i32
    %c0_i32_1 = arith.constant 0 : i32
    return %c0_i32, %c0_i32_0 : i32, i32
  }
  func.func @transform_3(%arg0: i32) -> (i32, i32, i32, i32) {
    %c0_i32 = arith.constant 0 : i32
    %c0_i32_0 = arith.constant 0 : i32
    %c0_i32_1 = arith.constant 0 : i32
    %c0_i32_2 = arith.constant 0 : i32
    return %arg0, %c0_i32, %c0_i32_0, %c0_i32_1 : i32, i32, i32, i32
  }
}

module attributes {stable_mosaic.version = 11 : i64} {
  func.func @_conv2x2_s2d_kernel(%arg0: i32, %arg1: memref<1x9x9x256xbf16, #tpu.memory_space<vmem>>, %arg2: memref<2x2x256x128xbf16, #tpu.memory_space<vmem>>, %arg3: memref<1x128xf32, #tpu.memory_space<vmem>>, %arg4: memref<1x8x8x128xbf16, #tpu.memory_space<vmem>>) attributes {dimension_semantics = [#tpu.dimension_semantics<parallel>], iteration_bounds = array<i64: 2>, scalar_prefetch = 0 : i64, scratch_operands = 0 : i64, tpu.core_type = #tpu.core_type<tc>, window_params = [{transform_indices = @transform_0, window_bounds = array<i64: 1, 9, 9, 256>}, {pipeline_mode = #tpu.pipeline_mode<synchronous>, transform_indices = @transform_1, window_bounds = array<i64: 2, 2, 256, 128>}, {pipeline_mode = #tpu.pipeline_mode<synchronous>, transform_indices = @transform_2, window_bounds = array<i64: 1, 128>}, {transform_indices = @transform_3, window_bounds = array<i64: 1, 8, 8, 128>}]} {
    %cst = arith.constant 0.000000e+00 : f32
    %0 = vector.broadcast %cst : f32 to vector<64x128xf32>
    %c0 = arith.constant 0 : index
    %c0_0 = arith.constant 0 : index
    %c0_1 = arith.constant 0 : index
    %c0_2 = arith.constant 0 : index
    %1 = vector.load %arg1[%c0, %c0_0, %c0_1, %c0_2] : memref<1x9x9x256xbf16, #tpu.memory_space<vmem>>, vector<1x8x8x256xbf16>
    %2 = vector.shape_cast %1 : vector<1x8x8x256xbf16> to vector<8x8x256xbf16>
    %3 = vector.shape_cast %2 : vector<8x8x256xbf16> to vector<64x256xbf16>
    %c0_3 = arith.constant 0 : index
    %c0_4 = arith.constant 0 : index
    %c0_5 = arith.constant 0 : index
    %c0_6 = arith.constant 0 : index
    %4 = vector.load %arg2[%c0_3, %c0_4, %c0_5, %c0_6] : memref<2x2x256x128xbf16, #tpu.memory_space<vmem>>, vector<1x1x256x128xbf16>
    %5 = vector.shape_cast %4 : vector<1x1x256x128xbf16> to vector<256x128xbf16>
    %cst_7 = arith.constant dense<0.000000e+00> : vector<64x128xf32>
    %6 = tpu.matmul %3, %5, %cst_7 {dimension_numbers = #tpu.dot_dimension_numbers<[1], [0], [0], [1], [0, 0, 1, 1], [], []>} : vector<64x256xbf16>, vector<256x128xbf16>, vector<64x128xf32> -> vector<64x128xf32>
    %7 = arith.addf %0, %6 : vector<64x128xf32>
    %c0_8 = arith.constant 0 : index
    %c0_9 = arith.constant 0 : index
    %c1 = arith.constant 1 : index
    %c0_10 = arith.constant 0 : index
    %8 = vector.load %arg1[%c0_8, %c0_9, %c1, %c0_10] : memref<1x9x9x256xbf16, #tpu.memory_space<vmem>>, vector<1x8x8x256xbf16>
    %9 = vector.shape_cast %8 : vector<1x8x8x256xbf16> to vector<8x8x256xbf16>
    %10 = vector.shape_cast %9 : vector<8x8x256xbf16> to vector<64x256xbf16>
    %c0_11 = arith.constant 0 : index
    %c1_12 = arith.constant 1 : index
    %c0_13 = arith.constant 0 : index
    %c0_14 = arith.constant 0 : index
    %11 = vector.load %arg2[%c0_11, %c1_12, %c0_13, %c0_14] : memref<2x2x256x128xbf16, #tpu.memory_space<vmem>>, vector<1x1x256x128xbf16>
    %12 = vector.shape_cast %11 : vector<1x1x256x128xbf16> to vector<256x128xbf16>
    %cst_15 = arith.constant dense<0.000000e+00> : vector<64x128xf32>
    %13 = tpu.matmul %10, %12, %cst_15 {dimension_numbers = #tpu.dot_dimension_numbers<[1], [0], [0], [1], [0, 0, 1, 1], [], []>} : vector<64x256xbf16>, vector<256x128xbf16>, vector<64x128xf32> -> vector<64x128xf32>
    %14 = arith.addf %7, %13 : vector<64x128xf32>
    %c0_16 = arith.constant 0 : index
    %c1_17 = arith.constant 1 : index
    %c0_18 = arith.constant 0 : index
    %c0_19 = arith.constant 0 : index
    %15 = vector.load %arg1[%c0_16, %c1_17, %c0_18, %c0_19] : memref<1x9x9x256xbf16, #tpu.memory_space<vmem>>, vector<1x8x8x256xbf16>
    %16 = vector.shape_cast %15 : vector<1x8x8x256xbf16> to vector<8x8x256xbf16>
    %17 = vector.shape_cast %16 : vector<8x8x256xbf16> to vector<64x256xbf16>
    %c1_20 = arith.constant 1 : index
    %c0_21 = arith.constant 0 : index
    %c0_22 = arith.constant 0 : index
    %c0_23 = arith.constant 0 : index
    %18 = vector.load %arg2[%c1_20, %c0_21, %c0_22, %c0_23] : memref<2x2x256x128xbf16, #tpu.memory_space<vmem>>, vector<1x1x256x128xbf16>
    %19 = vector.shape_cast %18 : vector<1x1x256x128xbf16> to vector<256x128xbf16>
    %cst_24 = arith.constant dense<0.000000e+00> : vector<64x128xf32>
    %20 = tpu.matmul %17, %19, %cst_24 {dimension_numbers = #tpu.dot_dimension_numbers<[1], [0], [0], [1], [0, 0, 1, 1], [], []>} : vector<64x256xbf16>, vector<256x128xbf16>, vector<64x128xf32> -> vector<64x128xf32>
    %21 = arith.addf %14, %20 : vector<64x128xf32>
    %c0_25 = arith.constant 0 : index
    %c1_26 = arith.constant 1 : index
    %c1_27 = arith.constant 1 : index
    %c0_28 = arith.constant 0 : index
    %22 = vector.load %arg1[%c0_25, %c1_26, %c1_27, %c0_28] : memref<1x9x9x256xbf16, #tpu.memory_space<vmem>>, vector<1x8x8x256xbf16>
    %23 = vector.shape_cast %22 : vector<1x8x8x256xbf16> to vector<8x8x256xbf16>
    %24 = vector.shape_cast %23 : vector<8x8x256xbf16> to vector<64x256xbf16>
    %c1_29 = arith.constant 1 : index
    %c1_30 = arith.constant 1 : index
    %c0_31 = arith.constant 0 : index
    %c0_32 = arith.constant 0 : index
    %25 = vector.load %arg2[%c1_29, %c1_30, %c0_31, %c0_32] : memref<2x2x256x128xbf16, #tpu.memory_space<vmem>>, vector<1x1x256x128xbf16>
    %26 = vector.shape_cast %25 : vector<1x1x256x128xbf16> to vector<256x128xbf16>
    %cst_33 = arith.constant dense<0.000000e+00> : vector<64x128xf32>
    %27 = tpu.matmul %24, %26, %cst_33 {dimension_numbers = #tpu.dot_dimension_numbers<[1], [0], [0], [1], [0, 0, 1, 1], [], []>} : vector<64x256xbf16>, vector<256x128xbf16>, vector<64x128xf32> -> vector<64x128xf32>
    %28 = arith.addf %21, %27 : vector<64x128xf32>
    %c0_34 = arith.constant 0 : index
    %c0_35 = arith.constant 0 : index
    %29 = vector.load %arg3[%c0_34, %c0_35] : memref<1x128xf32, #tpu.memory_space<vmem>>, vector<1x128xf32>
    %30 = vector.broadcast %29 : vector<1x128xf32> to vector<64x128xf32>
    %31 = arith.addf %28, %30 : vector<64x128xf32>
    %cst_36 = arith.constant 0.000000e+00 : f32
    %32 = vector.broadcast %cst_36 : f32 to vector<64x128xf32>
    %33 = arith.cmpf oge, %31, %32 : vector<64x128xf32>
    %cst_37 = arith.constant 2.000000e-01 : f32
    %34 = vector.broadcast %cst_37 : f32 to vector<64x128xf32>
    %35 = arith.mulf %34, %31 : vector<64x128xf32>
    %36 = arith.select %33, %31, %35 : vector<64x128xi1>, vector<64x128xf32>
    %37 = vector.shape_cast %36 : vector<64x128xf32> to vector<1x8x8x128xf32>
    %38 = arith.truncf %37 : vector<1x8x8x128xf32> to vector<1x8x8x128xbf16>
    %c0_38 = arith.constant 0 : index
    %c0_39 = arith.constant 0 : index
    %c0_40 = arith.constant 0 : index
    %c0_41 = arith.constant 0 : index
    %39 = vector.load %arg4[%c0_38, %c0_39, %c0_40, %c0_41] : memref<1x8x8x128xbf16, #tpu.memory_space<vmem>>, vector<1x8x8x128xbf16>
    tpu.vector_store %arg4[%c0_38, %c0_39, %c0_40, %c0_41], %38 {strides = array<i32>} : memref<1x8x8x128xbf16, #tpu.memory_space<vmem>>, vector<1x8x8x128xbf16>,
    return
  }
  func.func @transform_0(%arg0: i32) -> (i32, i32, i32, i32) {
    %c0_i32 = arith.constant 0 : i32
    %c0_i32_0 = arith.constant 0 : i32
    %c0_i32_1 = arith.constant 0 : i32
    %c0_i32_2 = arith.constant 0 : i32
    return %arg0, %c0_i32, %c0_i32_0, %c0_i32_1 : i32, i32, i32, i32
  }
  func.func @transform_1(%arg0: i32) -> (i32, i32, i32, i32) {
    %c0_i32 = arith.constant 0 : i32
    %c0_i32_0 = arith.constant 0 : i32
    %c0_i32_1 = arith.constant 0 : i32
    %c0_i32_2 = arith.constant 0 : i32
    %c0_i32_3 = arith.constant 0 : i32
    return %c0_i32, %c0_i32_0, %c0_i32_1, %c0_i32_2 : i32, i32, i32, i32
  }
  func.func @transform_2(%arg0: i32) -> (i32, i32) {
    %c0_i32 = arith.constant 0 : i32
    %c0_i32_0 = arith.constant 0 : i32
    %c0_i32_1 = arith.constant 0 : i32
    return %c0_i32, %c0_i32_0 : i32, i32
  }
  func.func @transform_3(%arg0: i32) -> (i32, i32, i32, i32) {
    %c0_i32 = arith.constant 0 : i32
    %c0_i32_0 = arith.constant 0 : i32
    %c0_i32_1 = arith.constant 0 : i32
    %c0_i32_2 = arith.constant 0 : i32
    return %arg0, %c0_i32, %c0_i32_0, %c0_i32_1 : i32, i32, i32, i32
  }
}

module attributes {stable_mosaic.version = 11 : i64} {
  func.func @_conv2x2_s2d_kernel(%arg0: i32, %arg1: memref<1x5x5x512xbf16, #tpu.memory_space<vmem>>, %arg2: memref<2x2x512x256xbf16, #tpu.memory_space<vmem>>, %arg3: memref<1x256xf32, #tpu.memory_space<vmem>>, %arg4: memref<1x4x4x256xbf16, #tpu.memory_space<vmem>>) attributes {dimension_semantics = [#tpu.dimension_semantics<parallel>], iteration_bounds = array<i64: 2>, scalar_prefetch = 0 : i64, scratch_operands = 0 : i64, tpu.core_type = #tpu.core_type<tc>, window_params = [{transform_indices = @transform_0, window_bounds = array<i64: 1, 5, 5, 512>}, {pipeline_mode = #tpu.pipeline_mode<synchronous>, transform_indices = @transform_1, window_bounds = array<i64: 2, 2, 512, 256>}, {pipeline_mode = #tpu.pipeline_mode<synchronous>, transform_indices = @transform_2, window_bounds = array<i64: 1, 256>}, {transform_indices = @transform_3, window_bounds = array<i64: 1, 4, 4, 256>}]} {
    %cst = arith.constant 0.000000e+00 : f32
    %0 = vector.broadcast %cst : f32 to vector<16x256xf32>
    %c0 = arith.constant 0 : index
    %c0_0 = arith.constant 0 : index
    %c0_1 = arith.constant 0 : index
    %c0_2 = arith.constant 0 : index
    %1 = vector.load %arg1[%c0, %c0_0, %c0_1, %c0_2] : memref<1x5x5x512xbf16, #tpu.memory_space<vmem>>, vector<1x4x4x512xbf16>
    %2 = vector.shape_cast %1 : vector<1x4x4x512xbf16> to vector<4x4x512xbf16>
    %3 = vector.shape_cast %2 : vector<4x4x512xbf16> to vector<16x512xbf16>
    %c0_3 = arith.constant 0 : index
    %c0_4 = arith.constant 0 : index
    %c0_5 = arith.constant 0 : index
    %c0_6 = arith.constant 0 : index
    %4 = vector.load %arg2[%c0_3, %c0_4, %c0_5, %c0_6] : memref<2x2x512x256xbf16, #tpu.memory_space<vmem>>, vector<1x1x512x256xbf16>
    %5 = vector.shape_cast %4 : vector<1x1x512x256xbf16> to vector<512x256xbf16>
    %cst_7 = arith.constant dense<0.000000e+00> : vector<16x256xf32>
    %6 = tpu.matmul %3, %5, %cst_7 {dimension_numbers = #tpu.dot_dimension_numbers<[1], [0], [0], [1], [0, 0, 1, 1], [], []>} : vector<16x512xbf16>, vector<512x256xbf16>, vector<16x256xf32> -> vector<16x256xf32>
    %7 = arith.addf %0, %6 : vector<16x256xf32>
    %c0_8 = arith.constant 0 : index
    %c0_9 = arith.constant 0 : index
    %c1 = arith.constant 1 : index
    %c0_10 = arith.constant 0 : index
    %8 = vector.load %arg1[%c0_8, %c0_9, %c1, %c0_10] : memref<1x5x5x512xbf16, #tpu.memory_space<vmem>>, vector<1x4x4x512xbf16>
    %9 = vector.shape_cast %8 : vector<1x4x4x512xbf16> to vector<4x4x512xbf16>
    %10 = vector.shape_cast %9 : vector<4x4x512xbf16> to vector<16x512xbf16>
    %c0_11 = arith.constant 0 : index
    %c1_12 = arith.constant 1 : index
    %c0_13 = arith.constant 0 : index
    %c0_14 = arith.constant 0 : index
    %11 = vector.load %arg2[%c0_11, %c1_12, %c0_13, %c0_14] : memref<2x2x512x256xbf16, #tpu.memory_space<vmem>>, vector<1x1x512x256xbf16>
    %12 = vector.shape_cast %11 : vector<1x1x512x256xbf16> to vector<512x256xbf16>
    %cst_15 = arith.constant dense<0.000000e+00> : vector<16x256xf32>
    %13 = tpu.matmul %10, %12, %cst_15 {dimension_numbers = #tpu.dot_dimension_numbers<[1], [0], [0], [1], [0, 0, 1, 1], [], []>} : vector<16x512xbf16>, vector<512x256xbf16>, vector<16x256xf32> -> vector<16x256xf32>
    %14 = arith.addf %7, %13 : vector<16x256xf32>
    %c0_16 = arith.constant 0 : index
    %c1_17 = arith.constant 1 : index
    %c0_18 = arith.constant 0 : index
    %c0_19 = arith.constant 0 : index
    %15 = vector.load %arg1[%c0_16, %c1_17, %c0_18, %c0_19] : memref<1x5x5x512xbf16, #tpu.memory_space<vmem>>, vector<1x4x4x512xbf16>
    %16 = vector.shape_cast %15 : vector<1x4x4x512xbf16> to vector<4x4x512xbf16>
    %17 = vector.shape_cast %16 : vector<4x4x512xbf16> to vector<16x512xbf16>
    %c1_20 = arith.constant 1 : index
    %c0_21 = arith.constant 0 : index
    %c0_22 = arith.constant 0 : index
    %c0_23 = arith.constant 0 : index
    %18 = vector.load %arg2[%c1_20, %c0_21, %c0_22, %c0_23] : memref<2x2x512x256xbf16, #tpu.memory_space<vmem>>, vector<1x1x512x256xbf16>
    %19 = vector.shape_cast %18 : vector<1x1x512x256xbf16> to vector<512x256xbf16>
    %cst_24 = arith.constant dense<0.000000e+00> : vector<16x256xf32>
    %20 = tpu.matmul %17, %19, %cst_24 {dimension_numbers = #tpu.dot_dimension_numbers<[1], [0], [0], [1], [0, 0, 1, 1], [], []>} : vector<16x512xbf16>, vector<512x256xbf16>, vector<16x256xf32> -> vector<16x256xf32>
    %21 = arith.addf %14, %20 : vector<16x256xf32>
    %c0_25 = arith.constant 0 : index
    %c1_26 = arith.constant 1 : index
    %c1_27 = arith.constant 1 : index
    %c0_28 = arith.constant 0 : index
    %22 = vector.load %arg1[%c0_25, %c1_26, %c1_27, %c0_28] : memref<1x5x5x512xbf16, #tpu.memory_space<vmem>>, vector<1x4x4x512xbf16>
    %23 = vector.shape_cast %22 : vector<1x4x4x512xbf16> to vector<4x4x512xbf16>
    %24 = vector.shape_cast %23 : vector<4x4x512xbf16> to vector<16x512xbf16>
    %c1_29 = arith.constant 1 : index
    %c1_30 = arith.constant 1 : index
    %c0_31 = arith.constant 0 : index
    %c0_32 = arith.constant 0 : index
    %25 = vector.load %arg2[%c1_29, %c1_30, %c0_31, %c0_32] : memref<2x2x512x256xbf16, #tpu.memory_space<vmem>>, vector<1x1x512x256xbf16>
    %26 = vector.shape_cast %25 : vector<1x1x512x256xbf16> to vector<512x256xbf16>
    %cst_33 = arith.constant dense<0.000000e+00> : vector<16x256xf32>
    %27 = tpu.matmul %24, %26, %cst_33 {dimension_numbers = #tpu.dot_dimension_numbers<[1], [0], [0], [1], [0, 0, 1, 1], [], []>} : vector<16x512xbf16>, vector<512x256xbf16>, vector<16x256xf32> -> vector<16x256xf32>
    %28 = arith.addf %21, %27 : vector<16x256xf32>
    %c0_34 = arith.constant 0 : index
    %c0_35 = arith.constant 0 : index
    %29 = vector.load %arg3[%c0_34, %c0_35] : memref<1x256xf32, #tpu.memory_space<vmem>>, vector<1x256xf32>
    %30 = vector.broadcast %29 : vector<1x256xf32> to vector<16x256xf32>
    %31 = arith.addf %28, %30 : vector<16x256xf32>
    %cst_36 = arith.constant 0.000000e+00 : f32
    %32 = vector.broadcast %cst_36 : f32 to vector<16x256xf32>
    %33 = arith.cmpf oge, %31, %32 : vector<16x256xf32>
    %cst_37 = arith.constant 2.000000e-01 : f32
    %34 = vector.broadcast %cst_37 : f32 to vector<16x256xf32>
    %35 = arith.mulf %34, %31 : vector<16x256xf32>
    %36 = arith.select %33, %31, %35 : vector<16x256xi1>, vector<16x256xf32>
    %37 = vector.shape_cast %36 : vector<16x256xf32> to vector<1x4x4x256xf32>
    %38 = arith.truncf %37 : vector<1x4x4x256xf32> to vector<1x4x4x256xbf16>
    %c0_38 = arith.constant 0 : index
    %c0_39 = arith.constant 0 : index
    %c0_40 = arith.constant 0 : index
    %c0_41 = arith.constant 0 : index
    %39 = vector.load %arg4[%c0_38, %c0_39, %c0_40, %c0_41] : memref<1x4x4x256xbf16, #tpu.memory_space<vmem>>, vector<1x4x4x256xbf16>
    tpu.vector_store %arg4[%c0_38, %c0_39, %c0_40, %c0_41], %38 {strides = array<i32>} : memref<1x4x4x256xbf16, #tpu.memory_space<vmem>>, vector<1x4x4x256xbf16>,
    return
  }
  func.func @transform_0(%arg0: i32) -> (i32, i32, i32, i32) {
    %c0_i32 = arith.constant 0 : i32
    %c0_i32_0 = arith.constant 0 : i32
    %c0_i32_1 = arith.constant 0 : i32
    %c0_i32_2 = arith.constant 0 : i32
    return %arg0, %c0_i32, %c0_i32_0, %c0_i32_1 : i32, i32, i32, i32
  }
  func.func @transform_1(%arg0: i32) -> (i32, i32, i32, i32) {
    %c0_i32 = arith.constant 0 : i32
    %c0_i32_0 = arith.constant 0 : i32
    %c0_i32_1 = arith.constant 0 : i32
    %c0_i32_2 = arith.constant 0 : i32
    %c0_i32_3 = arith.constant 0 : i32
    return %c0_i32, %c0_i32_0, %c0_i32_1, %c0_i32_2 : i32, i32, i32, i32
  }
  func.func @transform_2(%arg0: i32) -> (i32, i32) {
    %c0_i32 = arith.constant 0 : i32
    %c0_i32_0 = arith.constant 0 : i32
    %c0_i32_1 = arith.constant 0 : i32
    return %c0_i32, %c0_i32_0 : i32, i32
  }
  func.func @transform_3(%arg0: i32) -> (i32, i32, i32, i32) {
    %c0_i32 = arith.constant 0 : i32
    %c0_i32_0 = arith.constant 0 : i32
    %c0_i32_1 = arith.constant 0 : i32
    %c0_i32_2 = arith.constant 0 : i32
    return %arg0, %c0_i32, %c0_i32_0, %c0_i32_1 : i32, i32, i32, i32
  }
}

module attributes {stable_mosaic.version = 11 : i64} {
  func.func @_conv2x2_s2d_kernel(%arg0: i32, %arg1: memref<1x3x3x1024xbf16, #tpu.memory_space<vmem>>, %arg2: memref<2x2x1024x128xbf16, #tpu.memory_space<vmem>>, %arg3: memref<1x128xf32, #tpu.memory_space<vmem>>, %arg4: memref<1x2x2x128xf32, #tpu.memory_space<vmem>>) attributes {dimension_semantics = [#tpu.dimension_semantics<parallel>], iteration_bounds = array<i64: 2>, scalar_prefetch = 0 : i64, scratch_operands = 0 : i64, tpu.core_type = #tpu.core_type<tc>, window_params = [{transform_indices = @transform_0, window_bounds = array<i64: 1, 3, 3, 1024>}, {pipeline_mode = #tpu.pipeline_mode<synchronous>, transform_indices = @transform_1, window_bounds = array<i64: 2, 2, 1024, 128>}, {pipeline_mode = #tpu.pipeline_mode<synchronous>, transform_indices = @transform_2, window_bounds = array<i64: 1, 128>}, {transform_indices = @transform_3, window_bounds = array<i64: 1, 2, 2, 128>}]} {
    %cst = arith.constant 0.000000e+00 : f32
    %0 = vector.broadcast %cst : f32 to vector<4x128xf32>
    %c0 = arith.constant 0 : index
    %c0_0 = arith.constant 0 : index
    %c0_1 = arith.constant 0 : index
    %c0_2 = arith.constant 0 : index
    %1 = vector.load %arg1[%c0, %c0_0, %c0_1, %c0_2] : memref<1x3x3x1024xbf16, #tpu.memory_space<vmem>>, vector<1x2x2x1024xbf16>
    %2 = vector.shape_cast %1 : vector<1x2x2x1024xbf16> to vector<2x2x1024xbf16>
    %3 = vector.shape_cast %2 : vector<2x2x1024xbf16> to vector<4x1024xbf16>
    %c0_3 = arith.constant 0 : index
    %c0_4 = arith.constant 0 : index
    %c0_5 = arith.constant 0 : index
    %c0_6 = arith.constant 0 : index
    %4 = vector.load %arg2[%c0_3, %c0_4, %c0_5, %c0_6] : memref<2x2x1024x128xbf16, #tpu.memory_space<vmem>>, vector<1x1x1024x128xbf16>
    %5 = vector.shape_cast %4 : vector<1x1x1024x128xbf16> to vector<1024x128xbf16>
    %cst_7 = arith.constant dense<0.000000e+00> : vector<4x128xf32>
    %6 = tpu.matmul %3, %5, %cst_7 {dimension_numbers = #tpu.dot_dimension_numbers<[1], [0], [0], [1], [0, 0, 1, 1], [], []>} : vector<4x1024xbf16>, vector<1024x128xbf16>, vector<4x128xf32> -> vector<4x128xf32>
    %7 = arith.addf %0, %6 : vector<4x128xf32>
    %c0_8 = arith.constant 0 : index
    %c0_9 = arith.constant 0 : index
    %c1 = arith.constant 1 : index
    %c0_10 = arith.constant 0 : index
    %8 = vector.load %arg1[%c0_8, %c0_9, %c1, %c0_10] : memref<1x3x3x1024xbf16, #tpu.memory_space<vmem>>, vector<1x2x2x1024xbf16>
    %9 = vector.shape_cast %8 : vector<1x2x2x1024xbf16> to vector<2x2x1024xbf16>
    %10 = vector.shape_cast %9 : vector<2x2x1024xbf16> to vector<4x1024xbf16>
    %c0_11 = arith.constant 0 : index
    %c1_12 = arith.constant 1 : index
    %c0_13 = arith.constant 0 : index
    %c0_14 = arith.constant 0 : index
    %11 = vector.load %arg2[%c0_11, %c1_12, %c0_13, %c0_14] : memref<2x2x1024x128xbf16, #tpu.memory_space<vmem>>, vector<1x1x1024x128xbf16>
    %12 = vector.shape_cast %11 : vector<1x1x1024x128xbf16> to vector<1024x128xbf16>
    %cst_15 = arith.constant dense<0.000000e+00> : vector<4x128xf32>
    %13 = tpu.matmul %10, %12, %cst_15 {dimension_numbers = #tpu.dot_dimension_numbers<[1], [0], [0], [1], [0, 0, 1, 1], [], []>} : vector<4x1024xbf16>, vector<1024x128xbf16>, vector<4x128xf32> -> vector<4x128xf32>
    %14 = arith.addf %7, %13 : vector<4x128xf32>
    %c0_16 = arith.constant 0 : index
    %c1_17 = arith.constant 1 : index
    %c0_18 = arith.constant 0 : index
    %c0_19 = arith.constant 0 : index
    %15 = vector.load %arg1[%c0_16, %c1_17, %c0_18, %c0_19] : memref<1x3x3x1024xbf16, #tpu.memory_space<vmem>>, vector<1x2x2x1024xbf16>
    %16 = vector.shape_cast %15 : vector<1x2x2x1024xbf16> to vector<2x2x1024xbf16>
    %17 = vector.shape_cast %16 : vector<2x2x1024xbf16> to vector<4x1024xbf16>
    %c1_20 = arith.constant 1 : index
    %c0_21 = arith.constant 0 : index
    %c0_22 = arith.constant 0 : index
    %c0_23 = arith.constant 0 : index
    %18 = vector.load %arg2[%c1_20, %c0_21, %c0_22, %c0_23] : memref<2x2x1024x128xbf16, #tpu.memory_space<vmem>>, vector<1x1x1024x128xbf16>
    %19 = vector.shape_cast %18 : vector<1x1x1024x128xbf16> to vector<1024x128xbf16>
    %cst_24 = arith.constant dense<0.000000e+00> : vector<4x128xf32>
    %20 = tpu.matmul %17, %19, %cst_24 {dimension_numbers = #tpu.dot_dimension_numbers<[1], [0], [0], [1], [0, 0, 1, 1], [], []>} : vector<4x1024xbf16>, vector<1024x128xbf16>, vector<4x128xf32> -> vector<4x128xf32>
    %21 = arith.addf %14, %20 : vector<4x128xf32>
    %c0_25 = arith.constant 0 : index
    %c1_26 = arith.constant 1 : index
    %c1_27 = arith.constant 1 : index
    %c0_28 = arith.constant 0 : index
    %22 = vector.load %arg1[%c0_25, %c1_26, %c1_27, %c0_28] : memref<1x3x3x1024xbf16, #tpu.memory_space<vmem>>, vector<1x2x2x1024xbf16>
    %23 = vector.shape_cast %22 : vector<1x2x2x1024xbf16> to vector<2x2x1024xbf16>
    %24 = vector.shape_cast %23 : vector<2x2x1024xbf16> to vector<4x1024xbf16>
    %c1_29 = arith.constant 1 : index
    %c1_30 = arith.constant 1 : index
    %c0_31 = arith.constant 0 : index
    %c0_32 = arith.constant 0 : index
    %25 = vector.load %arg2[%c1_29, %c1_30, %c0_31, %c0_32] : memref<2x2x1024x128xbf16, #tpu.memory_space<vmem>>, vector<1x1x1024x128xbf16>
    %26 = vector.shape_cast %25 : vector<1x1x1024x128xbf16> to vector<1024x128xbf16>
    %cst_33 = arith.constant dense<0.000000e+00> : vector<4x128xf32>
    %27 = tpu.matmul %24, %26, %cst_33 {dimension_numbers = #tpu.dot_dimension_numbers<[1], [0], [0], [1], [0, 0, 1, 1], [], []>} : vector<4x1024xbf16>, vector<1024x128xbf16>, vector<4x128xf32> -> vector<4x128xf32>
    %28 = arith.addf %21, %27 : vector<4x128xf32>
    %c0_34 = arith.constant 0 : index
    %c0_35 = arith.constant 0 : index
    %29 = vector.load %arg3[%c0_34, %c0_35] : memref<1x128xf32, #tpu.memory_space<vmem>>, vector<1x128xf32>
    %30 = vector.broadcast %29 : vector<1x128xf32> to vector<4x128xf32>
    %31 = arith.addf %28, %30 : vector<4x128xf32>
    %32 = vector.shape_cast %31 : vector<4x128xf32> to vector<1x2x2x128xf32>
    %c0_36 = arith.constant 0 : index
    %c0_37 = arith.constant 0 : index
    %c0_38 = arith.constant 0 : index
    %c0_39 = arith.constant 0 : index
    %33 = vector.load %arg4[%c0_36, %c0_37, %c0_38, %c0_39] : memref<1x2x2x128xf32, #tpu.memory_space<vmem>>, vector<1x2x2x128xf32>
    tpu.vector_store %arg4[%c0_36, %c0_37, %c0_38, %c0_39], %32 {strides = array<i32>} : memref<1x2x2x128xf32, #tpu.memory_space<vmem>>, vector<1x2x2x128xf32>,
    return
  }
  func.func @transform_0(%arg0: i32) -> (i32, i32, i32, i32) {
    %c0_i32 = arith.constant 0 : i32
    %c0_i32_0 = arith.constant 0 : i32
    %c0_i32_1 = arith.constant 0 : i32
    %c0_i32_2 = arith.constant 0 : i32
    return %arg0, %c0_i32, %c0_i32_0, %c0_i32_1 : i32, i32, i32, i32
  }
  func.func @transform_1(%arg0: i32) -> (i32, i32, i32, i32) {
    %c0_i32 = arith.constant 0 : i32
    %c0_i32_0 = arith.constant 0 : i32
    %c0_i32_1 = arith.constant 0 : i32
    %c0_i32_2 = arith.constant 0 : i32
    %c0_i32_3 = arith.constant 0 : i32
    return %c0_i32, %c0_i32_0, %c0_i32_1, %c0_i32_2 : i32, i32, i32, i32
  }
  func.func @transform_2(%arg0: i32) -> (i32, i32) {
    %c0_i32 = arith.constant 0 : i32
    %c0_i32_0 = arith.constant 0 : i32
    %c0_i32_1 = arith.constant 0 : i32
    return %c0_i32, %c0_i32_0 : i32, i32
  }
  func.func @transform_3(%arg0: i32) -> (i32, i32, i32, i32) {
    %c0_i32 = arith.constant 0 : i32
    %c0_i32_0 = arith.constant 0 : i32
    %c0_i32_1 = arith.constant 0 : i32
    %c0_i32_2 = arith.constant 0 : i32
    return %arg0, %c0_i32, %c0_i32_0, %c0_i32_1 : i32, i32, i32, i32
  }
}

</mosaic_0001>

<bundles_post_ra>
// kernel: fc_discriminator_forward.5
= control target key start
LH: loop header
LB: loop body
LE: loop exit
PB: predicated region body
PF: predicated region fallthrough
CT: control target
= control target key end

     0   :  { %s11448_s12 = smov 0   ;;  %s13490_s0 = inlined_call_operand.vmem [shape: bf16[2,33,33,16], index: 0, kind: input, shape index: {}]   ;;  %s13491_s1 = inlined_call_operand.vmem [shape: bf16[2,2,16,32], index: 1, kind: input, shape index: {}]   ;;  %s13492_s2 = inlined_call_operand.vmem [shape: f32[1,32], index: 2, kind: input, shape index: {}]   ;;  %s13493_s3 = inlined_call_operand.vmem [shape: bf16[2,32,32,32], index: 3, kind: output, shape index: {}]  }
   0x1 LB: > { %s8919_s13 = sadd.s32 4294967295, %s11426_s12   ;;  %p8923_p0 = scmp.ge.s32.totalorder %s11426_s12, 1  ;;  %s11426_s12 = sphi %s11448_s12, %s13_s12  }
   0x2   : > { %p137_p1 = scmp.lt.s32.totalorder %s11426_s12, 3 }
   0x4   : > { %p138_p2 = pnand %p8923_p0, %p137_p1 }
   0x5   : > { %v11170_v0 = vld [vmem:[%s13491_s1 + $0x10] sm:$0xff] (!%p138_p2)   ;;  %p161_p3 = scmp.lt.s32.totalorder (!%p138_p2), %s8919_s13, 1  ;;  %v11173_v1 = vld [vmem:[%s13491_s1 + $0x8] sm:$0xff] (!%p138_p2)   ;;  %v11467_v2 = vld [vmem:[%s13491_s1] sm:$0xff] (!%p138_p2)   ;;  %vm1946_vm0 = vcmask (!%p138_p2), 130048   ;;  %vm8735_vm4 = vcmask (!%p138_p2), 257024  }
   0x6   : > { %141 = sbr.rel (%p138_p2) target bundleno = 802 (0x322), region = 32  ;;  %10517 = vmatprep.subr.bf16.mxu0 (!%p138_p2), %v11170_v0  ;;  %10257 = vmatprep.subr.bf16.mxu1 (!%p138_p2), %v11173_v1  ;;  %v11178_v3 = vld [vmem:[%s13491_s1 + $0x18] sm:$0xff] (!%p138_p2)   ;;  %vm334_vm1 = vsmask.f32 (!%p138_p2), 3328  ;;  %vm335_vm2 = vsmask.f32 (!%p138_p2), 7440 }
   0x7   : > { %10518 = vmatpush3.bf16.msra.mxu0 (!%p138_p2), %v11170_v0  ;;  %10258 = vmatpush3.bf16.msra.mxu1 (!%p138_p2), %v11173_v1  ;;  %vm11504_vm3 = vmor (!%p138_p2), %vm334_vm1, %vm335_vm2 }
   0x8   : > { %10387 = vmatprep.subr.bf16.mxu1 (!%p138_p2), %v11467_v2  ;;  %10647 = vmatprep.subr.bf16.mxu0 (!%p138_p2), %v11178_v3 }
   0xd   : > { %s13497_s13 = smov (!%p161_p3, %s8919_s13), 1 }
   0xe   : > { %s11161_s20 = smul.u32 660, %s13497_s13  ;;  %s9868_s28 = sshll.u32 %s13497_s13, 9 }
   0xf   : > { %s12720_s4 = scalar_lea.vmem %s13493_s3, %s9868_s28 }
  0x10   : > { %s11477_s25 = scalar_lea.vmem %s13490_s0, %s11161_s20 }
  0x11   : > { %v11171_v4 = vld [vmem:[%s11477_s25 + $0x14] sm:$0xff]   ;;  %v11172_v5 = vld [vmem:[%s11477_s25 + $0x1c] sm:$0xff]   ;;  %v11174_v6 = vld [vmem:[%s11477_s25 + $0x28] sm:$0xff]  }
  0x12   : > { %10519 = vmatprep.mubr.msk.bf16.mxu0 %vm1946_vm0, %v11171_v4  ;;  %v172_v7 = vld [vmem:[%s11477_s25] sm:$0xf]  ;;  %v173_v8 = vld [vmem:[%s11477_s25 + $0x4] sm:$0xf]  ;;  %v11487_v9 = vld [vmem:[%s11477_s25 + $0x8] sm:$0xf] }
  0x13   : > { %10520 = vmatmul.mubr.msk.bf16.vlgmr.msra.gmra.mrb[0].mxu0 %vm1946_vm0, %v11172_v5  ;;  %v11491_v10 = vld [vmem:[%s11477_s25 + $0xc] sm:$0xf]  ;;  %v338_v11 = vshrl.u32 %v172_v7, 16  ;;  %v341_v12 = vshll.u32 %v172_v7, 16  ;;  %v347_v13 = vshll.u32 %v173_v8, 16  ;;  %v351_v14 = vshrl.u32 %v173_v8, 16 }
  0x14   : > { %10523 = vmatprep.mubr.msk.bf16.mxu0 %vm1946_vm0, %v11174_v6  ;;  %10648 = vmatpush3.bf16.msra.mxu0 %v11178_v3  ;;  %v357_v15 = vshll.u32 %v11487_v9, 16  ;;  %v361_v16 = vshrl.u32 %v11487_v9, 16  ;;  %v9059_v17 = vcombine.low %v11487_v9, %v11491_v10  ;;  %v11177_v22 = vld [vmem:[%s11477_s25 + $0x30] sm:$0xff]   ;;  %v367_v26 = vshll.u32 %v11491_v10, 16  ;;  %v11179_v31 = vld [vmem:[%s11477_s25 + $0x3c] sm:$0xff]   ;;  %v11180_v63 = vld [vmem:[%s11477_s25 + $0x44] sm:$0xff]  }
  0x15   : > { %v340_v18 = vrot.slane %v338_v11, 4  ;;  %v343_v19 = vrot.slane %v341_v12, 5  ;;  %v349_v20 = vrot.slane %v347_v13, 5  ;;  %v353_v21 = vrot.slane %v351_v14, 4  ;;  %v302_v25 = vld [vmem:[%s11477_s25 + $0x10] sm:$0x1] }
  0x16   : > { %v359_v23 = vrot.slane %v357_v15, 5  ;;  %v363_v24 = vrot.slane %v361_v16, 4  ;;  %v371_v27 = vshrl.u32 %v11491_v10, 16  ;;  %v377_v30 = vshll.u32 %v302_v25, 16  ;;  %v176_v36 = vld [vmem:[%s11477_s25 + $0x14] sm:$0xf] }
  0x17   : > { %v344_v28 = vor.u32 %v343_v19, %v340_v18  ;;  %v354_v29 = vor.u32 %v353_v21, %v349_v20  ;;  %v369_v34 = vrot.slane %v367_v26, 5  ;;  %v177_v37 = vld [vmem:[%s11477_s25 + $0x18] sm:$0xf]  ;;  %v178_v41 = vld [vmem:[%s11477_s25 + $0x1c] sm:$0xf]  ;;  %v382_v42 = vshrl.u32 %v176_v36, 16 }
  0x18   : > { %v364_v33 = vor.u32 %v363_v24, %v359_v23  ;;  %v373_v35 = vrot.slane %v371_v27, 4  ;;  %v379_v40 = vrot.slane %v377_v30, 5  ;;  %v385_v45 = vshll.u32 %v176_v36, 16  ;;  %v179_v51 = vld [vmem:[%s11477_s25 + $0x20] sm:$0xf]  ;;  %v11181_v3 = vld [vmem:[%s11477_s25 + $0x50] sm:$0xff]  }
  0x19   : > { %v345_v38 = vrot.slane %v344_v28, 4  ;;  %v355_v39 = vrot.slane %v354_v29, 4  ;;  %v391_v46 = vshll.u32 %v177_v37, 16  ;;  %v384_v49 = vrot.slane %v382_v42, 4  ;;  %v303_v56 = vld [vmem:[%s11477_s25 + $0x24] sm:$0x1] }
  0x1a   : > { %v365_v43 = vrot.slane %v364_v33, 4  ;;  %v374_v44 = vor.u32 %v373_v35, %v369_v34  ;;  %v395_v50 = vshrl.u32 %v177_v37, 16  ;;  %v387_v55 = vrot.slane %v385_v45, 5  ;;  %v180_v4 = vld [vmem:[%s11477_s25 + $0x28] sm:$0xf] }
  0x1b   : > { %10524 = vmatmul.mubr.msk.bf16.gmra.mrb[4].mxu0 %vm1946_vm0, %v11177_v22  ;;  %v350_v47 = vsel %vm11504_vm3, %v345_v38, %v349_v20  ;;  %v360_v48 = vsel %vm11504_vm3, %v355_v39, %v359_v23  ;;  %v393_v57 = vrot.slane %v391_v46, 5  ;;  %v401_v59 = vshll.u32 %v178_v41, 16  ;;  %v181_v11 = vld [vmem:[%s11477_s25 + $0x2c] sm:$0xf]  ;;  %v182_v19 = vld [vmem:[%s11477_s25 + $0x30] sm:$0xf] }
  0x1c   : > { %10527 = vmatprep.mubr.msk.bf16.mxu0 %vm1946_vm0, %v11179_v31  ;;  %v8929_v52 = vcombine.low %v350_v47, %v360_v48  ;;  %v370_v53 = vsel %vm11504_vm3, %v365_v43, %v369_v34  ;;  %v375_v54 = vrot.slane %v374_v44, 4  ;;  %v397_v58 = vrot.slane %v395_v50, 4  ;;  %v183_v26 = vld [vmem:[%s11477_s25 + $0x34] sm:$0xf]  ;;  %v304_v35 = vld [vmem:[%s11477_s25 + $0x38] sm:$0x1] }
  0x1d   : > { %v405_v60 = vshrl.u32 %v178_v41, 16  ;;  %v388_v62 = vor.u32 %v387_v55, %v384_v49  ;;  %v411_v0 = vshll.u32 %v179_v51, 16  ;;  %v415_v1 = vshrl.u32 %v179_v51, 16  ;;  %v185_v41 = vld [vmem:[%s11477_s25 + $0x40] sm:$0xf]  ;;  %v11182_v44 = vld [vmem:[%s11477_s25 + $0x58] sm:$0xff]  }
  0x1e   : > { %10259 = vmatprep.mubr.msk.bf16.mxu1 %vm1946_vm0, %v8929_v52  ;;  %v380_v61 = vsel %vm11504_vm3, %v375_v54, %v379_v40  ;;  %v398_v6 = vor.u32 %v397_v58, %v393_v57  ;;  %v403_v7 = vrot.slane %v401_v59, 5  ;;  %v421_v15 = vshll.u32 %v303_v56, 16  ;;  %v184_v40 = vld [vmem:[%s11477_s25 + $0x3c] sm:$0xf]  ;;  %v11183_v51 = vld [vmem:[%s11477_s25 + $0x64] sm:$0xff]  }
  0x1f   : > { %v8930_v5 = vcombine.low %v370_v53, %v380_v61  ;;  %v407_v8 = vrot.slane %v405_v60, 4  ;;  %v389_v12 = vrot.slane %v388_v62, 4  ;;  %v413_v13 = vrot.slane %v411_v0, 5  ;;  %v186_v58 = vld [vmem:[%s11477_s25 + $0x44] sm:$0xf] }
  0x20   : > { %v417_v14 = vrot.slane %v415_v1, 4  ;;  %v399_v16 = vrot.slane %v398_v6, 4  ;;  %v426_v20 = vshrl.u32 %v180_v4, 16  ;;  %v429_v21 = vshll.u32 %v180_v4, 16  ;;  %v187_v6 = vld [vmem:[%s11477_s25 + $0x48] sm:$0xf] }
  0x21   : > { %10260 = vmatmul.mubr.msk.bf16.vlgmr.msra.gmra.mrb[0].mxu1 %vm1946_vm0, %v8930_v5  ;;  %v408_v18 = vor.u32 %v407_v8, %v403_v7  ;;  %v394_v22 = vsel %vm11504_vm3, %v389_v12, %v393_v57  ;;  %v423_v24 = vrot.slane %v421_v15, 5  ;;  %v435_v25 = vshll.u32 %v181_v11, 16 }
  0x22   : > { %10388 = vmatpush3.bf16.msra.mxu1 %v11467_v2  ;;  %v418_v23 = vor.u32 %v417_v14, %v413_v13  ;;  %v404_v27 = vsel %vm11504_vm3, %v399_v16, %v403_v7  ;;  %v428_v29 = vrot.slane %v426_v20, 4  ;;  %v431_v2 = vrot.slane %v429_v21, 5  ;;  %v188_v20 = vld [vmem:[%s11477_s25 + $0x50] sm:$0xf] }
  0x23   : > { %10528 = vmatmul.mubr.msk.bf16.gmra.mrb[8].mxu0 %vm1946_vm0, %v11180_v63  ;;  %v409_v28 = vrot.slane %v408_v18, 4  ;;  %v8931_v30 = vcombine.low %v394_v22, %v404_v27  ;;  %v437_v33 = vrot.slane %v435_v25, 5  ;;  %v439_v34 = vshrl.u32 %v181_v11, 16  ;;  %v11185_v25 = vld [vmem:[%s11477_s25 + $0x78] sm:$0xff]  }
  0x24   : > { %10531 = vmatprep.mubr.msk.bf16.mxu0 %vm1946_vm0, %v11181_v3  ;;  %v419_v31 = vrot.slane %v418_v23, 4  ;;  %v432_v37 = vor.u32 %v431_v2, %v428_v29  ;;  %v445_v38 = vshll.u32 %v182_v19, 16  ;;  %v449_v39 = vshrl.u32 %v182_v19, 16  ;;  %v11184_v19 = vld [vmem:[%s11477_s25 + $0x6c] sm:$0xff]   ;;  %v189_v2 = vld [vmem:[%s11477_s25 + $0x54] sm:$0xf] }
  0x25   : > { %v414_v36 = vsel %vm11504_vm3, %v409_v28, %v413_v13  ;;  %10263 = vmatprep.mubr.msk.bf16.mxu1 %vm1946_vm0, %v8931_v30  ;;  %v441_v43 = vrot.slane %v439_v34, 4  ;;  %v455_v45 = vshll.u32 %v183_v26, 16  ;;  %v459_v46 = vshrl.u32 %v183_v26, 16  ;;  %v305_v13 = vld [vmem:[%s11477_s25 + $0x4c] sm:$0x1] }
  0x26   : > { %v424_v42 = vsel %vm11504_vm3, %v419_v31, %v423_v24  ;;  %v433_v48 = vrot.slane %v432_v37, 4  ;;  %v447_v49 = vrot.slane %v445_v38, 5  ;;  %v451_v50 = vrot.slane %v449_v39, 4  ;;  %v190_v30 = vld [vmem:[%s11477_s25 + $0x58] sm:$0xf] }
  0x27   : > { %v8932_v47 = vcombine.low %v414_v36, %v424_v42  ;;  %v442_v52 = vor.u32 %v441_v43, %v437_v33  ;;  %v457_v53 = vrot.slane %v455_v45, 5  ;;  %v461_v54 = vrot.slane %v459_v46, 4 }
  0x28   : > { %v465_v55 = vshll.u32 %v304_v35, 16  ;;  %v438_v56 = vsel %vm11504_vm3, %v433_v48, %v437_v33  ;;  %v452_v57 = vor.u32 %v451_v50, %v447_v49  ;;  %v470_v59 = vshrl.u32 %v184_v40, 16  ;;  %v191_v48 = vld [vmem:[%s11477_s25 + $0x5c] sm:$0xf] }
  0x29   : > { %10264 = vmatmul.mubr.msk.bf16.gmra.mrb[4].mxu1 %vm1946_vm0, %v8932_v47  ;;  %v473_v60 = vshll.u32 %v184_v40, 16  ;;  %v443_v61 = vrot.slane %v442_v52, 4  ;;  %v462_v62 = vor.u32 %v461_v54, %v457_v53  ;;  %v479_v0 = vshll.u32 %v185_v41, 16 }
  0x2a   : > { %v467_v63 = vrot.slane %v465_v55, 5  ;;  %v453_v1 = vrot.slane %v452_v57, 4  ;;  %v472_v3 = vrot.slane %v470_v59, 4  ;;  %v483_v5 = vshrl.u32 %v185_v41, 16  ;;  %v11186_v57 = vld [vmem:[%s11477_s25 + $0x80] sm:$0xff]  }
  0x2b   : > { %10532 = vmatmul.mubr.msk.bf16.gmra.mrb[12].mxu0 %vm1946_vm0, %v11182_v44  ;;  %v475_v4 = vrot.slane %v473_v60, 5  ;;  %v448_v7 = vsel %vm11504_vm3, %v443_v61, %v447_v49  ;;  %v463_v8 = vrot.slane %v462_v62, 4  ;;  %v481_v11 = vrot.slane %v479_v0, 5  ;;  %v306_v49 = vld [vmem:[%s11477_s25 + $0x60] sm:$0x1] }
  0x2c   : > { %10535 = vmatprep.mubr.msk.bf16.mxu0 %vm1946_vm0, %v11183_v51  ;;  %v489_v12 = vshll.u32 %v186_v58, 16  ;;  %v8933_v14 = vcombine.low %v438_v56, %v448_v7  ;;  %v458_v15 = vsel %vm11504_vm3, %v453_v1, %v457_v53  ;;  %v485_v18 = vrot.slane %v483_v5, 4  ;;  %v192_v0 = vld [vmem:[%s11477_s25 + $0x64] sm:$0xf] }
  0x2d   : > { %v476_v16 = vor.u32 %v475_v4, %v472_v3  ;;  %v468_v21 = vsel %vm11504_vm3, %v463_v8, %v467_v63  ;;  %v493_v23 = vshrl.u32 %v186_v58, 16  ;;  %v499_v24 = vshll.u32 %v187_v6, 16  ;;  %v11187_v63 = vld [vmem:[%s11477_s25 + $0x8c] sm:$0xff]  }
  0x2e   : > { %v491_v22 = vrot.slane %v489_v12, 5  ;;  %10267 = vmatprep.mubr.msk.bf16.mxu1 %vm1946_vm0, %v8933_v14  ;;  %v8934_v26 = vcombine.low %v458_v15, %v468_v21  ;;  %v486_v28 = vor.u32 %v485_v18, %v481_v11  ;;  %v503_v29 = vshrl.u32 %v187_v6, 16  ;;  %v193_v6 = vld [vmem:[%s11477_s25 + $0x68] sm:$0xf] }
  0x2f   : > { %v477_v27 = vrot.slane %v476_v16, 4  ;;  %v495_v31 = vrot.slane %v493_v23, 4  ;;  %v501_v33 = vrot.slane %v499_v24, 5  ;;  %v509_v34 = vshll.u32 %v305_v13, 16  ;;  %v194_v16 = vld [vmem:[%s11477_s25 + $0x6c] sm:$0xf] }
  0x30   : > { %v514_v35 = vshrl.u32 %v188_v20, 16  ;;  %v487_v37 = vrot.slane %v486_v28, 4  ;;  %v505_v38 = vrot.slane %v503_v29, 4  ;;  %v517_v39 = vshll.u32 %v188_v20, 16  ;;  %v195_v23 = vld [vmem:[%s11477_s25 + $0x70] sm:$0xf] }
  0x31   : > { %10268 = vmatmul.mubr.msk.bf16.gmra.mrb[8].mxu1 %vm1946_vm0, %v8934_v26  ;;  %v482_v36 = vsel %vm11504_vm3, %v477_v27, %v481_v11  ;;  %v496_v40 = vor.u32 %v495_v31, %v491_v22  ;;  %v511_v41 = vrot.slane %v509_v34, 5  ;;  %v523_v43 = vshll.u32 %v189_v2, 16  ;;  %v11188_v31 = vld [vmem:[%s11477_s25 + $0x94] sm:$0xff]  }
  0x32   : > { %v516_v42 = vrot.slane %v514_v35, 4  ;;  %v492_v44 = vsel %vm11504_vm3, %v487_v37, %v491_v22  ;;  %v506_v45 = vor.u32 %v505_v38, %v501_v33  ;;  %v519_v46 = vrot.slane %v517_v39, 5  ;;  %v11189_v38 = vld [vmem:[%s11477_s25 + $0xa0] sm:$0xff]  }
  0x33   : > { %10536 = vmatmul.mubr.msk.bf16.gmra.mrb[16].mxu0 %vm1946_vm0, %v11184_v19  ;;  %v527_v47 = vshrl.u32 %v189_v2, 16  ;;  %v8935_v50 = vcombine.low %v482_v36, %v492_v44  ;;  %v497_v51 = vrot.slane %v496_v40, 4  ;;  %v525_v52 = vrot.slane %v523_v43, 5  ;;  %v307_v36 = vld [vmem:[%s11477_s25 + $0x74] sm:$0x1] }
  0x34   : > { %10539 = vmatprep.mubr.msk.bf16.mxu0 %vm1946_vm0, %v11185_v25  ;;  %v533_v53 = vshll.u32 %v190_v30, 16  ;;  %v507_v54 = vrot.slane %v506_v45, 4  ;;  %v520_v55 = vor.u32 %v519_v46, %v516_v42  ;;  %v537_v58 = vshrl.u32 %v190_v30, 16  ;;  %v196_v43 = vld [vmem:[%s11477_s25 + $0x78] sm:$0xf] }
  0x35   : > { %v529_v56 = vrot.slane %v527_v47, 4  ;;  %10271 = vmatprep.mubr.msk.bf16.mxu1 %vm1946_vm0, %v8935_v50  ;;  %v502_v59 = vsel %vm11504_vm3, %v497_v51, %v501_v33  ;;  %v543_v61 = vshll.u32 %v191_v48, 16  ;;  %v547_v62 = vshrl.u32 %v191_v48, 16  ;;  %v197_v48 = vld [vmem:[%s11477_s25 + $0x7c] sm:$0xf] }
  0x36   : > { %v535_v60 = vrot.slane %v533_v53, 5  ;;  %v512_v1 = vsel %vm11504_vm3, %v507_v54, %v511_v41  ;;  %v521_v3 = vrot.slane %v520_v55, 4  ;;  %v539_v5 = vrot.slane %v537_v58, 4  ;;  %v198_v55 = vld [vmem:[%s11477_s25 + $0x80] sm:$0xf] }
  0x37   : > { %v530_v4 = vor.u32 %v529_v56, %v525_v52  ;;  %v8936_v7 = vcombine.low %v502_v59, %v512_v1  ;;  %v545_v8 = vrot.slane %v543_v61, 5  ;;  %v549_v11 = vrot.slane %v547_v62, 4 }
  0x38   : > { %v553_v12 = vshll.u32 %v306_v49, 16  ;;  %v526_v13 = vsel %vm11504_vm3, %v521_v3, %v525_v52  ;;  %v540_v15 = vor.u32 %v539_v5, %v535_v60  ;;  %v558_v18 = vshrl.u32 %v192_v0, 16  ;;  %v199_v3 = vld [vmem:[%s11477_s25 + $0x84] sm:$0xf] }
  0x39   : > { %v531_v14 = vrot.slane %v530_v4, 4  ;;  %10272 = vmatmul.mubr.msk.bf16.gmra.mrb[12].mxu1 %vm1946_vm0, %v8936_v7  ;;  %v550_v19 = vor.u32 %v549_v11, %v545_v8  ;;  %v561_v21 = vshll.u32 %v192_v0, 16  ;;  %v567_v22 = vshll.u32 %v193_v6, 16 }
  0x3a   : > { %v555_v20 = vrot.slane %v553_v12, 5  ;;  %v541_v25 = vrot.slane %v540_v15, 4  ;;  %v560_v26 = vrot.slane %v558_v18, 4  ;;  %v571_v27 = vshrl.u32 %v193_v6, 16  ;;  %v11190_v18 = vld [vmem:[%s11477_s25 + $0xa8] sm:$0xff]  }
  0x3b   : > { %10540 = vmatmul.mubr.msk.bf16.gmra.mrb[20].mxu0 %vm1946_vm0, %v11186_v57  ;;  %v536_v24 = vsel %vm11504_vm3, %v531_v14, %v535_v60  ;;  %v551_v29 = vrot.slane %v550_v19, 4  ;;  %v563_v2 = vrot.slane %v561_v21, 5  ;;  %v569_v30 = vrot.slane %v567_v22, 5  ;;  %v200_v21 = vld [vmem:[%s11477_s25 + $0x8c] sm:$0xf] }
  0x3c   : > { %10543 = vmatprep.mubr.msk.bf16.mxu0 %vm1946_vm0, %v11187_v63  ;;  %v8937_v28 = vcombine.low %v526_v13, %v536_v24  ;;  %v546_v33 = vsel %vm11504_vm3, %v541_v25, %v545_v8  ;;  %v573_v34 = vrot.slane %v571_v27, 4  ;;  %v577_v35 = vshll.u32 %v194_v16, 16  ;;  %v308_v8 = vld [vmem:[%s11477_s25 + $0x88] sm:$0x1]  ;;  %v201_v27 = vld [vmem:[%s11477_s25 + $0x90] sm:$0xf] }
  0x3d   : > { %v581_v37 = vshrl.u32 %v194_v16, 16  ;;  %v556_v39 = vsel %vm11504_vm3, %v551_v29, %v555_v20  ;;  %v564_v40 = vor.u32 %v563_v2, %v560_v26  ;;  %v587_v41 = vshll.u32 %v195_v23, 16  ;;  %v11191_v26 = vld [vmem:[%s11477_s25 + $0xb4] sm:$0xff]  }
  0x3e   : > { %10275 = vmatprep.mubr.msk.bf16.mxu1 %vm1946_vm0, %v8937_v28  ;;  %v591_v42 = vshrl.u32 %v195_v23, 16  ;;  %v8938_v44 = vcombine.low %v546_v33, %v556_v39  ;;  %v574_v45 = vor.u32 %v573_v34, %v569_v30  ;;  %v579_v46 = vrot.slane %v577_v35, 5 }
  0x3f   : > { %v583_v47 = vrot.slane %v581_v37, 4  ;;  %v565_v49 = vrot.slane %v564_v40, 4  ;;  %v589_v50 = vrot.slane %v587_v41, 5  ;;  %v597_v52 = vshll.u32 %v307_v36, 16  ;;  %v203_v41 = vld [vmem:[%s11477_s25 + $0x98] sm:$0xf] }
  0x40   : > { %v593_v51 = vrot.slane %v591_v42, 4  ;;  %v575_v53 = vrot.slane %v574_v45, 4  ;;  %v602_v56 = vshrl.u32 %v196_v43, 16  ;;  %v605_v57 = vshll.u32 %v196_v43, 16 }
  0x41   : > { %v584_v54 = vor.u32 %v583_v47, %v579_v46  ;;  %10276 = vmatmul.mubr.msk.bf16.gmra.mrb[16].mxu1 %vm1946_vm0, %v8938_v44  ;;  %v570_v58 = vsel %vm11504_vm3, %v565_v49, %v569_v30  ;;  %v599_v60 = vrot.slane %v597_v52, 5  ;;  %v611_v61 = vshll.u32 %v197_v48, 16 }
  0x42   : > { %v594_v59 = vor.u32 %v593_v51, %v589_v50  ;;  %v580_v62 = vsel %vm11504_vm3, %v575_v53, %v579_v46  ;;  %v604_v0 = vrot.slane %v602_v56, 4  ;;  %v607_v1 = vrot.slane %v605_v57, 5  ;;  %v309_v46 = vld [vmem:[%s11477_s25 + $0x9c] sm:$0x1] }
  0x43   : > { %10544 = vmatmul.mubr.msk.bf16.gmra.mrb[24].mxu0 %vm1946_vm0, %v11188_v31  ;;  %v585_v63 = vrot.slane %v584_v54, 4  ;;  %v8939_v4 = vcombine.low %v570_v58, %v580_v62  ;;  %v613_v6 = vrot.slane %v611_v61, 5  ;;  %v615_v7 = vshrl.u32 %v197_v48, 16  ;;  %v202_v31 = vld [vmem:[%s11477_s25 + $0x94] sm:$0xf]  ;;  %v11192_v58 = vld [vmem:[%s11477_s25 + $0xbc] sm:$0xff]  }
  0x44   : > { %10547 = vmatprep.mubr.msk.bf16.mxu0 %vm1946_vm0, %v11189_v38  ;;  %v595_v5 = vrot.slane %v594_v59, 4  ;;  %v608_v12 = vor.u32 %v607_v1, %v604_v0  ;;  %v621_v13 = vshll.u32 %v198_v55, 16  ;;  %v625_v14 = vshrl.u32 %v198_v55, 16  ;;  %v204_v55 = vld [vmem:[%s11477_s25 + $0xa0] sm:$0xf]  ;;  %v11193_v61 = vld [vmem:[%s11477_s25 + $0xc8] sm:$0xff]  }
  0x45   : > { %v590_v11 = vsel %vm11504_vm3, %v585_v63, %v589_v50  ;;  %10279 = vmatprep.mubr.msk.bf16.mxu1 %vm1946_vm0, %v8939_v4  ;;  %v617_v16 = vrot.slane %v615_v7, 4  ;;  %v631_v19 = vshll.u32 %v199_v3, 16  ;;  %v635_v20 = vshrl.u32 %v199_v3, 16  ;;  %v205_v3 = vld [vmem:[%s11477_s25 + $0xa4] sm:$0xf] }
  0x46   : > { %v600_v15 = vsel %vm11504_vm3, %v595_v5, %v599_v60  ;;  %v609_v23 = vrot.slane %v608_v12, 4  ;;  %v623_v24 = vrot.slane %v621_v13, 5  ;;  %v627_v25 = vrot.slane %v625_v14, 4  ;;  %v206_v13 = vld [vmem:[%s11477_s25 + $0xa8] sm:$0xf] }
  0x47   : > { %v8940_v22 = vcombine.low %v590_v11, %v600_v15  ;;  %v618_v28 = vor.u32 %v617_v16, %v613_v6  ;;  %v633_v29 = vrot.slane %v631_v19, 5  ;;  %v637_v2 = vrot.slane %v635_v20, 4  ;;  %v207_v20 = vld [vmem:[%s11477_s25 + $0xac] sm:$0xf] }
  0x48   : > { %v641_v30 = vshll.u32 %v308_v8, 16  ;;  %v614_v33 = vsel %vm11504_vm3, %v609_v23, %v613_v6  ;;  %v628_v34 = vor.u32 %v627_v25, %v623_v24  ;;  %v646_v35 = vshrl.u32 %v200_v21, 16 }
  0x49   : > { %v649_v36 = vshll.u32 %v200_v21, 16  ;;  %10280 = vmatmul.mubr.msk.bf16.gmra.mrb[20].mxu1 %vm1946_vm0, %v8940_v22  ;;  %v619_v37 = vrot.slane %v618_v28, 4  ;;  %v638_v38 = vor.u32 %v637_v2, %v633_v29  ;;  %v655_v40 = vshll.u32 %v201_v27, 16 }
  0x4a   : > { %v643_v39 = vrot.slane %v641_v30, 5  ;;  %v629_v42 = vrot.slane %v628_v34, 4  ;;  %v648_v43 = vrot.slane %v646_v35, 4  ;;  %v659_v45 = vshrl.u32 %v201_v27, 16  ;;  %v208_v35 = vld [vmem:[%s11477_s25 + $0xb4] sm:$0xf] }
  0x4b   : > { %10548 = vmatmul.mubr.msk.bf16.gmra.mrb[28].mxu0 %vm1946_vm0, %v11190_v18  ;;  %v651_v44 = vrot.slane %v649_v36, 5  ;;  %v624_v47 = vsel %vm11504_vm3, %v619_v37, %v623_v24  ;;  %v639_v48 = vrot.slane %v638_v38, 4  ;;  %v657_v49 = vrot.slane %v655_v40, 5  ;;  %v11195_v40 = vld [vmem:[%s11477_s25 + $0xdc] sm:$0xff]  }
  0x4c   : > { %10551 = vmatprep.mubr.msk.bf16.mxu0 %vm1946_vm0, %v11191_v26  ;;  %v665_v50 = vshll.u32 %v202_v31, 16  ;;  %v8941_v51 = vcombine.low %v614_v33, %v624_v47  ;;  %v634_v52 = vsel %vm11504_vm3, %v629_v42, %v633_v29  ;;  %v661_v54 = vrot.slane %v659_v45, 4  ;;  %v310_v29 = vld [vmem:[%s11477_s25 + $0xb0] sm:$0x1] }
  0x4d   : > { %v652_v53 = vor.u32 %v651_v44, %v648_v43  ;;  %v644_v56 = vsel %vm11504_vm3, %v639_v48, %v643_v39  ;;  %v669_v59 = vshrl.u32 %v202_v31, 16  ;;  %v675_v60 = vshll.u32 %v203_v41, 16  ;;  %v11194_v33 = vld [vmem:[%s11477_s25 + $0xd0] sm:$0xff]  }
  0x4e   : > { %v667_v57 = vrot.slane %v665_v50, 5  ;;  %10283 = vmatprep.mubr.msk.bf16.mxu1 %vm1946_vm0, %v8941_v51  ;;  %v8942_v62 = vcombine.low %v634_v52, %v644_v56  ;;  %v662_v0 = vor.u32 %v661_v54, %v657_v49  ;;  %v679_v1 = vshrl.u32 %v203_v41, 16  ;;  %v209_v41 = vld [vmem:[%s11477_s25 + $0xb8] sm:$0xf] }
  0x4f   : > { %v653_v63 = vrot.slane %v652_v53, 4  ;;  %v671_v4 = vrot.slane %v669_v59, 4  ;;  %v677_v5 = vrot.slane %v675_v60, 5  ;;  %v685_v6 = vshll.u32 %v309_v46, 16  ;;  %v210_v53 = vld [vmem:[%s11477_s25 + $0xbc] sm:$0xf] }
  0x50   : > { %v690_v7 = vshrl.u32 %v204_v55, 16  ;;  %v663_v11 = vrot.slane %v662_v0, 4  ;;  %v681_v12 = vrot.slane %v679_v1, 4  ;;  %v693_v14 = vshll.u32 %v204_v55, 16 }
  0x51   : > { %v658_v8 = vsel %vm11504_vm3, %v653_v63, %v657_v49  ;;  %10284 = vmatmul.mubr.msk.bf16.gmra.mrb[24].mxu1 %vm1946_vm0, %v8942_v62  ;;  %v672_v15 = vor.u32 %v671_v4, %v667_v57  ;;  %v687_v16 = vrot.slane %v685_v6, 5  ;;  %v699_v19 = vshll.u32 %v205_v3, 16  ;;  %v211_v63 = vld [vmem:[%s11477_s25 + $0xc0] sm:$0xf] }
  0x52   : > { %v692_v18 = vrot.slane %v690_v7, 4  ;;  %v668_v21 = vsel %vm11504_vm3, %v663_v11, %v667_v57  ;;  %v682_v22 = vor.u32 %v681_v12, %v677_v5  ;;  %v695_v23 = vrot.slane %v693_v14, 5  ;;  %v11196_v11 = vld [vmem:[%s11477_s25 + $0xe4] sm:$0xff]  }
  0x53   : > { %10552 = vmatmul.mubr.msk.bf16.gmra.mrb[32].mxu0 %vm1946_vm0, %v11192_v58  ;;  %v703_v24 = vshrl.u32 %v205_v3, 16  ;;  %v8943_v25 = vcombine.low %v658_v8, %v668_v21  ;;  %v673_v26 = vrot.slane %v672_v15, 4  ;;  %v701_v27 = vrot.slane %v699_v19, 5 }
  0x54   : > { %10555 = vmatprep.mubr.msk.bf16.mxu0 %vm1946_vm0, %v11193_v61  ;;  %v709_v28 = vshll.u32 %v206_v13, 16  ;;  %v683_v2 = vrot.slane %v682_v22, 4  ;;  %v696_v30 = vor.u32 %v695_v23, %v692_v18  ;;  %v713_v34 = vshrl.u32 %v206_v13, 16  ;;  %v212_v13 = vld [vmem:[%s11477_s25 + $0xc8] sm:$0xf]  ;;  %v11197_v23 = vld [vmem:[%s11477_s25 + $0xf0] sm:$0xff]  }
  0x55   : > { %v705_v31 = vrot.slane %v703_v24, 4  ;;  %10287 = vmatprep.mubr.msk.bf16.mxu1 %vm1946_vm0, %v8943_v25  ;;  %v678_v36 = vsel %vm11504_vm3, %v673_v26, %v677_v5  ;;  %v719_v38 = vshll.u32 %v207_v20, 16  ;;  %v723_v39 = vshrl.u32 %v207_v20, 16  ;;  %v311_v5 = vld [vmem:[%s11477_s25 + $0xc4] sm:$0x1] }
  0x56   : > { %v711_v37 = vrot.slane %v709_v28, 5  ;;  %v688_v42 = vsel %vm11504_vm3, %v683_v2, %v687_v16  ;;  %v697_v43 = vrot.slane %v696_v30, 4  ;;  %v715_v45 = vrot.slane %v713_v34, 4  ;;  %v213_v24 = vld [vmem:[%s11477_s25 + $0xcc] sm:$0xf] }
  0x57   : > { %v706_v44 = vor.u32 %v705_v31, %v701_v27  ;;  %v8944_v46 = vcombine.low %v678_v36, %v688_v42  ;;  %v721_v47 = vrot.slane %v719_v38, 5  ;;  %v725_v48 = vrot.slane %v723_v39, 4  ;;  %v214_v36 = vld [vmem:[%s11477_s25 + $0xd0] sm:$0xf]  ;;  %v215_v38 = vld [vmem:[%s11477_s25 + $0xd4] sm:$0xf] }
  0x58   : > { %v729_v49 = vshll.u32 %v310_v29, 16  ;;  %v702_v50 = vsel %vm11504_vm3, %v697_v43, %v701_v27  ;;  %v716_v52 = vor.u32 %v715_v45, %v711_v37  ;;  %v734_v54 = vshrl.u32 %v208_v35, 16  ;;  %v312_v43 = vld [vmem:[%s11477_s25 + $0xd8] sm:$0x1] }
  0x59   : > { %v707_v51 = vrot.slane %v706_v44, 4  ;;  %10288 = vmatmul.mubr.msk.bf16.gmra.mrb[28].mxu1 %vm1946_vm0, %v8944_v46  ;;  %v726_v55 = vor.u32 %v725_v48, %v721_v47  ;;  %v737_v57 = vshll.u32 %v208_v35, 16  ;;  %v743_v58 = vshll.u32 %v209_v41, 16 }
  0x5a   : > { %v731_v56 = vrot.slane %v729_v49, 5  ;;  %v717_v60 = vrot.slane %v716_v52, 4  ;;  %v736_v61 = vrot.slane %v734_v54, 4  ;;  %v747_v62 = vshrl.u32 %v209_v41, 16  ;;  %v216_v52 = vld [vmem:[%s11477_s25 + $0xdc] sm:$0xf] }
  0x5b   : > { %10556 = vmatmul.mubr.msk.bf16.gmra.mrb[36].mxu0 %vm1946_vm0, %v11194_v33  ;;  %v712_v59 = vsel %vm11504_vm3, %v707_v51, %v711_v37  ;;  %v727_v1 = vrot.slane %v726_v55, 4  ;;  %v739_v3 = vrot.slane %v737_v57, 5  ;;  %v745_v4 = vrot.slane %v743_v58, 5  ;;  %v11198_v55 = vld [vmem:[%s11477_s25 + $0xf8] sm:$0xff]   ;;  %v217_v58 = vld [vmem:[%s11477_s25 + $0xe0] sm:$0xf] }
  0x5c   : > { %10559 = vmatprep.mubr.msk.bf16.mxu0 %vm1946_vm0, %v11195_v40  ;;  %v8945_v0 = vcombine.low %v702_v50, %v712_v59  ;;  %v722_v6 = vsel %vm11504_vm3, %v717_v60, %v721_v47  ;;  %v749_v7 = vrot.slane %v747_v62, 4  ;;  %v753_v8 = vshll.u32 %v210_v53, 16 }
  0x5d   : > { %v757_v12 = vshrl.u32 %v210_v53, 16  ;;  %v732_v14 = vsel %vm11504_vm3, %v727_v1, %v731_v56  ;;  %v740_v15 = vor.u32 %v739_v3, %v736_v61  ;;  %v763_v16 = vshll.u32 %v211_v63, 16 }
  0x5e   : > { %10291 = vmatprep.mubr.msk.bf16.mxu1 %vm1946_vm0, %v8945_v0  ;;  %v767_v18 = vshrl.u32 %v211_v63, 16  ;;  %v8946_v19 = vcombine.low %v722_v6, %v732_v14  ;;  %v750_v20 = vor.u32 %v749_v7, %v745_v4  ;;  %v755_v21 = vrot.slane %v753_v8, 5  ;;  %v11199_v63 = vld [vmem:[%s11477_s25 + $0x104] sm:$0xff]  }
  0x5f   : > { %v759_v22 = vrot.slane %v757_v12, 4  ;;  %v741_v25 = vrot.slane %v740_v15, 4  ;;  %v765_v26 = vrot.slane %v763_v16, 5  ;;  %v773_v28 = vshll.u32 %v311_v5, 16  ;;  %v218_v7 = vld [vmem:[%s11477_s25 + $0xe4] sm:$0xf] }
  0x60   : > { %v769_v27 = vrot.slane %v767_v18, 4  ;;  %v751_v29 = vrot.slane %v750_v20, 4  ;;  %v778_v30 = vshrl.u32 %v212_v13, 16  ;;  %v781_v31 = vshll.u32 %v212_v13, 16  ;;  %v219_v16 = vld [vmem:[%s11477_s25 + $0xe8] sm:$0xf] }
  0x61   : > { %v760_v2 = vor.u32 %v759_v22, %v755_v21  ;;  %10292 = vmatmul.mubr.msk.bf16.gmra.mrb[32].mxu1 %vm1946_vm0, %v8946_v19  ;;  %v746_v33 = vsel %vm11504_vm3, %v741_v25, %v745_v4  ;;  %v775_v35 = vrot.slane %v773_v28, 5  ;;  %v787_v37 = vshll.u32 %v213_v24, 16 }
  0x62   : > { %v770_v34 = vor.u32 %v769_v27, %v765_v26  ;;  %v756_v39 = vsel %vm11504_vm3, %v751_v29, %v755_v21  ;;  %v780_v41 = vrot.slane %v778_v30, 4  ;;  %v783_v42 = vrot.slane %v781_v31, 5  ;;  %v313_v30 = vld [vmem:[%s11477_s25 + $0xec] sm:$0x1]  ;;  %v220_v31 = vld [vmem:[%s11477_s25 + $0xf0] sm:$0xf] }
  0x63   : > { %10560 = vmatmul.mubr.msk.bf16.gmra.mrb[40].mxu0 %vm1946_vm0, %v11196_v11  ;;  %v761_v40 = vrot.slane %v760_v2, 4  ;;  %v8947_v44 = vcombine.low %v746_v33, %v756_v39  ;;  %v789_v46 = vrot.slane %v787_v37, 5  ;;  %v791_v47 = vshrl.u32 %v213_v24, 16  ;;  %v11200_v2 = vld [vmem:[%s11477_s25 + $0x10c] sm:$0xff]   ;;  %v11201_v37 = vld [vmem:[%s11477_s25 + $0x118] sm:$0xff]  }
  0x64   : > { %10563 = vmatprep.mubr.msk.bf16.mxu0 %vm1946_vm0, %v11197_v23  ;;  %v771_v45 = vrot.slane %v770_v34, 4  ;;  %v784_v49 = vor.u32 %v783_v42, %v780_v41  ;;  %v797_v50 = vshll.u32 %v214_v36, 16  ;;  %v801_v51 = vshrl.u32 %v214_v36, 16  ;;  %v221_v42 = vld [vmem:[%s11477_s25 + $0xf4] sm:$0xf] }
  0x65   : > { %v766_v48 = vsel %vm11504_vm3, %v761_v40, %v765_v26  ;;  %10295 = vmatprep.mubr.msk.bf16.mxu1 %vm1946_vm0, %v8947_v44  ;;  %v793_v54 = vrot.slane %v791_v47, 4  ;;  %v807_v56 = vshll.u32 %v215_v38, 16  ;;  %v811_v57 = vshrl.u32 %v215_v38, 16 }
  0x66   : > { %v776_v53 = vsel %vm11504_vm3, %v771_v45, %v775_v35  ;;  %v785_v60 = vrot.slane %v784_v49, 4  ;;  %v799_v61 = vrot.slane %v797_v50, 5  ;;  %v803_v62 = vrot.slane %v801_v51, 4 }
  0x67   : > { %v8948_v59 = vcombine.low %v766_v48, %v776_v53  ;;  %v794_v0 = vor.u32 %v793_v54, %v789_v46  ;;  %v809_v1 = vrot.slane %v807_v56, 5  ;;  %v813_v3 = vrot.slane %v811_v57, 4 }
  0x68   : > { %v817_v4 = vshll.u32 %v312_v43, 16  ;;  %v790_v5 = vsel %vm11504_vm3, %v785_v60, %v789_v46  ;;  %v804_v6 = vor.u32 %v803_v62, %v799_v61  ;;  %v822_v8 = vshrl.u32 %v216_v52, 16  ;;  %v222_v46 = vld [vmem:[%s11477_s25 + $0xf8] sm:$0xf] }
  0x69   : > { %v825_v11 = vshll.u32 %v216_v52, 16  ;;  %10296 = vmatmul.mubr.msk.bf16.gmra.mrb[36].mxu1 %vm1946_vm0, %v8948_v59  ;;  %v795_v12 = vrot.slane %v794_v0, 4  ;;  %v814_v13 = vor.u32 %v813_v3, %v809_v1  ;;  %v831_v15 = vshll.u32 %v217_v58, 16  ;;  %v223_v52 = vld [vmem:[%s11477_s25 + $0xfc] sm:$0xf] }
  0x6a   : > { %v819_v14 = vrot.slane %v817_v4, 5  ;;  %v805_v18 = vrot.slane %v804_v6, 4  ;;  %v824_v19 = vrot.slane %v822_v8, 4  ;;  %v835_v21 = vshrl.u32 %v217_v58, 16  ;;  %v224_v3 = vld [vmem:[%s11477_s25 + $0x104] sm:$0xf] }
  0x6b   : > { %10564 = vmatmul.mubr.msk.bf16.gmra.mrb[44].mxu0 %vm1946_vm0, %v11198_v55  ;;  %v827_v20 = vrot.slane %v825_v11, 5  ;;  %v800_v22 = vsel %vm11504_vm3, %v795_v12, %v799_v61  ;;  %v815_v23 = vrot.slane %v814_v13, 4  ;;  %v833_v24 = vrot.slane %v831_v15, 5  ;;  %v314_v61 = vld [vmem:[%s11477_s25 + $0x100] sm:$0x1] }
  0x6c   : > { %10567 = vmatprep.mubr.msk.bf16.mxu0 %vm1946_vm0, %v11199_v63  ;;  %v841_v25 = vshll.u32 %v218_v7, 16  ;;  %v8949_v26 = vcombine.low %v790_v5, %v800_v22  ;;  %v810_v27 = vsel %vm11504_vm3, %v805_v18, %v809_v1  ;;  %v837_v29 = vrot.slane %v835_v21, 4  ;;  %v11202_v12 = vld [vmem:[%s11477_s25 + $0x120] sm:$0xff]   ;;  %v225_v21 = vld [vmem:[%s11477_s25 + $0x108] sm:$0xf] }
  0x6d   : > { %v828_v28 = vor.u32 %v827_v20, %v824_v19  ;;  %v820_v33 = vsel %vm11504_vm3, %v815_v23, %v819_v14  ;;  %v845_v35 = vshrl.u32 %v218_v7, 16  ;;  %v851_v36 = vshll.u32 %v219_v16, 16  ;;  %v11203_v20 = vld [vmem:[%s11477_s25 + $0x12c] sm:$0xff]  }
  0x6e   : > { %v843_v34 = vrot.slane %v841_v25, 5  ;;  %10299 = vmatprep.mubr.msk.bf16.mxu1 %vm1946_vm0, %v8949_v26  ;;  %v8950_v38 = vcombine.low %v810_v27, %v820_v33  ;;  %v838_v40 = vor.u32 %v837_v29, %v833_v24  ;;  %v855_v41 = vshrl.u32 %v219_v16, 16  ;;  %v226_v26 = vld [vmem:[%s11477_s25 + $0x10c] sm:$0xf] }
  0x6f   : > { %v829_v39 = vrot.slane %v828_v28, 4  ;;  %v847_v43 = vrot.slane %v845_v35, 4  ;;  %v853_v44 = vrot.slane %v851_v36, 5  ;;  %v861_v45 = vshll.u32 %v313_v30, 16  ;;  %v227_v35 = vld [vmem:[%s11477_s25 + $0x110] sm:$0xf] }
  0x70   : > { %v866_v47 = vshrl.u32 %v220_v31, 16  ;;  %v839_v49 = vrot.slane %v838_v40, 4  ;;  %v857_v50 = vrot.slane %v855_v41, 4  ;;  %v869_v51 = vshll.u32 %v220_v31, 16  ;;  %v315_v40 = vld [vmem:[%s11477_s25 + $0x114] sm:$0x1] }
  0x71   : > { %v834_v48 = vsel %vm11504_vm3, %v829_v39, %v833_v24  ;;  %10300 = vmatmul.mubr.msk.bf16.gmra.mrb[40].mxu1 %vm1946_vm0, %v8950_v38  ;;  %v848_v53 = vor.u32 %v847_v43, %v843_v34  ;;  %v863_v54 = vrot.slane %v861_v45, 5  ;;  %v875_v56 = vshll.u32 %v221_v42, 16 }
  0x72   : > { %v868_v55 = vrot.slane %v866_v47, 4  ;;  %v844_v57 = vsel %vm11504_vm3, %v839_v49, %v843_v34  ;;  %v858_v58 = vor.u32 %v857_v50, %v853_v44  ;;  %v871_v59 = vrot.slane %v869_v51, 5  ;;  %v11204_v51 = vld [vmem:[%s11477_s25 + $0x134] sm:$0xff]  }
  0x73   : > { %10568 = vmatmul.mubr.msk.bf16.gmra.mrb[48].mxu0 %vm1946_vm0, %v11200_v2  ;;  %v879_v60 = vshrl.u32 %v221_v42, 16  ;;  %v8951_v62 = vcombine.low %v834_v48, %v844_v57  ;;  %v849_v63 = vrot.slane %v848_v53, 4  ;;  %v877_v0 = vrot.slane %v875_v56, 5 }
  0x74   : > { %10571 = vmatprep.mubr.msk.bf16.mxu0 %vm1946_vm0, %v11201_v37  ;;  %v885_v1 = vshll.u32 %v222_v46, 16  ;;  %v859_v4 = vrot.slane %v858_v58, 4  ;;  %v872_v5 = vor.u32 %v871_v59, %v868_v55  ;;  %v889_v7 = vshrl.u32 %v222_v46, 16  ;;  %v228_v55 = vld [vmem:[%s11477_s25 + $0x118] sm:$0xf] }
  0x75   : > { %v881_v6 = vrot.slane %v879_v60, 4  ;;  %10303 = vmatprep.mubr.msk.bf16.mxu1 %vm1946_vm0, %v8951_v62  ;;  %v854_v8 = vsel %vm11504_vm3, %v849_v63, %v853_v44  ;;  %v895_v13 = vshll.u32 %v223_v52, 16  ;;  %v899_v14 = vshrl.u32 %v223_v52, 16  ;;  %v229_v60 = vld [vmem:[%s11477_s25 + $0x11c] sm:$0xf] }
  0x76   : > { %v887_v11 = vrot.slane %v885_v1, 5  ;;  %v864_v15 = vsel %vm11504_vm3, %v859_v4, %v863_v54  ;;  %v873_v16 = vrot.slane %v872_v5, 4  ;;  %v891_v19 = vrot.slane %v889_v7, 4  ;;  %v11205_v54 = vld [vmem:[%s11477_s25 + $0x140] sm:$0xff]  }
  0x77   : > { %v882_v18 = vor.u32 %v881_v6, %v877_v0  ;;  %v8952_v22 = vcombine.low %v854_v8, %v864_v15  ;;  %v897_v23 = vrot.slane %v895_v13, 5  ;;  %v901_v24 = vrot.slane %v899_v14, 4  ;;  %v230_v4 = vld [vmem:[%s11477_s25 + $0x120] sm:$0xf]  ;;  %v231_v13 = vld [vmem:[%s11477_s25 + $0x124] sm:$0xf] }
  0x78   : > { %v905_v25 = vshll.u32 %v314_v61, 16  ;;  %v878_v27 = vsel %vm11504_vm3, %v873_v16, %v877_v0  ;;  %v892_v29 = vor.u32 %v891_v19, %v887_v11  ;;  %v910_v2 = vshrl.u32 %v224_v3, 16 }
  0x79   : > { %v883_v28 = vrot.slane %v882_v18, 4  ;;  %10304 = vmatmul.mubr.msk.bf16.gmra.mrb[44].mxu1 %vm1946_vm0, %v8952_v22  ;;  %v902_v30 = vor.u32 %v901_v24, %v897_v23  ;;  %v913_v33 = vshll.u32 %v224_v3, 16  ;;  %v919_v34 = vshll.u32 %v225_v21, 16 }
  0x7a   : > { %v907_v31 = vrot.slane %v905_v25, 5  ;;  %v893_v37 = vrot.slane %v892_v29, 4  ;;  %v912_v38 = vrot.slane %v910_v2, 4  ;;  %v923_v39 = vshrl.u32 %v225_v21, 16  ;;  %v233_v29 = vld [vmem:[%s11477_s25 + $0x130] sm:$0xf] }
  0x7b   : > { %10572 = vmatmul.mubr.msk.bf16.gmra.mrb[52].mxu0 %vm1946_vm0, %v11202_v12  ;;  %v888_v36 = vsel %vm11504_vm3, %v883_v28, %v887_v11  ;;  %v903_v42 = vrot.slane %v902_v30, 4  ;;  %v915_v43 = vrot.slane %v913_v33, 5  ;;  %v921_v44 = vrot.slane %v919_v34, 5  ;;  %v232_v28 = vld [vmem:[%s11477_s25 + $0x12c] sm:$0xf] }
  0x7c   : > { %10575 = vmatprep.mubr.msk.bf16.mxu0 %vm1946_vm0, %v11203_v20  ;;  %v8953_v41 = vcombine.low %v878_v27, %v888_v36  ;;  %v898_v45 = vsel %vm11504_vm3, %v893_v37, %v897_v23  ;;  %v925_v46 = vrot.slane %v923_v39, 4  ;;  %v929_v47 = vshll.u32 %v226_v26, 16  ;;  %v316_v23 = vld [vmem:[%s11477_s25 + $0x128] sm:$0x1]  ;;  %v11207_v39 = vld [vmem:[%s11477_s25 + $0x154] sm:$0xff]  }
  0x7d   : > { %v933_v48 = vshrl.u32 %v226_v26, 16  ;;  %v908_v49 = vsel %vm11504_vm3, %v903_v42, %v907_v31  ;;  %v916_v50 = vor.u32 %v915_v43, %v912_v38  ;;  %v939_v52 = vshll.u32 %v227_v35, 16  ;;  %v11206_v31 = vld [vmem:[%s11477_s25 + $0x148] sm:$0xff]  }
  0x7e   : > { %10307 = vmatprep.mubr.msk.bf16.mxu1 %vm1946_vm0, %v8953_v41  ;;  %v943_v53 = vshrl.u32 %v227_v35, 16  ;;  %v8954_v56 = vcombine.low %v898_v45, %v908_v49  ;;  %v926_v57 = vor.u32 %v925_v46, %v921_v44  ;;  %v931_v58 = vrot.slane %v929_v47, 5  ;;  %v234_v46 = vld [vmem:[%s11477_s25 + $0x134] sm:$0xf] }
  0x7f   : > { %v935_v59 = vrot.slane %v933_v48, 4  ;;  %v917_v61 = vrot.slane %v916_v50, 4  ;;  %v941_v62 = vrot.slane %v939_v52, 5  ;;  %v949_v0 = vshll.u32 %v315_v40, 16 }
  0x80   : > { %v945_v63 = vrot.slane %v943_v53, 4  ;;  %v927_v1 = vrot.slane %v926_v57, 4  ;;  %v954_v5 = vshrl.u32 %v228_v55, 16  ;;  %v957_v6 = vshll.u32 %v228_v55, 16  ;;  %v235_v57 = vld [vmem:[%s11477_s25 + $0x138] sm:$0xf] }
  0x81   : > { %v936_v3 = vor.u32 %v935_v59, %v931_v58  ;;  %10308 = vmatmul.mubr.msk.bf16.gmra.mrb[48].mxu1 %vm1946_vm0, %v8954_v56  ;;  %v922_v7 = vsel %vm11504_vm3, %v917_v61, %v921_v44  ;;  %v951_v11 = vrot.slane %v949_v0, 5  ;;  %v963_v12 = vshll.u32 %v229_v60, 16 }
  0x82   : > { %v946_v8 = vor.u32 %v945_v63, %v941_v62  ;;  %v932_v14 = vsel %vm11504_vm3, %v927_v1, %v931_v58  ;;  %v956_v16 = vrot.slane %v954_v5, 4  ;;  %v959_v18 = vrot.slane %v957_v6, 5  ;;  %v236_v5 = vld [vmem:[%s11477_s25 + $0x140] sm:$0xf] }
  0x83   : > { %10576 = vmatmul.mubr.msk.bf16.gmra.mrb[56].mxu0 %vm1946_vm0, %v11204_v51  ;;  %v937_v15 = vrot.slane %v936_v3, 4  ;;  %v8955_v19 = vcombine.low %v922_v7, %v932_v14  ;;  %v965_v21 = vrot.slane %v963_v12, 5  ;;  %v967_v22 = vshrl.u32 %v229_v60, 16  ;;  %v11209_v12 = vld [vmem:[%s11477_s25 + $0x168] sm:$0xff]  }
  0x84   : > { %10579 = vmatprep.mubr.msk.bf16.mxu0 %vm1946_vm0, %v11205_v54  ;;  %v947_v20 = vrot.slane %v946_v8, 4  ;;  %v960_v25 = vor.u32 %v959_v18, %v956_v16  ;;  %v973_v26 = vshll.u32 %v230_v4, 16  ;;  %v977_v27 = vshrl.u32 %v230_v4, 16  ;;  %v11208_v4 = vld [vmem:[%s11477_s25 + $0x15c] sm:$0xff]   ;;  %v237_v18 = vld [vmem:[%s11477_s25 + $0x144] sm:$0xf] }
  0x85   : > { %v942_v24 = vsel %vm11504_vm3, %v937_v15, %v941_v62  ;;  %10311 = vmatprep.mubr.msk.bf16.mxu1 %vm1946_vm0, %v8955_v19  ;;  %v969_v30 = vrot.slane %v967_v22, 4  ;;  %v983_v33 = vshll.u32 %v231_v13, 16  ;;  %v987_v34 = vshrl.u32 %v231_v13, 16  ;;  %v317_v62 = vld [vmem:[%s11477_s25 + $0x13c] sm:$0x1] }
  0x86   : > { %v952_v2 = vsel %vm11504_vm3, %v947_v20, %v951_v11  ;;  %v961_v36 = vrot.slane %v960_v25, 4  ;;  %v975_v37 = vrot.slane %v973_v26, 5  ;;  %v979_v38 = vrot.slane %v977_v27, 4  ;;  %v238_v19 = vld [vmem:[%s11477_s25 + $0x148] sm:$0xf] }
  0x87   : > { %v8956_v35 = vcombine.low %v942_v24, %v952_v2  ;;  %v970_v40 = vor.u32 %v969_v30, %v965_v21  ;;  %v985_v41 = vrot.slane %v983_v33, 5  ;;  %v989_v42 = vrot.slane %v987_v34, 4 }
  0x88   : > { %v993_v43 = vshll.u32 %v316_v23, 16  ;;  %v966_v44 = vsel %vm11504_vm3, %v961_v36, %v965_v21  ;;  %v980_v45 = vor.u32 %v979_v38, %v975_v37  ;;  %v998_v47 = vshrl.u32 %v232_v28, 16  ;;  %v239_v36 = vld [vmem:[%s11477_s25 + $0x14c] sm:$0xf] }
  0x89   : > { %v1001_v48 = vshll.u32 %v232_v28, 16  ;;  %10312 = vmatmul.mubr.msk.bf16.gmra.mrb[52].mxu1 %vm1946_vm0, %v8956_v35  ;;  %v971_v49 = vrot.slane %v970_v40, 4  ;;  %v990_v50 = vor.u32 %v989_v42, %v985_v41  ;;  %v1007_v52 = vshll.u32 %v233_v29, 16 }
  0x8a   : > { %v995_v51 = vrot.slane %v993_v43, 5  ;;  %v981_v53 = vrot.slane %v980_v45, 4  ;;  %v1000_v54 = vrot.slane %v998_v47, 4  ;;  %v1011_v56 = vshrl.u32 %v233_v29, 16  ;;  %v11210_v45 = vld [vmem:[%s11477_s25 + $0x170] sm:$0xff]  }
  0x8b   : > { %10580 = vmatmul.mubr.msk.bf16.gmra.mrb[60].mxu0 %vm1946_vm0, %v11206_v31  ;;  %v1003_v55 = vrot.slane %v1001_v48, 5  ;;  %v976_v58 = vsel %vm11504_vm3, %v971_v49, %v975_v37  ;;  %v991_v59 = vrot.slane %v990_v50, 4  ;;  %v1009_v60 = vrot.slane %v1007_v52, 5  ;;  %v318_v37 = vld [vmem:[%s11477_s25 + $0x150] sm:$0x1] }
  0x8c   : > { %10583 = vmatprep.mubr.msk.bf16.mxu0 %vm1946_vm0, %v11207_v39  ;;  %v1017_v61 = vshll.u32 %v234_v46, 16  ;;  %v8957_v63 = vcombine.low %v966_v44, %v976_v58  ;;  %v986_v0 = vsel %vm11504_vm3, %v981_v53, %v985_v41  ;;  %v1013_v3 = vrot.slane %v1011_v56, 4  ;;  %v240_v52 = vld [vmem:[%s11477_s25 + $0x154] sm:$0xf] }
  0x8d   : > { %v1004_v1 = vor.u32 %v1003_v55, %v1000_v54  ;;  %v996_v6 = vsel %vm11504_vm3, %v991_v59, %v995_v51  ;;  %v1021_v8 = vshrl.u32 %v234_v46, 16  ;;  %v1027_v11 = vshll.u32 %v235_v57, 16  ;;  %v11211_v51 = vld [vmem:[%s11477_s25 + $0x17c] sm:$0xff]  }
  0x8e   : > { %v1019_v7 = vrot.slane %v1017_v61, 5  ;;  %10315 = vmatprep.mubr.msk.bf16.mxu1 %vm1946_vm0, %v8957_v63  ;;  %v8958_v13 = vcombine.low %v986_v0, %v996_v6  ;;  %v1014_v15 = vor.u32 %v1013_v3, %v1009_v60  ;;  %v1031_v16 = vshrl.u32 %v235_v57, 16  ;;  %v241_v57 = vld [vmem:[%s11477_s25 + $0x158] sm:$0xf] }
  0x8f   : > { %v1005_v14 = vrot.slane %v1004_v1, 4  ;;  %v1023_v20 = vrot.slane %v1021_v8, 4  ;;  %v1029_v21 = vrot.slane %v1027_v11, 5  ;;  %v1037_v22 = vshll.u32 %v317_v62, 16  ;;  %v242_v1 = vld [vmem:[%s11477_s25 + $0x15c] sm:$0xf] }
  0x90   : > { %v1042_v23 = vshrl.u32 %v236_v5, 16  ;;  %v1015_v25 = vrot.slane %v1014_v15, 4  ;;  %v1033_v26 = vrot.slane %v1031_v16, 4  ;;  %v1045_v27 = vshll.u32 %v236_v5, 16  ;;  %v243_v8 = vld [vmem:[%s11477_s25 + $0x160] sm:$0xf] }
  0x91   : > { %v1010_v24 = vsel %vm11504_vm3, %v1005_v14, %v1009_v60  ;;  %10316 = vmatmul.mubr.msk.bf16.gmra.mrb[56].mxu1 %vm1946_vm0, %v8958_v13  ;;  %v1024_v28 = vor.u32 %v1023_v20, %v1019_v7  ;;  %v1039_v29 = vrot.slane %v1037_v22, 5  ;;  %v1051_v30 = vshll.u32 %v237_v18, 16  ;;  %v11212_v20 = vld [vmem:[%s11477_s25 + $0x184] sm:$0xff]  }
  0x92   : > { %v1044_v2 = vrot.slane %v1042_v23, 4  ;;  %v1020_v31 = vsel %vm11504_vm3, %v1015_v25, %v1019_v7  ;;  %v1034_v33 = vor.u32 %v1033_v26, %v1029_v21  ;;  %v1047_v34 = vrot.slane %v1045_v27, 5  ;;  %v11213_v26 = vld [vmem:[%s11477_s25 + $0x190] sm:$0xff]  }
  0x93   : > { %10584 = vmatmul.mubr.msk.bf16.gmra.mrb[64].mxu0 %vm1946_vm0, %v11208_v4  ;;  %v1055_v35 = vshrl.u32 %v237_v18, 16  ;;  %v8959_v38 = vcombine.low %v1010_v24, %v1020_v31  ;;  %v1025_v39 = vrot.slane %v1024_v28, 4  ;;  %v1053_v40 = vrot.slane %v1051_v30, 5  ;;  %v319_v24 = vld [vmem:[%s11477_s25 + $0x164] sm:$0x1] }
  0x94   : > { %10587 = vmatprep.mubr.msk.bf16.mxu0 %vm1946_vm0, %v11209_v12  ;;  %v1061_v41 = vshll.u32 %v238_v19, 16  ;;  %v1035_v42 = vrot.slane %v1034_v33, 4  ;;  %v1048_v43 = vor.u32 %v1047_v34, %v1044_v2  ;;  %v1065_v46 = vshrl.u32 %v238_v19, 16  ;;  %v244_v30 = vld [vmem:[%s11477_s25 + $0x168] sm:$0xf] }
  0x95   : > { %v1057_v44 = vrot.slane %v1055_v35, 4  ;;  %10319 = vmatprep.mubr.msk.bf16.mxu1 %vm1946_vm0, %v8959_v38  ;;  %v1030_v47 = vsel %vm11504_vm3, %v1025_v39, %v1029_v21  ;;  %v1071_v49 = vshll.u32 %v239_v36, 16  ;;  %v1075_v50 = vshrl.u32 %v239_v36, 16  ;;  %v245_v36 = vld [vmem:[%s11477_s25 + $0x16c] sm:$0xf] }
  0x96   : > { %v1063_v48 = vrot.slane %v1061_v41, 5  ;;  %v1040_v53 = vsel %vm11504_vm3, %v1035_v42, %v1039_v29  ;;  %v1049_v54 = vrot.slane %v1048_v43, 4  ;;  %v1067_v56 = vrot.slane %v1065_v46, 4  ;;  %v246_v43 = vld [vmem:[%s11477_s25 + $0x170] sm:$0xf] }
  0x97   : > { %v1058_v55 = vor.u32 %v1057_v44, %v1053_v40  ;;  %v8960_v58 = vcombine.low %v1030_v47, %v1040_v53  ;;  %v1073_v59 = vrot.slane %v1071_v49, 5  ;;  %v1077_v60 = vrot.slane %v1075_v50, 4 }
  0x98   : > { %v1081_v61 = vshll.u32 %v318_v37, 16  ;;  %v1054_v62 = vsel %vm11504_vm3, %v1049_v54, %v1053_v40  ;;  %v1068_v0 = vor.u32 %v1067_v56, %v1063_v48  ;;  %v1086_v3 = vshrl.u32 %v240_v52, 16  ;;  %v247_v54 = vld [vmem:[%s11477_s25 + $0x174] sm:$0xf] }
  0x99   : > { %v1059_v63 = vrot.slane %v1058_v55, 4  ;;  %10320 = vmatmul.mubr.msk.bf16.gmra.mrb[60].mxu1 %vm1946_vm0, %v8960_v58  ;;  %v1078_v4 = vor.u32 %v1077_v60, %v1073_v59  ;;  %v1089_v6 = vshll.u32 %v240_v52, 16  ;;  %v1095_v7 = vshll.u32 %v241_v57, 16 }
  0x9a   : > { %v1083_v5 = vrot.slane %v1081_v61, 5  ;;  %v1069_v12 = vrot.slane %v1068_v0, 4  ;;  %v1088_v13 = vrot.slane %v1086_v3, 4  ;;  %v1099_v14 = vshrl.u32 %v241_v57, 16  ;;  %v11214_v3 = vld [vmem:[%s11477_s25 + $0x198] sm:$0xff]  }
  0x9b   : > { %10588 = vmatmul.mubr.msk.bf16.gmra.mrb[68].mxu0 %vm1946_vm0, %v11210_v45  ;;  %v1064_v11 = vsel %vm11504_vm3, %v1059_v63, %v1063_v48  ;;  %v1079_v16 = vrot.slane %v1078_v4, 4  ;;  %v1091_v18 = vrot.slane %v1089_v6, 5  ;;  %v1097_v19 = vrot.slane %v1095_v7, 5  ;;  %v248_v6 = vld [vmem:[%s11477_s25 + $0x17c] sm:$0xf] }
  0x9c   : > { %10591 = vmatprep.mubr.msk.bf16.mxu0 %vm1946_vm0, %v11211_v51  ;;  %v8961_v15 = vcombine.low %v1054_v62, %v1064_v11  ;;  %v1074_v21 = vsel %vm11504_vm3, %v1069_v12, %v1073_v59  ;;  %v1101_v22 = vrot.slane %v1099_v14, 4  ;;  %v1105_v23 = vshll.u32 %v242_v1, 16  ;;  %v320_v59 = vld [vmem:[%s11477_s25 + $0x178] sm:$0x1]  ;;  %v249_v14 = vld [vmem:[%s11477_s25 + $0x180] sm:$0xf] }
  0x9d   : > { %v1109_v25 = vshrl.u32 %v242_v1, 16  ;;  %v1084_v27 = vsel %vm11504_vm3, %v1079_v16, %v1083_v5  ;;  %v1092_v28 = vor.u32 %v1091_v18, %v1088_v13  ;;  %v1115_v29 = vshll.u32 %v243_v8, 16  ;;  %v11215_v13 = vld [vmem:[%s11477_s25 + $0x1a4] sm:$0xff]  }
  0x9e   : > { %10323 = vmatprep.mubr.msk.bf16.mxu1 %vm1946_vm0, %v8961_v15  ;;  %v1119_v2 = vshrl.u32 %v243_v8, 16  ;;  %v8962_v31 = vcombine.low %v1074_v21, %v1084_v27  ;;  %v1102_v33 = vor.u32 %v1101_v22, %v1097_v19  ;;  %v1107_v34 = vrot.slane %v1105_v23, 5 }
  0x9f   : > { %v1111_v35 = vrot.slane %v1109_v25, 4  ;;  %v1093_v37 = vrot.slane %v1092_v28, 4  ;;  %v1117_v38 = vrot.slane %v1115_v29, 5  ;;  %v1125_v40 = vshll.u32 %v319_v24, 16  ;;  %v251_v29 = vld [vmem:[%s11477_s25 + $0x188] sm:$0xf] }
  0xa0   : > { %v1121_v39 = vrot.slane %v1119_v2, 4  ;;  %v1103_v41 = vrot.slane %v1102_v33, 4  ;;  %v1130_v44 = vshrl.u32 %v244_v30, 16  ;;  %v1133_v45 = vshll.u32 %v244_v30, 16 }
  0xa1   : > { %v1112_v42 = vor.u32 %v1111_v35, %v1107_v34  ;;  %10324 = vmatmul.mubr.msk.bf16.gmra.mrb[64].mxu1 %vm1946_vm0, %v8962_v31  ;;  %v1098_v46 = vsel %vm11504_vm3, %v1093_v37, %v1097_v19  ;;  %v1127_v48 = vrot.slane %v1125_v40, 5  ;;  %v1139_v49 = vshll.u32 %v245_v36, 16 }
  0xa2   : > { %v1122_v47 = vor.u32 %v1121_v39, %v1117_v38  ;;  %v1108_v50 = vsel %vm11504_vm3, %v1103_v41, %v1107_v34  ;;  %v1132_v52 = vrot.slane %v1130_v44, 4  ;;  %v1135_v53 = vrot.slane %v1133_v45, 5  ;;  %v321_v34 = vld [vmem:[%s11477_s25 + $0x18c] sm:$0x1] }
  0xa3   : > { %10592 = vmatmul.mubr.msk.bf16.gmra.mrb[72].mxu0 %vm1946_vm0, %v11212_v20  ;;  %v1113_v51 = vrot.slane %v1112_v42, 4  ;;  %v8963_v55 = vcombine.low %v1098_v46, %v1108_v50  ;;  %v1141_v57 = vrot.slane %v1139_v49, 5  ;;  %v1143_v58 = vshrl.u32 %v245_v36, 16  ;;  %v250_v20 = vld [vmem:[%s11477_s25 + $0x184] sm:$0xf]  ;;  %v11216_v46 = vld [vmem:[%s11477_s25 + $0x1ac] sm:$0xff]  }
  0xa4   : > { %10595 = vmatprep.mubr.msk.bf16.mxu0 %vm1946_vm0, %v11213_v26  ;;  %v1123_v56 = vrot.slane %v1122_v47, 4  ;;  %v1136_v61 = vor.u32 %v1135_v53, %v1132_v52  ;;  %v1149_v62 = vshll.u32 %v246_v43, 16  ;;  %v1153_v63 = vshrl.u32 %v246_v43, 16  ;;  %v252_v43 = vld [vmem:[%s11477_s25 + $0x190] sm:$0xf]  ;;  %v11217_v49 = vld [vmem:[%s11477_s25 + $0x1b8] sm:$0xff]  }
  0xa5   : > { %v1118_v60 = vsel %vm11504_vm3, %v1113_v51, %v1117_v38  ;;  %10327 = vmatprep.mubr.msk.bf16.mxu1 %vm1946_vm0, %v8963_v55  ;;  %v1145_v1 = vrot.slane %v1143_v58, 4  ;;  %v1159_v4 = vshll.u32 %v247_v54, 16  ;;  %v1163_v5 = vshrl.u32 %v247_v54, 16  ;;  %v253_v54 = vld [vmem:[%s11477_s25 + $0x194] sm:$0xf] }
  0xa6   : > { %v1128_v0 = vsel %vm11504_vm3, %v1123_v56, %v1127_v48  ;;  %v1137_v8 = vrot.slane %v1136_v61, 4  ;;  %v1151_v11 = vrot.slane %v1149_v62, 5  ;;  %v1155_v12 = vrot.slane %v1153_v63, 4  ;;  %v254_v62 = vld [vmem:[%s11477_s25 + $0x198] sm:$0xf] }
  0xa7   : > { %v8964_v7 = vcombine.low %v1118_v60, %v1128_v0  ;;  %v1146_v15 = vor.u32 %v1145_v1, %v1141_v57  ;;  %v1161_v16 = vrot.slane %v1159_v4, 5  ;;  %v1165_v18 = vrot.slane %v1163_v5, 4  ;;  %v255_v5 = vld [vmem:[%s11477_s25 + $0x19c] sm:$0xf] }
  0xa8   : > { %v1169_v19 = vshll.u32 %v320_v59, 16  ;;  %v1142_v21 = vsel %vm11504_vm3, %v1137_v8, %v1141_v57  ;;  %v1156_v22 = vor.u32 %v1155_v12, %v1151_v11  ;;  %v1174_v23 = vshrl.u32 %v248_v6, 16 }
  0xa9   : > { %v1177_v24 = vshll.u32 %v248_v6, 16  ;;  %10328 = vmatmul.mubr.msk.bf16.gmra.mrb[68].mxu1 %vm1946_vm0, %v8964_v7  ;;  %v1147_v25 = vrot.slane %v1146_v15, 4  ;;  %v1166_v26 = vor.u32 %v1165_v18, %v1161_v16  ;;  %v1183_v28 = vshll.u32 %v249_v14, 16 }
  0xaa   : > { %v1171_v27 = vrot.slane %v1169_v19, 5  ;;  %v1157_v2 = vrot.slane %v1156_v22, 4  ;;  %v1176_v30 = vrot.slane %v1174_v23, 4  ;;  %v1187_v33 = vshrl.u32 %v249_v14, 16  ;;  %v256_v23 = vld [vmem:[%s11477_s25 + $0x1a4] sm:$0xf] }
  0xab   : > { %10596 = vmatmul.mubr.msk.bf16.gmra.mrb[76].mxu0 %vm1946_vm0, %v11214_v3  ;;  %v1179_v31 = vrot.slane %v1177_v24, 5  ;;  %v1152_v35 = vsel %vm11504_vm3, %v1147_v25, %v1151_v11  ;;  %v1167_v36 = vrot.slane %v1166_v26, 4  ;;  %v1185_v37 = vrot.slane %v1183_v28, 5  ;;  %v11219_v28 = vld [vmem:[%s11477_s25 + $0x1cc] sm:$0xff]  }
  0xac   : > { %10599 = vmatprep.mubr.msk.bf16.mxu0 %vm1946_vm0, %v11215_v13  ;;  %v1193_v38 = vshll.u32 %v250_v20, 16  ;;  %v8965_v39 = vcombine.low %v1142_v21, %v1152_v35  ;;  %v1162_v40 = vsel %vm11504_vm3, %v1157_v2, %v1161_v16  ;;  %v1189_v42 = vrot.slane %v1187_v33, 4  ;;  %v322_v16 = vld [vmem:[%s11477_s25 + $0x1a0] sm:$0x1] }
  0xad   : > { %v1180_v41 = vor.u32 %v1179_v31, %v1176_v30  ;;  %v1172_v44 = vsel %vm11504_vm3, %v1167_v36, %v1171_v27  ;;  %v1197_v47 = vshrl.u32 %v250_v20, 16  ;;  %v1203_v48 = vshll.u32 %v251_v29, 16  ;;  %v11218_v21 = vld [vmem:[%s11477_s25 + $0x1c0] sm:$0xff]  }
  0xae   : > { %v1195_v45 = vrot.slane %v1193_v38, 5  ;;  %10331 = vmatprep.mubr.msk.bf16.mxu1 %vm1946_vm0, %v8965_v39  ;;  %v8966_v50 = vcombine.low %v1162_v40, %v1172_v44  ;;  %v1190_v52 = vor.u32 %v1189_v42, %v1185_v37  ;;  %v1207_v53 = vshrl.u32 %v251_v29, 16  ;;  %v257_v29 = vld [vmem:[%s11477_s25 + $0x1a8] sm:$0xf] }
  0xaf   : > { %v1181_v51 = vrot.slane %v1180_v41, 4  ;;  %v1199_v55 = vrot.slane %v1197_v47, 4  ;;  %v1205_v56 = vrot.slane %v1203_v48, 5  ;;  %v1213_v57 = vshll.u32 %v321_v34, 16  ;;  %v258_v41 = vld [vmem:[%s11477_s25 + $0x1ac] sm:$0xf] }
  0xb0   : > { %v1218_v58 = vshrl.u32 %v252_v43, 16  ;;  %v1191_v60 = vrot.slane %v1190_v52, 4  ;;  %v1209_v61 = vrot.slane %v1207_v53, 4  ;;  %v1221_v63 = vshll.u32 %v252_v43, 16 }
  0xb1   : > { %v1186_v59 = vsel %vm11504_vm3, %v1181_v51, %v1185_v37  ;;  %10332 = vmatmul.mubr.msk.bf16.gmra.mrb[72].mxu1 %vm1946_vm0, %v8966_v50  ;;  %v1200_v0 = vor.u32 %v1199_v55, %v1195_v45  ;;  %v1215_v1 = vrot.slane %v1213_v57, 5  ;;  %v1227_v4 = vshll.u32 %v253_v54, 16  ;;  %v259_v51 = vld [vmem:[%s11477_s25 + $0x1b0] sm:$0xf] }
  0xb2   : > { %v1220_v3 = vrot.slane %v1218_v58, 4  ;;  %v1196_v6 = vsel %vm11504_vm3, %v1191_v60, %v1195_v45  ;;  %v1210_v7 = vor.u32 %v1209_v61, %v1205_v56  ;;  %v1223_v8 = vrot.slane %v1221_v63, 5  ;;  %v11220_v60 = vld [vmem:[%s11477_s25 + $0x1d4] sm:$0xff]  }
  0xb3   : > { %10600 = vmatmul.mubr.msk.bf16.gmra.mrb[80].mxu0 %vm1946_vm0, %v11216_v46  ;;  %v1231_v11 = vshrl.u32 %v253_v54, 16  ;;  %v8967_v12 = vcombine.low %v1186_v59, %v1196_v6  ;;  %v1201_v13 = vrot.slane %v1200_v0, 4  ;;  %v1229_v14 = vrot.slane %v1227_v4, 5 }
  0xb4   : > { %10603 = vmatprep.mubr.msk.bf16.mxu0 %vm1946_vm0, %v11217_v49  ;;  %v1237_v15 = vshll.u32 %v254_v62, 16  ;;  %v1211_v18 = vrot.slane %v1210_v7, 4  ;;  %v1224_v19 = vor.u32 %v1223_v8, %v1220_v3  ;;  %v1241_v22 = vshrl.u32 %v254_v62, 16  ;;  %v260_v62 = vld [vmem:[%s11477_s25 + $0x1b8] sm:$0xf]  ;;  %v11221_v8 = vld [vmem:[%s11477_s25 + $0x1e0] sm:$0xff]  }
  0xb5   : > { %v1233_v20 = vrot.slane %v1231_v11, 4  ;;  %10335 = vmatprep.mubr.msk.bf16.mxu1 %vm1946_vm0, %v8967_v12  ;;  %v1206_v24 = vsel %vm11504_vm3, %v1201_v13, %v1205_v56  ;;  %v1247_v26 = vshll.u32 %v255_v5, 16  ;;  %v1251_v27 = vshrl.u32 %v255_v5, 16  ;;  %v323_v56 = vld [vmem:[%s11477_s25 + $0x1b4] sm:$0x1] }
  0xb6   : > { %v1239_v25 = vrot.slane %v1237_v15, 5  ;;  %v1216_v2 = vsel %vm11504_vm3, %v1211_v18, %v1215_v1  ;;  %v1225_v30 = vrot.slane %v1224_v19, 4  ;;  %v1243_v33 = vrot.slane %v1241_v22, 4  ;;  %v261_v11 = vld [vmem:[%s11477_s25 + $0x1bc] sm:$0xf] }
  0xb7   : > { %v1234_v31 = vor.u32 %v1233_v20, %v1229_v14  ;;  %v8968_v34 = vcombine.low %v1206_v24, %v1216_v2  ;;  %v1249_v35 = vrot.slane %v1247_v26, 5  ;;  %v1253_v36 = vrot.slane %v1251_v27, 4  ;;  %v262_v24 = vld [vmem:[%s11477_s25 + $0x1c0] sm:$0xf]  ;;  %v263_v26 = vld [vmem:[%s11477_s25 + $0x1c4] sm:$0xf] }
  0xb8   : > { %v1257_v37 = vshll.u32 %v322_v16, 16  ;;  %v1230_v38 = vsel %vm11504_vm3, %v1225_v30, %v1229_v14  ;;  %v1244_v40 = vor.u32 %v1243_v33, %v1239_v25  ;;  %v1262_v42 = vshrl.u32 %v256_v23, 16  ;;  %v324_v30 = vld [vmem:[%s11477_s25 + $0x1c8] sm:$0x1] }
  0xb9   : > { %v1235_v39 = vrot.slane %v1234_v31, 4  ;;  %10336 = vmatmul.mubr.msk.bf16.gmra.mrb[76].mxu1 %vm1946_vm0, %v8968_v34  ;;  %v1254_v43 = vor.u32 %v1253_v36, %v1249_v35  ;;  %v1265_v45 = vshll.u32 %v256_v23, 16  ;;  %v1271_v46 = vshll.u32 %v257_v29, 16 }
  0xba   : > { %v1259_v44 = vrot.slane %v1257_v37, 5  ;;  %v1245_v48 = vrot.slane %v1244_v40, 4  ;;  %v1264_v49 = vrot.slane %v1262_v42, 4  ;;  %v1275_v50 = vshrl.u32 %v257_v29, 16  ;;  %v264_v40 = vld [vmem:[%s11477_s25 + $0x1cc] sm:$0xf] }
  0xbb   : > { %10604 = vmatmul.mubr.msk.bf16.gmra.mrb[84].mxu0 %vm1946_vm0, %v11218_v21  ;;  %v1240_v47 = vsel %vm11504_vm3, %v1235_v39, %v1239_v25  ;;  %v1255_v53 = vrot.slane %v1254_v43, 4  ;;  %v1267_v54 = vrot.slane %v1265_v45, 5  ;;  %v1273_v55 = vrot.slane %v1271_v46, 5  ;;  %v11222_v43 = vld [vmem:[%s11477_s25 + $0x1e8] sm:$0xff]   ;;  %v265_v46 = vld [vmem:[%s11477_s25 + $0x1d0] sm:$0xf] }
  0xbc   : > { %10607 = vmatprep.mubr.msk.bf16.mxu0 %vm1946_vm0, %v11219_v28  ;;  %v8969_v52 = vcombine.low %v1230_v38, %v1240_v47  ;;  %v1250_v57 = vsel %vm11504_vm3, %v1245_v48, %v1249_v35  ;;  %v1277_v58 = vrot.slane %v1275_v50, 4  ;;  %v1281_v59 = vshll.u32 %v258_v41, 16 }
  0xbd   : > { %v1285_v61 = vshrl.u32 %v258_v41, 16  ;;  %v1260_v63 = vsel %vm11504_vm3, %v1255_v53, %v1259_v44  ;;  %v1268_v0 = vor.u32 %v1267_v54, %v1264_v49  ;;  %v1291_v1 = vshll.u32 %v259_v51, 16 }
  0xbe   : > { %10339 = vmatprep.mubr.msk.bf16.mxu1 %vm1946_vm0, %v8969_v52  ;;  %v1295_v3 = vshrl.u32 %v259_v51, 16  ;;  %v8970_v4 = vcombine.low %v1250_v57, %v1260_v63  ;;  %v1278_v5 = vor.u32 %v1277_v58, %v1273_v55  ;;  %v1283_v6 = vrot.slane %v1281_v59, 5  ;;  %v11223_v51 = vld [vmem:[%s11477_s25 + $0x1f4] sm:$0xff]  }
  0xbf   : > { %v1287_v7 = vrot.slane %v1285_v61, 4  ;;  %v1269_v12 = vrot.slane %v1268_v0, 4  ;;  %v1293_v13 = vrot.slane %v1291_v1, 5  ;;  %v1301_v15 = vshll.u32 %v323_v56, 16  ;;  %v266_v58 = vld [vmem:[%s11477_s25 + $0x1d4] sm:$0xf] }
  0xc0   : > { %v1297_v14 = vrot.slane %v1295_v3, 4  ;;  %v1279_v16 = vrot.slane %v1278_v5, 4  ;;  %v1306_v19 = vshrl.u32 %v260_v62, 16  ;;  %v1309_v20 = vshll.u32 %v260_v62, 16  ;;  %v267_v1 = vld [vmem:[%s11477_s25 + $0x1d8] sm:$0xf] }
  0xc1   : > { %v1288_v18 = vor.u32 %v1287_v7, %v1283_v6  ;;  %10340 = vmatmul.mubr.msk.bf16.gmra.mrb[80].mxu1 %vm1946_vm0, %v8970_v4  ;;  %v1274_v21 = vsel %vm11504_vm3, %v1269_v12, %v1273_v55  ;;  %v1303_v23 = vrot.slane %v1301_v15, 5  ;;  %v1315_v25 = vshll.u32 %v261_v11, 16 }
  0xc2   : > { %v1298_v22 = vor.u32 %v1297_v14, %v1293_v13  ;;  %v1284_v27 = vsel %vm11504_vm3, %v1279_v16, %v1283_v6  ;;  %v1308_v29 = vrot.slane %v1306_v19, 4  ;;  %v1311_v2 = vrot.slane %v1309_v20, 5  ;;  %v325_v19 = vld [vmem:[%s11477_s25 + $0x1dc] sm:$0x1]  ;;  %v268_v20 = vld [vmem:[%s11477_s25 + $0x1e0] sm:$0xf] }
  0xc3   : > { %10608 = vmatmul.mubr.msk.bf16.gmra.mrb[88].mxu0 %vm1946_vm0, %v11220_v60  ;;  %v1289_v28 = vrot.slane %v1288_v18, 4  ;;  %v8971_v31 = vcombine.low %v1274_v21, %v1284_v27  ;;  %v1317_v34 = vrot.slane %v1315_v25, 5  ;;  %v1319_v35 = vshrl.u32 %v261_v11, 16  ;;  %v11224_v18 = vld [vmem:[%s11477_s25 + $0x1fc] sm:$0xff]   ;;  %v11225_v25 = vld [vmem:[%s11477_s25 + $0x208] sm:$0xff]  }
  0xc4   : > { %10611 = vmatprep.mubr.msk.bf16.mxu0 %vm1946_vm0, %v11221_v8  ;;  %v1299_v33 = vrot.slane %v1298_v22, 4  ;;  %v1312_v37 = vor.u32 %v1311_v2, %v1308_v29  ;;  %v1325_v38 = vshll.u32 %v262_v24, 16  ;;  %v1329_v39 = vshrl.u32 %v262_v24, 16  ;;  %v269_v2 = vld [vmem:[%s11477_s25 + $0x1e4] sm:$0xf] }
  0xc5   : > { %v1294_v36 = vsel %vm11504_vm3, %v1289_v28, %v1293_v13  ;;  %10343 = vmatprep.mubr.msk.bf16.mxu1 %vm1946_vm0, %v8971_v31  ;;  %v1321_v42 = vrot.slane %v1319_v35, 4  ;;  %v1335_v44 = vshll.u32 %v263_v26, 16  ;;  %v1339_v45 = vshrl.u32 %v263_v26, 16 }
  0xc6   : > { %v1304_v41 = vsel %vm11504_vm3, %v1299_v33, %v1303_v23  ;;  %v1313_v48 = vrot.slane %v1312_v37, 4  ;;  %v1327_v49 = vrot.slane %v1325_v38, 5  ;;  %v1331_v50 = vrot.slane %v1329_v39, 4 }
  0xc7   : > { %v8972_v47 = vcombine.low %v1294_v36, %v1304_v41  ;;  %v1322_v52 = vor.u32 %v1321_v42, %v1317_v34  ;;  %v1337_v53 = vrot.slane %v1335_v44, 5  ;;  %v1341_v54 = vrot.slane %v1339_v45, 4 }
  0xc8   : > { %v1345_v55 = vshll.u32 %v324_v30, 16  ;;  %v1318_v56 = vsel %vm11504_vm3, %v1313_v48, %v1317_v34  ;;  %v1332_v57 = vor.u32 %v1331_v50, %v1327_v49  ;;  %v1350_v59 = vshrl.u32 %v264_v40, 16  ;;  %v270_v34 = vld [vmem:[%s11477_s25 + $0x1e8] sm:$0xf] }
  0xc9   : > { %v1353_v60 = vshll.u32 %v264_v40, 16  ;;  %10344 = vmatmul.mubr.msk.bf16.gmra.mrb[84].mxu1 %vm1946_vm0, %v8972_v47  ;;  %v1323_v61 = vrot.slane %v1322_v52, 4  ;;  %v1342_v62 = vor.u32 %v1341_v54, %v1337_v53  ;;  %v1359_v0 = vshll.u32 %v265_v46, 16  ;;  %v271_v40 = vld [vmem:[%s11477_s25 + $0x1ec] sm:$0xf] }
  0xca   : > { %v1347_v63 = vrot.slane %v1345_v55, 5  ;;  %v1333_v3 = vrot.slane %v1332_v57, 4  ;;  %v1352_v4 = vrot.slane %v1350_v59, 4  ;;  %v1363_v6 = vshrl.u32 %v265_v46, 16  ;;  %v272_v54 = vld [vmem:[%s11477_s25 + $0x1f4] sm:$0xf] }
  0xcb   : > { %10612 = vmatmul.mubr.msk.bf16.gmra.mrb[92].mxu0 %vm1946_vm0, %v11222_v43  ;;  %v1355_v5 = vrot.slane %v1353_v60, 5  ;;  %v1328_v7 = vsel %vm11504_vm3, %v1323_v61, %v1327_v49  ;;  %v1343_v8 = vrot.slane %v1342_v62, 4  ;;  %v1361_v11 = vrot.slane %v1359_v0, 5  ;;  %v326_v49 = vld [vmem:[%s11477_s25 + $0x1f0] sm:$0x1] }
  0xcc   : > { %10615 = vmatprep.mubr.msk.bf16.mxu0 %vm1946_vm0, %v11223_v51  ;;  %v1369_v12 = vshll.u32 %v266_v58, 16  ;;  %v8973_v13 = vcombine.low %v1318_v56, %v1328_v7  ;;  %v1338_v14 = vsel %vm11504_vm3, %v1333_v3, %v1337_v53  ;;  %v1365_v16 = vrot.slane %v1363_v6, 4  ;;  %v11226_v61 = vld [vmem:[%s11477_s25 + $0x210] sm:$0xff]   ;;  %v273_v6 = vld [vmem:[%s11477_s25 + $0x1f8] sm:$0xf] }
  0xcd   : > { %v1356_v15 = vor.u32 %v1355_v5, %v1352_v4  ;;  %v1348_v21 = vsel %vm11504_vm3, %v1343_v8, %v1347_v63  ;;  %v1373_v23 = vshrl.u32 %v266_v58, 16  ;;  %v1379_v24 = vshll.u32 %v267_v1, 16  ;;  %v11227_v5 = vld [vmem:[%s11477_s25 + $0x21c] sm:$0xff]  }
  0xce   : > { %v1371_v22 = vrot.slane %v1369_v12, 5  ;;  %10347 = vmatprep.mubr.msk.bf16.mxu1 %vm1946_vm0, %v8973_v13  ;;  %v8974_v26 = vcombine.low %v1338_v14, %v1348_v21  ;;  %v1366_v28 = vor.u32 %v1365_v16, %v1361_v11  ;;  %v1383_v29 = vshrl.u32 %v267_v1, 16  ;;  %v274_v13 = vld [vmem:[%s11477_s25 + $0x1fc] sm:$0xf] }
  0xcf   : > { %v1357_v27 = vrot.slane %v1356_v15, 4  ;;  %v1375_v30 = vrot.slane %v1373_v23, 4  ;;  %v1381_v31 = vrot.slane %v1379_v24, 5  ;;  %v1389_v33 = vshll.u32 %v325_v19, 16  ;;  %v275_v23 = vld [vmem:[%s11477_s25 + $0x200] sm:$0xf] }
  0xd0   : > { %v1394_v35 = vshrl.u32 %v268_v20, 16  ;;  %v1367_v37 = vrot.slane %v1366_v28, 4  ;;  %v1385_v38 = vrot.slane %v1383_v29, 4  ;;  %v1397_v39 = vshll.u32 %v268_v20, 16  ;;  %v327_v28 = vld [vmem:[%s11477_s25 + $0x204] sm:$0x1] }
  0xd1   : > { %v1362_v36 = vsel %vm11504_vm3, %v1357_v27, %v1361_v11  ;;  %10348 = vmatmul.mubr.msk.bf16.gmra.mrb[88].mxu1 %vm1946_vm0, %v8974_v26  ;;  %v1376_v41 = vor.u32 %v1375_v30, %v1371_v22  ;;  %v1391_v42 = vrot.slane %v1389_v33, 5  ;;  %v1403_v44 = vshll.u32 %v269_v2, 16 }
  0xd2   : > { %v1396_v43 = vrot.slane %v1394_v35, 4  ;;  %v1372_v45 = vsel %vm11504_vm3, %v1367_v37, %v1371_v22  ;;  %v1386_v46 = vor.u32 %v1385_v38, %v1381_v31  ;;  %v1399_v47 = vrot.slane %v1397_v39, 5  ;;  %v11228_v39 = vld [vmem:[%s11477_s25 + $0x224] sm:$0xff]  }
  0xd3   : > { %10616 = vmatmul.mubr.msk.bf16.gmra.mrb[96].mxu0 %vm1946_vm0, %v11224_v18  ;;  %v1407_v48 = vshrl.u32 %v269_v2, 16  ;;  %v8975_v50 = vcombine.low %v1362_v36, %v1372_v45  ;;  %v1377_v51 = vrot.slane %v1376_v41, 4  ;;  %v1405_v52 = vrot.slane %v1403_v44, 5 }
  0xd4   : > { %10619 = vmatprep.mubr.msk.bf16.mxu0 %vm1946_vm0, %v11225_v25  ;;  %v1413_v53 = vshll.u32 %v270_v34, 16  ;;  %v1387_v55 = vrot.slane %v1386_v46, 4  ;;  %v1400_v56 = vor.u32 %v1399_v47, %v1396_v43  ;;  %v1417_v58 = vshrl.u32 %v270_v34, 16  ;;  %v276_v43 = vld [vmem:[%s11477_s25 + $0x208] sm:$0xf] }
  0xd5   : > { %v1409_v57 = vrot.slane %v1407_v48, 4  ;;  %10351 = vmatprep.mubr.msk.bf16.mxu1 %vm1946_vm0, %v8975_v50  ;;  %v1382_v59 = vsel %vm11504_vm3, %v1377_v51, %v1381_v31  ;;  %v1423_v62 = vshll.u32 %v271_v40, 16  ;;  %v1427_v63 = vshrl.u32 %v271_v40, 16  ;;  %v277_v48 = vld [vmem:[%s11477_s25 + $0x20c] sm:$0xf] }
  0xd6   : > { %v1415_v60 = vrot.slane %v1413_v53, 5  ;;  %v1392_v0 = vsel %vm11504_vm3, %v1387_v55, %v1391_v42  ;;  %v1401_v1 = vrot.slane %v1400_v56, 4  ;;  %v1419_v4 = vrot.slane %v1417_v58, 4  ;;  %v11229_v42 = vld [vmem:[%s11477_s25 + $0x230] sm:$0xff]  }
  0xd7   : > { %v1410_v3 = vor.u32 %v1409_v57, %v1405_v52  ;;  %v8976_v7 = vcombine.low %v1382_v59, %v1392_v0  ;;  %v1425_v8 = vrot.slane %v1423_v62, 5  ;;  %v1429_v11 = vrot.slane %v1427_v63, 4 }
  0xd8   : > { %v1433_v12 = vshll.u32 %v326_v49, 16  ;;  %v1406_v14 = vsel %vm11504_vm3, %v1401_v1, %v1405_v52  ;;  %v1420_v16 = vor.u32 %v1419_v4, %v1415_v60  ;;  %v1438_v18 = vshrl.u32 %v272_v54, 16 }
  0xd9   : > { %v1411_v15 = vrot.slane %v1410_v3, 4  ;;  %10352 = vmatmul.mubr.msk.bf16.gmra.mrb[92].mxu1 %vm1946_vm0, %v8976_v7  ;;  %v1430_v19 = vor.u32 %v1429_v11, %v1425_v8  ;;  %v1441_v21 = vshll.u32 %v272_v54, 16  ;;  %v1447_v22 = vshll.u32 %v273_v6, 16  ;;  %v279_v3 = vld [vmem:[%s11477_s25 + $0x214] sm:$0xf] }
  0xda   : > { %v1435_v20 = vrot.slane %v1433_v12, 5  ;;  %v1421_v25 = vrot.slane %v1420_v16, 4  ;;  %v1440_v26 = vrot.slane %v1438_v18, 4  ;;  %v1451_v27 = vshrl.u32 %v273_v6, 16  ;;  %v11230_v18 = vld [vmem:[%s11477_s25 + $0x238] sm:$0xff]  }
  0xdb   : > { %10620 = vmatmul.mubr.msk.bf16.gmra.mrb[100].mxu0 %vm1946_vm0, %v11226_v61  ;;  %v1416_v24 = vsel %vm11504_vm3, %v1411_v15, %v1415_v60  ;;  %v1431_v2 = vrot.slane %v1430_v19, 4  ;;  %v1443_v30 = vrot.slane %v1441_v21, 5  ;;  %v1449_v31 = vrot.slane %v1447_v22, 5  ;;  %v278_v60 = vld [vmem:[%s11477_s25 + $0x210] sm:$0xf] }
  0xdc   : > { %10623 = vmatprep.mubr.msk.bf16.mxu0 %vm1946_vm0, %v11227_v5  ;;  %v8977_v29 = vcombine.low %v1406_v14, %v1416_v24  ;;  %v1426_v33 = vsel %vm11504_vm3, %v1421_v25, %v1425_v8  ;;  %v1453_v34 = vrot.slane %v1451_v27, 4  ;;  %v1457_v35 = vshll.u32 %v274_v13, 16  ;;  %v280_v21 = vld [vmem:[%s11477_s25 + $0x21c] sm:$0xf]  ;;  %v281_v27 = vld [vmem:[%s11477_s25 + $0x220] sm:$0xf] }
  0xdd   : > { %v1461_v36 = vshrl.u32 %v274_v13, 16  ;;  %v1436_v37 = vsel %vm11504_vm3, %v1431_v2, %v1435_v20  ;;  %v1444_v38 = vor.u32 %v1443_v30, %v1440_v26  ;;  %v1467_v40 = vshll.u32 %v275_v23, 16  ;;  %v328_v13 = vld [vmem:[%s11477_s25 + $0x218] sm:$0x1]  ;;  %v11231_v26 = vld [vmem:[%s11477_s25 + $0x244] sm:$0xff]  }
  0xde   : > { %10355 = vmatprep.mubr.msk.bf16.mxu1 %vm1946_vm0, %v8977_v29  ;;  %v1471_v41 = vshrl.u32 %v275_v23, 16  ;;  %v8978_v44 = vcombine.low %v1426_v33, %v1436_v37  ;;  %v1454_v45 = vor.u32 %v1453_v34, %v1449_v31  ;;  %v1459_v46 = vrot.slane %v1457_v35, 5  ;;  %v282_v34 = vld [vmem:[%s11477_s25 + $0x224] sm:$0xf] }
  0xdf   : > { %v1463_v47 = vrot.slane %v1461_v36, 4  ;;  %v1445_v49 = vrot.slane %v1444_v38, 4  ;;  %v1469_v50 = vrot.slane %v1467_v40, 5  ;;  %v1477_v52 = vshll.u32 %v327_v28, 16 }
  0xe0   : > { %v1473_v51 = vrot.slane %v1471_v41, 4  ;;  %v1455_v53 = vrot.slane %v1454_v45, 4  ;;  %v1482_v55 = vshrl.u32 %v276_v43, 16  ;;  %v1485_v56 = vshll.u32 %v276_v43, 16  ;;  %v283_v45 = vld [vmem:[%s11477_s25 + $0x228] sm:$0xf] }
  0xe1   : > { %v1464_v54 = vor.u32 %v1463_v47, %v1459_v46  ;;  %10356 = vmatmul.mubr.msk.bf16.gmra.mrb[96].mxu1 %vm1946_vm0, %v8978_v44  ;;  %v1450_v57 = vsel %vm11504_vm3, %v1445_v49, %v1449_v31  ;;  %v1479_v59 = vrot.slane %v1477_v52, 5  ;;  %v1491_v61 = vshll.u32 %v277_v48, 16 }
  0xe2   : > { %v1474_v58 = vor.u32 %v1473_v51, %v1469_v50  ;;  %v1460_v62 = vsel %vm11504_vm3, %v1455_v53, %v1459_v46  ;;  %v1484_v0 = vrot.slane %v1482_v55, 4  ;;  %v1487_v1 = vrot.slane %v1485_v56, 5  ;;  %v284_v55 = vld [vmem:[%s11477_s25 + $0x230] sm:$0xf] }
  0xe3   : > { %10624 = vmatmul.mubr.msk.bf16.gmra.mrb[104].mxu0 %vm1946_vm0, %v11228_v39  ;;  %v1465_v63 = vrot.slane %v1464_v54, 4  ;;  %v8979_v4 = vcombine.low %v1450_v57, %v1460_v62  ;;  %v1493_v6 = vrot.slane %v1491_v61, 5  ;;  %v1495_v7 = vshrl.u32 %v277_v48, 16  ;;  %v329_v54 = vld [vmem:[%s11477_s25 + $0x22c] sm:$0x1] }
  0xe4   : > { %10627 = vmatprep.mubr.msk.bf16.mxu0 %vm1946_vm0, %v11229_v42  ;;  %v1475_v5 = vrot.slane %v1474_v58, 4  ;;  %v1488_v11 = vor.u32 %v1487_v1, %v1484_v0  ;;  %v1501_v12 = vshll.u32 %v278_v60, 16  ;;  %v1505_v14 = vshrl.u32 %v278_v60, 16  ;;  %v11232_v58 = vld [vmem:[%s11477_s25 + $0x24c] sm:$0xff]   ;;  %v11233_v1 = vld [vmem:[%s11477_s25 + $0x258] sm:$0xff]  }
  0xe5   : > { %v1470_v8 = vsel %vm11504_vm3, %v1465_v63, %v1469_v50  ;;  %10359 = vmatprep.mubr.msk.bf16.mxu1 %vm1946_vm0, %v8979_v4  ;;  %v1497_v16 = vrot.slane %v1495_v7, 4  ;;  %v1511_v19 = vshll.u32 %v279_v3, 16  ;;  %v1515_v20 = vshrl.u32 %v279_v3, 16  ;;  %v285_v3 = vld [vmem:[%s11477_s25 + $0x234] sm:$0xf] }
  0xe6   : > { %v1480_v15 = vsel %vm11504_vm3, %v1475_v5, %v1479_v59  ;;  %v1489_v23 = vrot.slane %v1488_v11, 4  ;;  %v1503_v24 = vrot.slane %v1501_v12, 5  ;;  %v1507_v25 = vrot.slane %v1505_v14, 4 }
  0xe7   : > { %v8980_v22 = vcombine.low %v1470_v8, %v1480_v15  ;;  %v1498_v28 = vor.u32 %v1497_v16, %v1493_v6  ;;  %v1513_v29 = vrot.slane %v1511_v19, 5  ;;  %v1517_v2 = vrot.slane %v1515_v20, 4 }
  0xe8   : > { %v1521_v30 = vshll.u32 %v328_v13, 16  ;;  %v1494_v31 = vsel %vm11504_vm3, %v1489_v23, %v1493_v6  ;;  %v1508_v33 = vor.u32 %v1507_v25, %v1503_v24  ;;  %v1526_v35 = vshrl.u32 %v280_v21, 16  ;;  %v286_v13 = vld [vmem:[%s11477_s25 + $0x238] sm:$0xf] }
  0xe9   : > { %v1529_v36 = vshll.u32 %v280_v21, 16  ;;  %10360 = vmatmul.mubr.msk.bf16.gmra.mrb[100].mxu1 %vm1946_vm0, %v8980_v22  ;;  %v1499_v37 = vrot.slane %v1498_v28, 4  ;;  %v1518_v38 = vor.u32 %v1517_v2, %v1513_v29  ;;  %v1535_v40 = vshll.u32 %v281_v27, 16 }
  0xea   : > { %v1523_v39 = vrot.slane %v1521_v30, 5  ;;  %v1509_v41 = vrot.slane %v1508_v33, 4  ;;  %v1528_v42 = vrot.slane %v1526_v35, 4  ;;  %v1539_v44 = vshrl.u32 %v281_v27, 16 }
  0xeb   : > { %10628 = vmatmul.mubr.msk.bf16.gmra.mrb[108].mxu0 %vm1946_vm0, %v11230_v18  ;;  %v1531_v43 = vrot.slane %v1529_v36, 5  ;;  %v1504_v46 = vsel %vm11504_vm3, %v1499_v37, %v1503_v24  ;;  %v1519_v47 = vrot.slane %v1518_v38, 4  ;;  %v1537_v48 = vrot.slane %v1535_v40, 5  ;;  %v287_v24 = vld [vmem:[%s11477_s25 + $0x23c] sm:$0xf]  ;;  %v11234_v36 = vld [vmem:[%s11477_s25 + $0x260] sm:$0xff]  }
  0xec   : > { %10631 = vmatprep.mubr.msk.bf16.mxu0 %vm1946_vm0, %v11231_v26  ;;  %v1545_v49 = vshll.u32 %v282_v34, 16  ;;  %v8981_v50 = vcombine.low %v1494_v31, %v1504_v46  ;;  %v1514_v51 = vsel %vm11504_vm3, %v1509_v41, %v1513_v29  ;;  %v1541_v53 = vrot.slane %v1539_v44, 4  ;;  %v330_v31 = vld [vmem:[%s11477_s25 + $0x240] sm:$0x1]  ;;  %v11235_v44 = vld [vmem:[%s11477_s25 + $0x26c] sm:$0xff]  }
  0xed   : > { %v1532_v52 = vor.u32 %v1531_v43, %v1528_v42  ;;  %v1524_v56 = vsel %vm11504_vm3, %v1519_v47, %v1523_v39  ;;  %v1549_v59 = vshrl.u32 %v282_v34, 16  ;;  %v1555_v60 = vshll.u32 %v283_v45, 16  ;;  %v288_v39 = vld [vmem:[%s11477_s25 + $0x244] sm:$0xf] }
  0xee   : > { %v1547_v57 = vrot.slane %v1545_v49, 5  ;;  %10363 = vmatprep.mubr.msk.bf16.mxu1 %vm1946_vm0, %v8981_v50  ;;  %v8982_v61 = vcombine.low %v1514_v51, %v1524_v56  ;;  %v1542_v63 = vor.u32 %v1541_v53, %v1537_v48  ;;  %v1559_v0 = vshrl.u32 %v283_v45, 16  ;;  %v289_v45 = vld [vmem:[%s11477_s25 + $0x248] sm:$0xf]  ;;  %v290_v56 = vld [vmem:[%s11477_s25 + $0x24c] sm:$0xf] }
  0xef   : > { %v1533_v62 = vrot.slane %v1532_v52, 4  ;;  %v1551_v4 = vrot.slane %v1549_v59, 4  ;;  %v1557_v5 = vrot.slane %v1555_v60, 5  ;;  %v1565_v6 = vshll.u32 %v329_v54, 16 }
  0xf0   : > { %v1570_v7 = vshrl.u32 %v284_v55, 16  ;;  %v1543_v11 = vrot.slane %v1542_v63, 4  ;;  %v1561_v12 = vrot.slane %v1559_v0, 4  ;;  %v1573_v14 = vshll.u32 %v284_v55, 16  ;;  %v291_v63 = vld [vmem:[%s11477_s25 + $0x250] sm:$0xf] }
  0xf1   : > { %v1538_v8 = vsel %vm11504_vm3, %v1533_v62, %v1537_v48  ;;  %10364 = vmatmul.mubr.msk.bf16.gmra.mrb[104].mxu1 %vm1946_vm0, %v8982_v61  ;;  %v1552_v15 = vor.u32 %v1551_v4, %v1547_v57  ;;  %v1567_v16 = vrot.slane %v1565_v6, 5  ;;  %v1579_v19 = vshll.u32 %v285_v3, 16 }
  0xf2   : > { %v1572_v18 = vrot.slane %v1570_v7, 4  ;;  %v1548_v20 = vsel %vm11504_vm3, %v1543_v11, %v1547_v57  ;;  %v1562_v21 = vor.u32 %v1561_v12, %v1557_v5  ;;  %v1575_v22 = vrot.slane %v1573_v14, 5  ;;  %v11236_v14 = vld [vmem:[%s11477_s25 + $0x274] sm:$0xff]  }
  0xf3   : > { %10632 = vmatmul.mubr.msk.bf16.gmra.mrb[112].mxu0 %vm1946_vm0, %v11232_v58  ;;  %v1583_v23 = vshrl.u32 %v285_v3, 16  ;;  %v8983_v25 = vcombine.low %v1538_v8, %v1548_v20  ;;  %v1553_v26 = vrot.slane %v1552_v15, 4  ;;  %v1581_v27 = vrot.slane %v1579_v19, 5  ;;  %v331_v8 = vld [vmem:[%s11477_s25 + $0x254] sm:$0x1] }
  0xf4   : > { %10635 = vmatprep.mubr.msk.bf16.mxu0 %vm1946_vm0, %v11233_v1  ;;  %v1589_v28 = vshll.u32 %v286_v13, 16  ;;  %v1563_v29 = vrot.slane %v1562_v21, 4  ;;  %v1576_v2 = vor.u32 %v1575_v22, %v1572_v18  ;;  %v1593_v33 = vshrl.u32 %v286_v13, 16  ;;  %v292_v18 = vld [vmem:[%s11477_s25 + $0x258] sm:$0xf] }
  0xf5   : > { %v1585_v30 = vrot.slane %v1583_v23, 4  ;;  %10367 = vmatprep.mubr.msk.bf16.mxu1 %vm1946_vm0, %v8983_v25  ;;  %v1558_v34 = vsel %vm11504_vm3, %v1553_v26, %v1557_v5  ;;  %v1599_v37 = vshll.u32 %v287_v24, 16  ;;  %v1603_v38 = vshrl.u32 %v287_v24, 16  ;;  %v11237_v23 = vld [vmem:[%s11477_s25 + $0x280] sm:$0xff]   ;;  %v293_v24 = vld [vmem:[%s11477_s25 + $0x25c] sm:$0xf] }
  0xf6   : > { %v1591_v35 = vrot.slane %v1589_v28, 5  ;;  %v1568_v40 = vsel %vm11504_vm3, %v1563_v29, %v1567_v16  ;;  %v1577_v41 = vrot.slane %v1576_v2, 4  ;;  %v1595_v43 = vrot.slane %v1593_v33, 4 }
  0xf7   : > { %v1586_v42 = vor.u32 %v1585_v30, %v1581_v27  ;;  %v8984_v46 = vcombine.low %v1558_v34, %v1568_v40  ;;  %v1601_v47 = vrot.slane %v1599_v37, 5  ;;  %v1605_v48 = vrot.slane %v1603_v38, 4 }
  0xf8   : > { %v1609_v49 = vshll.u32 %v330_v31, 16  ;;  %v1582_v50 = vsel %vm11504_vm3, %v1577_v41, %v1581_v27  ;;  %v1596_v52 = vor.u32 %v1595_v43, %v1591_v35  ;;  %v1614_v53 = vshrl.u32 %v288_v39, 16 }
  0xf9   : > { %v1587_v51 = vrot.slane %v1586_v42, 4  ;;  %10368 = vmatmul.mubr.msk.bf16.gmra.mrb[108].mxu1 %vm1946_vm0, %v8984_v46  ;;  %v1606_v54 = vor.u32 %v1605_v48, %v1601_v47  ;;  %v1617_v57 = vshll.u32 %v288_v39, 16  ;;  %v1623_v58 = vshll.u32 %v289_v45, 16  ;;  %v295_v42 = vld [vmem:[%s11477_s25 + $0x264] sm:$0xf] }
  0xfa   : > { %v1611_v55 = vrot.slane %v1609_v49, 5  ;;  %v1597_v60 = vrot.slane %v1596_v52, 4  ;;  %v1616_v61 = vrot.slane %v1614_v53, 4  ;;  %v1627_v62 = vshrl.u32 %v289_v45, 16 }
  0xfb   : > { %10636 = vmatmul.mubr.msk.bf16.gmra.mrb[116].mxu0 %vm1946_vm0, %v11234_v36  ;;  %v1592_v59 = vsel %vm11504_vm3, %v1587_v51, %v1591_v35  ;;  %v1607_v1 = vrot.slane %v1606_v54, 4  ;;  %v1619_v3 = vrot.slane %v1617_v57, 5  ;;  %v1625_v4 = vrot.slane %v1623_v58, 5  ;;  %v294_v36 = vld [vmem:[%s11477_s25 + $0x260] sm:$0xf]  ;;  %v11238_v54 = vld [vmem:[%s11477_s25 + $0x288] sm:$0xff]  }
  0xfc   : > { %10639 = vmatprep.mubr.msk.bf16.mxu0 %vm1946_vm0, %v11235_v44  ;;  %v8985_v0 = vcombine.low %v1582_v50, %v1592_v59  ;;  %v1602_v5 = vsel %vm11504_vm3, %v1597_v60, %v1601_v47  ;;  %v1629_v6 = vrot.slane %v1627_v62, 4  ;;  %v1633_v7 = vshll.u32 %v290_v56, 16  ;;  %v332_v50 = vld [vmem:[%s11477_s25 + $0x268] sm:$0x1]  ;;  %v9446_v57 = vld [vmem:[%s11477_s25 + $0x14] sm:$0xf] }
  0xfd   : > { %v1637_v11 = vshrl.u32 %v290_v56, 16  ;;  %v1612_v12 = vsel %vm11504_vm3, %v1607_v1, %v1611_v55  ;;  %v1620_v13 = vor.u32 %v1619_v3, %v1616_v61  ;;  %v1643_v15 = vshll.u32 %v291_v63, 16  ;;  %v9447_v62 = vld [vmem:[%s11477_s25 + $0x18] sm:$0xf] }
  0xfe   : > { %10371 = vmatprep.mubr.msk.bf16.mxu1 %vm1946_vm0, %v8985_v0  ;;  %v1647_v16 = vshrl.u32 %v291_v63, 16  ;;  %v8986_v19 = vcombine.low %v1602_v5, %v1612_v12  ;;  %v1630_v20 = vor.u32 %v1629_v6, %v1625_v4  ;;  %v1635_v21 = vrot.slane %v1633_v7, 5  ;;  %v9448_v6 = vld [vmem:[%s11477_s25 + $0x1c] sm:$0xf] }
  0xff   : > { %v1639_v22 = vrot.slane %v1637_v11, 4  ;;  %v1621_v25 = vrot.slane %v1620_v13, 4  ;;  %v1645_v26 = vrot.slane %v1643_v15, 5  ;;  %v1653_v28 = vshll.u32 %v331_v8, 16 }
 0x100   : > { %v1649_v27 = vrot.slane %v1647_v16, 4  ;;  %v1631_v29 = vrot.slane %v1630_v20, 4  ;;  %v1658_v30 = vshrl.u32 %v292_v18, 16  ;;  %v1661_v31 = vshll.u32 %v292_v18, 16  ;;  %v296_v20 = vld [vmem:[%s11477_s25 + $0x26c] sm:$0xf] }
 0x101   : > { %v1640_v2 = vor.u32 %v1639_v22, %v1635_v21  ;;  %10372 = vmatmul.mubr.msk.bf16.gmra.mrb[112].mxu1 %vm1946_vm0, %v8986_v19  ;;  %v1626_v33 = vsel %vm11504_vm3, %v1621_v25, %v1625_v4  ;;  %v1655_v35 = vrot.slane %v1653_v28, 5  ;;  %v1667_v37 = vshll.u32 %v293_v24, 16 }
 0x102   : > { %v1650_v34 = vor.u32 %v1649_v27, %v1645_v26  ;;  %v1636_v38 = vsel %vm11504_vm3, %v1631_v29, %v1635_v21  ;;  %v1660_v40 = vrot.slane %v1658_v30, 4  ;;  %v1663_v41 = vrot.slane %v1661_v31, 5  ;;  %v297_v29 = vld [vmem:[%s11477_s25 + $0x270] sm:$0xf] }
 0x103   : > { %10640 = vmatmul.mubr.msk.bf16.gmra.mrb[120].mxu0 %vm1946_vm0, %v11236_v14  ;;  %v1641_v39 = vrot.slane %v1640_v2, 4  ;;  %v8987_v43 = vcombine.low %v1626_v33, %v1636_v38  ;;  %v1669_v45 = vrot.slane %v1667_v37, 5  ;;  %v1671_v46 = vshrl.u32 %v293_v24, 16  ;;  %v298_v33 = vld [vmem:[%s11477_s25 + $0x274] sm:$0xf] }
 0x104   : > { %10643 = vmatprep.mubr.msk.bf16.mxu0 %vm1946_vm0, %v11237_v23  ;;  %v1651_v44 = vrot.slane %v1650_v34, 4  ;;  %v1664_v48 = vor.u32 %v1663_v41, %v1660_v40  ;;  %v1677_v49 = vshll.u32 %v294_v36, 16  ;;  %v1681_v51 = vshrl.u32 %v294_v36, 16 }
 0x105   : > { %v1646_v47 = vsel %vm11504_vm3, %v1641_v39, %v1645_v26  ;;  %10375 = vmatprep.mubr.msk.bf16.mxu1 %vm1946_vm0, %v8987_v43  ;;  %v1673_v53 = vrot.slane %v1671_v46, 4  ;;  %v1687_v55 = vshll.u32 %v295_v42, 16  ;;  %v1691_v56 = vshrl.u32 %v295_v42, 16  ;;  %v9449_v39 = vld [vmem:[%s11477_s25 + $0x20] sm:$0xf] }
 0x106   : > { %v1656_v52 = vsel %vm11504_vm3, %v1651_v44, %v1655_v35  ;;  %v1665_v59 = vrot.slane %v1664_v48, 4  ;;  %v1679_v60 = vrot.slane %v1677_v49, 5  ;;  %v1683_v61 = vrot.slane %v1681_v51, 4  ;;  %v9450_v51 = vld [vmem:[%s11477_s25 + $0x24] sm:$0x1] }
 0x107   : > { %v8988_v58 = vcombine.low %v1646_v47, %v1656_v52  ;;  %v1674_v63 = vor.u32 %v1673_v53, %v1669_v45  ;;  %v1689_v0 = vrot.slane %v1687_v55, 5  ;;  %v1693_v1 = vrot.slane %v1691_v56, 4 }
 0x108   : > { %v1697_v3 = vshll.u32 %v332_v50, 16  ;;  %v1670_v4 = vsel %vm11504_vm3, %v1665_v59, %v1669_v45  ;;  %v1684_v5 = vor.u32 %v1683_v61, %v1679_v60  ;;  %v5231_v7 = vshrl.u32 %v9446_v57, 16 }
 0x109   : > { %v5234_v8 = vshll.u32 %v9446_v57, 16  ;;  %10376 = vmatmul.mubr.msk.bf16.gmra.mrb[116].mxu1 %vm1946_vm0, %v8988_v58  ;;  %v1675_v11 = vrot.slane %v1674_v63, 4  ;;  %v1694_v12 = vor.u32 %v1693_v1, %v1689_v0  ;;  %v5240_v14 = vshll.u32 %v9447_v62, 16  ;;  %v299_v57 = vld [vmem:[%s11477_s25 + $0x278] sm:$0xf] }
 0x10a   : > { %v1699_v13 = vrot.slane %v1697_v3, 5  ;;  %v1685_v15 = vrot.slane %v1684_v5, 4  ;;  %v5233_v16 = vrot.slane %v5231_v7, 4  ;;  %v5244_v19 = vshrl.u32 %v9447_v62, 16  ;;  %v333_v1 = vld [vmem:[%s11477_s25 + $0x27c] sm:$0x1] }
 0x10b   : > { %10644 = vmatmul.mubr.msk.bf16.gmra.mrb[124].mxu0 %vm1946_vm0, %v11238_v54  ;;  %v5236_v18 = vrot.slane %v5234_v8, 5  ;;  %v1680_v21 = vsel %vm11504_vm3, %v1675_v11, %v1679_v60  ;;  %v1695_v22 = vrot.slane %v1694_v12, 4  ;;  %v5242_v23 = vrot.slane %v5240_v14, 5  ;;  %v9451_v8 = vld [vmem:[%s11477_s25 + $0x28] sm:$0xf] }
 0x10c   : > { %v5250_v24 = vshll.u32 %v9448_v6, 16  ;;  %v8989_v25 = vcombine.low %v1670_v4, %v1680_v21  ;;  %v1690_v26 = vsel %vm11504_vm3, %v1685_v15, %v1689_v0  ;;  %v5246_v28 = vrot.slane %v5244_v19, 4  ;;  %v9452_v15 = vld [vmem:[%s11477_s25 + $0x2c] sm:$0xf] }
 0x10d   : > { %v5237_v27 = vor.u32 %v5236_v18, %v5233_v16  ;;  %v1700_v2 = vsel %vm11504_vm3, %v1695_v22, %v1699_v13  ;;  %v5254_v31 = vshrl.u32 %v9448_v6, 16  ;;  %v1702_v34 = vshrl.u32 %v296_v20, 16 }
 0x10e   : > { %v5252_v30 = vrot.slane %v5250_v24, 5  ;;  %10379 = vmatprep.mubr.msk.bf16.mxu1 %vm1946_vm0, %v8989_v25  ;;  %v8990_v35 = vcombine.low %v1690_v26, %v1700_v2  ;;  %v5247_v37 = vor.u32 %v5246_v28, %v5242_v23  ;;  %v1705_v38 = vshll.u32 %v296_v20, 16 }
 0x10f   : > { %v5238_v36 = vrot.slane %v5237_v27, 4  ;;  %v5256_v40 = vrot.slane %v5254_v31, 4  ;;  %v1704_v41 = vrot.slane %v1702_v34, 4  ;;  %v1711_v42 = vshll.u32 %v297_v29, 16  ;;  %v9453_v27 = vld [vmem:[%s11477_s25 + $0x30] sm:$0xf] }
 0x110   : > { %v1715_v43 = vshrl.u32 %v297_v29, 16  ;;  %v5248_v45 = vrot.slane %v5247_v37, 4  ;;  %v1707_v46 = vrot.slane %v1705_v38, 5  ;;  %v1721_v47 = vshll.u32 %v298_v33, 16  ;;  %v9454_v34 = vld [vmem:[%s11477_s25 + $0x34] sm:$0xf] }
 0x111   : > { %v5243_v44 = vsel %vm11504_vm3, %v5238_v36, %v5242_v23  ;;  %10380 = vmatmul.mubr.msk.bf16.gmra.mrb[120].mxu1 %vm1946_vm0, %v8990_v35  ;;  %v5257_v48 = vor.u32 %v5256_v40, %v5252_v30  ;;  %v1713_v49 = vrot.slane %v1711_v42, 5  ;;  %v5260_v52 = vshll.u32 %v9449_v39, 16 }
 0x112   : > { %v1717_v50 = vrot.slane %v1715_v43, 4  ;;  %v5253_v53 = vsel %vm11504_vm3, %v5248_v45, %v5252_v30  ;;  %v1708_v54 = vor.u32 %v1707_v46, %v1704_v41  ;;  %v1723_v55 = vrot.slane %v1721_v47, 5  ;;  %v9455_v43 = vld [vmem:[%s11477_s25 + $0x38] sm:$0x1]  ;;  %v11292_v46 = vld [vmem:[%s11477_s25] sm:$0xf] }
 0x113   : > { %v5264_v56 = vshrl.u32 %v9449_v39, 16  ;;  %v5258_v58 = vrot.slane %v5257_v48, 4  ;;  %v9608_v59 = vcombine.low %v5243_v44, %v5253_v53  ;;  %v5262_v61 = vrot.slane %v5260_v52, 5  ;;  %v11293_v47 = vld [vmem:[%s11477_s25 + $0x4] sm:$0xf] }
 0x114   : > { %v1718_v60 = vor.u32 %v1717_v50, %v1713_v49  ;;  %v1709_v62 = vrot.slane %v1708_v54, 4  ;;  %v5270_v0 = vshll.u32 %v9450_v51, 16  ;;  %v1725_v3 = vshrl.u32 %v298_v33, 16  ;;  %v9456_v50 = vld [vmem:[%s11477_s25 + $0x3c] sm:$0xf] }
 0x115   : > { %v5266_v63 = vrot.slane %v5264_v56, 4  ;;  %10649 = vmatprep.mubr.msk.bf16.mxu0 %vm1946_vm0, %v9608_v59  ;;  %v5263_v5 = vsel %vm11504_vm3, %v5258_v58, %v5262_v61  ;;  %v1731_v6 = vshll.u32 %v299_v57, 16  ;;  %v1735_v7 = vshrl.u32 %v299_v57, 16 }
 0x116   : > { %v1719_v4 = vrot.slane %v1718_v60, 4  ;;  %v1714_v11 = vsel %vm11504_vm3, %v1709_v62, %v1713_v49  ;;  %v5272_v13 = vrot.slane %v5270_v0, 5  ;;  %v1727_v14 = vrot.slane %v1725_v3, 4 }
 0x117   : > { %v5267_v12 = vor.u32 %v5266_v63, %v5262_v61  ;;  %v1733_v18 = vrot.slane %v1731_v6, 5  ;;  %v1737_v19 = vrot.slane %v1735_v7, 4  ;;  %v1741_v20 = vshll.u32 %v333_v1, 16 }
 0x118   : > { %v1724_v16 = vsel %vm11504_vm3, %v1719_v4, %v1723_v55  ;;  %v1728_v23 = vor.u32 %v1727_v14, %v1723_v55  ;;  %v5275_v24 = vshrl.u32 %v9451_v8, 16  ;;  %v5278_v28 = vshll.u32 %v9451_v8, 16  ;;  %v9457_v55 = vld [vmem:[%s11477_s25 + $0x40] sm:$0xf]  ;;  %v9458_v4 = vld [vmem:[%s11477_s25 + $0x44] sm:$0xf] }
 0x119   : > { %v8991_v21 = vcombine.low %v1714_v11, %v1724_v16  ;;  %v5268_v22 = vrot.slane %v5267_v12, 4  ;;  %v1738_v25 = vor.u32 %v1737_v19, %v1733_v18  ;;  %v1743_v26 = vrot.slane %v1741_v20, 5  ;;  %v9459_v12 = vld [vmem:[%s11477_s25 + $0x48] sm:$0xf] }
 0x11a   : > { %v5284_v29 = vshll.u32 %v9452_v15, 16  ;;  %v1729_v30 = vrot.slane %v1728_v23, 4  ;;  %v5277_v31 = vrot.slane %v5275_v24, 4  ;;  %v5288_v33 = vshrl.u32 %v9452_v15, 16 }
 0x11b   : > { %10383 = vmatprep.mubr.msk.bf16.mxu1 %vm1946_vm0, %v8991_v21  ;;  %v5273_v2 = vsel %vm11504_vm3, %v5268_v22, %v5272_v13  ;;  %v1739_v36 = vrot.slane %v1738_v25, 4  ;;  %v5280_v37 = vrot.slane %v5278_v28, 5  ;;  %v5294_v41 = vshll.u32 %v9453_v27, 16  ;;  %v9460_v22 = vld [vmem:[%s11477_s25 + $0x4c] sm:$0x1] }
 0x11c   : > { %v9609_v35 = vcombine.low %v5263_v5, %v5273_v2  ;;  %v5286_v38 = vrot.slane %v5284_v29, 5  ;;  %v1734_v39 = vsel %vm11504_vm3, %v1729_v30, %v1733_v18  ;;  %v5290_v40 = vrot.slane %v5288_v33, 4  ;;  %v11294_v25 = vld [vmem:[%s11477_s25 + $0x14] sm:$0xf]  ;;  %v9461_v33 = vld [vmem:[%s11477_s25 + $0x50] sm:$0xf] }
 0x11d   : > { %v5298_v42 = vshrl.u32 %v9453_v27, 16  ;;  %v1744_v44 = vsel %vm11504_vm3, %v1739_v36, %v1743_v26  ;;  %v5281_v45 = vor.u32 %v5280_v37, %v5277_v31  ;;  %v9058_v48 = vcombine.low %v11292_v46, %v11293_v47  ;;  %v11295_v26 = vld [vmem:[%s11477_s25 + $0x18] sm:$0xf]  ;;  %v11296_v46 = vld [vmem:[%s11477_s25 + $0x1c] sm:$0xf] }
 0x11e   : > { %10650 = vmatmul.mubr.msk.bf16.vlgmr.msra.gmra.mrb[0].mxu0 %vm1946_vm0, %v9609_v35  ;;  %v5304_v49 = vshll.u32 %v9454_v34, 16  ;;  %v8992_v51 = vcombine.low %v1734_v39, %v1744_v44  ;;  %v5291_v52 = vor.u32 %v5290_v40, %v5286_v38  ;;  %v5296_v53 = vrot.slane %v5294_v41, 5  ;;  %v11297_v47 = vld [vmem:[%s11477_s25 + $0x20] sm:$0xf] }
 0x11f   : > { %v5300_v54 = vrot.slane %v5298_v42, 4  ;;  %v5282_v56 = vrot.slane %v5281_v45, 4  ;;  %v5308_v58 = vshrl.u32 %v9454_v34, 16  ;;  %v5314_v59 = vshll.u32 %v9455_v43, 16  ;;  %v9463_v43 = vld [vmem:[%s11477_s25 + $0x58] sm:$0xf] }
 0x120   : > { %v5306_v57 = vrot.slane %v5304_v49, 5  ;;  %10384 = vmatmul.mubr.msk.bf16.gmra.mrb[124].mxu1 %vm1946_vm0, %v8992_v51  ;;  %v5292_v60 = vrot.slane %v5291_v52, 4  ;;  %v5319_v62 = vshrl.u32 %v9456_v50, 16  ;;  %v5322_v63 = vshll.u32 %v9456_v50, 16 }
 0x121   : > { %v5301_v61 = vor.u32 %v5300_v54, %v5296_v53  ;;  %v5287_v0 = vsel %vm11504_vm3, %v5282_v56, %v5286_v38  ;;  %10389 = vmatprep.mubr.msk.bf16.mxu1 %vm1946_vm0, %v9058_v48  ;;  %v5310_v1 = vrot.slane %v5308_v58, 4  ;;  %v5316_v3 = vrot.slane %v5314_v59, 5  ;;  %v9462_v38 = vld [vmem:[%s11477_s25 + $0x54] sm:$0xf] }
 0x122   : > { %v5328_v5 = vshll.u32 %v9457_v55, 16  ;;  %v5297_v6 = vsel %vm11504_vm3, %v5292_v60, %v5296_v53  ;;  %v5321_v8 = vrot.slane %v5319_v62, 4  ;;  %v5324_v11 = vrot.slane %v5322_v63, 5 }
 0x123   : > { %v5302_v7 = vrot.slane %v5301_v61, 4  ;;  %v9610_v13 = vcombine.low %v5287_v0, %v5297_v6  ;;  %v5311_v14 = vor.u32 %v5310_v1, %v5306_v57  ;;  %v5332_v16 = vshrl.u32 %v9457_v55, 16  ;;  %v9464_v55 = vld [vmem:[%s11477_s25 + $0x5c] sm:$0xf]  ;;  %v9465_v0 = vld [vmem:[%s11477_s25 + $0x60] sm:$0x1] }
 0x124   : > { %v5330_v15 = vrot.slane %v5328_v5, 5  ;;  %v5325_v19 = vor.u32 %v5324_v11, %v5321_v8  ;;  %v5338_v20 = vshll.u32 %v9458_v4, 16  ;;  %v5342_v21 = vshrl.u32 %v9458_v4, 16  ;;  %v11298_v4 = vld [vmem:[%s11477_s25 + $0x28] sm:$0xf] }
 0x125   : > { %v5307_v18 = vsel %vm11504_vm3, %v5302_v7, %v5306_v57  ;;  %10653 = vmatprep.mubr.msk.bf16.mxu0 %vm1946_vm0, %v9610_v13  ;;  %v5312_v23 = vrot.slane %v5311_v14, 4  ;;  %v5334_v24 = vrot.slane %v5332_v16, 4  ;;  %v9060_v27 = vcombine.low %v11294_v25, %v11295_v26  ;;  %v11299_v5 = vld [vmem:[%s11477_s25 + $0x2c] sm:$0xf]  ;;  %v9466_v8 = vld [vmem:[%s11477_s25 + $0x64] sm:$0xf] }
 0x126   : > { %v5348_v28 = vshll.u32 %v9459_v12, 16  ;;  %v5326_v29 = vrot.slane %v5325_v19, 4  ;;  %v5340_v2 = vrot.slane %v5338_v20, 5  ;;  %v5344_v30 = vrot.slane %v5342_v21, 4  ;;  %v11300_v20 = vld [vmem:[%s11477_s25 + $0x30] sm:$0xf] }
 0x127   : > { %v5352_v31 = vshrl.u32 %v9459_v12, 16  ;;  %v5317_v34 = vsel %vm11504_vm3, %v5312_v23, %v5316_v3  ;;  %v5335_v35 = vor.u32 %v5334_v24, %v5330_v15  ;;  %v5358_v37 = vshll.u32 %v9460_v22, 16  ;;  %v11301_v21 = vld [vmem:[%s11477_s25 + $0x34] sm:$0xf] }
 0x128   : > { %v5350_v36 = vrot.slane %v5348_v28, 5  ;;  %v9611_v39 = vcombine.low %v5307_v18, %v5317_v34  ;;  %10390 = vmatmul.mubr.msk.bf16.vlgmr.msra.gmra.mrb[0].mxu1 %vm1946_vm0, %v9059_v17  ;;  %v5331_v40 = vsel %vm11504_vm3, %v5326_v29, %v5330_v15  ;;  %v5345_v41 = vor.u32 %v5344_v30, %v5340_v2  ;;  %v9467_v15 = vld [vmem:[%s11477_s25 + $0x68] sm:$0xf]  ;;  %v9468_v29 = vld [vmem:[%s11477_s25 + $0x6c] sm:$0xf] }
 0x129   : > { %v5354_v42 = vrot.slane %v5352_v31, 4  ;;  %v5336_v44 = vrot.slane %v5335_v35, 4  ;;  %10393 = vmatprep.mubr.msk.bf16.mxu1 %vm1946_vm0, %v9060_v27  ;;  %v5360_v45 = vrot.slane %v5358_v37, 5  ;;  %v9061_v48 = vcombine.low %v11296_v46, %v11297_v47  ;;  %v11302_v47 = vld [vmem:[%s11477_s25 + $0x3c] sm:$0xf] }
 0x12a   : > { %v5363_v49 = vshrl.u32 %v9461_v33, 16  ;;  %10654 = vmatmul.mubr.msk.bf16.gmra.mrb[4].mxu0 %vm1946_vm0, %v9611_v39  ;;  %v5346_v9 = vrot.slane %v5345_v41, 4  ;;  %v5366_v17 = vshll.u32 %v9461_v33, 16  ;;  %v5372_v50 = vshll.u32 %v9462_v38, 16 }
 0x12b   : > { %v5355_v10 = vor.u32 %v5354_v42, %v5350_v36  ;;  %v5341_v51 = vsel %vm11504_vm3, %v5336_v44, %v5340_v2  ;;  %v5376_v53 = vshrl.u32 %v9462_v38, 16  ;;  %v5382_v54 = vshll.u32 %v9463_v43, 16 }
 0x12c   : > { %v5365_v52 = vrot.slane %v5363_v49, 4  ;;  %v9612_v56 = vcombine.low %v5331_v40, %v5341_v51  ;;  %v5351_v57 = vsel %vm11504_vm3, %v5346_v9, %v5350_v36  ;;  %v5368_v59 = vrot.slane %v5366_v17, 5  ;;  %v9469_v36 = vld [vmem:[%s11477_s25 + $0x70] sm:$0xf]  ;;  %v9470_v9 = vld [vmem:[%s11477_s25 + $0x74] sm:$0x1] }
 0x12d   : > { %v5356_v58 = vrot.slane %v5355_v10, 4  ;;  %v5374_v60 = vrot.slane %v5372_v50, 5  ;;  %v5378_v61 = vrot.slane %v5376_v53, 4  ;;  %v5384_v62 = vrot.slane %v5382_v54, 5  ;;  %v9471_v53 = vld [vmem:[%s11477_s25 + $0x78] sm:$0xf] }
 0x12e   : > { %v5386_v63 = vshrl.u32 %v9463_v43, 16  ;;  %10657 = vmatprep.mubr.msk.bf16.mxu0 %vm1946_vm0, %v9612_v56  ;;  %v5369_v3 = vor.u32 %v5368_v59, %v5365_v52  ;;  %v9062_v6 = vcombine.low %v11298_v4, %v11299_v5  ;;  %v5392_v7 = vshll.u32 %v9464_v55, 16 }
 0x12f   : > { %v5361_v1 = vsel %vm11504_vm3, %v5356_v58, %v5360_v45  ;;  %v5379_v12 = vor.u32 %v5378_v61, %v5374_v60  ;;  %v5396_v14 = vshrl.u32 %v9464_v55, 16  ;;  %v5402_v19 = vshll.u32 %v9465_v0, 16  ;;  %v9472_v58 = vld [vmem:[%s11477_s25 + $0x7c] sm:$0xf] }
 0x130   : > { %v9613_v11 = vcombine.low %v5351_v57, %v5361_v1  ;;  %v5388_v13 = vrot.slane %v5386_v63, 4  ;;  %10394 = vmatmul.mubr.msk.bf16.gmra.mrb[4].mxu1 %vm1946_vm0, %v9061_v48  ;;  %v5370_v16 = vrot.slane %v5369_v3, 4  ;;  %v5394_v18 = vrot.slane %v5392_v7, 5  ;;  %v11303_v48 = vld [vmem:[%s11477_s25 + $0x40] sm:$0xf] }
 0x131   : > { %v9063_v22 = vcombine.low %v11300_v20, %v11301_v21  ;;  %v5380_v23 = vrot.slane %v5379_v12, 4  ;;  %10397 = vmatprep.mubr.msk.bf16.mxu1 %vm1946_vm0, %v9062_v6  ;;  %v5398_v25 = vrot.slane %v5396_v14, 4  ;;  %v5407_v26 = vshrl.u32 %v9466_v8, 16  ;;  %v11305_v63 = vld [vmem:[%s11477_s25 + $0x48] sm:$0xf] }
 0x132   : > { %v5389_v24 = vor.u32 %v5388_v13, %v5384_v62  ;;  %10658 = vmatmul.mubr.msk.bf16.gmra.mrb[8].mxu0 %vm1946_vm0, %v9613_v11  ;;  %v5375_v27 = vsel %vm11504_vm3, %v5370_v16, %v5374_v60  ;;  %v5404_v28 = vrot.slane %v5402_v19, 5  ;;  %v5410_v2 = vshll.u32 %v9466_v8, 16  ;;  %v9473_v11 = vld [vmem:[%s11477_s25 + $0x80] sm:$0xf] }
 0x133   : > { %v5416_v30 = vshll.u32 %v9467_v15, 16  ;;  %v5385_v31 = vsel %vm11504_vm3, %v5380_v23, %v5384_v62  ;;  %v5399_v34 = vor.u32 %v5398_v25, %v5394_v18  ;;  %v5409_v35 = vrot.slane %v5407_v26, 4  ;;  %v11304_v62 = vld [vmem:[%s11477_s25 + $0x44] sm:$0xf] }
 0x134   : > { %v5390_v33 = vrot.slane %v5389_v24, 4  ;;  %v9614_v37 = vcombine.low %v5375_v27, %v5385_v31  ;;  %v5412_v38 = vrot.slane %v5410_v2, 5  ;;  %v5420_v40 = vshrl.u32 %v9467_v15, 16  ;;  %v9475_v27 = vld [vmem:[%s11477_s25 + $0x88] sm:$0x1] }
 0x135   : > { %v5418_v39 = vrot.slane %v5416_v30, 5  ;;  %v5400_v42 = vrot.slane %v5399_v34, 4  ;;  %v5426_v43 = vshll.u32 %v9468_v29, 16  ;;  %v5430_v44 = vshrl.u32 %v9468_v29, 16  ;;  %v11306_v29 = vld [vmem:[%s11477_s25 + $0x50] sm:$0xf] }
 0x136   : > { %v5395_v41 = vsel %vm11504_vm3, %v5390_v33, %v5394_v18  ;;  %10661 = vmatprep.mubr.msk.bf16.mxu0 %vm1946_vm0, %v9614_v37  ;;  %v5413_v45 = vor.u32 %v5412_v38, %v5409_v35  ;;  %v5422_v46 = vrot.slane %v5420_v40, 4  ;;  %v9064_v49 = vcombine.low %v11302_v47, %v11303_v48  ;;  %v9474_v18 = vld [vmem:[%s11477_s25 + $0x84] sm:$0xf]  ;;  %v11307_v2 = vld [vmem:[%s11477_s25 + $0x54] sm:$0xf] }
 0x137   : > { %v5436_v10 = vshll.u32 %v9469_v36, 16  ;;  %v5405_v17 = vsel %vm11504_vm3, %v5400_v42, %v5404_v28  ;;  %v5428_v50 = vrot.slane %v5426_v43, 5  ;;  %v5432_v51 = vrot.slane %v5430_v44, 4  ;;  %v9476_v34 = vld [vmem:[%s11477_s25 + $0x8c] sm:$0xf] }
 0x138   : > { %v5440_v52 = vshrl.u32 %v9469_v36, 16  ;;  %v9615_v54 = vcombine.low %v5395_v41, %v5405_v17  ;;  %10398 = vmatmul.mubr.msk.bf16.gmra.mrb[8].mxu1 %vm1946_vm0, %v9063_v22  ;;  %v5414_v55 = vrot.slane %v5413_v45, 4  ;;  %v5423_v56 = vor.u32 %v5422_v46, %v5418_v39  ;;  %v9477_v43 = vld [vmem:[%s11477_s25 + $0x90] sm:$0xf]  ;;  %v11308_v46 = vld [vmem:[%s11477_s25 + $0x58] sm:$0xf] }
 0x139   : > { %v5438_v57 = vrot.slane %v5436_v10, 5  ;;  %10401 = vmatprep.mubr.msk.bf16.mxu1 %vm1946_vm0, %v9064_v49  ;;  %v5433_v59 = vor.u32 %v5432_v51, %v5428_v50  ;;  %v5446_v61 = vshll.u32 %v9470_v9, 16  ;;  %v9065_v0 = vcombine.low %v11304_v62, %v11305_v63  ;;  %v11309_v47 = vld [vmem:[%s11477_s25 + $0x5c] sm:$0xf] }
 0x13a   : > { %v5442_v60 = vrot.slane %v5440_v52, 4  ;;  %10662 = vmatmul.mubr.msk.bf16.gmra.mrb[12].mxu0 %vm1946_vm0, %v9615_v54  ;;  %v5419_v1 = vsel %vm11504_vm3, %v5414_v55, %v5418_v39  ;;  %v5424_v3 = vrot.slane %v5423_v56, 4  ;;  %v5451_v4 = vshrl.u32 %v9471_v53, 16 }
 0x13b   : > { %v5454_v5 = vshll.u32 %v9471_v53, 16  ;;  %v5434_v6 = vrot.slane %v5433_v59, 4  ;;  %v5448_v8 = vrot.slane %v5446_v61, 5  ;;  %v5460_v12 = vshll.u32 %v9472_v58, 16 }
 0x13c   : > { %v5443_v7 = vor.u32 %v5442_v60, %v5438_v57  ;;  %v5429_v13 = vsel %vm11504_vm3, %v5424_v3, %v5428_v50  ;;  %v5453_v14 = vrot.slane %v5451_v4, 4  ;;  %v5464_v16 = vshrl.u32 %v9472_v58, 16  ;;  %v9478_v50 = vld [vmem:[%s11477_s25 + $0x94] sm:$0xf]  ;;  %v9479_v60 = vld [vmem:[%s11477_s25 + $0x98] sm:$0xf] }
 0x13d   : > { %v5456_v15 = vrot.slane %v5454_v5, 5  ;;  %v9616_v19 = vcombine.low %v5419_v1, %v5429_v13  ;;  %v5439_v20 = vsel %vm11504_vm3, %v5434_v6, %v5438_v57  ;;  %v5462_v22 = vrot.slane %v5460_v12, 5  ;;  %v9480_v1 = vld [vmem:[%s11477_s25 + $0x9c] sm:$0x1]  ;;  %v11310_v6 = vld [vmem:[%s11477_s25 + $0x64] sm:$0xf] }
 0x13e   : > { %v5444_v21 = vrot.slane %v5443_v7, 4  ;;  %v5466_v24 = vrot.slane %v5464_v16, 4  ;;  %v5470_v25 = vshll.u32 %v9473_v11, 16  ;;  %v5474_v26 = vshrl.u32 %v9473_v11, 16  ;;  %v11311_v7 = vld [vmem:[%s11477_s25 + $0x68] sm:$0xf] }
 0x13f   : > { %v5457_v23 = vor.u32 %v5456_v15, %v5453_v14  ;;  %10665 = vmatprep.mubr.msk.bf16.mxu0 %vm1946_vm0, %v9616_v19  ;;  %v9066_v30 = vcombine.low %v11306_v29, %v11307_v2  ;;  %v5480_v31 = vshll.u32 %v9474_v18, 16  ;;  %v5484_v33 = vshrl.u32 %v9474_v18, 16  ;;  %v9481_v11 = vld [vmem:[%s11477_s25 + $0xa0] sm:$0xf] }
 0x140   : > { %v5449_v28 = vsel %vm11504_vm3, %v5444_v21, %v5448_v8  ;;  %10402 = vmatmul.mubr.msk.bf16.gmra.mrb[12].mxu1 %vm1946_vm0, %v9065_v0  ;;  %v5467_v37 = vor.u32 %v5466_v24, %v5462_v22  ;;  %v5472_v38 = vrot.slane %v5470_v25, 5  ;;  %v5476_v39 = vrot.slane %v5474_v26, 4  ;;  %v11313_v24 = vld [vmem:[%s11477_s25 + $0x70] sm:$0xf]  ;;  %v9482_v26 = vld [vmem:[%s11477_s25 + $0xa4] sm:$0xf] }
 0x141   : > { %v9617_v35 = vcombine.low %v5439_v20, %v5449_v28  ;;  %v5458_v36 = vrot.slane %v5457_v23, 4  ;;  %10405 = vmatprep.mubr.msk.bf16.mxu1 %vm1946_vm0, %v9066_v30  ;;  %v5482_v40 = vrot.slane %v5480_v31, 5  ;;  %v5486_v41 = vrot.slane %v5484_v33, 4  ;;  %v11312_v23 = vld [vmem:[%s11477_s25 + $0x6c] sm:$0xf] }
 0x142   : > { %v5490_v42 = vshll.u32 %v9475_v27, 16  ;;  %v5468_v45 = vrot.slane %v5467_v37, 4  ;;  %v9067_v48 = vcombine.low %v11308_v46, %v11309_v47  ;;  %v5495_v49 = vshrl.u32 %v9476_v34, 16  ;;  %v9483_v31 = vld [vmem:[%s11477_s25 + $0xa8] sm:$0xf] }
 0x143   : > { %10666 = vmatmul.mubr.msk.bf16.gmra.mrb[16].mxu0 %vm1946_vm0, %v9617_v35  ;;  %v5463_v44 = vsel %vm11504_vm3, %v5458_v36, %v5462_v22  ;;  %v5477_v9 = vor.u32 %v5476_v39, %v5472_v38  ;;  %v5487_v10 = vor.u32 %v5486_v41, %v5482_v40  ;;  %v5498_v51 = vshll.u32 %v9476_v34, 16  ;;  %v9484_v41 = vld [vmem:[%s11477_s25 + $0xac] sm:$0xf]  ;;  %v9485_v46 = vld [vmem:[%s11477_s25 + $0xb0] sm:$0x1] }
 0x144   : > { %v5492_v17 = vrot.slane %v5490_v42, 5  ;;  %v5473_v52 = vsel %vm11504_vm3, %v5468_v45, %v5472_v38  ;;  %v5497_v53 = vrot.slane %v5495_v49, 4  ;;  %v5504_v54 = vshll.u32 %v9477_v43, 16 }
 0x145   : > { %v5508_v55 = vshrl.u32 %v9477_v43, 16  ;;  %v9618_v56 = vcombine.low %v5463_v44, %v5473_v52  ;;  %v5478_v57 = vrot.slane %v5477_v9, 4  ;;  %v5488_v58 = vrot.slane %v5487_v10, 4  ;;  %v11314_v9 = vld [vmem:[%s11477_s25 + $0x78] sm:$0xf] }
 0x146   : > { %v5500_v59 = vrot.slane %v5498_v51, 5  ;;  %v5506_v61 = vrot.slane %v5504_v54, 5  ;;  %v5514_v63 = vshll.u32 %v9478_v50, 16  ;;  %v5518_v0 = vshrl.u32 %v9478_v50, 16  ;;  %v11315_v10 = vld [vmem:[%s11477_s25 + $0x7c] sm:$0xf] }
 0x147   : > { %v5510_v62 = vrot.slane %v5508_v55, 4  ;;  %10669 = vmatprep.mubr.msk.bf16.mxu0 %vm1946_vm0, %v9618_v56  ;;  %v5483_v3 = vsel %vm11504_vm3, %v5478_v57, %v5482_v40  ;;  %v5493_v4 = vsel %vm11504_vm3, %v5488_v58, %v5492_v17  ;;  %v9068_v8 = vcombine.low %v11310_v6, %v11311_v7  ;;  %v9486_v58 = vld [vmem:[%s11477_s25 + $0xb4] sm:$0xf] }
 0x148   : > { %v5501_v5 = vor.u32 %v5500_v59, %v5497_v53  ;;  %v9619_v12 = vcombine.low %v5483_v3, %v5493_v4  ;;  %10406 = vmatmul.mubr.msk.bf16.gmra.mrb[16].mxu1 %vm1946_vm0, %v9067_v48  ;;  %v5516_v14 = vrot.slane %v5514_v63, 5  ;;  %v5520_v15 = vrot.slane %v5518_v0, 4  ;;  %v9487_v63 = vld [vmem:[%s11477_s25 + $0xb8] sm:$0xf]  ;;  %v11316_v4 = vld [vmem:[%s11477_s25 + $0x80] sm:$0xf] }
 0x149   : > { %v5511_v13 = vor.u32 %v5510_v62, %v5506_v61  ;;  %10409 = vmatprep.mubr.msk.bf16.mxu1 %vm1946_vm0, %v9068_v8  ;;  %v5524_v18 = vshll.u32 %v9479_v60, 16  ;;  %v5528_v19 = vshrl.u32 %v9479_v60, 16  ;;  %v5534_v20 = vshll.u32 %v9480_v1, 16 }
 0x14a   : > { %v5502_v16 = vrot.slane %v5501_v5, 4  ;;  %v5521_v22 = vor.u32 %v5520_v15, %v5516_v14  ;;  %v9069_v25 = vcombine.low %v11312_v23, %v11313_v24  ;;  %v5539_v27 = vshrl.u32 %v9481_v11, 16  ;;  %v11317_v5 = vld [vmem:[%s11477_s25 + $0x84] sm:$0xf] }
 0x14b   : > { %10670 = vmatmul.mubr.msk.bf16.gmra.mrb[20].mxu0 %vm1946_vm0, %v9619_v12  ;;  %v5512_v21 = vrot.slane %v5511_v13, 4  ;;  %v5526_v29 = vrot.slane %v5524_v18, 5  ;;  %v5530_v2 = vrot.slane %v5528_v19, 4  ;;  %v5536_v30 = vrot.slane %v5534_v20, 5  ;;  %v9489_v19 = vld [vmem:[%s11477_s25 + $0xc0] sm:$0xf] }
 0x14c   : > { %v5507_v28 = vsel %vm11504_vm3, %v5502_v16, %v5506_v61  ;;  %v5522_v34 = vrot.slane %v5521_v22, 4  ;;  %v5541_v35 = vrot.slane %v5539_v27, 4  ;;  %v5542_v36 = vshll.u32 %v9481_v11, 16  ;;  %v9488_v11 = vld [vmem:[%s11477_s25 + $0xbc] sm:$0xf] }
 0x14d   : > { %v5517_v33 = vsel %vm11504_vm3, %v5512_v21, %v5516_v14  ;;  %v5531_v38 = vor.u32 %v5530_v2, %v5526_v29  ;;  %v5548_v39 = vshll.u32 %v9482_v26, 16  ;;  %v5552_v40 = vshrl.u32 %v9482_v26, 16  ;;  %v11318_v2 = vld [vmem:[%s11477_s25 + $0x8c] sm:$0xf] }
 0x14e   : > { %v9620_v37 = vcombine.low %v5507_v28, %v5517_v33  ;;  %v5527_v42 = vsel %vm11504_vm3, %v5522_v34, %v5526_v29  ;;  %v5544_v43 = vrot.slane %v5542_v36, 5  ;;  %v5558_v44 = vshll.u32 %v9483_v31, 16  ;;  %v9490_v33 = vld [vmem:[%s11477_s25 + $0xc4] sm:$0x1] }
 0x14f   : > { %v5562_v45 = vshrl.u32 %v9483_v31, 16  ;;  %v5532_v47 = vrot.slane %v5531_v38, 4  ;;  %v5550_v48 = vrot.slane %v5548_v39, 5  ;;  %v5554_v49 = vrot.slane %v5552_v40, 4  ;;  %v9491_v39 = vld [vmem:[%s11477_s25 + $0xc8] sm:$0xf] }
 0x150   : > { %10673 = vmatprep.mubr.msk.bf16.mxu0 %vm1946_vm0, %v9620_v37  ;;  %v9070_v17 = vcombine.low %v11314_v9, %v11315_v10  ;;  %10410 = vmatmul.mubr.msk.bf16.gmra.mrb[20].mxu1 %vm1946_vm0, %v9069_v25  ;;  %v5545_v50 = vor.u32 %v5544_v43, %v5541_v35  ;;  %v5560_v51 = vrot.slane %v5558_v44, 5  ;;  %v5568_v53 = vshll.u32 %v9484_v41, 16  ;;  %v9492_v44 = vld [vmem:[%s11477_s25 + $0xcc] sm:$0xf] }
 0x151   : > { %v5564_v52 = vrot.slane %v5562_v45, 4  ;;  %v5537_v54 = vsel %vm11504_vm3, %v5532_v47, %v5536_v30  ;;  %v5555_v55 = vor.u32 %v5554_v49, %v5550_v48  ;;  %v5572_v56 = vshrl.u32 %v9484_v41, 16  ;;  %v11319_v30 = vld [vmem:[%s11477_s25 + $0x90] sm:$0xf]  ;;  %v11321_v49 = vld [vmem:[%s11477_s25 + $0x98] sm:$0xf] }
 0x152   : > { %10413 = vmatprep.mubr.msk.bf16.mxu1 %vm1946_vm0, %v9070_v17  ;;  %v5578_v57 = vshll.u32 %v9485_v46, 16  ;;  %v9621_v59 = vcombine.low %v5527_v42, %v5537_v54  ;;  %v5546_v60 = vrot.slane %v5545_v50, 4  ;;  %v5570_v62 = vrot.slane %v5568_v53, 5  ;;  %v9493_v50 = vld [vmem:[%s11477_s25 + $0xd0] sm:$0xf] }
 0x153   : > { %v5565_v61 = vor.u32 %v5564_v52, %v5560_v51  ;;  %v5556_v0 = vrot.slane %v5555_v55, 4  ;;  %v5574_v1 = vrot.slane %v5572_v56, 4  ;;  %v9071_v6 = vcombine.low %v11316_v4, %v11317_v5 }
 0x154   : > { %v5580_v3 = vrot.slane %v5578_v57, 5  ;;  %10674 = vmatmul.mubr.msk.bf16.gmra.mrb[24].mxu0 %vm1946_vm0, %v9621_v59  ;;  %v5551_v7 = vsel %vm11504_vm3, %v5546_v60, %v5550_v48  ;;  %v5583_v12 = vshrl.u32 %v9486_v58, 16  ;;  %v5586_v13 = vshll.u32 %v9486_v58, 16  ;;  %v11320_v48 = vld [vmem:[%s11477_s25 + $0x94] sm:$0xf] }
 0x155   : > { %v5566_v8 = vrot.slane %v5565_v61, 4  ;;  %v5561_v14 = vsel %vm11504_vm3, %v5556_v0, %v5560_v51  ;;  %v5575_v15 = vor.u32 %v5574_v1, %v5570_v62  ;;  %v5592_v16 = vshll.u32 %v9487_v63, 16  ;;  %v9494_v61 = vld [vmem:[%s11477_s25 + $0xd4] sm:$0xf] }
 0x156   : > { %v5596_v18 = vshrl.u32 %v9487_v63, 16  ;;  %v9622_v20 = vcombine.low %v5551_v7, %v5561_v14  ;;  %v5585_v22 = vrot.slane %v5583_v12, 4  ;;  %v5588_v23 = vrot.slane %v5586_v13, 5  ;;  %v11323_v7 = vld [vmem:[%s11477_s25 + $0xa4] sm:$0xf] }
 0x157   : > { %v5571_v21 = vsel %vm11504_vm3, %v5566_v8, %v5570_v62  ;;  %v5576_v24 = vrot.slane %v5575_v15, 4  ;;  %v5594_v25 = vrot.slane %v5592_v16, 5  ;;  %v5602_v27 = vshll.u32 %v9488_v11, 16  ;;  %v9496_v16 = vld [vmem:[%s11477_s25 + $0xdc] sm:$0xf] }
 0x158   : > { %v5598_v26 = vrot.slane %v5596_v18, 4  ;;  %10677 = vmatprep.mubr.msk.bf16.mxu0 %vm1946_vm0, %v9622_v20  ;;  %10414 = vmatmul.mubr.msk.bf16.gmra.mrb[24].mxu1 %vm1946_vm0, %v9071_v6  ;;  %v5589_v28 = vor.u32 %v5588_v23, %v5585_v22  ;;  %v5606_v29 = vshrl.u32 %v9488_v11, 16  ;;  %v9072_v31 = vcombine.low %v11318_v2, %v11319_v30  ;;  %v11322_v6 = vld [vmem:[%s11477_s25 + $0xa0] sm:$0xf]  ;;  %v9495_v11 = vld [vmem:[%s11477_s25 + $0xd8] sm:$0x1] }
 0x159   : > { %v5612_v34 = vshll.u32 %v9489_v19, 16  ;;  %v5581_v35 = vsel %vm11504_vm3, %v5576_v24, %v5580_v3  ;;  %v5604_v37 = vrot.slane %v5602_v27, 5  ;;  %v5616_v38 = vshrl.u32 %v9489_v19, 16  ;;  %v9497_v22 = vld [vmem:[%s11477_s25 + $0xe0] sm:$0xf] }
 0x15a   : > { %v5599_v36 = vor.u32 %v5598_v26, %v5594_v25  ;;  %v9623_v40 = vcombine.low %v5571_v21, %v5581_v35  ;;  %v5590_v41 = vrot.slane %v5589_v28, 4  ;;  %10417 = vmatprep.mubr.msk.bf16.mxu1 %vm1946_vm0, %v9072_v31  ;;  %v5608_v42 = vrot.slane %v5606_v29, 4  ;;  %v11324_v26 = vld [vmem:[%s11477_s25 + $0xa8] sm:$0xf]  ;;  %v11325_v27 = vld [vmem:[%s11477_s25 + $0xac] sm:$0xf] }
 0x15b   : > { %v5614_v43 = vrot.slane %v5612_v34, 5  ;;  %v5618_v46 = vrot.slane %v5616_v38, 4  ;;  %v5622_v47 = vshll.u32 %v9490_v33, 16  ;;  %v9073_v9 = vcombine.low %v11320_v48, %v11321_v49  ;;  %v9498_v31 = vld [vmem:[%s11477_s25 + $0xe4] sm:$0xf] }
 0x15c   : > { %v5600_v45 = vrot.slane %v5599_v36, 4  ;;  %10678 = vmatmul.mubr.msk.bf16.gmra.mrb[28].mxu0 %vm1946_vm0, %v9623_v40  ;;  %v5595_v10 = vsel %vm11504_vm3, %v5590_v41, %v5594_v25  ;;  %v5609_v17 = vor.u32 %v5608_v42, %v5604_v37  ;;  %v5627_v51 = vshrl.u32 %v9491_v39, 16 }
 0x15d   : > { %v5630_v52 = vshll.u32 %v9491_v39, 16  ;;  %v5619_v54 = vor.u32 %v5618_v46, %v5614_v43  ;;  %v5624_v55 = vrot.slane %v5622_v47, 5  ;;  %v5636_v56 = vshll.u32 %v9492_v44, 16  ;;  %v9499_v46 = vld [vmem:[%s11477_s25 + $0xe8] sm:$0xf] }
 0x15e   : > { %v5605_v53 = vsel %vm11504_vm3, %v5600_v45, %v5604_v37  ;;  %v5610_v58 = vrot.slane %v5609_v17, 4  ;;  %v5629_v59 = vrot.slane %v5627_v51, 4  ;;  %v5640_v0 = vshrl.u32 %v9492_v44, 16 }
 0x15f   : > { %v9624_v57 = vcombine.low %v5595_v10, %v5605_v53  ;;  %v5632_v60 = vrot.slane %v5630_v52, 5  ;;  %v5620_v62 = vrot.slane %v5619_v54, 4  ;;  %v5638_v63 = vrot.slane %v5636_v56, 5  ;;  %v9500_v10 = vld [vmem:[%s11477_s25 + $0xec] sm:$0x1] }
 0x160   : > { %v5646_v1 = vshll.u32 %v9493_v50, 16  ;;  %v5615_v3 = vsel %vm11504_vm3, %v5610_v58, %v5614_v43  ;;  %10418 = vmatmul.mubr.msk.bf16.gmra.mrb[28].mxu1 %vm1946_vm0, %v9073_v9  ;;  %v5650_v5 = vshrl.u32 %v9493_v50, 16  ;;  %v9074_v8 = vcombine.low %v11322_v6, %v11323_v7  ;;  %v11326_v52 = vld [vmem:[%s11477_s25 + $0xb4] sm:$0xf]  ;;  %v11327_v53 = vld [vmem:[%s11477_s25 + $0xb8] sm:$0xf] }
 0x161   : > { %10681 = vmatprep.mubr.msk.bf16.mxu0 %vm1946_vm0, %v9624_v57  ;;  %v5633_v4 = vor.u32 %v5632_v60, %v5629_v59  ;;  %v5625_v12 = vsel %vm11504_vm3, %v5620_v62, %v5624_v55  ;;  %v5642_v13 = vrot.slane %v5640_v0, 4  ;;  %v5656_v15 = vshll.u32 %v9494_v61, 16  ;;  %v9501_v59 = vld [vmem:[%s11477_s25 + $0xf0] sm:$0xf]  ;;  %v9502_v0 = vld [vmem:[%s11477_s25 + $0xf4] sm:$0xf] }
 0x162   : > { %v5648_v14 = vrot.slane %v5646_v1, 5  ;;  %v9625_v18 = vcombine.low %v5615_v3, %v5625_v12  ;;  %10421 = vmatprep.mubr.msk.bf16.mxu1 %vm1946_vm0, %v9074_v8  ;;  %v5652_v20 = vrot.slane %v5650_v5, 4  ;;  %v5660_v21 = vshrl.u32 %v9494_v61, 16  ;;  %v11328_v5 = vld [vmem:[%s11477_s25 + $0xbc] sm:$0xf] }
 0x163   : > { %v5634_v19 = vrot.slane %v5633_v4, 4  ;;  %v5643_v23 = vor.u32 %v5642_v13, %v5638_v63  ;;  %v5658_v24 = vrot.slane %v5656_v15, 5  ;;  %v5666_v25 = vshll.u32 %v9495_v11, 16  ;;  %v11329_v6 = vld [vmem:[%s11477_s25 + $0xc0] sm:$0xf] }
 0x164   : > { %v9075_v28 = vcombine.low %v11324_v26, %v11325_v27  ;;  %10682 = vmatmul.mubr.msk.bf16.gmra.mrb[32].mxu0 %vm1946_vm0, %v9625_v18  ;;  %v5653_v2 = vor.u32 %v5652_v20, %v5648_v14  ;;  %v5662_v30 = vrot.slane %v5660_v21, 4  ;;  %v5671_v33 = vshrl.u32 %v9496_v16, 16  ;;  %v9503_v13 = vld [vmem:[%s11477_s25 + $0xf8] sm:$0xf] }
 0x165   : > { %v5639_v29 = vsel %vm11504_vm3, %v5634_v19, %v5638_v63  ;;  %v5644_v34 = vrot.slane %v5643_v23, 4  ;;  %v5668_v35 = vrot.slane %v5666_v25, 5  ;;  %v5674_v36 = vshll.u32 %v9496_v16, 16 }
 0x166   : > { %v5680_v37 = vshll.u32 %v9497_v22, 16  ;;  %v5654_v38 = vrot.slane %v5653_v2, 4  ;;  %v5663_v39 = vor.u32 %v5662_v30, %v5658_v24  ;;  %v5673_v40 = vrot.slane %v5671_v33, 4  ;;  %v11331_v33 = vld [vmem:[%s11477_s25 + $0xcc] sm:$0xf] }
 0x167   : > { %v5684_v41 = vshrl.u32 %v9497_v22, 16  ;;  %v5649_v42 = vsel %vm11504_vm3, %v5644_v34, %v5648_v14  ;;  %v5676_v43 = vrot.slane %v5674_v36, 5  ;;  %v5690_v45 = vshll.u32 %v9498_v31, 16 }
 0x168   : > { %v5682_v44 = vrot.slane %v5680_v37, 5  ;;  %v9626_v47 = vcombine.low %v5639_v29, %v5649_v42  ;;  %v5659_v48 = vsel %vm11504_vm3, %v5654_v38, %v5658_v24  ;;  %v5664_v49 = vrot.slane %v5663_v39, 4  ;;  %10422 = vmatmul.mubr.msk.bf16.gmra.mrb[32].mxu1 %vm1946_vm0, %v9075_v28  ;;  %v9504_v24 = vld [vmem:[%s11477_s25 + $0xfc] sm:$0xf] }
 0x169   : > { %v5686_v9 = vrot.slane %v5684_v41, 4  ;;  %v5677_v17 = vor.u32 %v5676_v43, %v5673_v40  ;;  %v5692_v50 = vrot.slane %v5690_v45, 5  ;;  %v5694_v51 = vshrl.u32 %v9498_v31, 16  ;;  %v11330_v31 = vld [vmem:[%s11477_s25 + $0xc8] sm:$0xf] }
 0x16a   : > { %v9076_v54 = vcombine.low %v11326_v52, %v11327_v53  ;;  %10685 = vmatprep.mubr.msk.bf16.mxu0 %vm1946_vm0, %v9626_v47  ;;  %v5669_v55 = vsel %vm11504_vm3, %v5664_v49, %v5668_v35  ;;  %v5700_v57 = vshll.u32 %v9499_v46, 16  ;;  %v5704_v58 = vshrl.u32 %v9499_v46, 16  ;;  %v9505_v35 = vld [vmem:[%s11477_s25 + $0x100] sm:$0x1]  ;;  %v9506_v40 = vld [vmem:[%s11477_s25 + $0x104] sm:$0xf] }
 0x16b   : > { %v5687_v56 = vor.u32 %v5686_v9, %v5682_v44  ;;  %v9627_v60 = vcombine.low %v5659_v48, %v5669_v55  ;;  %v5678_v61 = vrot.slane %v5677_v17, 4  ;;  %v5696_v62 = vrot.slane %v5694_v51, 4  ;;  %v9507_v45 = vld [vmem:[%s11477_s25 + $0x108] sm:$0xf]  ;;  %v11332_v49 = vld [vmem:[%s11477_s25 + $0xd0] sm:$0xf] }
 0x16c   : > { %10425 = vmatprep.mubr.msk.bf16.mxu1 %vm1946_vm0, %v9076_v54  ;;  %v5710_v63 = vshll.u32 %v9500_v10, 16  ;;  %v5702_v3 = vrot.slane %v5700_v57, 5  ;;  %v5706_v4 = vrot.slane %v5704_v58, 4  ;;  %v9077_v7 = vcombine.low %v11328_v5, %v11329_v6  ;;  %v11333_v9 = vld [vmem:[%s11477_s25 + $0xd4] sm:$0xf] }
 0x16d   : > { %v5688_v1 = vrot.slane %v5687_v56, 4  ;;  %10686 = vmatmul.mubr.msk.bf16.gmra.mrb[36].mxu0 %vm1946_vm0, %v9627_v60  ;;  %v5683_v8 = vsel %vm11504_vm3, %v5678_v61, %v5682_v44  ;;  %v5697_v11 = vor.u32 %v5696_v62, %v5692_v50  ;;  %v5715_v14 = vshrl.u32 %v9501_v59, 16  ;;  %v9508_v55 = vld [vmem:[%s11477_s25 + $0x10c] sm:$0xf]  ;;  %v9509_v62 = vld [vmem:[%s11477_s25 + $0x110] sm:$0xf] }
 0x16e   : > { %v5712_v12 = vrot.slane %v5710_v63, 5  ;;  %v5707_v16 = vor.u32 %v5706_v4, %v5702_v3  ;;  %v5718_v18 = vshll.u32 %v9501_v59, 16  ;;  %v5724_v19 = vshll.u32 %v9502_v0, 16 }
 0x16f   : > { %v5693_v15 = vsel %vm11504_vm3, %v5688_v1, %v5692_v50  ;;  %v5698_v21 = vrot.slane %v5697_v11, 4  ;;  %v5717_v22 = vrot.slane %v5715_v14, 4  ;;  %v5728_v23 = vshrl.u32 %v9502_v0, 16 }
 0x170   : > { %v9628_v20 = vcombine.low %v5683_v8, %v5693_v15  ;;  %v5708_v25 = vrot.slane %v5707_v16, 4  ;;  %10426 = vmatmul.mubr.msk.bf16.gmra.mrb[36].mxu1 %vm1946_vm0, %v9077_v7  ;;  %v5720_v26 = vrot.slane %v5718_v18, 5  ;;  %v5726_v27 = vrot.slane %v5724_v19, 5  ;;  %v9510_v15 = vld [vmem:[%s11477_s25 + $0x114] sm:$0x1] }
 0x171   : > { %v5734_v28 = vshll.u32 %v9503_v13, 16  ;;  %v5703_v29 = vsel %vm11504_vm3, %v5698_v21, %v5702_v3  ;;  %v5730_v2 = vrot.slane %v5728_v23, 4  ;;  %v5738_v30 = vshrl.u32 %v9503_v13, 16  ;;  %v11335_v13 = vld [vmem:[%s11477_s25 + $0xe0] sm:$0xf] }
 0x172   : > { %10689 = vmatprep.mubr.msk.bf16.mxu0 %vm1946_vm0, %v9628_v20  ;;  %v9078_v34 = vcombine.low %v11330_v31, %v11331_v33  ;;  %v5713_v36 = vsel %vm11504_vm3, %v5708_v25, %v5712_v12  ;;  %v5721_v37 = vor.u32 %v5720_v26, %v5717_v22  ;;  %v5744_v39 = vshll.u32 %v9504_v24, 16  ;;  %v11334_v12 = vld [vmem:[%s11477_s25 + $0xdc] sm:$0xf]  ;;  %v9511_v22 = vld [vmem:[%s11477_s25 + $0x118] sm:$0xf] }
 0x173   : > { %v5736_v38 = vrot.slane %v5734_v28, 5  ;;  %v9629_v41 = vcombine.low %v5703_v29, %v5713_v36  ;;  %v5731_v42 = vor.u32 %v5730_v2, %v5726_v27  ;;  %v5740_v43 = vrot.slane %v5738_v30, 4  ;;  %v11336_v30 = vld [vmem:[%s11477_s25 + $0xe4] sm:$0xf]  ;;  %v11337_v31 = vld [vmem:[%s11477_s25 + $0xe8] sm:$0xf] }
 0x174   : > { %10429 = vmatprep.mubr.msk.bf16.mxu1 %vm1946_vm0, %v9078_v34  ;;  %v5748_v44 = vshrl.u32 %v9504_v24, 16  ;;  %v5722_v46 = vrot.slane %v5721_v37, 4  ;;  %v5746_v47 = vrot.slane %v5744_v39, 5  ;;  %v5754_v48 = vshll.u32 %v9505_v35, 16 }
 0x175   : > { %v9079_v10 = vcombine.low %v11332_v49, %v11333_v9  ;;  %10690 = vmatmul.mubr.msk.bf16.gmra.mrb[40].mxu0 %vm1946_vm0, %v9629_v41  ;;  %v5732_v17 = vrot.slane %v5731_v42, 4  ;;  %v5741_v50 = vor.u32 %v5740_v43, %v5736_v38  ;;  %v5759_v52 = vshrl.u32 %v9506_v40, 16  ;;  %v9513_v41 = vld [vmem:[%s11477_s25 + $0x120] sm:$0xf] }
 0x176   : > { %v5750_v51 = vrot.slane %v5748_v44, 4  ;;  %v5727_v53 = vsel %vm11504_vm3, %v5722_v46, %v5726_v27  ;;  %v5756_v54 = vrot.slane %v5754_v48, 5  ;;  %v5762_v56 = vshll.u32 %v9506_v40, 16  ;;  %v9512_v27 = vld [vmem:[%s11477_s25 + $0x11c] sm:$0xf] }
 0x177   : > { %v5768_v57 = vshll.u32 %v9507_v45, 16  ;;  %v5737_v58 = vsel %vm11504_vm3, %v5732_v17, %v5736_v38  ;;  %v5742_v59 = vrot.slane %v5741_v50, 4  ;;  %v5761_v61 = vrot.slane %v5759_v52, 4 }
 0x178   : > { %v5751_v60 = vor.u32 %v5750_v51, %v5746_v47  ;;  %v9630_v63 = vcombine.low %v5727_v53, %v5737_v58  ;;  %10430 = vmatmul.mubr.msk.bf16.gmra.mrb[40].mxu1 %vm1946_vm0, %v9079_v10  ;;  %v5764_v0 = vrot.slane %v5762_v56, 5  ;;  %v5772_v3 = vshrl.u32 %v9507_v45, 16  ;;  %v9515_v53 = vld [vmem:[%s11477_s25 + $0x128] sm:$0x1]  ;;  %v11339_v56 = vld [vmem:[%s11477_s25 + $0xf4] sm:$0xf] }
 0x179   : > { %v5770_v1 = vrot.slane %v5768_v57, 5  ;;  %v5747_v4 = vsel %vm11504_vm3, %v5742_v59, %v5746_v47  ;;  %v5778_v6 = vshll.u32 %v9508_v55, 16  ;;  %v5782_v7 = vshrl.u32 %v9508_v55, 16  ;;  %v9514_v47 = vld [vmem:[%s11477_s25 + $0x124] sm:$0xf] }
 0x17a   : > { %v5752_v5 = vrot.slane %v5751_v60, 4  ;;  %10693 = vmatprep.mubr.msk.bf16.mxu0 %vm1946_vm0, %v9630_v63  ;;  %v5765_v8 = vor.u32 %v5764_v0, %v5761_v61  ;;  %v5774_v11 = vrot.slane %v5772_v3, 4  ;;  %v9080_v14 = vcombine.low %v11334_v12, %v11335_v13  ;;  %v11338_v55 = vld [vmem:[%s11477_s25 + $0xf0] sm:$0xf]  ;;  %v9516_v60 = vld [vmem:[%s11477_s25 + $0x12c] sm:$0xf] }
 0x17b   : > { %v5788_v16 = vshll.u32 %v9509_v62, 16  ;;  %v5780_v19 = vrot.slane %v5778_v6, 5  ;;  %v5784_v20 = vrot.slane %v5782_v7, 4  ;;  %v5792_v21 = vshrl.u32 %v9509_v62, 16  ;;  %v9517_v6 = vld [vmem:[%s11477_s25 + $0x130] sm:$0xf] }
 0x17c   : > { %v5757_v18 = vsel %vm11504_vm3, %v5752_v5, %v5756_v54  ;;  %v5766_v24 = vrot.slane %v5765_v8, 4  ;;  %v5775_v25 = vor.u32 %v5774_v11, %v5770_v1  ;;  %10433 = vmatprep.mubr.msk.bf16.mxu1 %vm1946_vm0, %v9080_v14  ;;  %v5798_v2 = vshll.u32 %v9510_v15, 16  ;;  %v11340_v11 = vld [vmem:[%s11477_s25 + $0xf8] sm:$0xf]  ;;  %v11341_v12 = vld [vmem:[%s11477_s25 + $0xfc] sm:$0xf] }
 0x17d   : > { %v9631_v23 = vcombine.low %v5747_v4, %v5757_v18  ;;  %v5790_v26 = vrot.slane %v5788_v16, 5  ;;  %v5785_v28 = vor.u32 %v5784_v20, %v5780_v19  ;;  %v5794_v29 = vrot.slane %v5792_v21, 4 }
 0x17e   : > { %v9081_v33 = vcombine.low %v11336_v30, %v11337_v31  ;;  %v5771_v34 = vsel %vm11504_vm3, %v5766_v24, %v5770_v1  ;;  %v5776_v35 = vrot.slane %v5775_v25, 4  ;;  %v5803_v36 = vshrl.u32 %v9511_v22, 16 }
 0x17f   : > { %10694 = vmatmul.mubr.msk.bf16.gmra.mrb[44].mxu0 %vm1946_vm0, %v9631_v23  ;;  %v5806_v37 = vshll.u32 %v9511_v22, 16  ;;  %v5786_v38 = vrot.slane %v5785_v28, 4  ;;  %v5795_v39 = vor.u32 %v5794_v29, %v5790_v26  ;;  %v5800_v40 = vrot.slane %v5798_v2, 5  ;;  %v9519_v29 = vld [vmem:[%s11477_s25 + $0x138] sm:$0xf] }
 0x180   : > { %v5812_v42 = vshll.u32 %v9512_v27, 16  ;;  %v5781_v43 = vsel %vm11504_vm3, %v5776_v35, %v5780_v19  ;;  %10434 = vmatmul.mubr.msk.bf16.gmra.mrb[44].mxu1 %vm1946_vm0, %v9081_v33  ;;  %v5805_v44 = vrot.slane %v5803_v36, 4  ;;  %v5816_v46 = vshrl.u32 %v9512_v27, 16  ;;  %v9518_v19 = vld [vmem:[%s11477_s25 + $0x134] sm:$0xf] }
 0x181   : > { %v5808_v45 = vrot.slane %v5806_v37, 5  ;;  %v9632_v48 = vcombine.low %v5771_v34, %v5781_v43  ;;  %v5791_v49 = vsel %vm11504_vm3, %v5786_v38, %v5790_v26  ;;  %v5796_v9 = vrot.slane %v5795_v39, 4  ;;  %v9520_v34 = vld [vmem:[%s11477_s25 + $0x13c] sm:$0x1]  ;;  %v11342_v38 = vld [vmem:[%s11477_s25 + $0x104] sm:$0xf] }
 0x182   : > { %v5814_v10 = vrot.slane %v5812_v42, 5  ;;  %v5818_v50 = vrot.slane %v5816_v46, 4  ;;  %v5822_v51 = vshll.u32 %v9513_v41, 16  ;;  %v5826_v52 = vshrl.u32 %v9513_v41, 16  ;;  %v11343_v39 = vld [vmem:[%s11477_s25 + $0x108] sm:$0xf] }
 0x183   : > { %v5809_v17 = vor.u32 %v5808_v45, %v5805_v44  ;;  %10697 = vmatprep.mubr.msk.bf16.mxu0 %vm1946_vm0, %v9632_v48  ;;  %v5801_v54 = vsel %vm11504_vm3, %v5796_v9, %v5800_v40  ;;  %v9082_v57 = vcombine.low %v11338_v55, %v11339_v56  ;;  %v5832_v58 = vshll.u32 %v9514_v47, 16  ;;  %v9521_v41 = vld [vmem:[%s11477_s25 + $0x140] sm:$0xf] }
 0x184   : > { %v5836_v59 = vshrl.u32 %v9514_v47, 16  ;;  %v9633_v61 = vcombine.low %v5791_v49, %v5801_v54  ;;  %v5819_v63 = vor.u32 %v5818_v50, %v5814_v10  ;;  %v5824_v0 = vrot.slane %v5822_v51, 5  ;;  %v11345_v50 = vld [vmem:[%s11477_s25 + $0x110] sm:$0xf] }
 0x185   : > { %v5810_v62 = vrot.slane %v5809_v17, 4  ;;  %10437 = vmatprep.mubr.msk.bf16.mxu1 %vm1946_vm0, %v9082_v57  ;;  %v5828_v1 = vrot.slane %v5826_v52, 4  ;;  %v5834_v3 = vrot.slane %v5832_v58, 5  ;;  %v5842_v5 = vshll.u32 %v9515_v53, 16  ;;  %v11344_v17 = vld [vmem:[%s11477_s25 + $0x10c] sm:$0xf] }
 0x186   : > { %v5838_v4 = vrot.slane %v5836_v59, 4  ;;  %v5820_v8 = vrot.slane %v5819_v63, 4  ;;  %v9083_v13 = vcombine.low %v11340_v11, %v11341_v12  ;;  %v5847_v14 = vshrl.u32 %v9516_v60, 16  ;;  %v9522_v52 = vld [vmem:[%s11477_s25 + $0x144] sm:$0xf] }
 0x187   : > { %10698 = vmatmul.mubr.msk.bf16.gmra.mrb[48].mxu0 %vm1946_vm0, %v9633_v61  ;;  %v5815_v7 = vsel %vm11504_vm3, %v5810_v62, %v5814_v10  ;;  %v5829_v15 = vor.u32 %v5828_v1, %v5824_v0  ;;  %v5844_v18 = vrot.slane %v5842_v5, 5  ;;  %v5850_v20 = vshll.u32 %v9516_v60, 16  ;;  %v9523_v58 = vld [vmem:[%s11477_s25 + $0x148] sm:$0xf]  ;;  %v9525_v11 = vld [vmem:[%s11477_s25 + $0x150] sm:$0x1] }
 0x188   : > { %v5839_v16 = vor.u32 %v5838_v4, %v5834_v3  ;;  %v5825_v21 = vsel %vm11504_vm3, %v5820_v8, %v5824_v0  ;;  %10438 = vmatmul.mubr.msk.bf16.gmra.mrb[48].mxu1 %vm1946_vm0, %v9083_v13  ;;  %v5849_v22 = vrot.slane %v5847_v14, 4  ;;  %v5856_v23 = vshll.u32 %v9517_v6, 16  ;;  %v9524_v4 = vld [vmem:[%s11477_s25 + $0x14c] sm:$0xf] }
 0x189   : > { %v5860_v24 = vshrl.u32 %v9517_v6, 16  ;;  %v9634_v25 = vcombine.low %v5815_v7, %v5825_v21  ;;  %v5830_v26 = vrot.slane %v5829_v15, 4  ;;  %v5852_v28 = vrot.slane %v5850_v20, 5  ;;  %v11346_v15 = vld [vmem:[%s11477_s25 + $0x118] sm:$0xf] }
 0x18a   : > { %v5840_v27 = vrot.slane %v5839_v16, 4  ;;  %v5858_v2 = vrot.slane %v5856_v23, 5  ;;  %v5866_v31 = vshll.u32 %v9518_v19, 16  ;;  %v5870_v33 = vshrl.u32 %v9518_v19, 16  ;;  %v11347_v16 = vld [vmem:[%s11477_s25 + $0x11c] sm:$0xf] }
 0x18b   : > { %v5862_v30 = vrot.slane %v5860_v24, 4  ;;  %10701 = vmatprep.mubr.msk.bf16.mxu0 %vm1946_vm0, %v9634_v25  ;;  %v5835_v35 = vsel %vm11504_vm3, %v5830_v26, %v5834_v3  ;;  %v5853_v37 = vor.u32 %v5852_v28, %v5849_v22  ;;  %v9084_v40 = vcombine.low %v11342_v38, %v11343_v39 }
 0x18c   : > { %v5845_v36 = vsel %vm11504_vm3, %v5840_v27, %v5844_v18  ;;  %v5868_v44 = vrot.slane %v5866_v31, 5  ;;  %v5872_v45 = vrot.slane %v5870_v33, 4  ;;  %v5876_v47 = vshll.u32 %v9519_v29, 16  ;;  %v9526_v27 = vld [vmem:[%s11477_s25 + $0x154] sm:$0xf] }
 0x18d   : > { %v9635_v42 = vcombine.low %v5835_v35, %v5845_v36  ;;  %v5863_v43 = vor.u32 %v5862_v30, %v5858_v2  ;;  %v5854_v46 = vrot.slane %v5853_v37, 4  ;;  %10441 = vmatprep.mubr.msk.bf16.mxu1 %vm1946_vm0, %v9084_v40  ;;  %v5880_v48 = vshrl.u32 %v9519_v29, 16  ;;  %v9527_v31 = vld [vmem:[%s11477_s25 + $0x158] sm:$0xf]  ;;  %v11348_v36 = vld [vmem:[%s11477_s25 + $0x120] sm:$0xf] }
 0x18e   : > { %v5886_v49 = vshll.u32 %v9520_v34, 16  ;;  %v5873_v10 = vor.u32 %v5872_v45, %v5868_v44  ;;  %v9085_v51 = vcombine.low %v11344_v17, %v11345_v50  ;;  %v5891_v53 = vshrl.u32 %v9521_v41, 16  ;;  %v11349_v37 = vld [vmem:[%s11477_s25 + $0x124] sm:$0xf] }
 0x18f   : > { %10702 = vmatmul.mubr.msk.bf16.gmra.mrb[52].mxu0 %vm1946_vm0, %v9635_v42  ;;  %v5864_v9 = vrot.slane %v5863_v43, 4  ;;  %v5859_v54 = vsel %vm11504_vm3, %v5854_v46, %v5858_v2  ;;  %v5878_v55 = vrot.slane %v5876_v47, 5  ;;  %v5882_v56 = vrot.slane %v5880_v48, 4  ;;  %v9529_v48 = vld [vmem:[%s11477_s25 + $0x160] sm:$0xf] }
 0x190   : > { %v5888_v57 = vrot.slane %v5886_v49, 5  ;;  %v5874_v60 = vrot.slane %v5873_v10, 4  ;;  %10442 = vmatmul.mubr.msk.bf16.gmra.mrb[52].mxu1 %vm1946_vm0, %v9085_v51  ;;  %v5893_v61 = vrot.slane %v5891_v53, 4  ;;  %v5894_v62 = vshll.u32 %v9521_v41, 16  ;;  %v9528_v41 = vld [vmem:[%s11477_s25 + $0x15c] sm:$0xf] }
 0x191   : > { %v5869_v59 = vsel %vm11504_vm3, %v5864_v9, %v5868_v44  ;;  %v5883_v0 = vor.u32 %v5882_v56, %v5878_v55  ;;  %v5900_v1 = vshll.u32 %v9522_v52, 16  ;;  %v5904_v3 = vshrl.u32 %v9522_v52, 16  ;;  %v11350_v56 = vld [vmem:[%s11477_s25 + $0x12c] sm:$0xf] }
 0x192   : > { %v9636_v63 = vcombine.low %v5859_v54, %v5869_v59  ;;  %v5879_v5 = vsel %vm11504_vm3, %v5874_v60, %v5878_v55  ;;  %v5896_v6 = vrot.slane %v5894_v62, 5  ;;  %v5910_v7 = vshll.u32 %v9523_v58, 16  ;;  %v9530_v59 = vld [vmem:[%s11477_s25 + $0x164] sm:$0x1] }
 0x193   : > { %v5914_v8 = vshrl.u32 %v9523_v58, 16  ;;  %v5884_v12 = vrot.slane %v5883_v0, 4  ;;  %v5902_v13 = vrot.slane %v5900_v1, 5  ;;  %v5906_v14 = vrot.slane %v5904_v3, 4  ;;  %v9531_v1 = vld [vmem:[%s11477_s25 + $0x168] sm:$0xf] }
 0x194   : > { %10705 = vmatprep.mubr.msk.bf16.mxu0 %vm1946_vm0, %v9636_v63  ;;  %v9086_v18 = vcombine.low %v11346_v15, %v11347_v16  ;;  %v5897_v19 = vor.u32 %v5896_v6, %v5893_v61  ;;  %v5912_v20 = vrot.slane %v5910_v7, 5  ;;  %v5920_v22 = vshll.u32 %v9524_v4, 16  ;;  %v9532_v7 = vld [vmem:[%s11477_s25 + $0x16c] sm:$0xf] }
 0x195   : > { %v5916_v21 = vrot.slane %v5914_v8, 4  ;;  %v5889_v23 = vsel %vm11504_vm3, %v5884_v12, %v5888_v57  ;;  %v5907_v24 = vor.u32 %v5906_v14, %v5902_v13  ;;  %v5924_v25 = vshrl.u32 %v9524_v4, 16  ;;  %v11351_v57 = vld [vmem:[%s11477_s25 + $0x130] sm:$0xf]  ;;  %v11353_v14 = vld [vmem:[%s11477_s25 + $0x138] sm:$0xf] }
 0x196   : > { %10445 = vmatprep.mubr.msk.bf16.mxu1 %vm1946_vm0, %v9086_v18  ;;  %v5930_v26 = vshll.u32 %v9525_v11, 16  ;;  %v9637_v28 = vcombine.low %v5879_v5, %v5889_v23  ;;  %v5898_v29 = vrot.slane %v5897_v19, 4  ;;  %v5922_v30 = vrot.slane %v5920_v22, 5  ;;  %v9533_v19 = vld [vmem:[%s11477_s25 + $0x170] sm:$0xf] }
 0x197   : > { %v5917_v2 = vor.u32 %v5916_v21, %v5912_v20  ;;  %v5908_v33 = vrot.slane %v5907_v24, 4  ;;  %v5926_v34 = vrot.slane %v5924_v25, 4  ;;  %v9087_v38 = vcombine.low %v11348_v36, %v11349_v37 }
 0x198   : > { %v5932_v35 = vrot.slane %v5930_v26, 5  ;;  %10706 = vmatmul.mubr.msk.bf16.gmra.mrb[56].mxu0 %vm1946_vm0, %v9637_v28  ;;  %v5903_v39 = vsel %vm11504_vm3, %v5898_v29, %v5902_v13  ;;  %v5935_v42 = vshrl.u32 %v9526_v27, 16  ;;  %v5938_v43 = vshll.u32 %v9526_v27, 16  ;;  %v11352_v13 = vld [vmem:[%s11477_s25 + $0x134] sm:$0xf] }
 0x199   : > { %v5918_v40 = vrot.slane %v5917_v2, 4  ;;  %v5913_v44 = vsel %vm11504_vm3, %v5908_v33, %v5912_v20  ;;  %v5927_v45 = vor.u32 %v5926_v34, %v5922_v30  ;;  %10446 = vmatmul.mubr.msk.bf16.gmra.mrb[56].mxu1 %vm1946_vm0, %v9087_v38  ;;  %v5944_v46 = vshll.u32 %v9527_v31, 16  ;;  %v9534_v2 = vld [vmem:[%s11477_s25 + $0x174] sm:$0xf]  ;;  %v11354_v38 = vld [vmem:[%s11477_s25 + $0x140] sm:$0xf] }
 0x19a   : > { %v5948_v47 = vshrl.u32 %v9527_v31, 16  ;;  %v9638_v49 = vcombine.low %v5903_v39, %v5913_v44  ;;  %v5937_v10 = vrot.slane %v5935_v42, 4  ;;  %v5940_v17 = vrot.slane %v5938_v43, 5  ;;  %v11355_v39 = vld [vmem:[%s11477_s25 + $0x144] sm:$0xf] }
 0x19b   : > { %v5923_v9 = vsel %vm11504_vm3, %v5918_v40, %v5922_v30  ;;  %v5928_v50 = vrot.slane %v5927_v45, 4  ;;  %v5946_v51 = vrot.slane %v5944_v46, 5  ;;  %v5954_v53 = vshll.u32 %v9528_v41, 16  ;;  %v9536_v46 = vld [vmem:[%s11477_s25 + $0x17c] sm:$0xf] }
 0x19c   : > { %v5950_v52 = vrot.slane %v5948_v47, 4  ;;  %10709 = vmatprep.mubr.msk.bf16.mxu0 %vm1946_vm0, %v9638_v49  ;;  %v5941_v54 = vor.u32 %v5940_v17, %v5937_v10  ;;  %v5958_v55 = vshrl.u32 %v9528_v41, 16  ;;  %v9088_v58 = vcombine.low %v11350_v56, %v11351_v57  ;;  %v9535_v41 = vld [vmem:[%s11477_s25 + $0x178] sm:$0x1]  ;;  %v9537_v10 = vld [vmem:[%s11477_s25 + $0x180] sm:$0xf] }
 0x19d   : > { %v5964_v60 = vshll.u32 %v9529_v48, 16  ;;  %v5933_v61 = vsel %vm11504_vm3, %v5928_v50, %v5932_v35  ;;  %v5956_v63 = vrot.slane %v5954_v53, 5  ;;  %v5968_v0 = vshrl.u32 %v9529_v48, 16  ;;  %v11357_v53 = vld [vmem:[%s11477_s25 + $0x14c] sm:$0xf] }
 0x19e   : > { %v5951_v62 = vor.u32 %v5950_v52, %v5946_v51  ;;  %v9639_v3 = vcombine.low %v5923_v9, %v5933_v61  ;;  %v5942_v4 = vrot.slane %v5941_v54, 4  ;;  %10449 = vmatprep.mubr.msk.bf16.mxu1 %vm1946_vm0, %v9088_v58  ;;  %v5960_v5 = vrot.slane %v5958_v55, 4  ;;  %v11356_v52 = vld [vmem:[%s11477_s25 + $0x148] sm:$0xf]  ;;  %v9538_v58 = vld [vmem:[%s11477_s25 + $0x184] sm:$0xf] }
 0x19f   : > { %v5966_v6 = vrot.slane %v5964_v60, 5  ;;  %v5970_v11 = vrot.slane %v5968_v0, 4  ;;  %v5974_v12 = vshll.u32 %v9530_v59, 16  ;;  %v9089_v15 = vcombine.low %v11352_v13, %v11353_v14 }
 0x1a0   : > { %v5952_v8 = vrot.slane %v5951_v62, 4  ;;  %10710 = vmatmul.mubr.msk.bf16.gmra.mrb[60].mxu0 %vm1946_vm0, %v9639_v3  ;;  %v5947_v16 = vsel %vm11504_vm3, %v5942_v4, %v5946_v51  ;;  %v5961_v18 = vor.u32 %v5960_v5, %v5956_v63  ;;  %v5979_v20 = vshrl.u32 %v9531_v1, 16 }
 0x1a1   : > { %v5982_v21 = vshll.u32 %v9531_v1, 16  ;;  %v5971_v23 = vor.u32 %v5970_v11, %v5966_v6  ;;  %v5976_v24 = vrot.slane %v5974_v12, 5  ;;  %10450 = vmatmul.mubr.msk.bf16.gmra.mrb[60].mxu1 %vm1946_vm0, %v9089_v15  ;;  %v5988_v25 = vshll.u32 %v9532_v7, 16  ;;  %v9539_v11 = vld [vmem:[%s11477_s25 + $0x188] sm:$0xf] }
 0x1a2   : > { %v5957_v22 = vsel %vm11504_vm3, %v5952_v8, %v5956_v63  ;;  %v5962_v27 = vrot.slane %v5961_v18, 4  ;;  %v5981_v28 = vrot.slane %v5979_v20, 4  ;;  %v5992_v33 = vshrl.u32 %v9532_v7, 16 }
 0x1a3   : > { %v9640_v26 = vcombine.low %v5947_v16, %v5957_v22  ;;  %v5984_v29 = vrot.slane %v5982_v21, 5  ;;  %v5972_v30 = vrot.slane %v5971_v23, 4  ;;  %v5990_v31 = vrot.slane %v5988_v25, 5  ;;  %v9540_v16 = vld [vmem:[%s11477_s25 + $0x18c] sm:$0x1] }
 0x1a4   : > { %v5998_v34 = vshll.u32 %v9533_v19, 16  ;;  %v5967_v35 = vsel %vm11504_vm3, %v5962_v27, %v5966_v6  ;;  %v6002_v37 = vshrl.u32 %v9533_v19, 16  ;;  %v9090_v40 = vcombine.low %v11354_v38, %v11355_v39  ;;  %v11358_v21 = vld [vmem:[%s11477_s25 + $0x154] sm:$0xf]  ;;  %v11359_v22 = vld [vmem:[%s11477_s25 + $0x158] sm:$0xf] }
 0x1a5   : > { %10713 = vmatprep.mubr.msk.bf16.mxu0 %vm1946_vm0, %v9640_v26  ;;  %v5985_v36 = vor.u32 %v5984_v29, %v5981_v28  ;;  %v5977_v42 = vsel %vm11504_vm3, %v5972_v30, %v5976_v24  ;;  %v5994_v43 = vrot.slane %v5992_v33, 4  ;;  %v6008_v45 = vshll.u32 %v9534_v2, 16  ;;  %v9541_v28 = vld [vmem:[%s11477_s25 + $0x190] sm:$0xf]  ;;  %v9542_v33 = vld [vmem:[%s11477_s25 + $0x194] sm:$0xf] }
 0x1a6   : > { %v6000_v44 = vrot.slane %v5998_v34, 5  ;;  %v9641_v47 = vcombine.low %v5967_v35, %v5977_v42  ;;  %10453 = vmatprep.mubr.msk.bf16.mxu1 %vm1946_vm0, %v9090_v40  ;;  %v6004_v49 = vrot.slane %v6002_v37, 4  ;;  %v6012_v9 = vshrl.u32 %v9534_v2, 16  ;;  %v11360_v37 = vld [vmem:[%s11477_s25 + $0x15c] sm:$0xf] }
 0x1a7   : > { %v5986_v48 = vrot.slane %v5985_v36, 4  ;;  %v5995_v17 = vor.u32 %v5994_v43, %v5990_v31  ;;  %v6010_v50 = vrot.slane %v6008_v45, 5  ;;  %v6018_v51 = vshll.u32 %v9535_v41, 16  ;;  %v11361_v38 = vld [vmem:[%s11477_s25 + $0x160] sm:$0xf] }
 0x1a8   : > { %v9091_v54 = vcombine.low %v11356_v52, %v11357_v53  ;;  %10714 = vmatmul.mubr.msk.bf16.gmra.mrb[64].mxu0 %vm1946_vm0, %v9641_v47  ;;  %v6005_v56 = vor.u32 %v6004_v49, %v6000_v44  ;;  %v6014_v57 = vrot.slane %v6012_v9, 4  ;;  %v6023_v59 = vshrl.u32 %v9536_v46, 16  ;;  %v9543_v43 = vld [vmem:[%s11477_s25 + $0x198] sm:$0xf] }
 0x1a9   : > { %v5991_v55 = vsel %vm11504_vm3, %v5986_v48, %v5990_v31  ;;  %v5996_v60 = vrot.slane %v5995_v17, 4  ;;  %v6020_v61 = vrot.slane %v6018_v51, 5  ;;  %v6026_v62 = vshll.u32 %v9536_v46, 16 }
 0x1aa   : > { %10454 = vmatmul.mubr.msk.bf16.gmra.mrb[64].mxu1 %vm1946_vm0, %v9091_v54  ;;  %v6032_v63 = vshll.u32 %v9537_v10, 16  ;;  %v6006_v0 = vrot.slane %v6005_v56, 4  ;;  %v6015_v1 = vor.u32 %v6014_v57, %v6010_v50  ;;  %v6025_v3 = vrot.slane %v6023_v59, 4  ;;  %v11363_v59 = vld [vmem:[%s11477_s25 + $0x16c] sm:$0xf] }
 0x1ab   : > { %v6036_v4 = vshrl.u32 %v9537_v10, 16  ;;  %v6001_v5 = vsel %vm11504_vm3, %v5996_v60, %v6000_v44  ;;  %v6028_v6 = vrot.slane %v6026_v62, 5  ;;  %v6042_v8 = vshll.u32 %v9538_v58, 16 }
 0x1ac   : > { %v6034_v7 = vrot.slane %v6032_v63, 5  ;;  %v9642_v12 = vcombine.low %v5991_v55, %v6001_v5  ;;  %v6011_v13 = vsel %vm11504_vm3, %v6006_v0, %v6010_v50  ;;  %v6016_v14 = vrot.slane %v6015_v1, 4  ;;  %v9544_v50 = vld [vmem:[%s11477_s25 + $0x19c] sm:$0xf] }
 0x1ad   : > { %v6038_v15 = vrot.slane %v6036_v4, 4  ;;  %v6029_v18 = vor.u32 %v6028_v6, %v6025_v3  ;;  %v6044_v19 = vrot.slane %v6042_v8, 5  ;;  %v6046_v20 = vshrl.u32 %v9538_v58, 16  ;;  %v11362_v58 = vld [vmem:[%s11477_s25 + $0x168] sm:$0xf] }
 0x1ae   : > { %v9092_v23 = vcombine.low %v11358_v21, %v11359_v22  ;;  %10717 = vmatprep.mubr.msk.bf16.mxu0 %vm1946_vm0, %v9642_v12  ;;  %v6021_v24 = vsel %vm11504_vm3, %v6016_v14, %v6020_v61  ;;  %v6052_v26 = vshll.u32 %v9539_v11, 16  ;;  %v6056_v27 = vshrl.u32 %v9539_v11, 16  ;;  %v9545_v61 = vld [vmem:[%s11477_s25 + $0x1a0] sm:$0x1]  ;;  %v9546_v3 = vld [vmem:[%s11477_s25 + $0x1a4] sm:$0xf] }
 0x1af   : > { %v6039_v25 = vor.u32 %v6038_v15, %v6034_v7  ;;  %v9643_v29 = vcombine.low %v6011_v13, %v6021_v24  ;;  %v6030_v2 = vrot.slane %v6029_v18, 4  ;;  %v6048_v30 = vrot.slane %v6046_v20, 4  ;;  %v9547_v8 = vld [vmem:[%s11477_s25 + $0x1a8] sm:$0xf]  ;;  %v11364_v14 = vld [vmem:[%s11477_s25 + $0x170] sm:$0xf] }
 0x1b0   : > { %10457 = vmatprep.mubr.msk.bf16.mxu1 %vm1946_vm0, %v9092_v23  ;;  %v6062_v31 = vshll.u32 %v9540_v16, 16  ;;  %v6054_v35 = vrot.slane %v6052_v26, 5  ;;  %v6058_v36 = vrot.slane %v6056_v27, 4  ;;  %v9093_v39 = vcombine.low %v11360_v37, %v11361_v38  ;;  %v11365_v15 = vld [vmem:[%s11477_s25 + $0x174] sm:$0xf] }
 0x1b1   : > { %v6040_v34 = vrot.slane %v6039_v25, 4  ;;  %10718 = vmatmul.mubr.msk.bf16.gmra.mrb[68].mxu0 %vm1946_vm0, %v9643_v29  ;;  %v6035_v40 = vsel %vm11504_vm3, %v6030_v2, %v6034_v7  ;;  %v6049_v41 = vor.u32 %v6048_v30, %v6044_v19  ;;  %v6067_v44 = vshrl.u32 %v9541_v28, 16  ;;  %v9548_v24 = vld [vmem:[%s11477_s25 + $0x1ac] sm:$0xf]  ;;  %v9549_v30 = vld [vmem:[%s11477_s25 + $0x1b0] sm:$0xf] }
 0x1b2   : > { %v6064_v42 = vrot.slane %v6062_v31, 5  ;;  %v6059_v46 = vor.u32 %v6058_v36, %v6054_v35  ;;  %10458 = vmatmul.mubr.msk.bf16.gmra.mrb[68].mxu1 %vm1946_vm0, %v9093_v39  ;;  %v6070_v47 = vshll.u32 %v9541_v28, 16  ;;  %v6076_v48 = vshll.u32 %v9542_v33, 16 }
 0x1b3   : > { %v6045_v45 = vsel %vm11504_vm3, %v6040_v34, %v6044_v19  ;;  %v6050_v9 = vrot.slane %v6049_v41, 4  ;;  %v6069_v10 = vrot.slane %v6067_v44, 4  ;;  %v6080_v17 = vshrl.u32 %v9542_v33, 16 }
 0x1b4   : > { %v9644_v49 = vcombine.low %v6035_v40, %v6045_v45  ;;  %v6060_v51 = vrot.slane %v6059_v46, 4  ;;  %v6072_v52 = vrot.slane %v6070_v47, 5  ;;  %v6078_v53 = vrot.slane %v6076_v48, 5  ;;  %v9550_v45 = vld [vmem:[%s11477_s25 + $0x1b4] sm:$0x1] }
 0x1b5   : > { %v6086_v54 = vshll.u32 %v9543_v43, 16  ;;  %v6055_v55 = vsel %vm11504_vm3, %v6050_v9, %v6054_v35  ;;  %v6082_v56 = vrot.slane %v6080_v17, 4  ;;  %v6090_v57 = vshrl.u32 %v9543_v43, 16  ;;  %v11367_v43 = vld [vmem:[%s11477_s25 + $0x180] sm:$0xf] }
 0x1b6   : > { %10721 = vmatprep.mubr.msk.bf16.mxu0 %vm1946_vm0, %v9644_v49  ;;  %v9094_v60 = vcombine.low %v11362_v58, %v11363_v59  ;;  %v6065_v62 = vsel %vm11504_vm3, %v6060_v51, %v6064_v42  ;;  %v6073_v63 = vor.u32 %v6072_v52, %v6069_v10  ;;  %v6096_v1 = vshll.u32 %v9544_v50, 16  ;;  %v11366_v42 = vld [vmem:[%s11477_s25 + $0x17c] sm:$0xf]  ;;  %v9551_v10 = vld [vmem:[%s11477_s25 + $0x1b8] sm:$0xf] }
 0x1b7   : > { %v6088_v0 = vrot.slane %v6086_v54, 5  ;;  %v9645_v4 = vcombine.low %v6055_v55, %v6065_v62  ;;  %v6083_v5 = vor.u32 %v6082_v56, %v6078_v53  ;;  %v6092_v6 = vrot.slane %v6090_v57, 4  ;;  %v11368_v57 = vld [vmem:[%s11477_s25 + $0x184] sm:$0xf]  ;;  %v11369_v58 = vld [vmem:[%s11477_s25 + $0x188] sm:$0xf] }
 0x1b8   : > { %10461 = vmatprep.mubr.msk.bf16.mxu1 %vm1946_vm0, %v9094_v60  ;;  %v6100_v7 = vshrl.u32 %v9544_v50, 16  ;;  %v6074_v11 = vrot.slane %v6073_v63, 4  ;;  %v6098_v12 = vrot.slane %v6096_v1, 5  ;;  %v6106_v13 = vshll.u32 %v9545_v61, 16 }
 0x1b9   : > { %v9095_v16 = vcombine.low %v11364_v14, %v11365_v15  ;;  %10722 = vmatmul.mubr.msk.bf16.gmra.mrb[72].mxu0 %vm1946_vm0, %v9645_v4  ;;  %v6084_v18 = vrot.slane %v6083_v5, 4  ;;  %v6093_v19 = vor.u32 %v6092_v6, %v6088_v0  ;;  %v6111_v21 = vshrl.u32 %v9546_v3, 16  ;;  %v9553_v4 = vld [vmem:[%s11477_s25 + $0x1c0] sm:$0xf] }
 0x1ba   : > { %v6102_v20 = vrot.slane %v6100_v7, 4  ;;  %v6079_v22 = vsel %vm11504_vm3, %v6074_v11, %v6078_v53  ;;  %v6108_v23 = vrot.slane %v6106_v13, 5  ;;  %v6114_v25 = vshll.u32 %v9546_v3, 16  ;;  %v9552_v53 = vld [vmem:[%s11477_s25 + $0x1bc] sm:$0xf] }
 0x1bb   : > { %10462 = vmatmul.mubr.msk.bf16.gmra.mrb[72].mxu1 %vm1946_vm0, %v9095_v16  ;;  %v6120_v26 = vshll.u32 %v9547_v8, 16  ;;  %v6089_v27 = vsel %vm11504_vm3, %v6084_v18, %v6088_v0  ;;  %v6094_v28 = vrot.slane %v6093_v19, 4  ;;  %v6113_v2 = vrot.slane %v6111_v21, 4 }
 0x1bc   : > { %v6103_v29 = vor.u32 %v6102_v20, %v6098_v12  ;;  %v9646_v31 = vcombine.low %v6079_v22, %v6089_v27  ;;  %v6116_v33 = vrot.slane %v6114_v25, 5  ;;  %v6124_v35 = vshrl.u32 %v9547_v8, 16  ;;  %v9555_v22 = vld [vmem:[%s11477_s25 + $0x1c8] sm:$0x1]  ;;  %v11371_v25 = vld [vmem:[%s11477_s25 + $0x194] sm:$0xf] }
 0x1bd   : > { %v6122_v34 = vrot.slane %v6120_v26, 5  ;;  %v6099_v36 = vsel %vm11504_vm3, %v6094_v28, %v6098_v12  ;;  %v6130_v38 = vshll.u32 %v9548_v24, 16  ;;  %v6134_v39 = vshrl.u32 %v9548_v24, 16  ;;  %v9554_v12 = vld [vmem:[%s11477_s25 + $0x1c4] sm:$0xf] }
 0x1be   : > { %v6104_v37 = vrot.slane %v6103_v29, 4  ;;  %10725 = vmatprep.mubr.msk.bf16.mxu0 %vm1946_vm0, %v9646_v31  ;;  %v6117_v40 = vor.u32 %v6116_v33, %v6113_v2  ;;  %v6126_v41 = vrot.slane %v6124_v35, 4  ;;  %v9096_v44 = vcombine.low %v11366_v42, %v11367_v43  ;;  %v11370_v24 = vld [vmem:[%s11477_s25 + $0x190] sm:$0xf]  ;;  %v9556_v29 = vld [vmem:[%s11477_s25 + $0x1cc] sm:$0xf] }
 0x1bf   : > { %v6140_v46 = vshll.u32 %v9549_v30, 16  ;;  %v6132_v48 = vrot.slane %v6130_v38, 5  ;;  %v6136_v49 = vrot.slane %v6134_v39, 4  ;;  %v6144_v9 = vshrl.u32 %v9549_v30, 16  ;;  %v9557_v38 = vld [vmem:[%s11477_s25 + $0x1d0] sm:$0xf] }
 0x1c0   : > { %v6109_v47 = vsel %vm11504_vm3, %v6104_v37, %v6108_v23  ;;  %v6118_v50 = vrot.slane %v6117_v40, 4  ;;  %v6127_v51 = vor.u32 %v6126_v41, %v6122_v34  ;;  %10465 = vmatprep.mubr.msk.bf16.mxu1 %vm1946_vm0, %v9096_v44  ;;  %v6150_v56 = vshll.u32 %v9550_v45, 16  ;;  %v11372_v41 = vld [vmem:[%s11477_s25 + $0x198] sm:$0xf]  ;;  %v11373_v42 = vld [vmem:[%s11477_s25 + $0x19c] sm:$0xf] }
 0x1c1   : > { %v9647_v17 = vcombine.low %v6099_v36, %v6109_v47  ;;  %v6142_v52 = vrot.slane %v6140_v46, 5  ;;  %v6137_v54 = vor.u32 %v6136_v49, %v6132_v48  ;;  %v6146_v55 = vrot.slane %v6144_v9, 4 }
 0x1c2   : > { %v9097_v59 = vcombine.low %v11368_v57, %v11369_v58  ;;  %v6123_v60 = vsel %vm11504_vm3, %v6118_v50, %v6122_v34  ;;  %v6128_v61 = vrot.slane %v6127_v51, 4  ;;  %v6155_v62 = vshrl.u32 %v9551_v10, 16 }
 0x1c3   : > { %10726 = vmatmul.mubr.msk.bf16.gmra.mrb[76].mxu0 %vm1946_vm0, %v9647_v17  ;;  %v6158_v63 = vshll.u32 %v9551_v10, 16  ;;  %v6138_v0 = vrot.slane %v6137_v54, 4  ;;  %v6147_v1 = vor.u32 %v6146_v55, %v6142_v52  ;;  %v6152_v3 = vrot.slane %v6150_v56, 5  ;;  %v9559_v55 = vld [vmem:[%s11477_s25 + $0x1d8] sm:$0xf] }
 0x1c4   : > { %10466 = vmatmul.mubr.msk.bf16.gmra.mrb[76].mxu1 %vm1946_vm0, %v9097_v59  ;;  %v6164_v5 = vshll.u32 %v9552_v53, 16  ;;  %v6133_v6 = vsel %vm11504_vm3, %v6128_v61, %v6132_v48  ;;  %v6157_v7 = vrot.slane %v6155_v62, 4  ;;  %v6168_v11 = vshrl.u32 %v9552_v53, 16  ;;  %v9558_v48 = vld [vmem:[%s11477_s25 + $0x1d4] sm:$0xf] }
 0x1c5   : > { %v6160_v8 = vrot.slane %v6158_v63, 5  ;;  %v9648_v13 = vcombine.low %v6123_v60, %v6133_v6  ;;  %v6143_v14 = vsel %vm11504_vm3, %v6138_v0, %v6142_v52  ;;  %v6148_v15 = vrot.slane %v6147_v1, 4  ;;  %v9560_v60 = vld [vmem:[%s11477_s25 + $0x1dc] sm:$0x1]  ;;  %v11374_v0 = vld [vmem:[%s11477_s25 + $0x1a4] sm:$0xf] }
 0x1c6   : > { %v6166_v16 = vrot.slane %v6164_v5, 5  ;;  %v6170_v19 = vrot.slane %v6168_v11, 4  ;;  %v6174_v20 = vshll.u32 %v9553_v4, 16  ;;  %v6178_v21 = vshrl.u32 %v9553_v4, 16  ;;  %v11375_v1 = vld [vmem:[%s11477_s25 + $0x1a8] sm:$0xf] }
 0x1c7   : > { %v6161_v18 = vor.u32 %v6160_v8, %v6157_v7  ;;  %10729 = vmatprep.mubr.msk.bf16.mxu0 %vm1946_vm0, %v9648_v13  ;;  %v6153_v23 = vsel %vm11504_vm3, %v6148_v15, %v6152_v3  ;;  %v9098_v26 = vcombine.low %v11370_v24, %v11371_v25  ;;  %v6184_v27 = vshll.u32 %v9554_v12, 16  ;;  %v9561_v4 = vld [vmem:[%s11477_s25 + $0x1e0] sm:$0xf] }
 0x1c8   : > { %v6188_v28 = vshrl.u32 %v9554_v12, 16  ;;  %v9649_v2 = vcombine.low %v6143_v14, %v6153_v23  ;;  %v6171_v31 = vor.u32 %v6170_v19, %v6166_v16  ;;  %v6176_v33 = vrot.slane %v6174_v20, 5  ;;  %v11377_v19 = vld [vmem:[%s11477_s25 + $0x1b0] sm:$0xf] }
 0x1c9   : > { %v6162_v30 = vrot.slane %v6161_v18, 4  ;;  %10469 = vmatprep.mubr.msk.bf16.mxu1 %vm1946_vm0, %v9098_v26  ;;  %v6180_v34 = vrot.slane %v6178_v21, 4  ;;  %v6186_v35 = vrot.slane %v6184_v27, 5  ;;  %v6194_v37 = vshll.u32 %v9555_v22, 16  ;;  %v11376_v18 = vld [vmem:[%s11477_s25 + $0x1ac] sm:$0xf] }
 0x1ca   : > { %v6190_v36 = vrot.slane %v6188_v28, 4  ;;  %v6172_v40 = vrot.slane %v6171_v31, 4  ;;  %v9099_v43 = vcombine.low %v11372_v41, %v11373_v42  ;;  %v6199_v44 = vshrl.u32 %v9556_v29, 16  ;;  %v9562_v21 = vld [vmem:[%s11477_s25 + $0x1e4] sm:$0xf] }
 0x1cb   : > { %10730 = vmatmul.mubr.msk.bf16.gmra.mrb[80].mxu0 %vm1946_vm0, %v9649_v2  ;;  %v6167_v39 = vsel %vm11504_vm3, %v6162_v30, %v6166_v16  ;;  %v6181_v45 = vor.u32 %v6180_v34, %v6176_v33  ;;  %v6196_v47 = vrot.slane %v6194_v37, 5  ;;  %v6202_v49 = vshll.u32 %v9556_v29, 16  ;;  %v9563_v27 = vld [vmem:[%s11477_s25 + $0x1e8] sm:$0xf]  ;;  %v9565_v41 = vld [vmem:[%s11477_s25 + $0x1f0] sm:$0x1] }
 0x1cc   : > { %v6191_v46 = vor.u32 %v6190_v36, %v6186_v35  ;;  %v6177_v9 = vsel %vm11504_vm3, %v6172_v40, %v6176_v33  ;;  %10470 = vmatmul.mubr.msk.bf16.gmra.mrb[80].mxu1 %vm1946_vm0, %v9099_v43  ;;  %v6201_v10 = vrot.slane %v6199_v44, 4  ;;  %v6208_v17 = vshll.u32 %v9557_v38, 16  ;;  %v9564_v36 = vld [vmem:[%s11477_s25 + $0x1ec] sm:$0xf] }
 0x1cd   : > { %v6212_v50 = vshrl.u32 %v9557_v38, 16  ;;  %v9650_v51 = vcombine.low %v6167_v39, %v6177_v9  ;;  %v6182_v52 = vrot.slane %v6181_v45, 4  ;;  %v6204_v54 = vrot.slane %v6202_v49, 5  ;;  %v11378_v45 = vld [vmem:[%s11477_s25 + $0x1b8] sm:$0xf] }
 0x1ce   : > { %v6192_v53 = vrot.slane %v6191_v46, 4  ;;  %v6210_v56 = vrot.slane %v6208_v17, 5  ;;  %v6218_v58 = vshll.u32 %v9558_v48, 16  ;;  %v6222_v59 = vshrl.u32 %v9558_v48, 16  ;;  %v11379_v46 = vld [vmem:[%s11477_s25 + $0x1bc] sm:$0xf] }
 0x1cf   : > { %v6214_v57 = vrot.slane %v6212_v50, 4  ;;  %10733 = vmatprep.mubr.msk.bf16.mxu0 %vm1946_vm0, %v9650_v51  ;;  %v6187_v61 = vsel %vm11504_vm3, %v6182_v52, %v6186_v35  ;;  %v6205_v63 = vor.u32 %v6204_v54, %v6201_v10  ;;  %v9100_v3 = vcombine.low %v11374_v0, %v11375_v1 }
 0x1d0   : > { %v6197_v62 = vsel %vm11504_vm3, %v6192_v53, %v6196_v47  ;;  %v6220_v7 = vrot.slane %v6218_v58, 5  ;;  %v6224_v8 = vrot.slane %v6222_v59, 4  ;;  %v6228_v12 = vshll.u32 %v9559_v55, 16  ;;  %v9566_v53 = vld [vmem:[%s11477_s25 + $0x1f4] sm:$0xf] }
 0x1d1   : > { %v9651_v5 = vcombine.low %v6187_v61, %v6197_v62  ;;  %v6215_v6 = vor.u32 %v6214_v57, %v6210_v56  ;;  %v6206_v11 = vrot.slane %v6205_v63, 4  ;;  %10473 = vmatprep.mubr.msk.bf16.mxu1 %vm1946_vm0, %v9100_v3  ;;  %v6232_v13 = vshrl.u32 %v9559_v55, 16  ;;  %v9567_v58 = vld [vmem:[%s11477_s25 + $0x1f8] sm:$0xf]  ;;  %v11380_v62 = vld [vmem:[%s11477_s25 + $0x1c0] sm:$0xf] }
 0x1d2   : > { %v6238_v14 = vshll.u32 %v9560_v60, 16  ;;  %v6225_v16 = vor.u32 %v6224_v8, %v6220_v7  ;;  %v9101_v20 = vcombine.low %v11376_v18, %v11377_v19  ;;  %v6243_v22 = vshrl.u32 %v9561_v4, 16  ;;  %v11381_v63 = vld [vmem:[%s11477_s25 + $0x1c4] sm:$0xf] }
 0x1d3   : > { %10734 = vmatmul.mubr.msk.bf16.gmra.mrb[84].mxu0 %vm1946_vm0, %v9651_v5  ;;  %v6216_v15 = vrot.slane %v6215_v6, 4  ;;  %v6211_v23 = vsel %vm11504_vm3, %v6206_v11, %v6210_v56  ;;  %v6230_v24 = vrot.slane %v6228_v12, 5  ;;  %v6234_v25 = vrot.slane %v6232_v13, 4  ;;  %v9569_v13 = vld [vmem:[%s11477_s25 + $0x200] sm:$0xf] }
 0x1d4   : > { %v6240_v26 = vrot.slane %v6238_v14, 5  ;;  %v6226_v29 = vrot.slane %v6225_v16, 4  ;;  %10474 = vmatmul.mubr.msk.bf16.gmra.mrb[84].mxu1 %vm1946_vm0, %v9101_v20  ;;  %v6245_v2 = vrot.slane %v6243_v22, 4  ;;  %v6246_v30 = vshll.u32 %v9561_v4, 16  ;;  %v9568_v4 = vld [vmem:[%s11477_s25 + $0x1fc] sm:$0xf] }
 0x1d5   : > { %v6221_v28 = vsel %vm11504_vm3, %v6216_v15, %v6220_v7  ;;  %v6235_v33 = vor.u32 %v6234_v25, %v6230_v24  ;;  %v6252_v34 = vshll.u32 %v9562_v21, 16  ;;  %v6256_v35 = vshrl.u32 %v9562_v21, 16  ;;  %v11382_v25 = vld [vmem:[%s11477_s25 + $0x1cc] sm:$0xf] }
 0x1d6   : > { %v9652_v31 = vcombine.low %v6211_v23, %v6221_v28  ;;  %v6231_v37 = vsel %vm11504_vm3, %v6226_v29, %v6230_v24  ;;  %v6248_v38 = vrot.slane %v6246_v30, 5  ;;  %v6262_v39 = vshll.u32 %v9563_v27, 16  ;;  %v9570_v28 = vld [vmem:[%s11477_s25 + $0x204] sm:$0x1] }
 0x1d7   : > { %v6266_v40 = vshrl.u32 %v9563_v27, 16  ;;  %v6236_v42 = vrot.slane %v6235_v33, 4  ;;  %v6254_v43 = vrot.slane %v6252_v34, 5  ;;  %v6258_v44 = vrot.slane %v6256_v35, 4  ;;  %v9571_v34 = vld [vmem:[%s11477_s25 + $0x208] sm:$0xf] }
 0x1d8   : > { %10737 = vmatprep.mubr.msk.bf16.mxu0 %vm1946_vm0, %v9652_v31  ;;  %v9102_v47 = vcombine.low %v11378_v45, %v11379_v46  ;;  %v6249_v48 = vor.u32 %v6248_v38, %v6245_v2  ;;  %v6264_v49 = vrot.slane %v6262_v39, 5  ;;  %v6272_v10 = vshll.u32 %v9564_v36, 16  ;;  %v9572_v39 = vld [vmem:[%s11477_s25 + $0x20c] sm:$0xf] }
 0x1d9   : > { %v6268_v9 = vrot.slane %v6266_v40, 4  ;;  %v6241_v17 = vsel %vm11504_vm3, %v6236_v42, %v6240_v26  ;;  %v6259_v50 = vor.u32 %v6258_v44, %v6254_v43  ;;  %v6276_v51 = vshrl.u32 %v9564_v36, 16  ;;  %v11383_v26 = vld [vmem:[%s11477_s25 + $0x1d0] sm:$0xf]  ;;  %v11385_v44 = vld [vmem:[%s11477_s25 + $0x1d8] sm:$0xf] }
 0x1da   : > { %10477 = vmatprep.mubr.msk.bf16.mxu1 %vm1946_vm0, %v9102_v47  ;;  %v6282_v52 = vshll.u32 %v9565_v41, 16  ;;  %v9653_v54 = vcombine.low %v6231_v37, %v6241_v17  ;;  %v6250_v55 = vrot.slane %v6249_v48, 4  ;;  %v6274_v57 = vrot.slane %v6272_v10, 5  ;;  %v9573_v48 = vld [vmem:[%s11477_s25 + $0x210] sm:$0xf] }
 0x1db   : > { %v6269_v56 = vor.u32 %v6268_v9, %v6264_v49  ;;  %v6260_v59 = vrot.slane %v6259_v50, 4  ;;  %v6278_v60 = vrot.slane %v6276_v51, 4  ;;  %v9103_v0 = vcombine.low %v11380_v62, %v11381_v63 }
 0x1dc   : > { %v6284_v61 = vrot.slane %v6282_v52, 5  ;;  %10738 = vmatmul.mubr.msk.bf16.gmra.mrb[88].mxu0 %vm1946_vm0, %v9653_v54  ;;  %v6255_v1 = vsel %vm11504_vm3, %v6250_v55, %v6254_v43  ;;  %v6287_v5 = vshrl.u32 %v9566_v53, 16  ;;  %v6290_v6 = vshll.u32 %v9566_v53, 16  ;;  %v11384_v43 = vld [vmem:[%s11477_s25 + $0x1d4] sm:$0xf] }
 0x1dd   : > { %v6270_v3 = vrot.slane %v6269_v56, 4  ;;  %v6265_v7 = vsel %vm11504_vm3, %v6260_v59, %v6264_v49  ;;  %v6279_v8 = vor.u32 %v6278_v60, %v6274_v57  ;;  %10478 = vmatmul.mubr.msk.bf16.gmra.mrb[88].mxu1 %vm1946_vm0, %v9103_v0  ;;  %v6296_v11 = vshll.u32 %v9567_v58, 16  ;;  %v9574_v56 = vld [vmem:[%s11477_s25 + $0x214] sm:$0xf]  ;;  %v11386_v0 = vld [vmem:[%s11477_s25 + $0x1e0] sm:$0xf] }
 0x1de   : > { %v6300_v12 = vshrl.u32 %v9567_v58, 16  ;;  %v9654_v14 = vcombine.low %v6255_v1, %v6265_v7  ;;  %v6289_v16 = vrot.slane %v6287_v5, 4  ;;  %v6292_v18 = vrot.slane %v6290_v6, 5  ;;  %v11387_v1 = vld [vmem:[%s11477_s25 + $0x1e4] sm:$0xf] }
 0x1df   : > { %v6275_v15 = vsel %vm11504_vm3, %v6270_v3, %v6274_v57  ;;  %v6280_v19 = vrot.slane %v6279_v8, 4  ;;  %v6298_v20 = vrot.slane %v6296_v11, 5  ;;  %v6306_v22 = vshll.u32 %v9568_v4, 16  ;;  %v9576_v11 = vld [vmem:[%s11477_s25 + $0x21c] sm:$0xf] }
 0x1e0   : > { %v6302_v21 = vrot.slane %v6300_v12, 4  ;;  %10741 = vmatprep.mubr.msk.bf16.mxu0 %vm1946_vm0, %v9654_v14  ;;  %v6293_v23 = vor.u32 %v6292_v18, %v6289_v16  ;;  %v6310_v24 = vshrl.u32 %v9568_v4, 16  ;;  %v9104_v27 = vcombine.low %v11382_v25, %v11383_v26  ;;  %v9575_v4 = vld [vmem:[%s11477_s25 + $0x218] sm:$0x1]  ;;  %v9577_v16 = vld [vmem:[%s11477_s25 + $0x220] sm:$0xf] }
 0x1e1   : > { %v6316_v29 = vshll.u32 %v9569_v13, 16  ;;  %v6285_v2 = vsel %vm11504_vm3, %v6280_v19, %v6284_v61  ;;  %v6308_v31 = vrot.slane %v6306_v22, 5  ;;  %v6320_v33 = vshrl.u32 %v9569_v13, 16  ;;  %v11389_v22 = vld [vmem:[%s11477_s25 + $0x1ec] sm:$0xf] }
 0x1e2   : > { %v6303_v30 = vor.u32 %v6302_v21, %v6298_v20  ;;  %v9655_v35 = vcombine.low %v6275_v15, %v6285_v2  ;;  %v6294_v36 = vrot.slane %v6293_v23, 4  ;;  %10481 = vmatprep.mubr.msk.bf16.mxu1 %vm1946_vm0, %v9104_v27  ;;  %v6312_v37 = vrot.slane %v6310_v24, 4  ;;  %v11388_v21 = vld [vmem:[%s11477_s25 + $0x1e8] sm:$0xf]  ;;  %v9578_v27 = vld [vmem:[%s11477_s25 + $0x224] sm:$0xf] }
 0x1e3   : > { %v6318_v38 = vrot.slane %v6316_v29, 5  ;;  %v6322_v41 = vrot.slane %v6320_v33, 4  ;;  %v6326_v42 = vshll.u32 %v9570_v28, 16  ;;  %v9105_v45 = vcombine.low %v11384_v43, %v11385_v44 }
 0x1e4   : > { %v6304_v40 = vrot.slane %v6303_v30, 4  ;;  %10742 = vmatmul.mubr.msk.bf16.gmra.mrb[92].mxu0 %vm1946_vm0, %v9655_v35  ;;  %v6299_v46 = vsel %vm11504_vm3, %v6294_v36, %v6298_v20  ;;  %v6313_v47 = vor.u32 %v6312_v37, %v6308_v31  ;;  %v6331_v49 = vshrl.u32 %v9571_v34, 16 }
 0x1e5   : > { %v6334_v9 = vshll.u32 %v9571_v34, 16  ;;  %v6323_v17 = vor.u32 %v6322_v41, %v6318_v38  ;;  %v6328_v50 = vrot.slane %v6326_v42, 5  ;;  %10482 = vmatmul.mubr.msk.bf16.gmra.mrb[92].mxu1 %vm1946_vm0, %v9105_v45  ;;  %v6340_v51 = vshll.u32 %v9572_v39, 16  ;;  %v9579_v41 = vld [vmem:[%s11477_s25 + $0x228] sm:$0xf] }
 0x1e6   : > { %v6309_v10 = vsel %vm11504_vm3, %v6304_v40, %v6308_v31  ;;  %v6314_v53 = vrot.slane %v6313_v47, 4  ;;  %v6333_v54 = vrot.slane %v6331_v49, 4  ;;  %v6344_v59 = vshrl.u32 %v9572_v39, 16 }
 0x1e7   : > { %v9656_v52 = vcombine.low %v6299_v46, %v6309_v10  ;;  %v6336_v55 = vrot.slane %v6334_v9, 5  ;;  %v6324_v57 = vrot.slane %v6323_v17, 4  ;;  %v6342_v58 = vrot.slane %v6340_v51, 5  ;;  %v9580_v46 = vld [vmem:[%s11477_s25 + $0x22c] sm:$0x1] }
 0x1e8   : > { %v6350_v60 = vshll.u32 %v9573_v48, 16  ;;  %v6319_v61 = vsel %vm11504_vm3, %v6314_v53, %v6318_v38  ;;  %v6354_v63 = vshrl.u32 %v9573_v48, 16  ;;  %v9106_v3 = vcombine.low %v11386_v0, %v11387_v1  ;;  %v11390_v10 = vld [vmem:[%s11477_s25 + $0x1f4] sm:$0xf]  ;;  %v11391_v17 = vld [vmem:[%s11477_s25 + $0x1f8] sm:$0xf] }
 0x1e9   : > { %10745 = vmatprep.mubr.msk.bf16.mxu0 %vm1946_vm0, %v9656_v52  ;;  %v6337_v62 = vor.u32 %v6336_v55, %v6333_v54  ;;  %v6329_v5 = vsel %vm11504_vm3, %v6324_v57, %v6328_v50  ;;  %v6346_v6 = vrot.slane %v6344_v59, 4  ;;  %v6360_v8 = vshll.u32 %v9574_v56, 16  ;;  %v9581_v57 = vld [vmem:[%s11477_s25 + $0x230] sm:$0xf] }
 0x1ea   : > { %v6352_v7 = vrot.slane %v6350_v60, 5  ;;  %v9657_v12 = vcombine.low %v6319_v61, %v6329_v5  ;;  %10485 = vmatprep.mubr.msk.bf16.mxu1 %vm1946_vm0, %v9106_v3  ;;  %v6356_v14 = vrot.slane %v6354_v63, 4  ;;  %v6364_v15 = vshrl.u32 %v9574_v56, 16  ;;  %v9582_v63 = vld [vmem:[%s11477_s25 + $0x234] sm:$0xf] }
 0x1eb   : > { %v6338_v13 = vrot.slane %v6337_v62, 4  ;;  %v6347_v18 = vor.u32 %v6346_v6, %v6342_v58  ;;  %v6362_v19 = vrot.slane %v6360_v8, 5  ;;  %v6370_v20 = vshll.u32 %v9575_v4, 16  ;;  %v11392_v4 = vld [vmem:[%s11477_s25 + $0x1fc] sm:$0xf] }
 0x1ec   : > { %v9107_v23 = vcombine.low %v11388_v21, %v11389_v22  ;;  %10746 = vmatmul.mubr.msk.bf16.gmra.mrb[96].mxu0 %vm1946_vm0, %v9657_v12  ;;  %v6357_v25 = vor.u32 %v6356_v14, %v6352_v7  ;;  %v6366_v26 = vrot.slane %v6364_v15, 4  ;;  %v6375_v28 = vshrl.u32 %v9576_v11, 16  ;;  %v11393_v5 = vld [vmem:[%s11477_s25 + $0x200] sm:$0xf]  ;;  %v9583_v12 = vld [vmem:[%s11477_s25 + $0x238] sm:$0xf] }
 0x1ed   : > { %v6343_v24 = vsel %vm11504_vm3, %v6338_v13, %v6342_v58  ;;  %v6348_v29 = vrot.slane %v6347_v18, 4  ;;  %v6372_v2 = vrot.slane %v6370_v20, 5  ;;  %v6378_v30 = vshll.u32 %v9576_v11, 16 }
 0x1ee   : > { %10486 = vmatmul.mubr.msk.bf16.gmra.mrb[96].mxu1 %vm1946_vm0, %v9107_v23  ;;  %v6384_v31 = vshll.u32 %v9577_v16, 16  ;;  %v6358_v33 = vrot.slane %v6357_v25, 4  ;;  %v6367_v34 = vor.u32 %v6366_v26, %v6362_v19  ;;  %v6377_v35 = vrot.slane %v6375_v28, 4  ;;  %v9584_v23 = vld [vmem:[%s11477_s25 + $0x23c] sm:$0xf] }
 0x1ef   : > { %v6388_v36 = vshrl.u32 %v9577_v16, 16  ;;  %v6353_v37 = vsel %vm11504_vm3, %v6348_v29, %v6352_v7  ;;  %v6380_v38 = vrot.slane %v6378_v30, 5  ;;  %v6394_v40 = vshll.u32 %v9578_v27, 16  ;;  %v11394_v30 = vld [vmem:[%s11477_s25 + $0x208] sm:$0xf] }
 0x1f0   : > { %v6386_v39 = vrot.slane %v6384_v31, 5  ;;  %v9658_v42 = vcombine.low %v6343_v24, %v6353_v37  ;;  %v6363_v43 = vsel %vm11504_vm3, %v6358_v33, %v6362_v19  ;;  %v6368_v44 = vrot.slane %v6367_v34, 4  ;;  %v11395_v31 = vld [vmem:[%s11477_s25 + $0x20c] sm:$0xf]  ;;  %v9585_v34 = vld [vmem:[%s11477_s25 + $0x240] sm:$0x1] }
 0x1f1   : > { %v6390_v45 = vrot.slane %v6388_v36, 4  ;;  %v12646_v47 = vpop.f32.mrb[0].mxu0  ;;  %v6381_v48 = vor.u32 %v6380_v38, %v6377_v35  ;;  %v6396_v49 = vrot.slane %v6394_v40, 5  ;;  %v6398_v9 = vshrl.u32 %v9578_v27, 16 }
 0x1f2   : > { %v9108_v50 = vcombine.low %v11390_v10, %v11391_v17  ;;  %v12650_v51 = vpop.f32.mrb[1].mxu0  ;;  %10749 = vmatprep.mubr.msk.bf16.mxu0 %vm1946_vm0, %v9658_v42  ;;  %v6373_v52 = vsel %vm11504_vm3, %v6368_v44, %v6372_v2  ;;  %v6404_v54 = vshll.u32 %v9579_v41, 16  ;;  %v6408_v55 = vshrl.u32 %v9579_v41, 16  ;;  %v12686_v10 = vld [vmem:[%s13492_s2] ss:$0 sm:$0xff] }
 0x1f3   : > { %v6391_v53 = vor.u32 %v6390_v45, %v6386_v39  ;;  %v12655_v56 = vpop.f32.mrb[2].mxu0  ;;  %v9659_v58 = vcombine.low %v6363_v43, %v6373_v52  ;;  %v6382_v59 = vrot.slane %v6381_v48, 4  ;;  %v6400_v60 = vrot.slane %v6398_v9, 4  ;;  %v11396_v48 = vld [vmem:[%s11477_s25 + $0x210] sm:$0xf] }
 0x1f4   : > { %10489 = vmatprep.mubr.msk.bf16.mxu1 %vm1946_vm0, %v9108_v50  ;;  %v6414_v61 = vshll.u32 %v9580_v46, 16  ;;  %v12659_v62 = vpop.f32.mrb[3].mxu0  ;;  %v6406_v1 = vrot.slane %v6404_v54, 5  ;;  %v6410_v3 = vrot.slane %v6408_v55, 4  ;;  %v9109_v6 = vcombine.low %v11392_v4, %v11393_v5 }
 0x1f5   : > { %v6392_v0 = vrot.slane %v6391_v53, 4  ;;  %10750 = vmatmul.mubr.msk.bf16.gmra.mrb[100].mxu0 %vm1946_vm0, %v9659_v58  ;;  %v6387_v7 = vsel %vm11504_vm3, %v6382_v59, %v6386_v39  ;;  %v6401_v8 = vor.u32 %v6400_v60, %v6396_v49  ;;  %v6419_v13 = vshrl.u32 %v9581_v57, 16 }
 0x1f6   : > { %v6416_v11 = vrot.slane %v6414_v61, 5  ;;  %v6411_v15 = vor.u32 %v6410_v3, %v6406_v1  ;;  %10490 = vmatmul.mubr.msk.bf16.gmra.mrb[100].mxu1 %vm1946_vm0, %v9109_v6  ;;  %v6422_v16 = vshll.u32 %v9581_v57, 16  ;;  %v6428_v18 = vshll.u32 %v9582_v63, 16 }
 0x1f7   : > { %v6397_v14 = vsel %vm11504_vm3, %v6392_v0, %v6396_v49  ;;  %v6402_v20 = vrot.slane %v6401_v8, 4  ;;  %v6421_v21 = vrot.slane %v6419_v13, 4  ;;  %v6432_v22 = vshrl.u32 %v9582_v63, 16  ;;  %v11397_v49 = vld [vmem:[%s11477_s25 + $0x214] sm:$0xf] }
 0x1f8   : > { %v9660_v19 = vcombine.low %v6387_v7, %v6397_v14  ;;  %v6412_v24 = vrot.slane %v6411_v15, 4  ;;  %v6424_v25 = vrot.slane %v6422_v16, 5  ;;  %v6430_v26 = vrot.slane %v6428_v18, 5 }
 0x1f9   : > { %v6438_v27 = vshll.u32 %v9583_v12, 16  ;;  %v6407_v28 = vsel %vm11504_vm3, %v6402_v20, %v6406_v1  ;;  %v6434_v29 = vrot.slane %v6432_v22, 4  ;;  %v6442_v2 = vshrl.u32 %v9583_v12, 16 }
 0x1fa   : > { %10753 = vmatprep.mubr.msk.bf16.mxu0 %vm1946_vm0, %v9660_v19  ;;  %v9110_v33 = vcombine.low %v11394_v30, %v11395_v31  ;;  %v6417_v35 = vsel %vm11504_vm3, %v6412_v24, %v6416_v11  ;;  %v6425_v36 = vor.u32 %v6424_v25, %v6421_v21  ;;  %v6448_v38 = vshll.u32 %v9584_v23, 16  ;;  %v9586_v11 = vld [vmem:[%s11477_s25 + $0x244] sm:$0xf]  ;;  %v9587_v19 = vld [vmem:[%s11477_s25 + $0x248] sm:$0xf] }
 0x1fb   : > { %v6440_v37 = vrot.slane %v6438_v27, 5  ;;  %v9661_v39 = vcombine.low %v6407_v28, %v6417_v35  ;;  %v6435_v40 = vor.u32 %v6434_v29, %v6430_v26  ;;  %v6444_v41 = vrot.slane %v6442_v2, 4  ;;  %v10391_v43 = vpop.f32.mrb[0].mxu1  ;;  %v9589_v30 = vld [vmem:[%s11477_s25 + $0x250] sm:$0xf] }
 0x1fc   : > { %10493 = vmatprep.mubr.msk.bf16.mxu1 %vm1946_vm0, %v9110_v33  ;;  %v6452_v42 = vshrl.u32 %v9584_v23, 16  ;;  %v6426_v44 = vrot.slane %v6425_v36, 4  ;;  %v6450_v45 = vrot.slane %v6448_v38, 5  ;;  %v6458_v46 = vshll.u32 %v9585_v34, 16  ;;  %v3236_v17 = vpop.f32.mrb[1].mxu1 }
 0x1fd   : > { %v9111_v9 = vcombine.low %v11396_v48, %v11397_v49  ;;  %10754 = vmatmul.mubr.msk.bf16.gmra.mrb[104].mxu0 %vm1946_vm0, %v9661_v39  ;;  %v6436_v50 = vrot.slane %v6435_v40, 4  ;;  %v6445_v52 = vor.u32 %v6444_v41, %v6440_v37  ;;  %v12689_v54 = vpop.f32.mrb[4].mxu0  ;;  %v10777_v55 = vadd.f32 %v12646_v47, %v10391_v43  ;;  %v10392_v57 = vpop.f32.mrb[2].mxu1  ;;  %v9590_v43 = vld [vmem:[%s11477_s25 + $0x254] sm:$0x1] }
 0x1fe   : > { %v6454_v53 = vrot.slane %v6452_v42, 4  ;;  %v6431_v58 = vsel %vm11504_vm3, %v6426_v44, %v6430_v26  ;;  %v6460_v59 = vrot.slane %v6458_v46, 5  ;;  %v12695_v60 = vpop.f32.mrb[5].mxu0  ;;  %v10778_v61 = vadd.f32 %v12650_v51, %v3236_v17  ;;  %v3239_v63 = vpop.f32.mrb[3].mxu1  ;;  %v9588_v26 = vld [vmem:[%s11477_s25 + $0x24c] sm:$0xf] }
 0x1ff   : > { %10494 = vmatmul.mubr.msk.bf16.gmra.mrb[104].mxu1 %vm1946_vm0, %v9111_v9  ;;  %v6441_v0 = vsel %vm11504_vm3, %v6436_v50, %v6440_v37  ;;  %v6446_v1 = vrot.slane %v6445_v52, 4  ;;  %v7713_v47 = vadd.f32 %v10777_v55, %v12686_v10  ;;  %v12701_v4 = vpop.f32.mrb[6].mxu0  ;;  %v10779_v7 = vadd.f32 %v12655_v56, %v10392_v57  ;;  %v11399_v55 = vld [vmem:[%s11477_s25 + $0x220] sm:$0xf] }
 0x200   : > { %v6455_v3 = vor.u32 %v6454_v53, %v6450_v45  ;;  %v9662_v5 = vcombine.low %v6431_v58, %v6441_v0  ;;  %v7711_v6 = vadd.f32 %v10778_v61, %v12686_v10  ;;  %v12706_v8 = vpop.f32.mrb[7].mxu0  ;;  %v10780_v51 = vadd.f32 %v12659_v62, %v3239_v63  ;;  %v11398_v53 = vld [vmem:[%s11477_s25 + $0x21c] sm:$0xf] }
 0x201   : > { %v6451_v12 = vsel %vm11504_vm3, %v6446_v1, %v6450_v45  ;;  %vm7841_vm5 = vcmp.ge.f32.partialorder %v7713_v47, 0.0  ;;  %v7969_v14 = vmul.f32 0.2, %v7713_v47  ;;  %v7714_v16 = vadd.f32 %v10779_v7, %v12686_v10 }
 0x202   : > { %v6456_v13 = vrot.slane %v6455_v3, 4  ;;  %10757 = vmatprep.mubr.msk.bf16.mxu0 %vm1946_vm0, %v9662_v5  ;;  %vm7839_vm6 = vcmp.ge.f32.partialorder %v7711_v6, 0.0  ;;  %v7967_v15 = vmul.f32 0.2, %v7711_v6  ;;  %v7712_v56 = vadd.f32 %v10780_v51, %v12686_v10  ;;  %v11401_v5 = vld [vmem:[%s11477_s25 + $0x228] sm:$0xf] }
 0x203   : > { %v8097_v62 = vsel %vm7841_vm5, %v7713_v47, %v7969_v14  ;;  %v6463_v20 = vshrl.u32 %v9586_v11, 16  ;;  %v6466_v21 = vshll.u32 %v9586_v11, 16  ;;  %v10395_v22 = vpop.f32.mrb[4].mxu1  ;;  %vm7842_vm7 = vcmp.ge.f32.partialorder %v7714_v16, 0.0  ;;  %v11400_v47 = vld [vmem:[%s11477_s25 + $0x224] sm:$0xf] }
 0x204   : > { %v6461_v18 = vsel %vm11504_vm3, %v6456_v13, %v6460_v59  ;;  %v9871_v24 = vpack.c.bf16 %v8097_v62, %v8097_v62  ;;  %v8095_v25 = vsel %vm7839_vm6, %v7711_v6, %v7967_v15  ;;  %v3252_v27 = vpop.f32.mrb[5].mxu1  ;;  %v7970_v29 = vmul.f32 0.2, %v7714_v16  ;;  %v9591_v51 = vld [vmem:[%s11477_s25 + $0x258] sm:$0xf] }
 0x205   : > { %v9663_v23 = vcombine.low %v6451_v12, %v6461_v18  ;;  %v9869_v28 = vpack.c.bf16 %v8095_v25, %v8095_v25  ;;  %vm7840_vm8 = vcmp.ge.f32.partialorder %v7712_v56, 0.0  ;;  %v7968_v2 = vmul.f32 0.2, %v7712_v56  ;;  %v12725_v31 = vpop.f32.mrb[8].mxu0  ;;  %v10396_v38 = vpop.f32.mrb[6].mxu1 }
 0x206   : > { %8738 = vst.msk [vmem:[%s12720_s4 + $0x8] sm:$0xf] %vm8735_vm4, %v9871_v24  ;;  %v6465_v33 = vrot.slane %v6463_v20, 4  ;;  %v6468_v34 = vrot.slane %v6466_v21, 5  ;;  %v6472_v35 = vshll.u32 %v9587_v19, 16  ;;  %v6476_v36 = vshrl.u32 %v9587_v19, 16 }
 0x207   : > { %10758 = vmatmul.mubr.msk.bf16.gmra.mrb[108].mxu0 %vm1946_vm0, %v9663_v23  ;;  %v12730_v37 = vpop.f32.mrb[9].mxu0  ;;  %8736 = vst.msk [vmem:[%s12720_s4] sm:$0xf] %vm8735_vm4, %v9869_v28  ;;  %v8098_v39 = vsel %vm7842_vm7, %v7714_v16, %v7970_v29  ;;  %v8096_v40 = vsel %vm7840_vm8, %v7712_v56, %v7968_v2  ;;  %v6482_v41 = vshll.u32 %v9588_v26, 16  ;;  %v6486_v42 = vshrl.u32 %v9588_v26, 16  ;;  %v3255_v45 = vpop.f32.mrb[7].mxu1 }
 0x208   : > { %v12736_v44 = vpop.f32.mrb[10].mxu0  ;;  %v9872_v46 = vpack.c.bf16 %v8098_v39, %v8098_v39  ;;  %v9870_v48 = vpack.c.bf16 %v8096_v40, %v8096_v40  ;;  %v6469_v49 = vor.u32 %v6468_v34, %v6465_v33  ;;  %v6474_v9 = vrot.slane %v6472_v35, 5 }
 0x209   : > { %v12738_v17 = vpop.f32.mrb[11].mxu0  ;;  %v6478_v50 = vrot.slane %v6476_v36, 4  ;;  %v6484_v52 = vrot.slane %v6482_v41, 5  ;;  %v9112_v57 = vcombine.low %v11398_v53, %v11399_v55  ;;  %v6488_v58 = vrot.slane %v6486_v42, 4  ;;  %v9592_v36 = vld [vmem:[%s11477_s25 + $0x25c] sm:$0xf] }
 0x20a   : > { %8739 = vst.msk [vmem:[%s12720_s4 + $0xc] sm:$0xf] %vm8735_vm4, %v9872_v46  ;;  %8737 = vst.msk [vmem:[%s12720_s4 + $0x4] sm:$0xf] %vm8735_vm4, %v9870_v48  ;;  %v6470_v59 = vrot.slane %v6469_v49, 4  ;;  %v6492_v61 = vshll.u32 %v9589_v30, 16  ;;  %v9113_v6 = vcombine.low %v11400_v47, %v11401_v5  ;;  %v10781_v7 = vadd.f32 %v12689_v54, %v10395_v22 }
 0x20b   : > { %v6496_v63 = vshrl.u32 %v9589_v30, 16  ;;  %v6502_v0 = vshll.u32 %v9590_v43, 16  ;;  %v6479_v1 = vor.u32 %v6478_v50, %v6474_v9  ;;  %10497 = vmatprep.mubr.msk.bf16.mxu1 %vm1946_vm0, %v9112_v57  ;;  %v6489_v3 = vor.u32 %v6488_v58, %v6484_v52  ;;  %v12751_v11 = vpop.f32.mrb[8].mxu1  ;;  %v9593_v43 = vld [vmem:[%s11477_s25 + $0x260] sm:$0xf] }
 0x20c   : > { %v6475_v12 = vsel %vm11504_vm3, %v6470_v59, %v6474_v9  ;;  %v6494_v13 = vrot.slane %v6492_v61, 5  ;;  %v12755_v16 = vpop.f32.mrb[9].mxu1  ;;  %10498 = vmatmul.mubr.msk.bf16.gmra.mrb[108].mxu1 %vm1946_vm0, %v9113_v6  ;;  %v7717_v62 = vadd.f32 %v10781_v7, %v12686_v10  ;;  %v10782_v19 = vadd.f32 %v12695_v60, %v3252_v27  ;;  %v9594_v61 = vld [vmem:[%s11477_s25 + $0x264] sm:$0xf]  ;;  %v9595_v6 = vld [vmem:[%s11477_s25 + $0x268] sm:$0x1] }
 0x20d   : > { %v6498_v14 = vrot.slane %v6496_v63, 4  ;;  %v6504_v15 = vrot.slane %v6502_v0, 5  ;;  %v6480_v56 = vrot.slane %v6479_v1, 4  ;;  %v6490_v18 = vrot.slane %v6489_v3, 4  ;;  %v12760_v54 = vpop.f32.mrb[12].mxu0  ;;  %v12762_v20 = vpop.f32.mrb[10].mxu1 }
 0x20e   : > { %v10783_v22 = vadd.f32 %v12701_v4, %v10396_v38  ;;  %v10784_v23 = vadd.f32 %v12706_v8, %v3255_v45  ;;  %v6507_v24 = vshrl.u32 %v9591_v51, 16  ;;  %v12766_v25 = vpop.f32.mrb[13].mxu0  ;;  %v12768_v26 = vpop.f32.mrb[11].mxu1  ;;  %vm7845_vm9 = vcmp.ge.f32.partialorder %v7717_v62, 0.0 }
 0x20f   : > { %v6499_v21 = vor.u32 %v6498_v14, %v6494_v13  ;;  %v6485_v28 = vsel %vm11504_vm3, %v6480_v56, %v6484_v52  ;;  %v6495_v60 = vsel %vm11504_vm3, %v6490_v18, %v6494_v13  ;;  %v7973_v27 = vmul.f32 0.2, %v7717_v62  ;;  %v12774_v29 = vpop.f32.mrb[14].mxu0 }
 0x210   : > { %v9664_v4 = vcombine.low %v6475_v12, %v6485_v28  ;;  %v7715_v8 = vadd.f32 %v10782_v19, %v12686_v10  ;;  %v7718_v30 = vadd.f32 %v10783_v22, %v12686_v10  ;;  %v12778_v33 = vpop.f32.mrb[15].mxu0  ;;  %v7716_v35 = vadd.f32 %v10784_v23, %v12686_v10  ;;  %v11403_v19 = vld [vmem:[%s11477_s25 + $0x234] sm:$0xf] }
 0x211   : > { %v6500_v2 = vrot.slane %v6499_v21, 4  ;;  %v8101_v34 = vsel %vm7845_vm9, %v7717_v62, %v7973_v27  ;;  %v6509_v38 = vrot.slane %v6507_v24, 4  ;;  %v6510_v39 = vshll.u32 %v9591_v51, 16  ;;  %v11402_v62 = vld [vmem:[%s11477_s25 + $0x230] sm:$0xf] }
 0x212   : > { %10761 = vmatprep.mubr.msk.bf16.mxu0 %vm1946_vm0, %v9664_v4  ;;  %v9875_v41 = vpack.c.bf16 %v8101_v34, %v8101_v34  ;;  %vm7843_vm10 = vcmp.ge.f32.partialorder %v7715_v8, 0.0  ;;  %v7971_v42 = vmul.f32 0.2, %v7715_v8  ;;  %vm7846_vm11 = vcmp.ge.f32.partialorder %v7718_v30, 0.0  ;;  %v11404_v4 = vld [vmem:[%s11477_s25 + $0x238] sm:$0xf] }
 0x213   : > { %v6505_v40 = vsel %vm11504_vm3, %v6500_v2, %v6504_v15  ;;  %v7974_v46 = vmul.f32 0.2, %v7718_v30  ;;  %vm7844_vm12 = vcmp.ge.f32.partialorder %v7716_v35, 0.0  ;;  %v12786_v48 = vpop.f32.mrb[12].mxu1  ;;  %v7972_v9 = vmul.f32 0.2, %v7716_v35 }
 0x214   : > { %v9665_v45 = vcombine.low %v6495_v60, %v6505_v40  ;;  %8742 = vst.msk [vmem:[%s12720_s4 + $0x18] sm:$0xf] %vm8735_vm4, %v9875_v41  ;;  %v8099_v49 = vsel %vm7843_vm10, %v7715_v8, %v7971_v42  ;;  %v6512_v50 = vrot.slane %v6510_v39, 5  ;;  %v6516_v52 = vshll.u32 %v9592_v36, 16  ;;  %v12790_v53 = vpop.f32.mrb[13].mxu1 }
 0x215   : > { %v9873_v55 = vpack.c.bf16 %v8099_v49, %v8099_v49  ;;  %v8102_v57 = vsel %vm7846_vm11, %v7718_v30, %v7974_v46  ;;  %v6520_v58 = vshrl.u32 %v9592_v36, 16  ;;  %v6526_v59 = vshll.u32 %v9593_v43, 16  ;;  %v12796_v0 = vpop.f32.mrb[14].mxu1  ;;  %v11405_v2 = vld [vmem:[%s11477_s25 + $0x23c] sm:$0xf] }
 0x216   : > { %10762 = vmatmul.mubr.msk.bf16.gmra.mrb[112].mxu0 %vm1946_vm0, %v9665_v45  ;;  %v12794_v63 = vpop.f32.mrb[16].mxu0  ;;  %v9876_v1 = vpack.c.bf16 %v8102_v57, %v8102_v57  ;;  %v8100_v3 = vsel %vm7844_vm12, %v7716_v35, %v7972_v9  ;;  %v6513_v47 = vor.u32 %v6512_v50, %v6509_v38  ;;  %v6518_v5 = vrot.slane %v6516_v52, 5  ;;  %v12802_v51 = vpop.f32.mrb[15].mxu1  ;;  %v12824_v38 = vld [vmem:[%s11477_s25 + $0x26c] sm:$0xf] }
 0x217   : > { %v12800_v7 = vpop.f32.mrb[17].mxu0  ;;  %8740 = vst.msk [vmem:[%s12720_s4 + $0x10] sm:$0xf] %vm8735_vm4, %v9873_v55  ;;  %v9874_v12 = vpack.c.bf16 %v8100_v3, %v8100_v3  ;;  %v6522_v13 = vrot.slane %v6520_v58, 4  ;;  %v6528_v14 = vrot.slane %v6526_v59, 5  ;;  %v6530_v15 = vshrl.u32 %v9593_v43, 16 }
 0x218   : > { %v12806_v56 = vpop.f32.mrb[18].mxu0  ;;  %8743 = vst.msk [vmem:[%s12720_s4 + $0x1c] sm:$0xf] %vm8735_vm4, %v9876_v1  ;;  %v6514_v18 = vrot.slane %v6513_v47, 4  ;;  %v9114_v21 = vcombine.low %v11402_v62, %v11403_v19  ;;  %v6536_v22 = vshll.u32 %v9594_v61, 16  ;;  %v6540_v23 = vshrl.u32 %v9594_v61, 16 }
 0x219   : > { %v12812_v24 = vpop.f32.mrb[19].mxu0  ;;  %8741 = vst.msk [vmem:[%s12720_s4 + $0x14] sm:$0xf] %vm8735_vm4, %v9874_v12  ;;  %v6523_v28 = vor.u32 %v6522_v13, %v6518_v5  ;;  %v6532_v60 = vrot.slane %v6530_v15, 4  ;;  %v6546_v27 = vshll.u32 %v9595_v6, 16  ;;  %v9115_v8 = vcombine.low %v11404_v4, %v11405_v2 }
 0x21a   : > { %v6519_v30 = vsel %vm11504_vm3, %v6514_v18, %v6518_v5  ;;  %10501 = vmatprep.mubr.msk.bf16.mxu1 %vm1946_vm0, %v9114_v21  ;;  %v6538_v34 = vrot.slane %v6536_v22, 5  ;;  %v6542_v35 = vrot.slane %v6540_v23, 4  ;;  %v10785_v36 = vadd.f32 %v12725_v31, %v12751_v11  ;;  %v9597_v6 = vld [vmem:[%s11477_s25 + $0x270] sm:$0xf]  ;;  %v9598_v12 = vld [vmem:[%s11477_s25 + $0x274] sm:$0xf] }
 0x21b   : > { %v6524_v39 = vrot.slane %v6523_v28, 4  ;;  %v6533_v40 = vor.u32 %v6532_v60, %v6528_v14  ;;  %v6548_v41 = vrot.slane %v6546_v27, 5  ;;  %10502 = vmatmul.mubr.msk.bf16.gmra.mrb[112].mxu1 %vm1946_vm0, %v9115_v8  ;;  %v10786_v42 = vadd.f32 %v12730_v37, %v12755_v16  ;;  %v12829_v43 = vpop.f32.mrb[16].mxu1  ;;  %v9599_v19 = vld [vmem:[%s11477_s25 + $0x278] sm:$0xf] }
 0x21c   : > { %v6543_v45 = vor.u32 %v6542_v35, %v6538_v34  ;;  %v7721_v46 = vadd.f32 %v10785_v36, %v12686_v10  ;;  %v10787_v49 = vadd.f32 %v12736_v44, %v12762_v20  ;;  %v10788_v31 = vadd.f32 %v12738_v17, %v12768_v26  ;;  %v12836_v11 = vpop.f32.mrb[17].mxu1  ;;  %v11406_v35 = vld [vmem:[%s11477_s25 + $0x244] sm:$0xf]  ;;  %v11407_v36 = vld [vmem:[%s11477_s25 + $0x248] sm:$0xf] }
 0x21d   : > { %v6529_v9 = vsel %vm11504_vm3, %v6524_v39, %v6528_v14  ;;  %v6534_v50 = vrot.slane %v6533_v40, 4  ;;  %v7719_v52 = vadd.f32 %v10786_v42, %v12686_v10  ;;  %v6551_v37 = vshrl.u32 %v12824_v38, 16  ;;  %v12844_v55 = vpop.f32.mrb[18].mxu1  ;;  %v9600_v40 = vld [vmem:[%s11477_s25 + $0x27c] sm:$0x1] }
 0x21e   : > { %v12842_v16 = vpop.f32.mrb[20].mxu0  ;;  %v9666_v57 = vcombine.low %v6519_v30, %v6529_v9  ;;  %v6544_v44 = vrot.slane %v6543_v45, 4  ;;  %vm7849_vm13 = vcmp.ge.f32.partialorder %v7721_v46, 0.0  ;;  %v7977_v17 = vmul.f32 0.2, %v7721_v46  ;;  %v12848_v26 = vpop.f32.mrb[19].mxu1 }
 0x21f   : > { %v12846_v20 = vpop.f32.mrb[21].mxu0  ;;  %v6539_v58 = vsel %vm11504_vm3, %v6534_v50, %v6538_v34  ;;  %vm7847_vm14 = vcmp.ge.f32.partialorder %v7719_v52, 0.0  ;;  %v7975_v59 = vmul.f32 0.2, %v7719_v52  ;;  %v7722_v61 = vadd.f32 %v10787_v49, %v12686_v10 }
 0x220   : > { %v12853_v1 = vpop.f32.mrb[22].mxu0  ;;  %10765 = vmatprep.mubr.msk.bf16.mxu0 %vm1946_vm0, %v9666_v57  ;;  %v6549_v3 = vsel %vm11504_vm3, %v6544_v44, %v6548_v41  ;;  %v8105_v47 = vsel %vm7849_vm13, %v7721_v46, %v7977_v17  ;;  %v7720_v5 = vadd.f32 %v10788_v31, %v12686_v10  ;;  %v6553_v13 = vrot.slane %v6551_v37, 4 }
 0x221   : > { %v12861_v14 = vpop.f32.mrb[23].mxu0  ;;  %v9667_v15 = vcombine.low %v6539_v58, %v6549_v3  ;;  %v9879_v18 = vpack.c.bf16 %v8105_v47, %v8105_v47  ;;  %v8103_v62 = vsel %vm7847_vm14, %v7719_v52, %v7975_v59  ;;  %vm7850_vm15 = vcmp.ge.f32.partialorder %v7722_v61, 0.0  ;;  %v11408_v58 = vld [vmem:[%s11477_s25 + $0x24c] sm:$0xf]  ;;  %v11409_v59 = vld [vmem:[%s11477_s25 + $0x250] sm:$0xf] }
 0x222   : > { %v9877_v21 = vpack.c.bf16 %v8103_v62, %v8103_v62  ;;  %v7978_v22 = vmul.f32 0.2, %v7722_v61  ;;  %vm7848_vm1 = vcmp.ge.f32.partialorder %v7720_v5, 0.0  ;;  %v7976_v23 = vmul.f32 0.2, %v7720_v5 }
 0x223   : > { %10766 = vmatmul.mubr.msk.bf16.gmra.mrb[116].mxu0 %vm1946_vm0, %v9667_v15  ;;  %8746 = vst.msk [vmem:[%s12720_s4 + $0x28] sm:$0xf] %vm8735_vm4, %v9879_v18  ;;  %v6554_v28 = vshll.u32 %v12824_v38, 16  ;;  %v6560_v60 = vshll.u32 %v9597_v6, 16  ;;  %v6564_v27 = vshrl.u32 %v9597_v6, 16  ;;  %v6570_v4 = vshll.u32 %v9598_v12, 16 }
 0x224   : > { %v12868_v2 = vpop.f32.mrb[20].mxu1  ;;  %8744 = vst.msk [vmem:[%s12720_s4 + $0x20] sm:$0xf] %vm8735_vm4, %v9877_v21  ;;  %v8106_v8 = vsel %vm7850_vm15, %v7722_v61, %v7978_v22  ;;  %v8104_v30 = vsel %vm7848_vm1, %v7720_v5, %v7976_v23  ;;  %v6574_v34 = vshrl.u32 %v9598_v12, 16  ;;  %v9116_v39 = vcombine.low %v11406_v35, %v11407_v36 }
 0x225   : > { %v12875_v41 = vpop.f32.mrb[21].mxu1  ;;  %v9880_v42 = vpack.c.bf16 %v8106_v8, %v8106_v8  ;;  %v9878_v38 = vpack.c.bf16 %v8104_v30, %v8104_v30  ;;  %v6556_v45 = vrot.slane %v6554_v28, 5  ;;  %v6562_v46 = vrot.slane %v6560_v60, 5 }
 0x226   : > { %v12877_v49 = vpop.f32.mrb[22].mxu1  ;;  %v6566_v31 = vrot.slane %v6564_v27, 4  ;;  %v6572_v9 = vrot.slane %v6570_v4, 5  ;;  %10505 = vmatprep.mubr.msk.bf16.mxu1 %vm1946_vm0, %v9116_v39  ;;  %v6576_v50 = vrot.slane %v6574_v34, 4  ;;  %v6580_v52 = vshll.u32 %v9599_v19, 16 }
 0x227   : > { %v12880_v37 = vpop.f32.mrb[23].mxu1  ;;  %8747 = vst.msk [vmem:[%s12720_s4 + $0x2c] sm:$0xf] %vm8735_vm4, %v9880_v42  ;;  %8745 = vst.msk [vmem:[%s12720_s4 + $0x24] sm:$0xf] %vm8735_vm4, %v9878_v38  ;;  %v6557_v57 = vor.u32 %v6556_v45, %v6553_v13  ;;  %v6584_v44 = vshrl.u32 %v9599_v19, 16  ;;  %v9117_v61 = vcombine.low %v11408_v58, %v11409_v59  ;;  %v10789_v12 = vadd.f32 %v12760_v54, %v12786_v48 }
 0x228   : > { %v6590_v17 = vshll.u32 %v9600_v40, 16  ;;  %v12888_v3 = vpop.f32.mrb[24].mxu0  ;;  %v6567_v47 = vor.u32 %v6566_v31, %v6562_v46  ;;  %v6577_v5 = vor.u32 %v6576_v50, %v6572_v9  ;;  %v6582_v6 = vrot.slane %v6580_v52, 5  ;;  %v9602_v50 = vld [vmem:[%s11477_s25 + $0x284] sm:$0xf] }
 0x229   : > { %v12892_v15 = vpop.f32.mrb[25].mxu0  ;;  %v6558_v18 = vrot.slane %v6557_v57, 4  ;;  %v6586_v62 = vrot.slane %v6584_v44, 4  ;;  %10506 = vmatmul.mubr.msk.bf16.gmra.mrb[116].mxu1 %vm1946_vm0, %v9117_v61  ;;  %v10790_v13 = vadd.f32 %v12766_v25, %v12790_v53  ;;  %v7725_v28 = vadd.f32 %v10789_v12, %v12686_v10  ;;  %v9601_v53 = vld [vmem:[%s11477_s25 + $0x280] sm:$0xf] }
 0x22a   : > { %v6592_v21 = vrot.slane %v6590_v17, 5  ;;  %v12897_v19 = vpop.f32.mrb[26].mxu0  ;;  %v6568_v22 = vrot.slane %v6567_v47, 4  ;;  %v6578_v23 = vrot.slane %v6577_v5, 4  ;;  %v10791_v54 = vadd.f32 %v12774_v29, %v12796_v0  ;;  %v9603_v52 = vld [vmem:[%s11477_s25 + $0x288] sm:$0xf] }
 0x22b   : > { %v12902_v48 = vpop.f32.mrb[27].mxu0  ;;  %v6563_v60 = vsel %vm11504_vm3, %v6558_v18, %v6562_v46  ;;  %v6587_v27 = vor.u32 %v6586_v62, %v6582_v6  ;;  %v7723_v4 = vadd.f32 %v10790_v13, %v12686_v10  ;;  %v10792_v25 = vadd.f32 %v12778_v33, %v12802_v51  ;;  %v12910_v8 = vpop.f32.mrb[24].mxu1 }
 0x22c   : > { %v6573_v30 = vsel %vm11504_vm3, %v6568_v22, %v6572_v9  ;;  %v6583_v29 = vsel %vm11504_vm3, %v6578_v23, %v6582_v6  ;;  %vm7853_vm2 = vcmp.ge.f32.partialorder %v7725_v28, 0.0  ;;  %v7981_v0 = vmul.f32 0.2, %v7725_v28  ;;  %v12916_v34 = vpop.f32.mrb[25].mxu1  ;;  %v9604_v22 = vld [vmem:[%s11477_s25 + $0x28c] sm:$0xf] }
 0x22d   : > { %v9668_v35 = vcombine.low %v6563_v60, %v6573_v30  ;;  %v6588_v36 = vrot.slane %v6587_v27, 4  ;;  %vm7851_vm5 = vcmp.ge.f32.partialorder %v7723_v4, 0.0  ;;  %v7979_v39 = vmul.f32 0.2, %v7723_v4  ;;  %v12918_v33 = vpop.f32.mrb[26].mxu1 }
 0x22e   : > { %v8109_v51 = vsel %vm7853_vm2, %v7725_v28, %v7981_v0  ;;  %v7726_v40 = vadd.f32 %v10791_v54, %v12686_v10  ;;  %v7724_v42 = vadd.f32 %v10792_v25, %v12686_v10  ;;  %v6595_v38 = vshrl.u32 %v9601_v53, 16  ;;  %v12922_v45 = vpop.f32.mrb[27].mxu1 }
 0x22f   : > { %10769 = vmatprep.mubr.msk.bf16.mxu0 %vm1946_vm0, %v9668_v35  ;;  %v6593_v46 = vsel %vm11504_vm3, %v6588_v36, %v6592_v21  ;;  %v9883_v31 = vpack.c.bf16 %v8109_v51, %v8109_v51  ;;  %v8107_v9 = vsel %vm7851_vm5, %v7723_v4, %v7979_v39  ;;  %v6598_v57 = vshll.u32 %v9601_v53, 16  ;;  %v12929_v44 = vpop.f32.mrb[28].mxu0  ;;  %v9605_v4 = vld [vmem:[%s11477_s25 + $0x290] sm:$0x1]  ;;  %v11410_v39 = vld [vmem:[%s11477_s25 + $0x258] sm:$0xf] }
 0x230   : > { %v9669_v17 = vcombine.low %v6583_v29, %v6593_v46  ;;  %v9881_v58 = vpack.c.bf16 %v8107_v9, %v8107_v9  ;;  %vm7854_vm6 = vcmp.ge.f32.partialorder %v7726_v40, 0.0  ;;  %v7982_v59 = vmul.f32 0.2, %v7726_v40  ;;  %v12931_v61 = vpop.f32.mrb[29].mxu0  ;;  %v11411_v51 = vld [vmem:[%s11477_s25 + $0x25c] sm:$0xf] }
 0x231   : > { %8750 = vst.msk [vmem:[%s12720_s4 + $0x38] sm:$0xf] %vm8735_vm4, %v9883_v31  ;;  %vm7852_vm7 = vcmp.ge.f32.partialorder %v7724_v42, 0.0  ;;  %v7980_v47 = vmul.f32 0.2, %v7724_v42  ;;  %v6597_v5 = vrot.slane %v6595_v38, 4  ;;  %v10798_v32 = vadd.f32 %v12846_v20, %v12875_v41 }
 0x232   : > { %v6600_v6 = vrot.slane %v6598_v57, 5  ;;  %v12935_v12 = vpop.f32.mrb[30].mxu0  ;;  %10770 = vmatmul.mubr.msk.bf16.gmra.mrb[120].mxu0 %vm1946_vm0, %v9669_v17  ;;  %8748 = vst.msk [vmem:[%s12720_s4 + $0x30] sm:$0xf] %vm8735_vm4, %v9881_v58  ;;  %v8110_v18 = vsel %vm7854_vm6, %v7726_v40, %v7982_v59  ;;  %v6604_v62 = vshll.u32 %v9602_v50, 16  ;;  %v6608_v21 = vshrl.u32 %v9602_v50, 16 }
 0x233   : > { %v6614_v13 = vshll.u32 %v9603_v52, 16  ;;  %v12941_v23 = vpop.f32.mrb[31].mxu0  ;;  %v9884_v28 = vpack.c.bf16 %v8110_v18, %v8110_v18  ;;  %v8108_v54 = vsel %vm7852_vm7, %v7724_v42, %v7980_v47  ;;  %v6618_v27 = vshrl.u32 %v9603_v52, 16  ;;  %v12944_v25 = vpop.f32.mrb[28].mxu1  ;;  %v11412_v52 = vld [vmem:[%s11477_s25 + $0x260] sm:$0xf] }
 0x234   : > { %v6601_v60 = vor.u32 %v6600_v6, %v6597_v5  ;;  %v9882_v53 = vpack.c.bf16 %v8108_v54, %v8108_v54  ;;  %v6606_v30 = vrot.slane %v6604_v62, 5  ;;  %v6610_v29 = vrot.slane %v6608_v21, 4  ;;  %v12946_v35 = vpop.f32.mrb[29].mxu1  ;;  %v11413_v57 = vld [vmem:[%s11477_s25 + $0x264] sm:$0xf] }
 0x235   : > { %v6616_v0 = vrot.slane %v6614_v13, 5  ;;  %8751 = vst.msk [vmem:[%s12720_s4 + $0x3c] sm:$0xf] %vm8735_vm4, %v9884_v28  ;;  %v9118_v40 = vcombine.low %v11410_v39, %v11411_v51  ;;  %v6620_v42 = vrot.slane %v6618_v27, 4  ;;  %v6624_v38 = vshll.u32 %v9604_v22, 16  ;;  %v12952_v46 = vpop.f32.mrb[30].mxu1 }
 0x236   : > { %v6602_v36 = vrot.slane %v6601_v60, 4  ;;  %8749 = vst.msk [vmem:[%s12720_s4 + $0x34] sm:$0xf] %vm8735_vm4, %v9882_v53  ;;  %v6611_v31 = vor.u32 %v6610_v29, %v6606_v30  ;;  %v6628_v9 = vshrl.u32 %v9604_v22, 16  ;;  %v6634_v50 = vshll.u32 %v9605_v4, 16  ;;  %v12958_v58 = vpop.f32.mrb[31].mxu1 }
 0x237   : > { %v9119_v17 = vcombine.low %v11412_v52, %v11413_v57  ;;  %10509 = vmatprep.mubr.msk.bf16.mxu1 %vm1946_vm0, %v9118_v40  ;;  %v6621_v47 = vor.u32 %v6620_v42, %v6616_v0  ;;  %v6626_v5 = vrot.slane %v6624_v38, 5  ;;  %v10793_v6 = vadd.f32 %v12794_v63, %v12829_v43  ;;  %v12965_v18 = vpop.f32.mrb[32].mxu0 }
 0x238   : > { %v6607_v59 = vsel %vm11504_vm3, %v6602_v36, %v6606_v30  ;;  %v6612_v62 = vrot.slane %v6611_v31, 4  ;;  %v6630_v21 = vrot.slane %v6628_v9, 4  ;;  %v6636_v13 = vrot.slane %v6634_v50, 5  ;;  %v12970_v28 = vpop.f32.mrb[33].mxu0  ;;  %v11416_v31 = vld [vmem:[%s11477_s25 + $0x274] sm:$0xf] }
 0x239   : > { %10510 = vmatmul.mubr.msk.bf16.gmra.mrb[120].mxu1 %vm1946_vm0, %v9119_v17  ;;  %v10794_v22 = vadd.f32 %v12800_v7, %v12836_v11  ;;  %v6622_v54 = vrot.slane %v6621_v47, 4  ;;  %v7729_v60 = vadd.f32 %v10793_v6, %v12686_v10  ;;  %v10795_v63 = vadd.f32 %v12806_v56, %v12844_v55  ;;  %v12977_v27 = vpop.f32.mrb[34].mxu0  ;;  %v11414_v7 = vld [vmem:[%s11477_s25 + $0x26c] sm:$0xf]  ;;  %v11415_v11 = vld [vmem:[%s11477_s25 + $0x270] sm:$0xf] }
 0x23a   : > { %v10796_v43 = vadd.f32 %v12812_v24, %v12848_v26  ;;  %v6617_v4 = vsel %vm11504_vm3, %v6612_v62, %v6616_v0  ;;  %v6631_v53 = vor.u32 %v6630_v21, %v6626_v5  ;;  %v9120_v29 = vcombine.low %v11414_v7, %v11415_v11  ;;  %v12984_v36 = vpop.f32.mrb[35].mxu0  ;;  %v11417_v9 = vld [vmem:[%s11477_s25 + $0x278] sm:$0xf] }
 0x23b   : > { %v7727_v30 = vadd.f32 %v10794_v22, %v12686_v10  ;;  %v9670_v39 = vcombine.low %v6607_v59, %v6617_v4  ;;  %v6627_v56 = vsel %vm11504_vm3, %v6622_v54, %v6626_v5  ;;  %vm7857_vm8 = vcmp.ge.f32.partialorder %v7729_v60, 0.0  ;;  %v12988_v55 = vpop.f32.mrb[32].mxu1 }
 0x23c   : > { %v7985_v24 = vmul.f32 0.2, %v7729_v60  ;;  %v6632_v26 = vrot.slane %v6631_v53, 4  ;;  %v7730_v51 = vadd.f32 %v10795_v63, %v12686_v10  ;;  %10513 = vmatprep.mubr.msk.bf16.mxu1 %vm1946_vm0, %v9120_v29  ;;  %v12992_v40 = vpop.f32.mrb[33].mxu1  ;;  %v7728_v38 = vadd.f32 %v10796_v43, %v12686_v10 }
 0x23d   : > { %vm7855_vm9 = vcmp.ge.f32.partialorder %v7727_v30, 0.0  ;;  %v7983_v0 = vmul.f32 0.2, %v7727_v30  ;;  %10773 = vmatprep.mubr.msk.bf16.mxu0 %vm1946_vm0, %v9670_v39  ;;  %v9121_v50 = vcombine.low %v11416_v31, %v11417_v9  ;;  %v10797_v52 = vadd.f32 %v12842_v16, %v12868_v2  ;;  %v13000_v57 = vpop.f32.mrb[34].mxu1 }
 0x23e   : > { %v8113_v42 = vsel %vm7857_vm8, %v7729_v60, %v7985_v24  ;;  %v6637_v17 = vsel %vm11504_vm3, %v6632_v26, %v6636_v13  ;;  %vm7858_vm10 = vcmp.ge.f32.partialorder %v7730_v51, 0.0  ;;  %v13004_v5 = vpop.f32.mrb[35].mxu1  ;;  %v7986_v21 = vmul.f32 0.2, %v7730_v51 }
 0x23f   : > { %v9887_v59 = vpack.c.bf16 %v8113_v42, %v8113_v42  ;;  %v8111_v47 = vsel %vm7855_vm9, %v7727_v30, %v7983_v0  ;;  %v9671_v6 = vcombine.low %v6627_v56, %v6637_v17  ;;  %vm7856_vm11 = vcmp.ge.f32.partialorder %v7728_v38, 0.0 }
 0x240   : > { %v9885_v62 = vpack.c.bf16 %v8111_v47, %v8111_v47  ;;  %v7984_v22 = vmul.f32 0.2, %v7728_v38  ;;  %v7733_v16 = vadd.f32 %v10797_v52, %v12686_v10  ;;  %v10799_v2 = vadd.f32 %v12853_v1, %v12877_v49  ;;  %v13014_v13 = vpop.f32.mrb[36].mxu0 }
 0x241   : > { %8754 = vst.msk [vmem:[%s12720_s4 + $0x48] sm:$0xf] %vm8735_vm4, %v9887_v59  ;;  %10514 = vmatmul.mubr.msk.bf16.gmra.mrb[124].mxu1 %vm1946_vm0, %v9121_v50  ;;  %10774 = vmatmul.mubr.msk.bf16.gmra.mrb[124].mxu0 %vm1946_vm0, %v9671_v6  ;;  %v8114_v54 = vsel %vm7858_vm10, %v7730_v51, %v7986_v21  ;;  %v10800_v60 = vadd.f32 %v12861_v14, %v12880_v37  ;;  %v13025_v41 = vpop.f32.mrb[37].mxu0 }
 0x242   : > { %8752 = vst.msk [vmem:[%s12720_s4 + $0x40] sm:$0xf] %vm8735_vm4, %v9885_v62  ;;  %v10801_v63 = vadd.f32 %v12888_v3, %v12910_v8  ;;  %v10802_v20 = vadd.f32 %v12892_v15, %v12916_v34  ;;  %v9888_v1 = vpack.c.bf16 %v8114_v54, %v8114_v54  ;;  %v8112_v49 = vsel %vm7856_vm11, %v7728_v38, %v7984_v22  ;;  %v13028_v4 = vpop.f32.mrb[38].mxu0 }
 0x243   : > { %vm7861_vm0 = vcmp.ge.f32.partialorder %v7733_v16, 0.0  ;;  %v7989_v43 = vmul.f32 0.2, %v7733_v16  ;;  %v9886_v53 = vpack.c.bf16 %v8112_v49, %v8112_v49  ;;  %v7731_v30 = vadd.f32 %v10798_v32, %v12686_v10  ;;  %v13033_v3 = vpop.f32.mrb[39].mxu0  ;;  %v13035_v15 = vpop.f32.mrb[36].mxu1 }
 0x244   : > { %v7734_v14 = vadd.f32 %v10799_v2, %v12686_v10  ;;  %v7732_v37 = vadd.f32 %v10800_v60, %v12686_v10  ;;  %8755 = vst.msk [vmem:[%s12720_s4 + $0x4c] sm:$0xf] %vm8735_vm4, %v9888_v1  ;;  %v7737_v34 = vadd.f32 %v10801_v63, %v12686_v10  ;;  %v7735_v7 = vadd.f32 %v10802_v20, %v12686_v10  ;;  %v13043_v29 = vpop.f32.mrb[37].mxu1 }
 0x245   : > { %v8117_v8 = vsel %vm7861_vm0, %v7733_v16, %v7989_v43  ;;  %v10803_v11 = vadd.f32 %v12897_v19, %v12918_v33  ;;  %8753 = vst.msk [vmem:[%s12720_s4 + $0x44] sm:$0xf] %vm8735_vm4, %v9886_v53  ;;  %vm7859_vm3 = vcmp.ge.f32.partialorder %v7731_v30, 0.0  ;;  %v7987_v56 = vmul.f32 0.2, %v7731_v30  ;;  %v13047_v24 = vpop.f32.mrb[38].mxu1 }
 0x246   : > { %v9891_v39 = vpack.c.bf16 %v8117_v8, %v8117_v8  ;;  %vm7862_vm12 = vcmp.ge.f32.partialorder %v7734_v14, 0.0  ;;  %v7990_v26 = vmul.f32 0.2, %v7734_v14  ;;  %vm7860_vm13 = vcmp.ge.f32.partialorder %v7732_v37, 0.0  ;;  %v13051_v33 = vpop.f32.mrb[39].mxu1 }
 0x247   : > { %v7988_v0 = vmul.f32 0.2, %v7732_v37  ;;  %vm7865_vm14 = vcmp.ge.f32.partialorder %v7737_v34, 0.0  ;;  %v8115_v51 = vsel %vm7859_vm3, %v7731_v30, %v7987_v56  ;;  %v7993_v42 = vmul.f32 0.2, %v7737_v34 }
 0x248   : > { %8758 = vst.msk [vmem:[%s12720_s4 + $0x58] sm:$0xf] %vm8735_vm4, %v9891_v39  ;;  %vm7863_vm15 = vcmp.ge.f32.partialorder %v7735_v7, 0.0  ;;  %v7991_v19 = vmul.f32 0.2, %v7735_v7  ;;  %v9889_v38 = vpack.c.bf16 %v8115_v51, %v8115_v51  ;;  %v8118_v31 = vsel %vm7862_vm12, %v7734_v14, %v7990_v26  ;;  %v13054_v52 = vpop.f32.mrb[40].mxu0 }
 0x249   : > { %v8116_v9 = vsel %vm7860_vm13, %v7732_v37, %v7988_v0  ;;  %v7738_v50 = vadd.f32 %v10803_v11, %v12686_v10  ;;  %v9892_v17 = vpack.c.bf16 %v8118_v31, %v8118_v31  ;;  %v8121_v47 = vsel %vm7865_vm14, %v7737_v34, %v7993_v42  ;;  %v13056_v62 = vpop.f32.mrb[41].mxu0 }
 0x24a   : > { %v9890_v59 = vpack.c.bf16 %v8116_v9, %v8116_v9  ;;  %v8119_v6 = vsel %vm7863_vm15, %v7735_v7, %v7991_v19  ;;  %8756 = vst.msk [vmem:[%s12720_s4 + $0x50] sm:$0xf] %vm8735_vm4, %v9889_v38  ;;  %v9895_v21 = vpack.c.bf16 %v8121_v47, %v8121_v47  ;;  %v13060_v32 = vpop.f32.mrb[42].mxu0  ;;  %v10804_v2 = vadd.f32 %v12902_v48, %v12922_v45 }
 0x24b   : > { %v9893_v22 = vpack.c.bf16 %v8119_v6, %v8119_v6  ;;  %vm7866_vm1 = vcmp.ge.f32.partialorder %v7738_v50, 0.0  ;;  %v7994_v16 = vmul.f32 0.2, %v7738_v50  ;;  %8759 = vst.msk [vmem:[%s12720_s4 + $0x5c] sm:$0xf] %vm8735_vm4, %v9892_v17  ;;  %v10805_v54 = vadd.f32 %v12929_v44, %v12944_v25  ;;  %v13074_v20 = vpop.f32.mrb[43].mxu0 }
 0x24c   : > { %8757 = vst.msk [vmem:[%s12720_s4 + $0x54] sm:$0xf] %vm8735_vm4, %v9890_v59  ;;  %v10806_v60 = vadd.f32 %v12931_v61, %v12946_v35  ;;  %v10807_v63 = vadd.f32 %v12935_v12, %v12952_v46  ;;  %v13076_v1 = vpop.f32.mrb[40].mxu1  ;;  %8762 = vst.msk [vmem:[%s12720_s4 + $0x68] sm:$0xf] %vm8735_vm4, %v9895_v21  ;;  %v10808_v48 = vadd.f32 %v12941_v23, %v12958_v58 }
 0x24d   : > { %8760 = vst.msk [vmem:[%s12720_s4 + $0x60] sm:$0xf] %vm8735_vm4, %v9893_v22  ;;  %v8122_v49 = vsel %vm7866_vm1, %v7738_v50, %v7994_v16  ;;  %v10809_v45 = vadd.f32 %v12965_v18, %v12988_v55  ;;  %v10810_v44 = vadd.f32 %v12970_v28, %v12992_v40  ;;  %v13088_v61 = vpop.f32.mrb[41].mxu1  ;;  %v7736_v25 = vadd.f32 %v10804_v2, %v12686_v10 }
 0x24e   : > { %v9896_v12 = vpack.c.bf16 %v8122_v49, %v8122_v49  ;;  %v7741_v35 = vadd.f32 %v10805_v54, %v12686_v10  ;;  %v7739_v46 = vadd.f32 %v10806_v60, %v12686_v10  ;;  %v13093_v43 = vpop.f32.mrb[42].mxu1  ;;  %v7742_v53 = vadd.f32 %v10807_v63, %v12686_v10 }
 0x24f   : > { %v7740_v23 = vadd.f32 %v10808_v48, %v12686_v10  ;;  %v7745_v58 = vadd.f32 %v10809_v45, %v12686_v10  ;;  %v7743_v18 = vadd.f32 %v10810_v44, %v12686_v10  ;;  %v13099_v28 = vpop.f32.mrb[43].mxu1  ;;  %vm7864_vm2 = vcmp.ge.f32.partialorder %v7736_v25, 0.0 }
 0x250   : > { %8763 = vst.msk [vmem:[%s12720_s4 + $0x6c] sm:$0xf] %vm8735_vm4, %v9896_v12  ;;  %v7992_v55 = vmul.f32 0.2, %v7736_v25  ;;  %vm7869_vm5 = vcmp.ge.f32.partialorder %v7741_v35, 0.0  ;;  %vm7867_vm6 = vcmp.ge.f32.partialorder %v7739_v46, 0.0  ;;  %v10811_v59 = vadd.f32 %v12977_v27, %v13000_v57 }
 0x251   : > { %v7997_v40 = vmul.f32 0.2, %v7741_v35  ;;  %v7995_v30 = vmul.f32 0.2, %v7739_v46  ;;  %vm7870_vm7 = vcmp.ge.f32.partialorder %v7742_v53, 0.0  ;;  %vm7868_vm8 = vcmp.ge.f32.partialorder %v7740_v23, 0.0 }
 0x252   : > { %v7998_v14 = vmul.f32 0.2, %v7742_v53  ;;  %v8120_v37 = vsel %vm7864_vm2, %v7736_v25, %v7992_v55  ;;  %v7996_v34 = vmul.f32 0.2, %v7740_v23  ;;  %v13103_v7 = vpop.f32.mrb[44].mxu0  ;;  %vm7873_vm9 = vcmp.ge.f32.partialorder %v7745_v58, 0.0 }
 0x253   : > { %v8125_v8 = vsel %vm7869_vm5, %v7741_v35, %v7997_v40  ;;  %v9894_v10 = vpack.c.bf16 %v8120_v37, %v8120_v37  ;;  %v8123_v39 = vsel %vm7867_vm6, %v7739_v46, %v7995_v30  ;;  %v13105_v26 = vpop.f32.mrb[45].mxu0  ;;  %v13109_v38 = vpop.f32.mrb[44].mxu1  ;;  %v8001_v9 = vmul.f32 0.2, %v7745_v58 }
 0x254   : > { %v9899_v11 = vpack.c.bf16 %v8125_v8, %v8125_v8  ;;  %v8126_v56 = vsel %vm7870_vm7, %v7742_v53, %v7998_v14  ;;  %v9897_v0 = vpack.c.bf16 %v8123_v39, %v8123_v39  ;;  %v8124_v42 = vsel %vm7868_vm8, %v7740_v23, %v7996_v34  ;;  %v13107_v19 = vpop.f32.mrb[46].mxu0  ;;  %v3412_v22 = vpop.f32.mrb[45].mxu1 }
 0x255   : > { %v9900_v51 = vpack.c.bf16 %v8126_v56, %v8126_v56  ;;  %8761 = vst.msk [vmem:[%s12720_s4 + $0x64] sm:$0xf] %vm8735_vm4, %v9894_v10  ;;  %v9898_v31 = vpack.c.bf16 %v8124_v42, %v8124_v42  ;;  %vm7871_vm10 = vcmp.ge.f32.partialorder %v7743_v18, 0.0  ;;  %v7999_v50 = vmul.f32 0.2, %v7743_v18  ;;  %v13115_v17 = vpop.f32.mrb[47].mxu0 }
 0x256   : > { %8766 = vst.msk [vmem:[%s12720_s4 + $0x78] sm:$0xf] %vm8735_vm4, %v9899_v11  ;;  %8764 = vst.msk [vmem:[%s12720_s4 + $0x70] sm:$0xf] %vm8735_vm4, %v9897_v0  ;;  %v10812_v47 = vadd.f32 %v12984_v36, %v13004_v5  ;;  %v10813_v6 = vadd.f32 %v13014_v13, %v13035_v15  ;;  %v10814_v21 = vadd.f32 %v13025_v41, %v13043_v29  ;;  %v10436_v57 = vpop.f32.mrb[46].mxu1 }
 0x257   : > { %8767 = vst.msk [vmem:[%s12720_s4 + $0x7c] sm:$0xf] %vm8735_vm4, %v9900_v51  ;;  %8765 = vst.msk [vmem:[%s12720_s4 + $0x74] sm:$0xf] %vm8735_vm4, %v9898_v31  ;;  %v8129_v16 = vsel %vm7873_vm9, %v7745_v58, %v8001_v9  ;;  %v8127_v2 = vsel %vm7871_vm10, %v7743_v18, %v7999_v50  ;;  %v10815_v27 = vadd.f32 %v13028_v4, %v13047_v24  ;;  %v13139_v41 = vld [vmem:[%s13492_s2] ss:$0 sm:$0xff] }
 0x258   : > { %v10816_v36 = vadd.f32 %v13033_v3, %v13051_v33  ;;  %v9903_v5 = vpack.c.bf16 %v8129_v16, %v8129_v16  ;;  %v9901_v13 = vpack.c.bf16 %v8127_v2, %v8127_v2  ;;  %v7746_v15 = vadd.f32 %v13139_v41, %v10811_v59  ;;  %v13143_v54 = vpop.f32.mrb[47].mxu1 }
 0x259   : > { %v7744_v29 = vadd.f32 %v13139_v41, %v10812_v47  ;;  %v7749_v60 = vadd.f32 %v13139_v41, %v10813_v6  ;;  %v7747_v4 = vadd.f32 %v13139_v41, %v10814_v21  ;;  %v7750_v3 = vadd.f32 %v13139_v41, %v10815_v27 }
 0x25a   : > { %v7748_v24 = vadd.f32 %v13139_v41, %v10816_v36  ;;  %8770 = vst.msk [vmem:[%s12720_s4 + $0x88] sm:$0xf] %vm8735_vm4, %v9903_v5  ;;  %8768 = vst.msk [vmem:[%s12720_s4 + $0x80] sm:$0xf] %vm8735_vm4, %v9901_v13  ;;  %vm7874_vm11 = vcmp.ge.f32.partialorder %v7746_v15, 0.0  ;;  %v13153_v25 = vpop.f32.mrb[48].mxu0  ;;  %v10817_v11 = vadd.f32 %v13054_v52, %v13076_v1  ;;  %v10818_v39 = vadd.f32 %v13056_v62, %v13088_v61 }
 0x25b   : > { %v8002_v33 = vmul.f32 0.2, %v7746_v15  ;;  %vm7872_vm0 = vcmp.ge.f32.partialorder %v7744_v29, 0.0  ;;  %v8000_v63 = vmul.f32 0.2, %v7744_v29  ;;  %vm7877_vm3 = vcmp.ge.f32.partialorder %v7749_v60, 0.0 }
 0x25c   : > { %v8005_v49 = vmul.f32 0.2, %v7749_v60  ;;  %vm7875_vm12 = vcmp.ge.f32.partialorder %v7747_v4, 0.0  ;;  %v8003_v48 = vmul.f32 0.2, %v7747_v4  ;;  %vm7878_vm13 = vcmp.ge.f32.partialorder %v7750_v3, 0.0 }
 0x25d   : > { %v8130_v45 = vsel %vm7874_vm11, %v7746_v15, %v8002_v33  ;;  %v8128_v44 = vsel %vm7872_vm0, %v7744_v29, %v8000_v63  ;;  %v8006_v12 = vmul.f32 0.2, %v7750_v3  ;;  %v13155_v35 = vpop.f32.mrb[48].mxu1  ;;  %v13157_v18 = vpop.f32.mrb[49].mxu0  ;;  %vm7876_vm14 = vcmp.ge.f32.partialorder %v7748_v24, 0.0 }
 0x25e   : > { %v9904_v46 = vpack.c.bf16 %v8130_v45, %v8130_v45  ;;  %v9902_v53 = vpack.c.bf16 %v8128_v44, %v8128_v44  ;;  %v8133_v23 = vsel %vm7877_vm3, %v7749_v60, %v8005_v49  ;;  %v8131_v58 = vsel %vm7875_vm12, %v7747_v4, %v8003_v48  ;;  %v13159_v55 = vpop.f32.mrb[49].mxu1  ;;  %v13161_v37 = vpop.f32.mrb[50].mxu0 }
 0x25f   : > { %v9907_v40 = vpack.c.bf16 %v8133_v23, %v8133_v23  ;;  %v9905_v30 = vpack.c.bf16 %v8131_v58, %v8131_v58  ;;  %v8134_v14 = vsel %vm7878_vm13, %v7750_v3, %v8006_v12  ;;  %v13163_v8 = vpop.f32.mrb[50].mxu1  ;;  %v8004_v10 = vmul.f32 0.2, %v7748_v24  ;;  %v13173_v56 = vpop.f32.mrb[51].mxu0 }
 0x260   : > { %8771 = vst.msk [vmem:[%s12720_s4 + $0x8c] sm:$0xf] %vm8735_vm4, %v9904_v46  ;;  %8769 = vst.msk [vmem:[%s12720_s4 + $0x84] sm:$0xf] %vm8735_vm4, %v9902_v53  ;;  %v9908_v34 = vpack.c.bf16 %v8134_v14, %v8134_v14  ;;  %v13175_v0 = vpop.f32.mrb[51].mxu1  ;;  %v10819_v51 = vadd.f32 %v13060_v32, %v13093_v43  ;;  %v10820_v42 = vadd.f32 %v13074_v20, %v13099_v28 }
 0x261   : > { %8774 = vst.msk [vmem:[%s12720_s4 + $0x98] sm:$0xf] %vm8735_vm4, %v9907_v40  ;;  %8772 = vst.msk [vmem:[%s12720_s4 + $0x90] sm:$0xf] %vm8735_vm4, %v9905_v30  ;;  %v10821_v52 = vadd.f32 %v13103_v7, %v13109_v38  ;;  %v10822_v62 = vadd.f32 %v13105_v26, %v3412_v22  ;;  %v8132_v1 = vsel %vm7876_vm14, %v7748_v24, %v8004_v10 }
 0x262   : > { %8775 = vst.msk [vmem:[%s12720_s4 + $0x9c] sm:$0xf] %vm8735_vm4, %v9908_v34  ;;  %v7753_v61 = vadd.f32 %v13139_v41, %v10817_v11  ;;  %v7751_v31 = vadd.f32 %v13139_v41, %v10818_v39  ;;  %v10823_v9 = vadd.f32 %v13107_v19, %v10436_v57  ;;  %v9906_v32 = vpack.c.bf16 %v8132_v1, %v8132_v1  ;;  %v13197_v7 = vpop.f32.mrb[52].mxu0 }
 0x263   : > { %v7754_v43 = vadd.f32 %v13139_v41, %v10819_v51  ;;  %v7752_v20 = vadd.f32 %v13139_v41, %v10820_v42  ;;  %v7757_v28 = vadd.f32 %v13139_v41, %v10821_v52  ;;  %v13201_v21 = vpop.f32.mrb[53].mxu0  ;;  %v10443_v22 = vpop.f32.mrb[52].mxu1  ;;  %v7755_v60 = vadd.f32 %v13139_v41, %v10822_v62 }
 0x264   : > { %vm7881_vm15 = vcmp.ge.f32.partialorder %v7753_v61, 0.0  ;;  %v8009_v26 = vmul.f32 0.2, %v7753_v61  ;;  %vm7879_vm1 = vcmp.ge.f32.partialorder %v7751_v31, 0.0  ;;  %v8007_v38 = vmul.f32 0.2, %v7751_v31 }
 0x265   : > { %8773 = vst.msk [vmem:[%s12720_s4 + $0x94] sm:$0xf] %vm8735_vm4, %v9906_v32  ;;  %vm7882_vm2 = vcmp.ge.f32.partialorder %v7754_v43, 0.0  ;;  %v8010_v50 = vmul.f32 0.2, %v7754_v43  ;;  %vm7880_vm5 = vcmp.ge.f32.partialorder %v7752_v20, 0.0  ;;  %v7758_v33 = vadd.f32 %v13139_v41, %v10823_v9 }
 0x266   : > { %v8008_v59 = vmul.f32 0.2, %v7752_v20  ;;  %v8137_v19 = vsel %vm7881_vm15, %v7753_v61, %v8009_v26  ;;  %v8135_v47 = vsel %vm7879_vm1, %v7751_v31, %v8007_v38  ;;  %vm7885_vm6 = vcmp.ge.f32.partialorder %v7757_v28, 0.0  ;;  %v13203_v57 = vpop.f32.mrb[54].mxu0  ;;  %v3444_v5 = vpop.f32.mrb[53].mxu1 }
 0x267   : > { %v8013_v6 = vmul.f32 0.2, %v7757_v28  ;;  %v9911_v16 = vpack.c.bf16 %v8137_v19, %v8137_v19  ;;  %v9909_v2 = vpack.c.bf16 %v8135_v47, %v8135_v47  ;;  %v8138_v27 = vsel %vm7882_vm2, %v7754_v43, %v8010_v50  ;;  %v13206_v4 = vpop.f32.mrb[55].mxu0  ;;  %v10444_v3 = vpop.f32.mrb[54].mxu1 }
 0x268   : > { %v8136_v36 = vsel %vm7880_vm5, %v7752_v20, %v8008_v59  ;;  %v9912_v13 = vpack.c.bf16 %v8138_v27, %v8138_v27  ;;  %v10824_v63 = vadd.f32 %v13115_v17, %v13143_v54  ;;  %v10825_v49 = vadd.f32 %v13153_v25, %v13155_v35  ;;  %v3447_v48 = vpop.f32.mrb[55].mxu1 }
 0x269   : > { %v9910_v15 = vpack.c.bf16 %v8136_v36, %v8136_v36  ;;  %v8141_v29 = vsel %vm7885_vm6, %v7757_v28, %v8013_v6  ;;  %8778 = vst.msk [vmem:[%s12720_s4 + $0xa8] sm:$0xf] %vm8735_vm4, %v9911_v16  ;;  %8776 = vst.msk [vmem:[%s12720_s4 + $0xa0] sm:$0xf] %vm8735_vm4, %v9909_v2  ;;  %vm7883_vm7 = vcmp.ge.f32.partialorder %v7755_v60, 0.0  ;;  %v10826_v44 = vadd.f32 %v13157_v18, %v13159_v55 }
 0x26a   : > { %v9915_v24 = vpack.c.bf16 %v8141_v29, %v8141_v29  ;;  %8779 = vst.msk [vmem:[%s12720_s4 + $0xac] sm:$0xf] %vm8735_vm4, %v9912_v13  ;;  %v8011_v45 = vmul.f32 0.2, %v7755_v60  ;;  %v10827_v12 = vadd.f32 %v13161_v37, %v13163_v8  ;;  %vm7886_vm8 = vcmp.ge.f32.partialorder %v7758_v33, 0.0 }
 0x26b   : > { %8777 = vst.msk [vmem:[%s12720_s4 + $0xa4] sm:$0xf] %vm8735_vm4, %v9910_v15  ;;  %v8014_v17 = vmul.f32 0.2, %v7758_v33  ;;  %v7756_v54 = vadd.f32 %v13139_v41, %v10824_v63  ;;  %v7761_v25 = vadd.f32 %v13139_v41, %v10825_v49  ;;  %v7759_v46 = vadd.f32 %v13139_v41, %v10826_v44  ;;  %v10707_v40 = vpop.f32.mrb[56].mxu0 }
 0x26c   : > { %8782 = vst.msk [vmem:[%s12720_s4 + $0xb8] sm:$0xf] %vm8735_vm4, %v9915_v24  ;;  %v8139_v35 = vsel %vm7883_vm7, %v7755_v60, %v8011_v45  ;;  %v7762_v53 = vadd.f32 %v13139_v41, %v10827_v12  ;;  %v10828_v23 = vadd.f32 %v13173_v56, %v13175_v0  ;;  %v7289_v37 = vpop.f32.mrb[57].mxu0  ;;  %v10447_v8 = vpop.f32.mrb[56].mxu1  ;;  %v10829_v42 = vadd.f32 %v13197_v7, %v10443_v22 }
 0x26d   : > { %v9913_v58 = vpack.c.bf16 %v8139_v35, %v8139_v35  ;;  %v8142_v18 = vsel %vm7886_vm8, %v7758_v33, %v8014_v17  ;;  %vm7884_vm9 = vcmp.ge.f32.partialorder %v7756_v54, 0.0  ;;  %v8012_v55 = vmul.f32 0.2, %v7756_v54  ;;  %v10708_v39 = vpop.f32.mrb[58].mxu0  ;;  %v3460_v62 = vpop.f32.mrb[57].mxu1 }
 0x26e   : > { %v9916_v30 = vpack.c.bf16 %v8142_v18, %v8142_v18  ;;  %vm7889_vm10 = vcmp.ge.f32.partialorder %v7761_v25, 0.0  ;;  %v8017_v14 = vmul.f32 0.2, %v7761_v25  ;;  %vm7887_vm11 = vcmp.ge.f32.partialorder %v7759_v46, 0.0  ;;  %v7292_v52 = vpop.f32.mrb[59].mxu0  ;;  %v10448_v32 = vpop.f32.mrb[58].mxu1 }
 0x26f   : > { %8780 = vst.msk [vmem:[%s12720_s4 + $0xb0] sm:$0xf] %vm8735_vm4, %v9913_v58  ;;  %v8140_v34 = vsel %vm7884_vm9, %v7756_v54, %v8012_v55  ;;  %v8015_v10 = vmul.f32 0.2, %v7759_v46  ;;  %vm7890_vm0 = vcmp.ge.f32.partialorder %v7762_v53, 0.0  ;;  %v7760_v51 = vadd.f32 %v13139_v41, %v10828_v23  ;;  %v3463_v26 = vpop.f32.mrb[59].mxu1 }
 0x270   : > { %v8018_v11 = vmul.f32 0.2, %v7762_v53  ;;  %8783 = vst.msk [vmem:[%s12720_s4 + $0xbc] sm:$0xf] %vm8735_vm4, %v9916_v30  ;;  %v9914_v56 = vpack.c.bf16 %v8140_v34, %v8140_v34  ;;  %v8145_v0 = vsel %vm7889_vm10, %v7761_v25, %v8017_v14  ;;  %v10830_v9 = vadd.f32 %v13201_v21, %v3444_v5 }
 0x271   : > { %v9919_v1 = vpack.c.bf16 %v8145_v0, %v8145_v0  ;;  %v8143_v61 = vsel %vm7887_vm11, %v7759_v46, %v8015_v10  ;;  %vm7888_vm3 = vcmp.ge.f32.partialorder %v7760_v51, 0.0  ;;  %v8016_v28 = vmul.f32 0.2, %v7760_v51 }
 0x272   : > { %v8146_v31 = vsel %vm7890_vm0, %v7762_v53, %v8018_v11  ;;  %8781 = vst.msk [vmem:[%s12720_s4 + $0xb4] sm:$0xf] %vm8735_vm4, %v9914_v56  ;;  %v9917_v43 = vpack.c.bf16 %v8143_v61, %v8143_v61  ;;  %v7765_v7 = vadd.f32 %v13139_v41, %v10829_v42  ;;  %v7763_v38 = vadd.f32 %v13139_v41, %v10830_v9 }
 0x273   : > { %v9920_v20 = vpack.c.bf16 %v8146_v31, %v8146_v31  ;;  %8786 = vst.msk [vmem:[%s12720_s4 + $0xc8] sm:$0xf] %vm8735_vm4, %v9919_v1  ;;  %v10831_v50 = vadd.f32 %v13203_v57, %v10444_v3  ;;  %v10832_v59 = vadd.f32 %v13206_v4, %v3447_v48  ;;  %v8144_v19 = vsel %vm7888_vm3, %v7760_v51, %v8016_v28  ;;  %v10711_v2 = vpop.f32.mrb[60].mxu0 }
 0x274   : > { %8784 = vst.msk [vmem:[%s12720_s4 + $0xc0] sm:$0xf] %vm8735_vm4, %v9917_v43  ;;  %v10833_v47 = vadd.f32 %v10707_v40, %v10447_v8  ;;  %v10834_v6 = vadd.f32 %v7289_v37, %v3460_v62  ;;  %v10835_v21 = vadd.f32 %v10708_v39, %v10448_v32  ;;  %v9918_v22 = vpack.c.bf16 %v8144_v19, %v8144_v19  ;;  %v7305_v13 = vpop.f32.mrb[61].mxu0  ;;  %v10451_v15 = vpop.f32.mrb[60].mxu1 }
 0x275   : > { %8787 = vst.msk [vmem:[%s12720_s4 + $0xcc] sm:$0xf] %vm8735_vm4, %v9920_v20  ;;  %vm7893_vm12 = vcmp.ge.f32.partialorder %v7765_v7, 0.0  ;;  %v8021_v16 = vmul.f32 0.2, %v7765_v7  ;;  %vm7891_vm13 = vcmp.ge.f32.partialorder %v7763_v38, 0.0  ;;  %v7766_v36 = vadd.f32 %v13139_v41, %v10831_v50 }
 0x276   : > { %v8019_v27 = vmul.f32 0.2, %v7763_v38  ;;  %v7764_v57 = vadd.f32 %v13139_v41, %v10832_v59  ;;  %v7769_v5 = vadd.f32 %v13139_v41, %v10833_v47  ;;  %8785 = vst.msk [vmem:[%s12720_s4 + $0xc4] sm:$0xf] %vm8735_vm4, %v9918_v22  ;;  %v7767_v60 = vadd.f32 %v13139_v41, %v10834_v6  ;;  %v10712_v4 = vpop.f32.mrb[62].mxu0  ;;  %v3476_v33 = vpop.f32.mrb[61].mxu1 }
 0x277   : > { %v8149_v29 = vsel %vm7893_vm12, %v7765_v7, %v8021_v16  ;;  %v7770_v3 = vadd.f32 %v13139_v41, %v10835_v21  ;;  %v10836_v24 = vadd.f32 %v7292_v52, %v3463_v26  ;;  %vm7894_vm14 = vcmp.ge.f32.partialorder %v7766_v36, 0.0  ;;  %v7308_v45 = vpop.f32.mrb[63].mxu0  ;;  %v10452_v44 = vpop.f32.mrb[62].mxu1 }
 0x278   : > { %v9923_v63 = vpack.c.bf16 %v8149_v29, %v8149_v29  ;;  %v8147_v49 = vsel %vm7891_vm13, %v7763_v38, %v8019_v27  ;;  %v8022_v48 = vmul.f32 0.2, %v7766_v36  ;;  %vm7892_vm15 = vcmp.ge.f32.partialorder %v7764_v57, 0.0  ;;  %v3479_v54 = vpop.f32.mrb[63].mxu1 }
 0x279   : > { %v9921_v12 = vpack.c.bf16 %v8147_v49, %v8147_v49  ;;  %v8020_v17 = vmul.f32 0.2, %v7764_v57  ;;  %vm7897_vm1 = vcmp.ge.f32.partialorder %v7769_v5, 0.0  ;;  %v8025_v35 = vmul.f32 0.2, %v7769_v5 }
 0x27a   : > { %8790 = vst.msk [vmem:[%s12720_s4 + $0xd8] sm:$0xf] %vm8735_vm4, %v9923_v63  ;;  %v8150_v25 = vsel %vm7894_vm14, %v7766_v36, %v8022_v48  ;;  %vm7895_vm2 = vcmp.ge.f32.partialorder %v7767_v60, 0.0  ;;  %v8023_v46 = vmul.f32 0.2, %v7767_v60  ;;  %vm7898_vm5 = vcmp.ge.f32.partialorder %v7770_v3, 0.0 }
 0x27b   : > { %8788 = vst.msk [vmem:[%s12720_s4 + $0xd0] sm:$0xf] %vm8735_vm4, %v9921_v12  ;;  %v9924_v53 = vpack.c.bf16 %v8150_v25, %v8150_v25  ;;  %v8148_v23 = vsel %vm7892_vm15, %v7764_v57, %v8020_v17  ;;  %v8026_v58 = vmul.f32 0.2, %v7770_v3  ;;  %v8153_v55 = vsel %vm7897_vm1, %v7769_v5, %v8025_v35  ;;  %v10715_v34 = vpop.f32.mrb[64].mxu0 }
 0x27c   : > { %v9922_v18 = vpack.c.bf16 %v8148_v23, %v8148_v23  ;;  %v8151_v40 = vsel %vm7895_vm2, %v7767_v60, %v8023_v46  ;;  %v7768_v30 = vadd.f32 %v13139_v41, %v10836_v24  ;;  %v9927_v14 = vpack.c.bf16 %v8153_v55, %v8153_v55  ;;  %v7321_v56 = vpop.f32.mrb[65].mxu0 }
 0x27d   : > { %8791 = vst.msk [vmem:[%s12720_s4 + $0xdc] sm:$0xf] %vm8735_vm4, %v9924_v53  ;;  %v9925_v37 = vpack.c.bf16 %v8151_v40, %v8151_v40  ;;  %v8154_v8 = vsel %vm7898_vm5, %v7770_v3, %v8026_v58  ;;  %v10837_v10 = vadd.f32 %v10711_v2, %v10451_v15  ;;  %v10838_v0 = vadd.f32 %v7305_v13, %v3476_v33  ;;  %v10455_v51 = vpop.f32.mrb[64].mxu1  ;;  %v10716_v52 = vpop.f32.mrb[66].mxu0 }
 0x27e   : > { %8789 = vst.msk [vmem:[%s12720_s4 + $0xd4] sm:$0xf] %vm8735_vm4, %v9922_v18  ;;  %v9928_v11 = vpack.c.bf16 %v8154_v8, %v8154_v8  ;;  %vm7896_vm6 = vcmp.ge.f32.partialorder %v7768_v30, 0.0  ;;  %v8024_v39 = vmul.f32 0.2, %v7768_v30  ;;  %v10839_v62 = vadd.f32 %v10712_v4, %v10452_v44  ;;  %v3492_v31 = vpop.f32.mrb[65].mxu1 }
 0x27f   : > { %8794 = vst.msk [vmem:[%s12720_s4 + $0xe8] sm:$0xf] %vm8735_vm4, %v9927_v14  ;;  %8792 = vst.msk [vmem:[%s12720_s4 + $0xe0] sm:$0xf] %vm8735_vm4, %v9925_v37  ;;  %v7773_v42 = vadd.f32 %v13139_v41, %v10837_v10  ;;  %v10840_v1 = vadd.f32 %v7308_v45, %v3479_v54  ;;  %v10841_v61 = vadd.f32 %v10715_v34, %v10455_v51  ;;  %v7324_v43 = vpop.f32.mrb[67].mxu0  ;;  %v10456_v28 = vpop.f32.mrb[66].mxu1 }
 0x280   : > { %8795 = vst.msk [vmem:[%s12720_s4 + $0xec] sm:$0xf] %vm8735_vm4, %v9928_v11  ;;  %v8152_v9 = vsel %vm7896_vm6, %v7768_v30, %v8024_v39  ;;  %v7771_v32 = vadd.f32 %v13139_v41, %v10838_v0  ;;  %v10842_v20 = vadd.f32 %v7321_v56, %v3492_v31  ;;  %v7774_v38 = vadd.f32 %v13139_v41, %v10839_v62  ;;  %v3495_v50 = vpop.f32.mrb[67].mxu1 }
 0x281   : > { %v9926_v26 = vpack.c.bf16 %v8152_v9, %v8152_v9  ;;  %vm7901_vm7 = vcmp.ge.f32.partialorder %v7773_v42, 0.0  ;;  %v8029_v7 = vmul.f32 0.2, %v7773_v42  ;;  %v7772_v19 = vadd.f32 %v13139_v41, %v10840_v1 }
 0x282   : > { %vm7899_vm8 = vcmp.ge.f32.partialorder %v7771_v32, 0.0  ;;  %v8027_v59 = vmul.f32 0.2, %v7771_v32  ;;  %v7777_v47 = vadd.f32 %v13139_v41, %v10841_v61  ;;  %vm7902_vm9 = vcmp.ge.f32.partialorder %v7774_v38, 0.0 }
 0x283   : > { %8793 = vst.msk [vmem:[%s12720_s4 + $0xe4] sm:$0xf] %vm8735_vm4, %v9926_v26  ;;  %v8157_v6 = vsel %vm7901_vm7, %v7773_v42, %v8029_v7  ;;  %v8030_v21 = vmul.f32 0.2, %v7774_v38  ;;  %v7775_v22 = vadd.f32 %v13139_v41, %v10842_v20  ;;  %vm7900_vm10 = vcmp.ge.f32.partialorder %v7772_v19, 0.0 }
 0x284   : > { %v9931_v16 = vpack.c.bf16 %v8157_v6, %v8157_v6  ;;  %v8155_v2 = vsel %vm7899_vm8, %v7771_v32, %v8027_v59  ;;  %v8028_v27 = vmul.f32 0.2, %v7772_v19  ;;  %vm7905_vm11 = vcmp.ge.f32.partialorder %v7777_v47, 0.0  ;;  %v10719_v29 = vpop.f32.mrb[68].mxu0 }
 0x285   : > { %v9929_v36 = vpack.c.bf16 %v8155_v2, %v8155_v2  ;;  %v8158_v57 = vsel %vm7902_vm9, %v7774_v38, %v8030_v21  ;;  %v8033_v5 = vmul.f32 0.2, %v7777_v47  ;;  %vm7903_vm0 = vcmp.ge.f32.partialorder %v7775_v22, 0.0  ;;  %v7337_v24 = vpop.f32.mrb[69].mxu0  ;;  %v10459_v49 = vpop.f32.mrb[68].mxu1 }
 0x286   : > { %8798 = vst.msk [vmem:[%s12720_s4 + $0xf8] sm:$0xf] %vm8735_vm4, %v9931_v16  ;;  %v9932_v13 = vpack.c.bf16 %v8158_v57, %v8158_v57  ;;  %v8156_v15 = vsel %vm7900_vm10, %v7772_v19, %v8028_v27  ;;  %v8031_v60 = vmul.f32 0.2, %v7775_v22  ;;  %v10843_v33 = vadd.f32 %v10716_v52, %v10456_v28  ;;  %v10720_v44 = vpop.f32.mrb[70].mxu0  ;;  %v3508_v17 = vpop.f32.mrb[69].mxu1 }
 0x287   : > { %8796 = vst.msk [vmem:[%s12720_s4 + $0xf0] sm:$0xf] %vm8735_vm4, %v9929_v36  ;;  %v9930_v4 = vpack.c.bf16 %v8156_v15, %v8156_v15  ;;  %v8161_v3 = vsel %vm7905_vm11, %v7777_v47, %v8033_v5  ;;  %v10844_v63 = vadd.f32 %v7324_v43, %v3495_v50  ;;  %v10845_v12 = vadd.f32 %v10719_v29, %v10459_v49  ;;  %v7340_v35 = vpop.f32.mrb[71].mxu0  ;;  %v10460_v23 = vpop.f32.mrb[70].mxu1 }
 0x288   : > { %8799 = vst.msk [vmem:[%s12720_s4 + $0xfc] sm:$0xf] %vm8735_vm4, %v9932_v13  ;;  %v9935_v48 = vpack.c.bf16 %v8161_v3, %v8161_v3  ;;  %v8159_v45 = vsel %vm7903_vm0, %v7775_v22, %v8031_v60  ;;  %v7778_v25 = vadd.f32 %v13139_v41, %v10843_v33  ;;  %v10846_v53 = vadd.f32 %v7337_v24, %v3508_v17  ;;  %v3511_v55 = vpop.f32.mrb[71].mxu1 }
 0x289   : > { %8797 = vst.msk [vmem:[%s12720_s4 + $0xf4] sm:$0xf] %vm8735_vm4, %v9930_v4  ;;  %v9933_v54 = vpack.c.bf16 %v8159_v45, %v8159_v45  ;;  %v7776_v46 = vadd.f32 %v13139_v41, %v10844_v63  ;;  %v7781_v58 = vadd.f32 %v13139_v41, %v10845_v12  ;;  %v10847_v18 = vadd.f32 %v10720_v44, %v10460_v23 }
 0x28a   : > { %8802 = vst.msk [vmem:[%s12720_s4 + $0x108] sm:$0xf] %vm8735_vm4, %v9935_v48  ;;  %vm7906_vm3 = vcmp.ge.f32.partialorder %v7778_v25, 0.0  ;;  %v8034_v40 = vmul.f32 0.2, %v7778_v25  ;;  %v7779_v37 = vadd.f32 %v13139_v41, %v10846_v53  ;;  %v10848_v11 = vadd.f32 %v7340_v35, %v3511_v55 }
 0x28b   : > { %8800 = vst.msk [vmem:[%s12720_s4 + $0x100] sm:$0xf] %vm8735_vm4, %v9933_v54  ;;  %vm7904_vm12 = vcmp.ge.f32.partialorder %v7776_v46, 0.0  ;;  %v8032_v30 = vmul.f32 0.2, %v7776_v46  ;;  %vm7909_vm13 = vcmp.ge.f32.partialorder %v7781_v58, 0.0  ;;  %v7782_v8 = vadd.f32 %v13139_v41, %v10847_v18 }
 0x28c   : > { %v8037_v14 = vmul.f32 0.2, %v7781_v58  ;;  %v8162_v34 = vsel %vm7906_vm3, %v7778_v25, %v8034_v40  ;;  %v10723_v0 = vpop.f32.mrb[72].mxu0  ;;  %vm7907_vm14 = vcmp.ge.f32.partialorder %v7779_v37, 0.0  ;;  %v8035_v62 = vmul.f32 0.2, %v7779_v37 }
 0x28d   : > { %v8160_v10 = vsel %vm7904_vm12, %v7776_v46, %v8032_v30  ;;  %v9936_v39 = vpack.c.bf16 %v8162_v34, %v8162_v34  ;;  %v7353_v52 = vpop.f32.mrb[73].mxu0  ;;  %vm7910_vm15 = vcmp.ge.f32.partialorder %v7782_v8, 0.0  ;;  %v8038_v1 = vmul.f32 0.2, %v7782_v8 }
 0x28e   : > { %v9934_v56 = vpack.c.bf16 %v8160_v10, %v8160_v10  ;;  %v8165_v51 = vsel %vm7909_vm13, %v7781_v58, %v8037_v14  ;;  %v10724_v61 = vpop.f32.mrb[74].mxu0  ;;  %v7780_v31 = vadd.f32 %v13139_v41, %v10848_v11  ;;  %v10463_v9 = vpop.f32.mrb[72].mxu1  ;;  %v8163_v32 = vsel %vm7907_vm14, %v7779_v37, %v8035_v62 }
 0x28f   : > { %v9939_v42 = vpack.c.bf16 %v8165_v51, %v8165_v51  ;;  %8803 = vst.msk [vmem:[%s12720_s4 + $0x10c] sm:$0xf] %vm8735_vm4, %v9936_v39  ;;  %v8166_v43 = vsel %vm7910_vm15, %v7782_v8, %v8038_v1  ;;  %v7356_v20 = vpop.f32.mrb[75].mxu0  ;;  %v10849_v28 = vadd.f32 %v10723_v0, %v10463_v9  ;;  %v3524_v26 = vpop.f32.mrb[73].mxu1  ;;  %v9937_v7 = vpack.c.bf16 %v8163_v32, %v8163_v32 }
 0x290   : > { %8801 = vst.msk [vmem:[%s12720_s4 + $0x104] sm:$0xf] %vm8735_vm4, %v9934_v56  ;;  %v9940_v38 = vpack.c.bf16 %v8166_v43, %v8166_v43  ;;  %vm7908_vm1 = vcmp.ge.f32.partialorder %v7780_v31, 0.0  ;;  %v8036_v50 = vmul.f32 0.2, %v7780_v31  ;;  %v10464_v59 = vpop.f32.mrb[74].mxu1  ;;  %v10850_v47 = vadd.f32 %v7353_v52, %v3524_v26 }
 0x291   : > { %8806 = vst.msk [vmem:[%s12720_s4 + $0x118] sm:$0xf] %vm8735_vm4, %v9939_v42  ;;  %v7785_v19 = vadd.f32 %v13139_v41, %v10849_v28  ;;  %v10851_v6 = vadd.f32 %v10724_v61, %v10464_v59  ;;  %v3527_v21 = vpop.f32.mrb[75].mxu1  ;;  %8804 = vst.msk [vmem:[%s12720_s4 + $0x110] sm:$0xf] %vm8735_vm4, %v9937_v7 }
 0x292   : > { %8807 = vst.msk [vmem:[%s12720_s4 + $0x11c] sm:$0xf] %vm8735_vm4, %v9940_v38  ;;  %v8164_v22 = vsel %vm7908_vm1, %v7780_v31, %v8036_v50  ;;  %v10852_v16 = vadd.f32 %v7356_v20, %v3527_v21  ;;  %v7783_v36 = vadd.f32 %v13139_v41, %v10850_v47 }
 0x293   : > { %v9938_v2 = vpack.c.bf16 %v8164_v22, %v8164_v22  ;;  %vm7913_vm2 = vcmp.ge.f32.partialorder %v7785_v19, 0.0  ;;  %v8041_v27 = vmul.f32 0.2, %v7785_v19  ;;  %v7786_v57 = vadd.f32 %v13139_v41, %v10851_v6 }
 0x294   : > { %v7784_v5 = vadd.f32 %v13139_v41, %v10852_v16  ;;  %vm7911_vm5 = vcmp.ge.f32.partialorder %v7783_v36, 0.0  ;;  %v8039_v29 = vmul.f32 0.2, %v7783_v36 }
 0x295   : > { %8805 = vst.msk [vmem:[%s12720_s4 + $0x114] sm:$0xf] %vm8735_vm4, %v9938_v2  ;;  %v8169_v15 = vsel %vm7913_vm2, %v7785_v19, %v8041_v27  ;;  %vm7914_vm6 = vcmp.ge.f32.partialorder %v7786_v57, 0.0  ;;  %v8042_v3 = vmul.f32 0.2, %v7786_v57 }
 0x296   : > { %v10727_v13 = vpop.f32.mrb[76].mxu0  ;;  %v9943_v60 = vpack.c.bf16 %v8169_v15, %v8169_v15  ;;  %vm7912_vm7 = vcmp.ge.f32.partialorder %v7784_v5, 0.0  ;;  %v8167_v33 = vsel %vm7911_vm5, %v7783_v36, %v8039_v29  ;;  %v8040_v49 = vmul.f32 0.2, %v7784_v5 }
 0x297   : > { %v7369_v4 = vpop.f32.mrb[77].mxu0  ;;  %v10467_v24 = vpop.f32.mrb[76].mxu1  ;;  %v9941_v44 = vpack.c.bf16 %v8167_v33, %v8167_v33  ;;  %v8170_v12 = vsel %vm7914_vm6, %v7786_v57, %v8042_v3 }
 0x298   : > { %v10728_v63 = vpop.f32.mrb[78].mxu0  ;;  %v10853_v48 = vadd.f32 %v10727_v13, %v10467_v24  ;;  %v3540_v45 = vpop.f32.mrb[77].mxu1  ;;  %8810 = vst.msk [vmem:[%s12720_s4 + $0x128] sm:$0xf] %vm8735_vm4, %v9943_v60  ;;  %v9944_v35 = vpack.c.bf16 %v8170_v12, %v8170_v12  ;;  %v8168_v46 = vsel %vm7912_vm7, %v7784_v5, %v8040_v49 }
 0x299   : > { %v7372_v17 = vpop.f32.mrb[79].mxu0  ;;  %v10854_v54 = vadd.f32 %v7369_v4, %v3540_v45  ;;  %v10468_v25 = vpop.f32.mrb[78].mxu1  ;;  %8808 = vst.msk [vmem:[%s12720_s4 + $0x120] sm:$0xf] %vm8735_vm4, %v9941_v44  ;;  %v9942_v18 = vpack.c.bf16 %v8168_v46, %v8168_v46 }
 0x29a   : > { %v7789_v53 = vadd.f32 %v13139_v41, %v10853_v48  ;;  %v10855_v23 = vadd.f32 %v10728_v63, %v10468_v25  ;;  %v3543_v58 = vpop.f32.mrb[79].mxu1  ;;  %8811 = vst.msk [vmem:[%s12720_s4 + $0x12c] sm:$0xf] %vm8735_vm4, %v9944_v35 }
 0x29b   : > { %v7787_v55 = vadd.f32 %v13139_v41, %v10854_v54  ;;  %v10856_v40 = vadd.f32 %v7372_v17, %v3543_v58  ;;  %8809 = vst.msk [vmem:[%s12720_s4 + $0x124] sm:$0xf] %vm8735_vm4, %v9942_v18 }
 0x29c   : > { %vm7917_vm8 = vcmp.ge.f32.partialorder %v7789_v53, 0.0  ;;  %v8045_v30 = vmul.f32 0.2, %v7789_v53  ;;  %v7790_v14 = vadd.f32 %v13139_v41, %v10855_v23 }
 0x29d   : > { %vm7915_vm9 = vcmp.ge.f32.partialorder %v7787_v55, 0.0  ;;  %v8043_v37 = vmul.f32 0.2, %v7787_v55  ;;  %v7788_v8 = vadd.f32 %v13139_v41, %v10856_v40 }
 0x29e   : > { %v10731_v34 = vpop.f32.mrb[80].mxu0  ;;  %v8173_v10 = vsel %vm7917_vm8, %v7789_v53, %v8045_v30  ;;  %vm7918_vm10 = vcmp.ge.f32.partialorder %v7790_v14, 0.0  ;;  %v8046_v11 = vmul.f32 0.2, %v7790_v14 }
 0x29f   : > { %v9947_v39 = vpack.c.bf16 %v8173_v10, %v8173_v10  ;;  %v7385_v56 = vpop.f32.mrb[81].mxu0  ;;  %v8171_v0 = vsel %vm7915_vm9, %v7787_v55, %v8043_v37  ;;  %vm7916_vm11 = vcmp.ge.f32.partialorder %v7788_v8, 0.0  ;;  %v8044_v51 = vmul.f32 0.2, %v7788_v8  ;;  %v10471_v1 = vpop.f32.mrb[80].mxu1 }
 0x2a0   : > { %v9945_v42 = vpack.c.bf16 %v8171_v0, %v8171_v0  ;;  %v10732_v52 = vpop.f32.mrb[82].mxu0  ;;  %v8174_v62 = vsel %vm7918_vm10, %v7790_v14, %v8046_v11  ;;  %v10857_v32 = vadd.f32 %v10731_v34, %v10471_v1  ;;  %v3556_v43 = vpop.f32.mrb[81].mxu1 }
 0x2a1   : > { %8814 = vst.msk [vmem:[%s12720_s4 + $0x138] sm:$0xf] %vm8735_vm4, %v9947_v39  ;;  %v9948_v61 = vpack.c.bf16 %v8174_v62, %v8174_v62  ;;  %v7388_v31 = vpop.f32.mrb[83].mxu0  ;;  %v8172_v9 = vsel %vm7916_vm11, %v7788_v8, %v8044_v51  ;;  %v10858_v28 = vadd.f32 %v7385_v56, %v3556_v43  ;;  %v10472_v26 = vpop.f32.mrb[82].mxu1 }
 0x2a2   : > { %8812 = vst.msk [vmem:[%s12720_s4 + $0x130] sm:$0xf] %vm8735_vm4, %v9945_v42  ;;  %v9946_v20 = vpack.c.bf16 %v8172_v9, %v8172_v9  ;;  %v7793_v7 = vadd.f32 %v13139_v41, %v10857_v32  ;;  %v10859_v38 = vadd.f32 %v10732_v52, %v10472_v26  ;;  %v3559_v50 = vpop.f32.mrb[83].mxu1 }
 0x2a3   : > { %8815 = vst.msk [vmem:[%s12720_s4 + $0x13c] sm:$0xf] %vm8735_vm4, %v9948_v61  ;;  %v7791_v59 = vadd.f32 %v13139_v41, %v10858_v28  ;;  %v10860_v19 = vadd.f32 %v7388_v31, %v3559_v50 }
 0x2a4   : > { %8813 = vst.msk [vmem:[%s12720_s4 + $0x134] sm:$0xf] %vm8735_vm4, %v9946_v20  ;;  %vm7921_vm0 = vcmp.ge.f32.partialorder %v7793_v7, 0.0  ;;  %v8049_v47 = vmul.f32 0.2, %v7793_v7  ;;  %v7794_v6 = vadd.f32 %v13139_v41, %v10859_v38 }
 0x2a5   : > { %vm7919_vm3 = vcmp.ge.f32.partialorder %v7791_v59, 0.0  ;;  %v8047_v22 = vmul.f32 0.2, %v7791_v59  ;;  %v7792_v16 = vadd.f32 %v13139_v41, %v10860_v19 }
 0x2a6   : > { %v10735_v21 = vpop.f32.mrb[84].mxu0  ;;  %v8177_v2 = vsel %vm7921_vm0, %v7793_v7, %v8049_v47  ;;  %vm7922_vm12 = vcmp.ge.f32.partialorder %v7794_v6, 0.0  ;;  %v8050_v36 = vmul.f32 0.2, %v7794_v6 }
 0x2a7   : > { %v7401_v27 = vpop.f32.mrb[85].mxu0  ;;  %v9951_v57 = vpack.c.bf16 %v8177_v2, %v8177_v2  ;;  %v8175_v5 = vsel %vm7919_vm3, %v7791_v59, %v8047_v22  ;;  %vm7920_vm13 = vcmp.ge.f32.partialorder %v7792_v16, 0.0  ;;  %v8048_v15 = vmul.f32 0.2, %v7792_v16  ;;  %v10475_v29 = vpop.f32.mrb[84].mxu1 }
 0x2a8   : > { %v10736_v13 = vpop.f32.mrb[86].mxu0  ;;  %v9949_v60 = vpack.c.bf16 %v8175_v5, %v8175_v5  ;;  %v8178_v4 = vsel %vm7922_vm12, %v7794_v6, %v8050_v36  ;;  %v10861_v24 = vadd.f32 %v10735_v21, %v10475_v29  ;;  %v3572_v33 = vpop.f32.mrb[85].mxu1 }
 0x2a9   : > { %v7404_v3 = vpop.f32.mrb[87].mxu0  ;;  %8818 = vst.msk [vmem:[%s12720_s4 + $0x148] sm:$0xf] %vm8735_vm4, %v9951_v57  ;;  %v9952_v63 = vpack.c.bf16 %v8178_v4, %v8178_v4  ;;  %v8176_v49 = vsel %vm7920_vm13, %v7792_v16, %v8048_v15  ;;  %v10862_v48 = vadd.f32 %v7401_v27, %v3572_v33  ;;  %v10476_v45 = vpop.f32.mrb[86].mxu1 }
 0x2aa   : > { %8816 = vst.msk [vmem:[%s12720_s4 + $0x140] sm:$0xf] %vm8735_vm4, %v9949_v60  ;;  %v9950_v44 = vpack.c.bf16 %v8176_v49, %v8176_v49  ;;  %v7797_v12 = vadd.f32 %v13139_v41, %v10861_v24  ;;  %v10863_v17 = vadd.f32 %v10736_v13, %v10476_v45  ;;  %v3575_v54 = vpop.f32.mrb[87].mxu1 }
 0x2ab   : > { %8819 = vst.msk [vmem:[%s12720_s4 + $0x14c] sm:$0xf] %vm8735_vm4, %v9952_v63  ;;  %v7795_v25 = vadd.f32 %v13139_v41, %v10862_v48  ;;  %v10864_v35 = vadd.f32 %v7404_v3, %v3575_v54 }
 0x2ac   : > { %8817 = vst.msk [vmem:[%s12720_s4 + $0x144] sm:$0xf] %vm8735_vm4, %v9950_v44  ;;  %vm7925_vm14 = vcmp.ge.f32.partialorder %v7797_v12, 0.0  ;;  %v8053_v46 = vmul.f32 0.2, %v7797_v12  ;;  %v7798_v53 = vadd.f32 %v13139_v41, %v10863_v17 }
 0x2ad   : > { %vm7923_vm15 = vcmp.ge.f32.partialorder %v7795_v25, 0.0  ;;  %v8051_v23 = vmul.f32 0.2, %v7795_v25  ;;  %v7796_v58 = vadd.f32 %v13139_v41, %v10864_v35 }
 0x2ae   : > { %v8181_v18 = vsel %vm7925_vm14, %v7797_v12, %v8053_v46  ;;  %vm7926_vm1 = vcmp.ge.f32.partialorder %v7798_v53, 0.0  ;;  %v8054_v55 = vmul.f32 0.2, %v7798_v53 }
 0x2af   : > { %v10739_v40 = vpop.f32.mrb[88].mxu0  ;;  %v9955_v30 = vpack.c.bf16 %v8181_v18, %v8181_v18  ;;  %v8179_v14 = vsel %vm7923_vm15, %v7795_v25, %v8051_v23  ;;  %vm7924_vm2 = vcmp.ge.f32.partialorder %v7796_v58, 0.0  ;;  %v8052_v37 = vmul.f32 0.2, %v7796_v58 }
 0x2b0   : > { %v7417_v8 = vpop.f32.mrb[89].mxu0  ;;  %v9953_v34 = vpack.c.bf16 %v8179_v14, %v8179_v14  ;;  %v8182_v10 = vsel %vm7926_vm1, %v7798_v53, %v8054_v55  ;;  %v10479_v11 = vpop.f32.mrb[88].mxu1 }
 0x2b1   : > { %8822 = vst.msk [vmem:[%s12720_s4 + $0x158] sm:$0xf] %vm8735_vm4, %v9955_v30  ;;  %v10740_v39 = vpop.f32.mrb[90].mxu0  ;;  %v9956_v56 = vpack.c.bf16 %v8182_v10, %v8182_v10  ;;  %v8180_v0 = vsel %vm7924_vm2, %v7796_v58, %v8052_v37  ;;  %v10865_v51 = vadd.f32 %v10739_v40, %v10479_v11  ;;  %v3588_v42 = vpop.f32.mrb[89].mxu1 }
 0x2b2   : > { %8820 = vst.msk [vmem:[%s12720_s4 + $0x150] sm:$0xf] %vm8735_vm4, %v9953_v34  ;;  %v7420_v52 = vpop.f32.mrb[91].mxu0  ;;  %v9954_v62 = vpack.c.bf16 %v8180_v0, %v8180_v0  ;;  %v10866_v1 = vadd.f32 %v7417_v8, %v3588_v42  ;;  %v10480_v61 = vpop.f32.mrb[90].mxu1 }
 0x2b3   : > { %8823 = vst.msk [vmem:[%s12720_s4 + $0x15c] sm:$0xf] %vm8735_vm4, %v9956_v56  ;;  %v7801_v31 = vadd.f32 %v13139_v41, %v10865_v51  ;;  %v10867_v9 = vadd.f32 %v10740_v39, %v10480_v61  ;;  %v3591_v32 = vpop.f32.mrb[91].mxu1  ;;  %v13385_v56 = vld [vmem:[%s13492_s2] ss:$0 sm:$0xff] }
 0x2b4   : > { %8821 = vst.msk [vmem:[%s12720_s4 + $0x154] sm:$0xf] %vm8735_vm4, %v9954_v62  ;;  %v7799_v43 = vadd.f32 %v13139_v41, %v10866_v1  ;;  %v10868_v20 = vadd.f32 %v7420_v52, %v3591_v32 }
 0x2b5   : > { %vm7929_vm5 = vcmp.ge.f32.partialorder %v7801_v31, 0.0  ;;  %v8057_v28 = vmul.f32 0.2, %v7801_v31  ;;  %v7802_v26 = vadd.f32 %v13139_v41, %v10867_v9 }
 0x2b6   : > { %vm7927_vm6 = vcmp.ge.f32.partialorder %v7799_v43, 0.0  ;;  %v8055_v7 = vmul.f32 0.2, %v7799_v43  ;;  %v7800_v38 = vadd.f32 %v13139_v41, %v10868_v20 }
 0x2b7   : > { %v10743_v50 = vpop.f32.mrb[92].mxu0  ;;  %v8185_v59 = vsel %vm7929_vm5, %v7801_v31, %v8057_v28  ;;  %vm7930_vm7 = vcmp.ge.f32.partialorder %v7802_v26, 0.0  ;;  %v8058_v19 = vmul.f32 0.2, %v7802_v26 }
 0x2b8   : > { %v9959_v47 = vpack.c.bf16 %v8185_v59, %v8185_v59  ;;  %v7433_v6 = vpop.f32.mrb[93].mxu0  ;;  %v8183_v21 = vsel %vm7927_vm6, %v7799_v43, %v8055_v7  ;;  %vm7928_vm8 = vcmp.ge.f32.partialorder %v7800_v38, 0.0  ;;  %v8056_v22 = vmul.f32 0.2, %v7800_v38  ;;  %v10483_v16 = vpop.f32.mrb[92].mxu1 }
 0x2b9   : > { %v9957_v2 = vpack.c.bf16 %v8183_v21, %v8183_v21  ;;  %v10744_v27 = vpop.f32.mrb[94].mxu0  ;;  %v8186_v36 = vsel %vm7930_vm7, %v7802_v26, %v8058_v19  ;;  %v10869_v57 = vadd.f32 %v10743_v50, %v10483_v16  ;;  %v3604_v5 = vpop.f32.mrb[93].mxu1 }
 0x2ba   : > { %8826 = vst.msk [vmem:[%s12720_s4 + $0x168] sm:$0xf] %vm8735_vm4, %v9959_v47  ;;  %v9960_v13 = vpack.c.bf16 %v8186_v36, %v8186_v36  ;;  %v7436_v15 = vpop.f32.mrb[95].mxu0  ;;  %v8184_v29 = vsel %vm7928_vm8, %v7800_v38, %v8056_v22  ;;  %v10870_v60 = vadd.f32 %v7433_v6, %v3604_v5  ;;  %v10484_v4 = vpop.f32.mrb[94].mxu1 }
 0x2bb   : > { %8824 = vst.msk [vmem:[%s12720_s4 + $0x160] sm:$0xf] %vm8735_vm4, %v9957_v2  ;;  %v9958_v3 = vpack.c.bf16 %v8184_v29, %v8184_v29  ;;  %v7805_v24 = vadd.f32 %v13139_v41, %v10869_v57  ;;  %v10871_v33 = vadd.f32 %v10744_v27, %v10484_v4  ;;  %v3607_v63 = vpop.f32.mrb[95].mxu1 }
 0x2bc   : > { %8827 = vst.msk [vmem:[%s12720_s4 + $0x16c] sm:$0xf] %vm8735_vm4, %v9960_v13  ;;  %v7803_v49 = vadd.f32 %v13139_v41, %v10870_v60  ;;  %v10872_v48 = vadd.f32 %v7436_v15, %v3607_v63 }
 0x2bd   : > { %8825 = vst.msk [vmem:[%s12720_s4 + $0x164] sm:$0xf] %vm8735_vm4, %v9958_v3  ;;  %vm7933_vm9 = vcmp.ge.f32.partialorder %v7805_v24, 0.0  ;;  %v8061_v45 = vmul.f32 0.2, %v7805_v24  ;;  %v7806_v44 = vadd.f32 %v13139_v41, %v10871_v33 }
 0x2be   : > { %vm7931_vm10 = vcmp.ge.f32.partialorder %v7803_v49, 0.0  ;;  %v8059_v12 = vmul.f32 0.2, %v7803_v49  ;;  %v7804_v17 = vadd.f32 %v13139_v41, %v10872_v48 }
 0x2bf   : > { %v10747_v54 = vpop.f32.mrb[96].mxu0  ;;  %v8189_v25 = vsel %vm7933_vm9, %v7805_v24, %v8061_v45  ;;  %vm7934_vm11 = vcmp.ge.f32.partialorder %v7806_v44, 0.0  ;;  %v8062_v35 = vmul.f32 0.2, %v7806_v44 }
 0x2c0   : > { %v9963_v46 = vpack.c.bf16 %v8189_v25, %v8189_v25  ;;  %v7449_v53 = vpop.f32.mrb[97].mxu0  ;;  %v8187_v23 = vsel %vm7931_vm10, %v7803_v49, %v8059_v12  ;;  %vm7932_vm0 = vcmp.ge.f32.partialorder %v7804_v17, 0.0  ;;  %v8060_v58 = vmul.f32 0.2, %v7804_v17 }
 0x2c1   : > { %v10487_v18 = vpop.f32.mrb[96].mxu1  ;;  %v9961_v55 = vpack.c.bf16 %v8187_v23, %v8187_v23  ;;  %v10748_v40 = vpop.f32.mrb[98].mxu0  ;;  %v8190_v30 = vsel %vm7934_vm11, %v7806_v44, %v8062_v35 }
 0x2c2   : > { %v10873_v14 = vadd.f32 %v10747_v54, %v10487_v18  ;;  %v3620_v37 = vpop.f32.mrb[97].mxu1  ;;  %8830 = vst.msk [vmem:[%s12720_s4 + $0x178] sm:$0xf] %vm8735_vm4, %v9963_v46  ;;  %v9964_v41 = vpack.c.bf16 %v8190_v30, %v8190_v30  ;;  %v7452_v8 = vpop.f32.mrb[99].mxu0  ;;  %v8188_v34 = vsel %vm7932_vm0, %v7804_v17, %v8060_v58 }
 0x2c3   : > { %v10874_v10 = vadd.f32 %v7449_v53, %v3620_v37  ;;  %v10488_v11 = vpop.f32.mrb[98].mxu1  ;;  %8828 = vst.msk [vmem:[%s12720_s4 + $0x170] sm:$0xf] %vm8735_vm4, %v9961_v55  ;;  %v9962_v39 = vpack.c.bf16 %v8188_v34, %v8188_v34 }
 0x2c4   : > { %v7809_v0 = vadd.f32 %v13385_v56, %v10873_v14  ;;  %v10875_v51 = vadd.f32 %v10748_v40, %v10488_v11  ;;  %v3623_v42 = vpop.f32.mrb[99].mxu1  ;;  %8831 = vst.msk [vmem:[%s12720_s4 + $0x17c] sm:$0xf] %vm8735_vm4, %v9964_v41 }
 0x2c5   : > { %v7807_v52 = vadd.f32 %v13385_v56, %v10874_v10  ;;  %v10876_v62 = vadd.f32 %v7452_v8, %v3623_v42  ;;  %8829 = vst.msk [vmem:[%s12720_s4 + $0x174] sm:$0xf] %vm8735_vm4, %v9962_v39 }
 0x2c6   : > { %vm7937_vm3 = vcmp.ge.f32.partialorder %v7809_v0, 0.0  ;;  %v8065_v1 = vmul.f32 0.2, %v7809_v0  ;;  %v7810_v61 = vadd.f32 %v13385_v56, %v10875_v51 }
 0x2c7   : > { %vm7935_vm12 = vcmp.ge.f32.partialorder %v7807_v52, 0.0  ;;  %v8063_v31 = vmul.f32 0.2, %v7807_v52  ;;  %v7808_v9 = vadd.f32 %v13385_v56, %v10876_v62 }
 0x2c8   : > { %v8193_v32 = vsel %vm7937_vm3, %v7809_v0, %v8065_v1  ;;  %vm7938_vm13 = vcmp.ge.f32.partialorder %v7810_v61, 0.0  ;;  %v8066_v43 = vmul.f32 0.2, %v7810_v61  ;;  %v10751_v20 = vpop.f32.mrb[100].mxu0 }
 0x2c9   : > { %v9967_v28 = vpack.c.bf16 %v8193_v32, %v8193_v32  ;;  %v8191_v26 = vsel %vm7935_vm12, %v7807_v52, %v8063_v31  ;;  %vm7936_vm14 = vcmp.ge.f32.partialorder %v7808_v9, 0.0  ;;  %v8064_v7 = vmul.f32 0.2, %v7808_v9  ;;  %v7465_v38 = vpop.f32.mrb[101].mxu0  ;;  %v10491_v19 = vpop.f32.mrb[100].mxu1 }
 0x2ca   : > { %v9965_v50 = vpack.c.bf16 %v8191_v26, %v8191_v26  ;;  %v8194_v59 = vsel %vm7938_vm13, %v7810_v61, %v8066_v43  ;;  %v10752_v47 = vpop.f32.mrb[102].mxu0  ;;  %v10877_v22 = vadd.f32 %v10751_v20, %v10491_v19  ;;  %v3636_v16 = vpop.f32.mrb[101].mxu1 }
 0x2cb   : > { %8834 = vst.msk [vmem:[%s12720_s4 + $0x188] sm:$0xf] %vm8735_vm4, %v9967_v28  ;;  %v9968_v6 = vpack.c.bf16 %v8194_v59, %v8194_v59  ;;  %v8192_v21 = vsel %vm7936_vm14, %v7808_v9, %v8064_v7  ;;  %v7468_v2 = vpop.f32.mrb[103].mxu0  ;;  %v10878_v36 = vadd.f32 %v7465_v38, %v3636_v16  ;;  %v10492_v57 = vpop.f32.mrb[102].mxu1 }
 0x2cc   : > { %8832 = vst.msk [vmem:[%s12720_s4 + $0x180] sm:$0xf] %vm8735_vm4, %v9965_v50  ;;  %v9966_v27 = vpack.c.bf16 %v8192_v21, %v8192_v21  ;;  %v7813_v5 = vadd.f32 %v13385_v56, %v10877_v22  ;;  %v10879_v13 = vadd.f32 %v10752_v47, %v10492_v57  ;;  %v3639_v15 = vpop.f32.mrb[103].mxu1 }
 0x2cd   : > { %8835 = vst.msk [vmem:[%s12720_s4 + $0x18c] sm:$0xf] %vm8735_vm4, %v9968_v6  ;;  %v7811_v29 = vadd.f32 %v13385_v56, %v10878_v36  ;;  %v10880_v60 = vadd.f32 %v7468_v2, %v3639_v15 }
 0x2ce   : > { %8833 = vst.msk [vmem:[%s12720_s4 + $0x184] sm:$0xf] %vm8735_vm4, %v9966_v27  ;;  %vm7941_vm15 = vcmp.ge.f32.partialorder %v7813_v5, 0.0  ;;  %v8069_v4 = vmul.f32 0.2, %v7813_v5  ;;  %v7814_v3 = vadd.f32 %v13385_v56, %v10879_v13 }
 0x2cf   : > { %vm7939_vm1 = vcmp.ge.f32.partialorder %v7811_v29, 0.0  ;;  %v8067_v24 = vmul.f32 0.2, %v7811_v29  ;;  %v7812_v33 = vadd.f32 %v13385_v56, %v10880_v60 }
 0x2d0   : > { %v10755_v63 = vpop.f32.mrb[104].mxu0  ;;  %v8197_v49 = vsel %vm7941_vm15, %v7813_v5, %v8069_v4  ;;  %vm7942_vm2 = vcmp.ge.f32.partialorder %v7814_v3, 0.0  ;;  %v8070_v48 = vmul.f32 0.2, %v7814_v3 }
 0x2d1   : > { %v9971_v45 = vpack.c.bf16 %v8197_v49, %v8197_v49  ;;  %v7481_v44 = vpop.f32.mrb[105].mxu0  ;;  %v8195_v12 = vsel %vm7939_vm1, %v7811_v29, %v8067_v24  ;;  %vm7940_vm5 = vcmp.ge.f32.partialorder %v7812_v33, 0.0  ;;  %v8068_v17 = vmul.f32 0.2, %v7812_v33 }
 0x2d2   : > { %v10495_v54 = vpop.f32.mrb[104].mxu1  ;;  %v9969_v25 = vpack.c.bf16 %v8195_v12, %v8195_v12  ;;  %v10756_v35 = vpop.f32.mrb[106].mxu0  ;;  %v8198_v46 = vsel %vm7942_vm2, %v7814_v3, %v8070_v48 }
 0x2d3   : > { %v10881_v53 = vadd.f32 %v10755_v63, %v10495_v54  ;;  %v3652_v23 = vpop.f32.mrb[105].mxu1  ;;  %8838 = vst.msk [vmem:[%s12720_s4 + $0x198] sm:$0xf] %vm8735_vm4, %v9971_v45  ;;  %v9972_v58 = vpack.c.bf16 %v8198_v46, %v8198_v46  ;;  %v7484_v18 = vpop.f32.mrb[107].mxu0  ;;  %v8196_v55 = vsel %vm7940_vm5, %v7812_v33, %v8068_v17 }
 0x2d4   : > { %v10882_v40 = vadd.f32 %v7481_v44, %v3652_v23  ;;  %v10496_v30 = vpop.f32.mrb[106].mxu1  ;;  %8836 = vst.msk [vmem:[%s12720_s4 + $0x190] sm:$0xf] %vm8735_vm4, %v9969_v25  ;;  %v9970_v14 = vpack.c.bf16 %v8196_v55, %v8196_v55 }
 0x2d5   : > { %v7817_v37 = vadd.f32 %v13385_v56, %v10881_v53  ;;  %v10883_v41 = vadd.f32 %v10756_v35, %v10496_v30  ;;  %v3655_v8 = vpop.f32.mrb[107].mxu1  ;;  %8839 = vst.msk [vmem:[%s12720_s4 + $0x19c] sm:$0xf] %vm8735_vm4, %v9972_v58 }
 0x2d6   : > { %v7815_v34 = vadd.f32 %v13385_v56, %v10882_v40  ;;  %v10884_v10 = vadd.f32 %v7484_v18, %v3655_v8  ;;  %8837 = vst.msk [vmem:[%s12720_s4 + $0x194] sm:$0xf] %vm8735_vm4, %v9970_v14 }
 0x2d7   : > { %vm7945_vm6 = vcmp.ge.f32.partialorder %v7817_v37, 0.0  ;;  %v8073_v11 = vmul.f32 0.2, %v7817_v37  ;;  %v7818_v39 = vadd.f32 %v13385_v56, %v10883_v41 }
 0x2d8   : > { %vm7943_vm7 = vcmp.ge.f32.partialorder %v7815_v34, 0.0  ;;  %v8071_v0 = vmul.f32 0.2, %v7815_v34  ;;  %v7816_v51 = vadd.f32 %v13385_v56, %v10884_v10 }
 0x2d9   : > { %v8201_v42 = vsel %vm7945_vm6, %v7817_v37, %v8073_v11  ;;  %vm7946_vm8 = vcmp.ge.f32.partialorder %v7818_v39, 0.0  ;;  %v8074_v52 = vmul.f32 0.2, %v7818_v39 }
 0x2da   : > { %v10759_v62 = vpop.f32.mrb[108].mxu0  ;;  %v9975_v1 = vpack.c.bf16 %v8201_v42, %v8201_v42  ;;  %v8199_v61 = vsel %vm7943_vm7, %v7815_v34, %v8071_v0  ;;  %vm7944_vm9 = vcmp.ge.f32.partialorder %v7816_v51, 0.0  ;;  %v8072_v31 = vmul.f32 0.2, %v7816_v51 }
 0x2db   : > { %v7497_v9 = vpop.f32.mrb[109].mxu0  ;;  %v9973_v32 = vpack.c.bf16 %v8199_v61, %v8199_v61  ;;  %v8202_v43 = vsel %vm7946_vm8, %v7818_v39, %v8074_v52 }
 0x2dc   : > { %8842 = vst.msk [vmem:[%s12720_s4 + $0x1a8] sm:$0xf] %vm8735_vm4, %v9975_v1  ;;  %v10760_v20 = vpop.f32.mrb[110].mxu0  ;;  %v9976_v28 = vpack.c.bf16 %v8202_v43, %v8202_v43  ;;  %v8200_v26 = vsel %vm7944_vm9, %v7816_v51, %v8072_v31 }
 0x2dd   : > { %8840 = vst.msk [vmem:[%s12720_s4 + $0x1a0] sm:$0xf] %vm8735_vm4, %v9973_v32  ;;  %v7500_v7 = vpop.f32.mrb[111].mxu0  ;;  %v9974_v38 = vpack.c.bf16 %v8200_v26, %v8200_v26 }
 0x2de   : > { %8843 = vst.msk [vmem:[%s12720_s4 + $0x1ac] sm:$0xf] %vm8735_vm4, %v9976_v28 }
 0x2df   : > { %8841 = vst.msk [vmem:[%s12720_s4 + $0x1a4] sm:$0xf] %vm8735_vm4, %v9974_v38  ;;  %v10499_v50 = vpop.f32.mrb[108].mxu1 }
 0x2e0   : > { %v10885_v59 = vadd.f32 %v10759_v62, %v10499_v50  ;;  %v3668_v19 = vpop.f32.mrb[109].mxu1 }
 0x2e1   : > { %v10886_v47 = vadd.f32 %v7497_v9, %v3668_v19  ;;  %v10500_v6 = vpop.f32.mrb[110].mxu1 }
 0x2e2   : > { %v7821_v21 = vadd.f32 %v13385_v56, %v10885_v59  ;;  %v10887_v22 = vadd.f32 %v10760_v20, %v10500_v6  ;;  %v3671_v16 = vpop.f32.mrb[111].mxu1 }
 0x2e3   : > { %v7819_v2 = vadd.f32 %v13385_v56, %v10886_v47  ;;  %v10888_v27 = vadd.f32 %v7500_v7, %v3671_v16 }
 0x2e4   : > { %vm7949_vm10 = vcmp.ge.f32.partialorder %v7821_v21, 0.0  ;;  %v8077_v36 = vmul.f32 0.2, %v7821_v21  ;;  %v7822_v57 = vadd.f32 %v13385_v56, %v10887_v22 }
 0x2e5   : > { %vm7947_vm11 = vcmp.ge.f32.partialorder %v7819_v2, 0.0  ;;  %v8075_v5 = vmul.f32 0.2, %v7819_v2  ;;  %v7820_v13 = vadd.f32 %v13385_v56, %v10888_v27 }
 0x2e6   : > { %v8205_v15 = vsel %vm7949_vm10, %v7821_v21, %v8077_v36  ;;  %vm7950_vm0 = vcmp.ge.f32.partialorder %v7822_v57, 0.0  ;;  %v8078_v29 = vmul.f32 0.2, %v7822_v57 }
 0x2e7   : > { %v9979_v4 = vpack.c.bf16 %v8205_v15, %v8205_v15  ;;  %v8203_v3 = vsel %vm7947_vm11, %v7819_v2, %v8075_v5  ;;  %vm7948_vm3 = vcmp.ge.f32.partialorder %v7820_v13, 0.0  ;;  %v8076_v24 = vmul.f32 0.2, %v7820_v13 }
 0x2e8   : > { %v9977_v63 = vpack.c.bf16 %v8203_v3, %v8203_v3  ;;  %v8206_v49 = vsel %vm7950_vm0, %v7822_v57, %v8078_v29 }
 0x2e9   : > { %v10763_v60 = vpop.f32.mrb[112].mxu0  ;;  %8846 = vst.msk [vmem:[%s12720_s4 + $0x1b8] sm:$0xf] %vm8735_vm4, %v9979_v4  ;;  %v9980_v45 = vpack.c.bf16 %v8206_v49, %v8206_v49  ;;  %v8204_v44 = vsel %vm7948_vm3, %v7820_v13, %v8076_v24 }
 0x2ea   : > { %v7513_v33 = vpop.f32.mrb[113].mxu0  ;;  %8844 = vst.msk [vmem:[%s12720_s4 + $0x1b0] sm:$0xf] %vm8735_vm4, %v9977_v63  ;;  %v9978_v17 = vpack.c.bf16 %v8204_v44, %v8204_v44 }
 0x2eb   : > { %v10764_v48 = vpop.f32.mrb[114].mxu0  ;;  %8847 = vst.msk [vmem:[%s12720_s4 + $0x1bc] sm:$0xf] %vm8735_vm4, %v9980_v45 }
 0x2ec   : > { %v7516_v12 = vpop.f32.mrb[115].mxu0  ;;  %8845 = vst.msk [vmem:[%s12720_s4 + $0x1b4] sm:$0xf] %vm8735_vm4, %v9978_v17 }
 0x2ee   : > { %v10503_v54 = vpop.f32.mrb[112].mxu1 }
 0x2ef   : > { %v10889_v25 = vadd.f32 %v10763_v60, %v10503_v54  ;;  %v3684_v35 = vpop.f32.mrb[113].mxu1 }
 0x2f0   : > { %v10890_v46 = vadd.f32 %v7513_v33, %v3684_v35  ;;  %v10504_v53 = vpop.f32.mrb[114].mxu1 }
 0x2f1   : > { %v7825_v23 = vadd.f32 %v13385_v56, %v10889_v25  ;;  %v10891_v58 = vadd.f32 %v10764_v48, %v10504_v53  ;;  %v3687_v18 = vpop.f32.mrb[115].mxu1 }
 0x2f2   : > { %v7823_v55 = vadd.f32 %v13385_v56, %v10890_v46  ;;  %v10892_v40 = vadd.f32 %v7516_v12, %v3687_v18 }
 0x2f3   : > { %vm7953_vm12 = vcmp.ge.f32.partialorder %v7825_v23, 0.0  ;;  %v8081_v30 = vmul.f32 0.2, %v7825_v23  ;;  %v7826_v14 = vadd.f32 %v13385_v56, %v10891_v58 }
 0x2f4   : > { %vm7951_vm13 = vcmp.ge.f32.partialorder %v7823_v55, 0.0  ;;  %v8079_v37 = vmul.f32 0.2, %v7823_v55  ;;  %v7824_v41 = vadd.f32 %v13385_v56, %v10892_v40 }
 0x2f5   : > { %v8209_v8 = vsel %vm7953_vm12, %v7825_v23, %v8081_v30  ;;  %vm7954_vm14 = vcmp.ge.f32.partialorder %v7826_v14, 0.0  ;;  %v8082_v34 = vmul.f32 0.2, %v7826_v14 }
 0x2f6   : > { %v10767_v10 = vpop.f32.mrb[116].mxu0  ;;  %v9983_v11 = vpack.c.bf16 %v8209_v8, %v8209_v8  ;;  %v8207_v39 = vsel %vm7951_vm13, %v7823_v55, %v8079_v37  ;;  %vm7952_vm15 = vcmp.ge.f32.partialorder %v7824_v41, 0.0  ;;  %v8080_v0 = vmul.f32 0.2, %v7824_v41 }
 0x2f7   : > { %v7529_v51 = vpop.f32.mrb[117].mxu0  ;;  %v9981_v42 = vpack.c.bf16 %v8207_v39, %v8207_v39  ;;  %v8210_v52 = vsel %vm7954_vm14, %v7826_v14, %v8082_v34 }
 0x2f8   : > { %8850 = vst.msk [vmem:[%s12720_s4 + $0x1c8] sm:$0xf] %vm8735_vm4, %v9983_v11  ;;  %v10768_v62 = vpop.f32.mrb[118].mxu0  ;;  %v9984_v1 = vpack.c.bf16 %v8210_v52, %v8210_v52  ;;  %v8208_v61 = vsel %vm7952_vm15, %v7824_v41, %v8080_v0 }
 0x2f9   : > { %8848 = vst.msk [vmem:[%s12720_s4 + $0x1c0] sm:$0xf] %vm8735_vm4, %v9981_v42  ;;  %v7532_v31 = vpop.f32.mrb[119].mxu0  ;;  %v9982_v9 = vpack.c.bf16 %v8208_v61, %v8208_v61 }
 0x2fa   : > { %8851 = vst.msk [vmem:[%s12720_s4 + $0x1cc] sm:$0xf] %vm8735_vm4, %v9984_v1 }
 0x2fb   : > { %8849 = vst.msk [vmem:[%s12720_s4 + $0x1c4] sm:$0xf] %vm8735_vm4, %v9982_v9 }
 0x2fc   : > { %v10507_v32 = vpop.f32.mrb[116].mxu1 }
 0x2fd   : > { %v10893_v43 = vadd.f32 %v10767_v10, %v10507_v32  ;;  %v3700_v20 = vpop.f32.mrb[117].mxu1 }
 0x2fe   : > { %v10894_v28 = vadd.f32 %v7529_v51, %v3700_v20  ;;  %v10508_v26 = vpop.f32.mrb[118].mxu1 }
 0x2ff   : > { %v7829_v7 = vadd.f32 %v13385_v56, %v10893_v43  ;;  %v10895_v38 = vadd.f32 %v10768_v62, %v10508_v26  ;;  %v3703_v50 = vpop.f32.mrb[119].mxu1 }
 0x300   : > { %v7827_v59 = vadd.f32 %v13385_v56, %v10894_v28  ;;  %v10896_v19 = vadd.f32 %v7532_v31, %v3703_v50 }
 0x301   : > { %vm7957_vm1 = vcmp.ge.f32.partialorder %v7829_v7, 0.0  ;;  %v8085_v47 = vmul.f32 0.2, %v7829_v7  ;;  %v7830_v6 = vadd.f32 %v13385_v56, %v10895_v38 }
 0x302   : > { %vm7955_vm2 = vcmp.ge.f32.partialorder %v7827_v59, 0.0  ;;  %v8083_v21 = vmul.f32 0.2, %v7827_v59  ;;  %v7828_v22 = vadd.f32 %v13385_v56, %v10896_v19 }
 0x303   : > { %v8213_v16 = vsel %vm7957_vm1, %v7829_v7, %v8085_v47  ;;  %vm7958_vm5 = vcmp.ge.f32.partialorder %v7830_v6, 0.0  ;;  %v8086_v2 = vmul.f32 0.2, %v7830_v6 }
 0x304   : > { %v9987_v27 = vpack.c.bf16 %v8213_v16, %v8213_v16  ;;  %v8211_v36 = vsel %vm7955_vm2, %v7827_v59, %v8083_v21  ;;  %vm7956_vm6 = vcmp.ge.f32.partialorder %v7828_v22, 0.0  ;;  %v8084_v57 = vmul.f32 0.2, %v7828_v22 }
 0x305   : > { %v10771_v5 = vpop.f32.mrb[120].mxu0  ;;  %v9985_v13 = vpack.c.bf16 %v8211_v36, %v8211_v36  ;;  %v8214_v15 = vsel %vm7958_vm5, %v7830_v6, %v8086_v2 }
 0x306   : > { %8854 = vst.msk [vmem:[%s12720_s4 + $0x1d8] sm:$0xf] %vm8735_vm4, %v9987_v27  ;;  %v7545_v29 = vpop.f32.mrb[121].mxu0  ;;  %v9988_v60 = vpack.c.bf16 %v8214_v15, %v8214_v15  ;;  %v8212_v4 = vsel %vm7956_vm6, %v7828_v22, %v8084_v57 }
 0x307   : > { %8852 = vst.msk [vmem:[%s12720_s4 + $0x1d0] sm:$0xf] %vm8735_vm4, %v9985_v13  ;;  %v10772_v3 = vpop.f32.mrb[122].mxu0  ;;  %v9986_v24 = vpack.c.bf16 %v8212_v4, %v8212_v4 }
 0x308   : > { %8855 = vst.msk [vmem:[%s12720_s4 + $0x1dc] sm:$0xf] %vm8735_vm4, %v9988_v60  ;;  %v7548_v33 = vpop.f32.mrb[123].mxu0 }
 0x309   : > { %8853 = vst.msk [vmem:[%s12720_s4 + $0x1d4] sm:$0xf] %vm8735_vm4, %v9986_v24 }
 0x30c   : > { %v10511_v63 = vpop.f32.mrb[120].mxu1 }
 0x30d   : > { %v10897_v49 = vadd.f32 %v10771_v5, %v10511_v63  ;;  %v3716_v48 = vpop.f32.mrb[121].mxu1 }
 0x30e   : > { %v10898_v45 = vadd.f32 %v7545_v29, %v3716_v48  ;;  %v10512_v44 = vpop.f32.mrb[122].mxu1 }
 0x30f   : > { %v7833_v12 = vadd.f32 %v13385_v56, %v10897_v49  ;;  %v10899_v17 = vadd.f32 %v10772_v3, %v10512_v44  ;;  %v3719_v54 = vpop.f32.mrb[123].mxu1 }
 0x310   : > { %v7831_v25 = vadd.f32 %v13385_v56, %v10898_v45  ;;  %v10900_v35 = vadd.f32 %v7548_v33, %v3719_v54 }
 0x311   : > { %vm7961_vm7 = vcmp.ge.f32.partialorder %v7833_v12, 0.0  ;;  %v8089_v46 = vmul.f32 0.2, %v7833_v12  ;;  %v7834_v53 = vadd.f32 %v13385_v56, %v10899_v17 }
 0x312   : > { %vm7959_vm8 = vcmp.ge.f32.partialorder %v7831_v25, 0.0  ;;  %v8087_v23 = vmul.f32 0.2, %v7831_v25  ;;  %v7832_v58 = vadd.f32 %v13385_v56, %v10900_v35 }
 0x313   : > { %v8217_v18 = vsel %vm7961_vm7, %v7833_v12, %v8089_v46  ;;  %vm7962_vm9 = vcmp.ge.f32.partialorder %v7834_v53, 0.0  ;;  %v8090_v55 = vmul.f32 0.2, %v7834_v53 }
 0x314   : > { %v9991_v40 = vpack.c.bf16 %v8217_v18, %v8217_v18  ;;  %v8215_v30 = vsel %vm7959_vm8, %v7831_v25, %v8087_v23  ;;  %vm7960_vm10 = vcmp.ge.f32.partialorder %v7832_v58, 0.0  ;;  %v8088_v14 = vmul.f32 0.2, %v7832_v58  ;;  %v10515_v37 = vpop.f32.mrb[124].mxu1  ;;  %v10775_v41 = vpop.f32.mrb[124].mxu0 }
 0x315   : > { %v9989_v8 = vpack.c.bf16 %v8215_v30, %v8215_v30  ;;  %v8218_v34 = vsel %vm7962_vm9, %v7834_v53, %v8090_v55  ;;  %v3732_v10 = vpop.f32.mrb[125].mxu1  ;;  %v7561_v11 = vpop.f32.mrb[125].mxu0  ;;  %v10901_v51 = vadd.f32 %v10775_v41, %v10515_v37 }
 0x316   : > { %8858 = vst.msk [vmem:[%s12720_s4 + $0x1e8] sm:$0xf] %vm8735_vm4, %v9991_v40  ;;  %v9992_v39 = vpack.c.bf16 %v8218_v34, %v8218_v34  ;;  %v8216_v0 = vsel %vm7960_vm10, %v7832_v58, %v8088_v14  ;;  %v10516_v42 = vpop.f32.mrb[126].mxu1  ;;  %v10776_v52 = vpop.f32.mrb[126].mxu0  ;;  %v10902_v1 = vadd.f32 %v7561_v11, %v3732_v10 }
 0x317   : > { %8856 = vst.msk [vmem:[%s12720_s4 + $0x1e0] sm:$0xf] %vm8735_vm4, %v9989_v8  ;;  %v9990_v62 = vpack.c.bf16 %v8216_v0, %v8216_v0  ;;  %v3735_v61 = vpop.f32.mrb[127].mxu1  ;;  %v7564_v31 = vpop.f32.mrb[127].mxu0  ;;  %v7837_v9 = vadd.f32 %v13385_v56, %v10901_v51  ;;  %v10903_v32 = vadd.f32 %v10776_v52, %v10516_v42 }
 0x318   : > { %8859 = vst.msk [vmem:[%s12720_s4 + $0x1ec] sm:$0xf] %vm8735_vm4, %v9992_v39  ;;  %v7835_v43 = vadd.f32 %v13385_v56, %v10902_v1  ;;  %v10904_v20 = vadd.f32 %v7564_v31, %v3735_v61 }
 0x319   : > { %8857 = vst.msk [vmem:[%s12720_s4 + $0x1e4] sm:$0xf] %vm8735_vm4, %v9990_v62  ;;  %vm7965_vm11 = vcmp.ge.f32.partialorder %v7837_v9, 0.0  ;;  %v8093_v28 = vmul.f32 0.2, %v7837_v9  ;;  %v7838_v26 = vadd.f32 %v13385_v56, %v10903_v32 }
 0x31a   : > { %vm7963_vm0 = vcmp.ge.f32.partialorder %v7835_v43, 0.0  ;;  %v8091_v7 = vmul.f32 0.2, %v7835_v43  ;;  %v7836_v38 = vadd.f32 %v13385_v56, %v10904_v20 }
 0x31b   : > { %v8221_v50 = vsel %vm7965_vm11, %v7837_v9, %v8093_v28  ;;  %vm7966_vm3 = vcmp.ge.f32.partialorder %v7838_v26, 0.0  ;;  %v8094_v59 = vmul.f32 0.2, %v7838_v26 }
 0x31c   : > { %v9995_v19 = vpack.c.bf16 %v8221_v50, %v8221_v50  ;;  %v8219_v47 = vsel %vm7963_vm0, %v7835_v43, %v8091_v7  ;;  %vm7964_vm12 = vcmp.ge.f32.partialorder %v7836_v38, 0.0  ;;  %v8092_v6 = vmul.f32 0.2, %v7836_v38 }
 0x31d   : > { %v9993_v21 = vpack.c.bf16 %v8219_v47, %v8219_v47  ;;  %v8222_v22 = vsel %vm7966_vm3, %v7838_v26, %v8094_v59 }
 0x31e   : > { %8862 = vst.msk [vmem:[%s12720_s4 + $0x1f8] sm:$0xf] %vm8735_vm4, %v9995_v19  ;;  %v9996_v16 = vpack.c.bf16 %v8222_v22, %v8222_v22  ;;  %v8220_v2 = vsel %vm7964_vm12, %v7836_v38, %v8092_v6 }
 0x31f   : > { %8860 = vst.msk [vmem:[%s12720_s4 + $0x1f0] sm:$0xf] %vm8735_vm4, %v9993_v21  ;;  %v9994_v27 = vpack.c.bf16 %v8220_v2, %v8220_v2 }
 0x320   : > { %8863 = vst.msk [vmem:[%s12720_s4 + $0x1fc] sm:$0xf] %vm8735_vm4, %v9996_v16 }
 0x321   : > { %8861 = vst.msk [vmem:[%s12720_s4 + $0x1f4] sm:$0xf] %vm8735_vm4, %v9994_v27 }
 0x322 PF: > { %s13_s12 = sadd.s32 1, %s11426_s12  }
 0x323   : > { %p10_p4 = scmp.ge.s32.totalorder %s13_s12, 4  }
 0x325   :  { %12 = sbr.rel (!%p10_p4) target bundleno = 1 (0x1), region = 66 }

// kernel: fc_discriminator_forward.6
= control target key start
LH: loop header
LB: loop body
LE: loop exit
PB: predicated region body
PF: predicated region fallthrough
CT: control target
= control target key end

     0   :  { %s3495_s12 = smov 0   ;;  %s4171_s0 = inlined_call_operand.vmem [shape: bf16[2,17,17,128], index: 0, kind: input, shape index: {}]   ;;  %s4172_s1 = inlined_call_operand.vmem [shape: bf16[2,2,128,64], index: 1, kind: input, shape index: {}]   ;;  %s4173_s2 = inlined_call_operand.vmem [shape: f32[1,64], index: 2, kind: input, shape index: {}]   ;;  %s4174_s3 = inlined_call_operand.vmem [shape: bf16[2,16,16,64], index: 3, kind: output, shape index: {}]  }
   0x1 LB: > { %s2710_s13 = sadd.s32 4294967295, %s3473_s12   ;;  %p2714_p0 = scmp.ge.s32.totalorder %s3473_s12, 1  ;;  %s3473_s12 = sphi %s3495_s12, %s13_s12  }
   0x2   : > { %p137_p1 = scmp.lt.s32.totalorder %s3473_s12, 3 }
   0x4   : > { %p138_p2 = pnand %p2714_p0, %p137_p1 }
   0x5   : > { %v3403_v0 = vld [vmem:[%s4172_s1 + $0x40] sm:$0xff] (!%p138_p2)   ;;  %p161_p3 = scmp.lt.s32.totalorder (!%p138_p2), %s2710_s13, 1  ;;  %v3405_v2 = vld [vmem:[%s4172_s1 + $0x48] sm:$0xff] (!%p138_p2)   ;;  %v3407_v4 = vld [vmem:[%s4172_s1 + $0x50] sm:$0xff] (!%p138_p2)   ;;  %vm236_vm0 = vsmask.f32 (!%p138_p2), 3328 }
   0x6   : > { %141 = sbr.rel (%p138_p2) target bundleno = 395 (0x18b), region = 32  ;;  %v3404_v1 = vld [vmem:[%s4172_s1 + $0x80] sm:$0xff] (!%p138_p2)   ;;  %3106 = vmatprep.subr.bf16.mxu1 (!%p138_p2), %v3403_v0  ;;  %v3406_v3 = vld [vmem:[%s4172_s1 + $0x88] sm:$0xff] (!%p138_p2)   ;;  %v3408_v5 = vld [vmem:[%s4172_s1 + $0x90] sm:$0xff] (!%p138_p2)   ;;  %vm237_vm1 = vsmask.f32 (!%p138_p2), 7440 }
   0x7   : > { %3202 = vmatprep.subr.bf16.mxu0 (!%p138_p2), %v3404_v1  ;;  %3107 = vmatpush3.bf16.msra.mxu1 (!%p138_p2), %v3403_v0  ;;  %v3409_v6 = vld [vmem:[%s4172_s1 + $0x58] sm:$0xff] (!%p138_p2)   ;;  %v3411_v8 = vld [vmem:[%s4172_s1 + $0x60] sm:$0xff] (!%p138_p2)   ;;  %v3413_v10 = vld [vmem:[%s4172_s1 + $0x68] sm:$0xff] (!%p138_p2)   ;;  %vm2622_vm5 = vcmask (!%p138_p2), 519168  }
   0x8   : > { %3203 = vmatpush3.bf16.msra.mxu0 (!%p138_p2), %v3404_v1  ;;  %3108 = vmatprep.subr.bf16.mxu1 (!%p138_p2), %v3405_v2  ;;  %v3410_v7 = vld [vmem:[%s4172_s1 + $0x98] sm:$0xff] (!%p138_p2)   ;;  %v3412_v9 = vld [vmem:[%s4172_s1 + $0xa0] sm:$0xff] (!%p138_p2)   ;;  %v3414_v11 = vld [vmem:[%s4172_s1 + $0xa8] sm:$0xff] (!%p138_p2)  }
   0x9   : > { %3204 = vmatprep.subr.bf16.mxu0 (!%p138_p2), %v3406_v3  ;;  %v3415_v17 = vld [vmem:[%s4172_s1 + $0x70] sm:$0xff] (!%p138_p2)   ;;  %vm3580_vm2 = vmor (!%p138_p2), %vm236_vm0, %vm237_vm1  ;;  %v3417_v46 = vld [vmem:[%s4172_s1 + $0x78] sm:$0xff] (!%p138_p2)  }
   0xa   : > { %v3416_v31 = vld [vmem:[%s4172_s1 + $0xb0] sm:$0xff] (!%p138_p2)   ;;  %v3418_v47 = vld [vmem:[%s4172_s1 + $0xb8] sm:$0xff] (!%p138_p2)   ;;  %v3420_v62 = vld [vmem:[%s4172_s1] sm:$0xff] (!%p138_p2)  }
   0xb   : > { %3109 = vmatpush3.bf16.msra.mxu1 (!%p138_p2), %v3405_v2 }
   0xc   : > { %3205 = vmatpush3.bf16.msra.mxu0 (!%p138_p2), %v3406_v3  ;;  %3110 = vmatprep.subr.bf16.mxu1 (!%p138_p2), %v3407_v4 }
   0xd   : > { %s4193_s13 = smov (!%p161_p3, %s2710_s13), 1  ;;  %3206 = vmatprep.subr.bf16.mxu0 %v3408_v5 }
   0xe   : > { %s3394_s30 = smul.u32 204, %s4193_s13  ;;  %s2977_s7 = sshll.u32 %s4193_s13, 7 }
   0xf   : > { %3111 = vmatpush3.bf16.msra.mxu1 %v3407_v4  ;;  %s4074_s11 = scalar_lea.vmem %s4174_s3, %s2977_s7 }
  0x10   : > { %3207 = vmatpush3.bf16.msra.mxu0 %v3408_v5  ;;  %3112 = vmatprep.subr.bf16.mxu1 %v3409_v6  ;;  %s3539_s10 = scalar_lea.vmem %s4171_s0, %s3394_s30 }
  0x11   : > { %3208 = vmatprep.subr.bf16.mxu0 %v3410_v7  ;;  %v3548_v12 = vld [vmem:[%s3539_s10] sm:$0xf]  ;;  %v3551_v13 = vld [vmem:[%s3539_s10 + $0x4] sm:$0xf]  ;;  %v220_v14 = vld [vmem:[%s3539_s10 + $0x8] sm:$0x1] }
  0x12   : > { %v240_v15 = vshrl.u32 %v3548_v12, 16  ;;  %v243_v16 = vshll.u32 %v3548_v12, 16  ;;  %v249_v18 = vshll.u32 %v3551_v13, 16  ;;  %v253_v19 = vshrl.u32 %v3551_v13, 16  ;;  %v3419_v21 = vld [vmem:[%s3539_s10 + $0xc] sm:$0xff]  }
  0x13   : > { %3113 = vmatpush3.bf16.msra.mxu1 %v3409_v6  ;;  %v259_v20 = vshll.u32 %v220_v14, 16  ;;  %v2758_v22 = vcombine.low %v3548_v12, %v3551_v13  ;;  %v3565_v25 = vld [vmem:[%s3539_s10 + $0xc] sm:$0xf]  ;;  %v3568_v29 = vld [vmem:[%s3539_s10 + $0x10] sm:$0xf]  ;;  %3218 = vmatprep.mubr.bf16.mxu0 %v3419_v21  ;;  %v3421_v6 = vld [vmem:[%s3539_s10 + $0x18] sm:$0xff]  }
  0x14   : > { %3209 = vmatpush3.bf16.msra.mxu0 %v3410_v7  ;;  %3114 = vmatprep.subr.bf16.mxu1 %v3411_v8  ;;  %v242_v23 = vrot.slane %v240_v15, 4  ;;  %v245_v24 = vrot.slane %v243_v16, 5  ;;  %v251_v26 = vrot.slane %v249_v18, 5  ;;  %v255_v27 = vrot.slane %v253_v19, 4  ;;  %v221_v33 = vld [vmem:[%s3539_s10 + $0x14] sm:$0x1] }
  0x15   : > { %3210 = vmatprep.subr.bf16.mxu0 %v3412_v9  ;;  %v261_v28 = vrot.slane %v259_v20, 5  ;;  %v264_v30 = vshrl.u32 %v3565_v25, 16  ;;  %v267_v34 = vshll.u32 %v3565_v25, 16  ;;  %v273_v35 = vshll.u32 %v3568_v29, 16  ;;  %v3595_v53 = vld [vmem:[%s3539_s10 + $0x18] sm:$0xf] }
  0x16   : > { %v246_v32 = vor.u32 %v245_v24, %v242_v23  ;;  %v277_v36 = vshrl.u32 %v3568_v29, 16  ;;  %v256_v38 = vor.u32 %v255_v27, %v251_v26  ;;  %v283_v40 = vshll.u32 %v221_v33, 16  ;;  %v3600_v55 = vld [vmem:[%s3539_s10 + $0x1c] sm:$0xf]  ;;  %v222_v56 = vld [vmem:[%s3539_s10 + $0x20] sm:$0x1] }
  0x17   : > { %3115 = vmatpush3.bf16.msra.mxu1 %v3411_v8  ;;  %v266_v39 = vrot.slane %v264_v30, 4  ;;  %v269_v43 = vrot.slane %v267_v34, 5  ;;  %v275_v44 = vrot.slane %v273_v35, 5  ;;  %v288_v57 = vshrl.u32 %v3595_v53, 16  ;;  %v3422_v7 = vld [vmem:[%s4172_s1 + $0xc0] sm:$0xff]   ;;  %v3424_v35 = vld [vmem:[%s4172_s1 + $0x8] sm:$0xff]  }
  0x18   : > { %3211 = vmatpush3.bf16.msra.mxu0 %v3412_v9  ;;  %3116 = vmatprep.subr.bf16.mxu1 %v3413_v10  ;;  %v247_v42 = vrot.slane %v246_v32, 4  ;;  %v279_v45 = vrot.slane %v277_v36, 4  ;;  %v257_v48 = vrot.slane %v256_v38, 4  ;;  %v285_v49 = vrot.slane %v283_v40, 5  ;;  %v3619_v9 = vld [vmem:[%s3539_s10 + $0x24] sm:$0xf] }
  0x19   : > { %3212 = vmatprep.subr.bf16.mxu0 %v3414_v11  ;;  %v270_v51 = vor.u32 %v269_v43, %v266_v39  ;;  %v291_v58 = vshll.u32 %v3595_v53, 16  ;;  %v297_v63 = vshll.u32 %v3600_v55, 16  ;;  %v290_v0 = vrot.slane %v288_v57, 4  ;;  %v3423_v18 = vld [vmem:[%s3539_s10 + $0x24] sm:$0xff]   ;;  %v223_v19 = vld [vmem:[%s3539_s10 + $0x2c] sm:$0x1] }
  0x1a   : > { %v252_v50 = vsel %vm3580_vm2, %v247_v42, %v251_v26  ;;  %v280_v52 = vor.u32 %v279_v45, %v275_v44  ;;  %v262_v54 = vsel %vm3580_vm2, %v257_v48, %v261_v28  ;;  %v301_v2 = vshrl.u32 %v3600_v55, 16  ;;  %v3426_v36 = vld [vmem:[%s4172_s1 + $0xc8] sm:$0xff]   ;;  %v3646_v45 = vld [vmem:[%s3539_s10 + $0x34] sm:$0xf] }
  0x1b   : > { %3117 = vmatpush3.bf16.msra.mxu1 %v3413_v10  ;;  %v2734_v59 = vcombine.low %v252_v50, %v262_v54  ;;  %v271_v60 = vrot.slane %v270_v51, 4  ;;  %v293_v1 = vrot.slane %v291_v58, 5  ;;  %v307_v3 = vshll.u32 %v222_v56, 16  ;;  %v3622_v10 = vld [vmem:[%s3539_s10 + $0x28] sm:$0xf]  ;;  %v3425_v56 = vld [vmem:[%s3539_s10 + $0x30] sm:$0xff]  }
  0x1c   : > { %3213 = vmatpush3.bf16.msra.mxu0 %v3414_v11  ;;  %3118 = vmatprep.subr.bf16.mxu1 %v3415_v17  ;;  %v281_v61 = vrot.slane %v280_v52, 4  ;;  %v299_v8 = vrot.slane %v297_v63, 5  ;;  %v303_v16 = vrot.slane %v301_v2, 4  ;;  %v312_v20 = vshrl.u32 %v3619_v9, 16  ;;  %v3428_v58 = vld [vmem:[%s4172_s1 + $0x10] sm:$0xff]   ;;  %v3427_v63 = vld [vmem:[%s3539_s10 + $0x3c] sm:$0xff]  }
  0x1d   : > { %3214 = vmatprep.subr.bf16.mxu0 %v3416_v31  ;;  %3122 = vmatprep.mubr.bf16.mxu1 %v2734_v59  ;;  %v276_v4 = vsel %vm3580_vm2, %v271_v60, %v275_v44  ;;  %v294_v15 = vor.u32 %v293_v1, %v290_v0  ;;  %v315_v21 = vshll.u32 %v3619_v9, 16  ;;  %v321_v23 = vshll.u32 %v3622_v10, 16  ;;  %v3643_v44 = vld [vmem:[%s3539_s10 + $0x30] sm:$0xf]  ;;  %v3661_v0 = vld [vmem:[%s3539_s10 + $0x3c] sm:$0xf] }
  0x1e   : > { %v286_v5 = vsel %vm3580_vm2, %v281_v61, %v285_v49  ;;  %v325_v24 = vshrl.u32 %v3622_v10, 16  ;;  %v304_v27 = vor.u32 %v303_v16, %v299_v8  ;;  %v331_v28 = vshll.u32 %v223_v19, 16  ;;  %v2862_v41 = vld [vmem:[%s3539_s10 + $0x2c] sm:$0x1]  ;;  %v2864_v13 = vld [vmem:[%s3539_s10 + $0x34] sm:$0xf] }
  0x1f   : > { %3119 = vmatpush3.bf16.msra.mxu1 %v3415_v17  ;;  %v2735_v14 = vcombine.low %v276_v4, %v286_v5  ;;  %v309_v17 = vrot.slane %v307_v3, 5  ;;  %v295_v26 = vrot.slane %v294_v15, 4  ;;  %v317_v32 = vrot.slane %v315_v21, 5  ;;  %v3668_v4 = vld [vmem:[%s3539_s10 + $0x40] sm:$0xf] }
  0x20   : > { %3215 = vmatpush3.bf16.msra.mxu0 %v3416_v31  ;;  %3120 = vmatprep.subr.bf16.mxu1 %v3417_v46  ;;  %v314_v31 = vrot.slane %v312_v20, 4  ;;  %v323_v33 = vrot.slane %v321_v23, 5  ;;  %v327_v34 = vrot.slane %v325_v24, 4  ;;  %v305_v39 = vrot.slane %v304_v27, 4  ;;  %v225_v5 = vld [vmem:[%s3539_s10 + $0x44] sm:$0x1] }
  0x21   : > { %3216 = vmatprep.subr.bf16.mxu0 %v3418_v47  ;;  %v300_v38 = vsel %vm3580_vm2, %v295_v26, %v299_v8  ;;  %v333_v40 = vrot.slane %v331_v28, 5  ;;  %v336_v48 = vshrl.u32 %v3643_v44, 16  ;;  %v339_v49 = vshll.u32 %v3643_v44, 16  ;;  %v3430_v24 = vld [vmem:[%s4172_s1 + $0xd0] sm:$0xff]  }
  0x22   : > { %v318_v42 = vor.u32 %v317_v32, %v314_v31  ;;  %v328_v43 = vor.u32 %v327_v34, %v323_v33  ;;  %v345_v50 = vshll.u32 %v3646_v45, 16  ;;  %v349_v57 = vshrl.u32 %v3646_v45, 16 }
  0x23   : > { %3121 = vmatpush3.bf16.msra.mxu1 %v3417_v46  ;;  %v224_v46 = vld [vmem:[%s3539_s10 + $0x38] sm:$0x1]  ;;  %v338_v59 = vrot.slane %v336_v48, 4  ;;  %v341_v60 = vrot.slane %v339_v49, 5  ;;  %v363_v15 = vshll.u32 %v3661_v0, 16  ;;  %v373_v19 = vshrl.u32 %v3668_v4, 16 }
  0x24   : > { %3217 = vmatpush3.bf16.msra.mxu0 %v3418_v47  ;;  %3154 = vmatprep.subr.bf16.mxu1 %v3420_v62  ;;  %v310_v47 = vsel %vm3580_vm2, %v305_v39, %v309_v17  ;;  %v319_v52 = vrot.slane %v318_v42, 4  ;;  %v329_v54 = vrot.slane %v328_v43, 4  ;;  %v347_v61 = vrot.slane %v345_v50, 5  ;;  %v3429_v42 = vld [vmem:[%s3539_s10 + $0x48] sm:$0xff]  }
  0x25   : > { %3250 = vmatprep.subr.bf16.mxu0 %v3422_v7  ;;  %v2736_v51 = vcombine.low %v300_v38, %v310_v47  ;;  %v351_v3 = vrot.slane %v349_v57, 4  ;;  %v342_v8 = vor.u32 %v341_v60, %v338_v59  ;;  %v365_v21 = vrot.slane %v363_v15, 5  ;;  %v3432_v38 = vld [vmem:[%s4172_s1 + $0x18] sm:$0xff]   ;;  %v3694_v43 = vld [vmem:[%s3539_s10 + $0x4c] sm:$0xf] }
  0x26   : > { %3123 = vmatmul.mubr.bf16.vlgmr.msra.gmra.mrb[0].mxu1 %v2735_v14  ;;  %v324_v1 = vsel %vm3580_vm2, %v319_v52, %v323_v33  ;;  %v334_v2 = vsel %vm3580_vm2, %v329_v54, %v333_v40  ;;  %v379_v23 = vshll.u32 %v225_v5, 16  ;;  %v375_v31 = vrot.slane %v373_v19, 4  ;;  %v3431_v54 = vld [vmem:[%s3539_s10 + $0x54] sm:$0xff]  }
  0x27   : > { %3219 = vmatmul.mubr.bf16.vlgmr.msra.gmra.mrb[0].mxu0 %v3421_v6  ;;  %3155 = vmatpush3.bf16.msra.mxu1 %v3420_v62  ;;  %v355_v62 = vshll.u32 %v224_v46, 16  ;;  %v360_v6 = vshrl.u32 %v3661_v0, 16  ;;  %v352_v16 = vor.u32 %v351_v3, %v347_v61  ;;  %v343_v20 = vrot.slane %v342_v8, 4  ;;  %v226_v46 = vld [vmem:[%s3539_s10 + $0x50] sm:$0x1] }
  0x28   : > { %3251 = vmatpush3.bf16.msra.mxu0 %v3422_v7  ;;  %3222 = vmatprep.mubr.bf16.mxu0 %v3423_v18  ;;  %v2737_v7 = vcombine.low %v324_v1, %v334_v2  ;;  %v369_v18 = vshll.u32 %v3668_v4, 16  ;;  %v397_v52 = vshrl.u32 %v3694_v43, 16  ;;  %v403_v59 = vshll.u32 %v226_v46, 16  ;;  %v3708_v1 = vld [vmem:[%s3539_s10 + $0x58] sm:$0xf] }
  0x29   : > { %3156 = vmatprep.subr.bf16.mxu1 %v3424_v35  ;;  %3252 = vmatprep.subr.bf16.mxu0 %v3426_v36  ;;  %v357_v14 = vrot.slane %v355_v62, 5  ;;  %v362_v17 = vrot.slane %v360_v6, 4  ;;  %v353_v27 = vrot.slane %v352_v16, 4  ;;  %v348_v33 = vsel %vm3580_vm2, %v343_v20, %v347_v61  ;;  %v3733_v46 = vld [vmem:[%s3539_s10 + $0x64] sm:$0xf] }
  0x2a   : > { %3126 = vmatprep.mubr.bf16.mxu1 %v2736_v51  ;;  %v371_v28 = vrot.slane %v369_v18, 5  ;;  %v393_v51 = vshll.u32 %v3694_v43, 16  ;;  %v399_v62 = vrot.slane %v397_v52, 4  ;;  %v405_v6 = vrot.slane %v403_v59, 5 }
  0x2b   : > { %3157 = vmatpush3.bf16.msra.mxu1 %v3424_v35  ;;  %v366_v34 = vor.u32 %v365_v21, %v362_v17  ;;  %v381_v35 = vrot.slane %v379_v23, 5  ;;  %v358_v39 = vsel %vm3580_vm2, %v353_v27, %v357_v14  ;;  %v417_v17 = vshll.u32 %v3708_v1, 16 }
  0x2c   : > { %3253 = vmatpush3.bf16.msra.mxu0 %v3426_v36  ;;  %3158 = vmatprep.subr.bf16.mxu1 %v3428_v58  ;;  %v3685_v36 = vld [vmem:[%s3539_s10 + $0x48] sm:$0xf]  ;;  %v376_v40 = vor.u32 %v375_v31, %v371_v28  ;;  %v2738_v49 = vcombine.low %v348_v33, %v358_v39  ;;  %v395_v61 = vrot.slane %v393_v51, 5  ;;  %v421_v20 = vshrl.u32 %v3708_v1, 16  ;;  %v3728_v39 = vld [vmem:[%s3539_s10 + $0x60] sm:$0xf] }
  0x2d   : > { %3254 = vmatprep.subr.bf16.mxu0 %v3430_v24  ;;  %v384_v47 = vshrl.u32 %v3685_v36, 16  ;;  %v387_v48 = vshll.u32 %v3685_v36, 16  ;;  %v367_v50 = vrot.slane %v366_v34, 4  ;;  %v419_v27 = vrot.slane %v417_v17, 5  ;;  %v229_v17 = vld [vmem:[%s3539_s10 + $0x74] sm:$0x1] }
  0x2e   : > { %3127 = vmatmul.mubr.bf16.gmra.mrb[4].mxu1 %v2737_v7  ;;  %v227_v7 = vld [vmem:[%s3539_s10 + $0x5c] sm:$0x1]  ;;  %v400_v15 = vor.u32 %v399_v62, %v395_v61  ;;  %v423_v34 = vrot.slane %v421_v20, 4  ;;  %v441_v52 = vshll.u32 %v3733_v46, 16  ;;  %v1721_v12 = vshll.u32 %v2862_v41, 16 }
  0x2f   : > { %3223 = vmatmul.mubr.bf16.gmra.mrb[4].mxu0 %v3425_v56  ;;  %3159 = vmatpush3.bf16.msra.mxu1 %v3428_v58  ;;  %v377_v56 = vrot.slane %v376_v40, 4  ;;  %v386_v57 = vrot.slane %v384_v47, 4  ;;  %v389_v58 = vrot.slane %v387_v48, 5  ;;  %v372_v60 = vsel %vm3580_vm2, %v367_v50, %v371_v28  ;;  %v3434_v28 = vld [vmem:[%s4172_s1 + $0xd8] sm:$0xff]   ;;  %v228_v47 = vld [vmem:[%s3539_s10 + $0x68] sm:$0x1] }
  0x30   : > { %3226 = vmatprep.mubr.bf16.mxu0 %v3427_v63  ;;  %3255 = vmatpush3.bf16.msra.mxu0 %v3430_v24  ;;  %v3705_v63 = vld [vmem:[%s3539_s10 + $0x54] sm:$0xf]  ;;  %v427_v21 = vshll.u32 %v227_v7, 16  ;;  %v401_v23 = vrot.slane %v400_v15, 4  ;;  %v432_v48 = vshrl.u32 %v3728_v39, 16  ;;  %v424_v51 = vor.u32 %v423_v34, %v419_v27  ;;  %v3438_v34 = vld [vmem:[%s4172_s1 + $0xe0] sm:$0xff]  }
  0x31   : > { %3160 = vmatprep.subr.bf16.mxu1 %v3432_v38  ;;  %3130 = vmatprep.mubr.bf16.mxu1 %v2738_v49  ;;  %v382_v3 = vsel %vm3580_vm2, %v377_v56, %v381_v35  ;;  %v390_v5 = vor.u32 %v389_v58, %v386_v57  ;;  %v408_v8 = vshrl.u32 %v3705_v63, 16  ;;  %v411_v16 = vshll.u32 %v3705_v63, 16 }
  0x32   : > { %v2739_v14 = vcombine.low %v372_v60, %v382_v3  ;;  %v429_v35 = vrot.slane %v427_v21, 5  ;;  %v406_v40 = vsel %vm3580_vm2, %v401_v23, %v405_v6  ;;  %3256 = vmatprep.subr.bf16.mxu0 %v3434_v28  ;;  %v435_v49 = vshll.u32 %v3728_v39, 16  ;;  %v3435_v60 = vld [vmem:[%s3539_s10 + $0x6c] sm:$0xff]  }
  0x33   : > { %3161 = vmatpush3.bf16.msra.mxu1 %v3432_v38  ;;  %v391_v18 = vrot.slane %v390_v5, 4  ;;  %v410_v19 = vrot.slane %v408_v8, 4  ;;  %v413_v24 = vrot.slane %v411_v16, 5  ;;  %v3433_v38 = vld [vmem:[%s3539_s10 + $0x60] sm:$0xff]   ;;  %v434_v57 = vrot.slane %v432_v48, 4 }
  0x34   : > { %3257 = vmatpush3.bf16.msra.mxu0 %v3434_v28  ;;  %v437_v58 = vrot.slane %v435_v49, 5  ;;  %v451_v59 = vshll.u32 %v228_v47, 16  ;;  %v425_v62 = vrot.slane %v424_v51, 4  ;;  %v443_v3 = vrot.slane %v441_v52, 5  ;;  %v3745_v6 = vld [vmem:[%s3539_s10 + $0x6c] sm:$0xf] }
  0x35   : > { %v396_v33 = vsel %vm3580_vm2, %v391_v18, %v395_v61  ;;  %v3436_v61 = vld [vmem:[%s4172_s1 + $0x20] sm:$0xff]   ;;  %v3752_v16 = vld [vmem:[%s3539_s10 + $0x70] sm:$0xf]  ;;  %v456_v18 = vshrl.u32 %v3745_v6, 16  ;;  %v459_v21 = vshll.u32 %v3745_v6, 16  ;;  %v3437_v47 = vld [vmem:[%s3539_s10 + $0x78] sm:$0xff]   ;;  %3258 = vmatprep.subr.bf16.mxu0 %v3438_v34 }
  0x36   : > { %3131 = vmatmul.mubr.bf16.gmra.mrb[8].mxu1 %v2739_v14  ;;  %v2740_v50 = vcombine.low %v396_v33, %v406_v40  ;;  %v438_v14 = vor.u32 %v437_v58, %v434_v57  ;;  %v453_v15 = vrot.slane %v451_v59, 5  ;;  %3162 = vmatprep.subr.bf16.mxu1 %v3436_v61  ;;  %v465_v23 = vshll.u32 %v3752_v16, 16  ;;  %v3773_v57 = vld [vmem:[%s3539_s10 + $0x78] sm:$0xf]  ;;  %v3776_v58 = vld [vmem:[%s3539_s10 + $0x7c] sm:$0xf] }
  0x37   : > { %3227 = vmatmul.mubr.bf16.gmra.mrb[8].mxu0 %v3429_v42  ;;  %v414_v42 = vor.u32 %v413_v24, %v410_v19  ;;  %v430_v19 = vsel %vm3580_vm2, %v425_v62, %v429_v35  ;;  %3163 = vmatpush3.bf16.msra.mxu1 %v3436_v61  ;;  %v458_v28 = vrot.slane %v456_v18, 4  ;;  %v469_v33 = vshrl.u32 %v3752_v16, 16  ;;  %v3440_v59 = vld [vmem:[%s4172_s1 + $0x28] sm:$0xff]   ;;  %v230_v62 = vld [vmem:[%s3539_s10 + $0x80] sm:$0x1] }
  0x38   : > { %3230 = vmatprep.mubr.bf16.mxu0 %v3431_v54  ;;  %v445_v54 = vshrl.u32 %v3733_v46, 16  ;;  %3134 = vmatprep.mubr.bf16.mxu1 %v2740_v50  ;;  %v467_v40 = vrot.slane %v465_v23, 5  ;;  %v3439_v50 = vld [vmem:[%s3539_s10 + $0x84] sm:$0xff]   ;;  %v235_v23 = vld [vmem:[%s3539_s10 + $0xbc] sm:$0x1] }
  0x39   : > { %v415_v56 = vrot.slane %v414_v42, 4  ;;  %v475_v42 = vshll.u32 %v229_v17, 16  ;;  %v471_v49 = vrot.slane %v469_v33, 4  ;;  %3259 = vmatpush3.bf16.msra.mxu0 %v3438_v34  ;;  %v499_v17 = vshll.u32 %v230_v62, 16  ;;  %3164 = vmatprep.subr.bf16.mxu1 %v3440_v59  ;;  %v3794_v34 = vld [vmem:[%s3539_s10 + $0x88] sm:$0xf] }
  0x3a   : > { %v447_v5 = vrot.slane %v445_v54, 4 }
  0x3b   : > { %v420_v8 = vsel %vm3580_vm2, %v415_v56, %v419_v27  ;;  %v439_v27 = vrot.slane %v438_v14, 4  ;;  %v477_v56 = vrot.slane %v475_v42, 5  ;;  %v472_v61 = vor.u32 %v471_v49, %v467_v40  ;;  %3165 = vmatpush3.bf16.msra.mxu1 %v3440_v59 }
  0x3c   : > { %v448_v20 = vor.u32 %v447_v5, %v443_v3  ;;  %v2741_v24 = vcombine.low %v420_v8, %v430_v19  ;;  %v483_v5 = vshll.u32 %v3773_v57, 16  ;;  %v489_v14 = vshll.u32 %v3776_v58, 16 }
  0x3d   : > { %v444_v48 = vsel %vm3580_vm2, %v439_v27, %v443_v3  ;;  %v480_v3 = vshrl.u32 %v3773_v57, 16  ;;  %v473_v18 = vrot.slane %v472_v61, 4  ;;  %v501_v33 = vrot.slane %v499_v17, 5 }
  0x3e   : > { %v449_v35 = vrot.slane %v448_v20, 4  ;;  %3135 = vmatmul.mubr.bf16.gmra.mrb[12].mxu1 %v2741_v24  ;;  %v485_v20 = vrot.slane %v483_v5, 5  ;;  %v491_v27 = vrot.slane %v489_v14, 5  ;;  %v517_v59 = vshrl.u32 %v3794_v34, 16  ;;  %v3443_v14 = vld [vmem:[%s3539_s10 + $0x9c] sm:$0xff]  }
  0x3f   : > { %3231 = vmatmul.mubr.bf16.gmra.mrb[12].mxu0 %v3433_v38  ;;  %v461_v38 = vrot.slane %v459_v21, 5  ;;  %v482_v19 = vrot.slane %v480_v3, 4  ;;  %v3787_v21 = vld [vmem:[%s3539_s10 + $0x84] sm:$0xf] }
  0x40   : > { %3234 = vmatprep.mubr.bf16.mxu0 %v3435_v60  ;;  %v454_v52 = vsel %vm3580_vm2, %v449_v35, %v453_v15  ;;  %v493_v15 = vshrl.u32 %v3776_v58, 16  ;;  %v3442_v35 = vld [vmem:[%s4172_s1 + $0xe8] sm:$0xff]   ;;  %v504_v49 = vshrl.u32 %v3787_v21, 16 }
  0x41   : > { %v462_v54 = vor.u32 %v461_v38, %v458_v28  ;;  %v2742_v60 = vcombine.low %v444_v48, %v454_v52  ;;  %v478_v38 = vsel %vm3580_vm2, %v473_v18, %v477_v56  ;;  %v486_v42 = vor.u32 %v485_v20, %v482_v19  ;;  %v231_v48 = vld [vmem:[%s3539_s10 + $0x8c] sm:$0x1]  ;;  %3260 = vmatprep.subr.bf16.mxu0 %v3442_v35  ;;  %v3813_v20 = vld [vmem:[%s3539_s10 + $0x90] sm:$0xf] }
  0x42   : > { %v495_v28 = vrot.slane %v493_v15, 4  ;;  %v506_v62 = vrot.slane %v504_v49, 4  ;;  %3261 = vmatpush3.bf16.msra.mxu0 %v3442_v35  ;;  %v531_v49 = vshll.u32 %v3813_v20, 16  ;;  %v3449_v15 = vld [vmem:[%s3539_s10 + $0xc0] sm:$0xff]  }
  0x43   : > { %v463_v8 = vrot.slane %v462_v54, 4  ;;  %3138 = vmatprep.mubr.bf16.mxu1 %v2742_v60  ;;  %v513_v54 = vshll.u32 %v3794_v34, 16  ;;  %v3441_v60 = vld [vmem:[%s3539_s10 + $0x90] sm:$0xff]   ;;  %v487_v61 = vrot.slane %v486_v42, 4  ;;  %v232_v42 = vld [vmem:[%s3539_s10 + $0x98] sm:$0x1] }
  0x44   : > { %v496_v52 = vor.u32 %v495_v28, %v491_v27 }
  0x45   : > { %v468_v24 = vsel %vm3580_vm2, %v463_v8, %v467_v40  ;;  %v507_v40 = vshll.u32 %v3787_v21, 16  ;;  %v515_v5 = vrot.slane %v513_v54, 5  ;;  %v519_v8 = vrot.slane %v517_v59, 4 }
  0x46   : > { %v497_v3 = vrot.slane %v496_v52, 4  ;;  %v492_v17 = vsel %vm3580_vm2, %v487_v61, %v491_v27  ;;  %v533_v59 = vrot.slane %v531_v49, 5  ;;  %v547_v61 = vshll.u32 %v232_v42, 16  ;;  %v3445_v42 = vld [vmem:[%s3539_s10 + $0xa8] sm:$0xff]  }
  0x47   : > { %3235 = vmatmul.mubr.bf16.gmra.mrb[16].mxu0 %v3437_v47  ;;  %v2743_v47 = vcombine.low %v468_v24, %v478_v38  ;;  %v509_v56 = vrot.slane %v507_v40, 5  ;;  %v3444_v24 = vld [vmem:[%s4172_s1 + $0x30] sm:$0xff]   ;;  %v520_v35 = vor.u32 %v519_v8, %v515_v5  ;;  %v3834_v8 = vld [vmem:[%s3539_s10 + $0xa0] sm:$0xf] }
  0x48   : > { %3238 = vmatprep.mubr.bf16.mxu0 %v3439_v50  ;;  %v523_v50 = vshll.u32 %v231_v48, 16  ;;  %v502_v28 = vsel %vm3580_vm2, %v497_v3, %v501_v33  ;;  %v3821_v38 = vld [vmem:[%s3539_s10 + $0x94] sm:$0xf]  ;;  %v528_v48 = vshrl.u32 %v3813_v20, 16  ;;  %3166 = vmatprep.subr.bf16.mxu1 %v3444_v24  ;;  %v3831_v3 = vld [vmem:[%s3539_s10 + $0x9c] sm:$0xf] }
  0x49   : > { %3139 = vmatmul.mubr.bf16.gmra.mrb[16].mxu1 %v2743_v47  ;;  %v510_v18 = vor.u32 %v509_v56, %v506_v62  ;;  %v2744_v27 = vcombine.low %v492_v17, %v502_v28  ;;  %v537_v47 = vshll.u32 %v3821_v38, 16  ;;  %v541_v52 = vshrl.u32 %v3821_v38, 16 }
  0x4a   : > { %v525_v19 = vrot.slane %v523_v50, 5  ;;  %v521_v54 = vrot.slane %v520_v35, 4  ;;  %v530_v33 = vrot.slane %v528_v48, 4  ;;  %3167 = vmatpush3.bf16.msra.mxu1 %v3444_v24  ;;  %v549_v28 = vrot.slane %v547_v61, 5  ;;  %v233_v24 = vld [vmem:[%s3539_s10 + $0xa4] sm:$0x1] }
  0x4b   : > { %v511_v40 = vrot.slane %v510_v18, 4  ;;  %3142 = vmatprep.mubr.bf16.mxu1 %v2744_v27  ;;  %v539_v56 = vrot.slane %v537_v47, 5  ;;  %v543_v50 = vrot.slane %v541_v52, 4  ;;  %v552_v35 = vshrl.u32 %v3831_v3, 16 }
  0x4c   : > { %v526_v17 = vsel %vm3580_vm2, %v521_v54, %v525_v19  ;;  %v534_v18 = vor.u32 %v533_v59, %v530_v33  ;;  %v561_v49 = vshll.u32 %v3834_v8, 16  ;;  %v565_v47 = vshrl.u32 %v3834_v8, 16  ;;  %v3446_v59 = vld [vmem:[%s4172_s1 + $0xf0] sm:$0xff]  }
  0x4d   : > { %v516_v62 = vsel %vm3580_vm2, %v511_v40, %v515_v5  ;;  %v544_v48 = vor.u32 %v543_v50, %v539_v56  ;;  %v554_v40 = vrot.slane %v552_v35, 4  ;;  %v571_v19 = vshll.u32 %v233_v24, 16  ;;  %3262 = vmatprep.subr.bf16.mxu0 %v3446_v59 }
  0x4e   : > { %v2745_v5 = vcombine.low %v516_v62, %v526_v17  ;;  %v535_v27 = vrot.slane %v534_v18, 4  ;;  %v563_v33 = vrot.slane %v561_v49, 5  ;;  %v567_v50 = vrot.slane %v565_v47, 4  ;;  %v3854_v18 = vld [vmem:[%s3539_s10 + $0xa8] sm:$0xf]  ;;  %3263 = vmatpush3.bf16.msra.mxu0 %v3446_v59 }
  0x4f   : > { %3239 = vmatmul.mubr.bf16.gmra.mrb[20].mxu0 %v3441_v60  ;;  %v545_v52 = vrot.slane %v544_v48, 4  ;;  %v573_v17 = vrot.slane %v571_v19, 5  ;;  %v234_v48 = vld [vmem:[%s3539_s10 + $0xb0] sm:$0x1]  ;;  %v579_v49 = vshll.u32 %v3854_v18, 16 }
  0x50   : > { %3242 = vmatprep.mubr.bf16.mxu0 %v3443_v14  ;;  %v555_v14 = vshll.u32 %v3831_v3, 16  ;;  %v540_v62 = vsel %vm3580_vm2, %v535_v27, %v539_v56  ;;  %v568_v56 = vor.u32 %v567_v50, %v563_v33  ;;  %v3871_v60 = vld [vmem:[%s3539_s10 + $0xb4] sm:$0xf] }
  0x51   : > { %3143 = vmatmul.mubr.bf16.gmra.mrb[20].mxu1 %v2745_v5  ;;  %v550_v24 = vsel %vm3580_vm2, %v545_v52, %v549_v28  ;;  %v3859_v5 = vld [vmem:[%s3539_s10 + $0xac] sm:$0xf]  ;;  %v581_v19 = vrot.slane %v579_v49, 5  ;;  %v595_v52 = vshll.u32 %v234_v48, 16  ;;  %v3879_v49 = vld [vmem:[%s3539_s10 + $0xb8] sm:$0xf] }
  0x52   : > { %v557_v54 = vrot.slane %v555_v14, 5  ;;  %v576_v14 = vshrl.u32 %v3854_v18, 16  ;;  %v2746_v61 = vcombine.low %v540_v62, %v550_v24  ;;  %v585_v27 = vshll.u32 %v3859_v5, 16  ;;  %v3448_v62 = vld [vmem:[%s4172_s1 + $0x38] sm:$0xff]  }
  0x53   : > { %v589_v47 = vshrl.u32 %v3859_v5, 16  ;;  %v569_v50 = vrot.slane %v568_v56, 4  ;;  %v597_v48 = vrot.slane %v595_v52, 5  ;;  %3168 = vmatprep.subr.bf16.mxu1 %v3448_v62  ;;  %v609_v59 = vshll.u32 %v3879_v49, 16 }
  0x54   : > { %v558_v35 = vor.u32 %v557_v54, %v554_v40  ;;  %v578_v40 = vrot.slane %v576_v14, 4  ;;  %v3447_v54 = vld [vmem:[%s3539_s10 + $0xb4] sm:$0xff]   ;;  %3146 = vmatprep.mubr.bf16.mxu1 %v2746_v61  ;;  %v587_v24 = vrot.slane %v585_v27, 5  ;;  %v600_v61 = vshrl.u32 %v3871_v60, 16  ;;  %3169 = vmatpush3.bf16.msra.mxu1 %v3448_v62 }
  0x55   : > { %v574_v56 = vsel %vm3580_vm2, %v569_v50, %v573_v17  ;;  %v611_v17 = vrot.slane %v609_v59, 5  ;;  %v619_v50 = vshll.u32 %v235_v23, 16  ;;  %v2854_v59 = vld [vmem:[%s3539_s10 + $0xc] sm:$0xf] }
  0x56   : > { %v559_v28 = vrot.slane %v558_v35, 4  ;;  %v582_v14 = vor.u32 %v581_v19, %v578_v40  ;;  %v613_v40 = vshrl.u32 %v3879_v49, 16  ;;  %v3450_v19 = vld [vmem:[%s4172_s1 + $0xf8] sm:$0xff]  }
  0x57   : > { %3243 = vmatmul.mubr.bf16.gmra.mrb[24].mxu0 %v3445_v42  ;;  %v591_v42 = vrot.slane %v589_v47, 4  ;;  %v603_v47 = vshll.u32 %v3871_v60, 16  ;;  %3264 = vmatprep.subr.bf16.mxu0 %v3450_v19 }
  0x58   : > { %v564_v35 = vsel %vm3580_vm2, %v559_v28, %v563_v33  ;;  %3246 = vmatprep.mubr.bf16.mxu0 %v3447_v54  ;;  %v583_v33 = vrot.slane %v582_v14, 4  ;;  %v602_v28 = vrot.slane %v600_v61, 4  ;;  %3265 = vmatpush3.bf16.msra.mxu0 %v3450_v19 }
  0x59   : > { %v592_v27 = vor.u32 %v591_v42, %v587_v24  ;;  %v2747_v51 = vcombine.low %v564_v35, %v574_v56  ;;  %v605_v54 = vrot.slane %v603_v47, 5  ;;  %v615_v42 = vrot.slane %v613_v40, 4  ;;  %v2857_v40 = vld [vmem:[%s3539_s10 + $0x18] sm:$0xf] }
  0x5a   : > { %v588_v62 = vsel %vm3580_vm2, %v583_v33, %v587_v24  ;;  %v621_v56 = vrot.slane %v619_v50, 5  ;;  %v2856_v24 = vld [vmem:[%s3539_s10 + $0x14] sm:$0x1]  ;;  %v1654_v47 = vshrl.u32 %v2854_v59, 16  ;;  %v1657_v33 = vshll.u32 %v2854_v59, 16 }
  0x5b   : > { %v593_v52 = vrot.slane %v592_v27, 4  ;;  %3147 = vmatmul.mubr.bf16.gmra.mrb[24].mxu1 %v2747_v51  ;;  %v606_v61 = vor.u32 %v605_v54, %v602_v28  ;;  %v2855_v27 = vld [vmem:[%s3539_s10 + $0x10] sm:$0xf]  ;;  %v616_v51 = vor.u32 %v615_v42, %v611_v17  ;;  %v1673_v2 = vshll.u32 %v2856_v24, 16  ;;  %v2859_v54 = vld [vmem:[%s3539_s10 + $0x20] sm:$0x1] }
  0x5c   : > { %v1663_v35 = vshll.u32 %v2855_v27, 16  ;;  %v1667_v31 = vshrl.u32 %v2855_v27, 16  ;;  %v1678_v50 = vshrl.u32 %v2857_v40, 16  ;;  %v2860_v59 = vld [vmem:[%s3539_s10 + $0x24] sm:$0xf] }
  0x5d   : > { %v598_v14 = vsel %vm3580_vm2, %v593_v52, %v597_v48  ;;  %v607_v7 = vrot.slane %v606_v61, 4  ;;  %v2858_v48 = vld [vmem:[%s3539_s10 + $0x1c] sm:$0xf]  ;;  %v617_v28 = vrot.slane %v616_v51, 4  ;;  %v1656_v52 = vrot.slane %v1654_v47, 4 }
  0x5e   : > { %v2748_v23 = vcombine.low %v588_v62, %v598_v14  ;;  %v1665_v19 = vrot.slane %v1663_v35, 5  ;;  %v1669_v42 = vrot.slane %v1667_v31, 4  ;;  %v1675_v14 = vrot.slane %v1673_v2, 5 }
  0x5f   : > { %3247 = vmatmul.mubr.bf16.gmra.mrb[28].mxu0 %v3449_v15  ;;  %v1659_v15 = vrot.slane %v1657_v33, 5  ;;  %v612_v62 = vsel %vm3580_vm2, %v607_v7, %v611_v17  ;;  %v622_v61 = vsel %vm3580_vm2, %v617_v28, %v621_v56  ;;  %v1680_v24 = vrot.slane %v1678_v50, 4  ;;  %v2861_v17 = vld [vmem:[%s3539_s10 + $0x28] sm:$0xf] }
  0x60   : > { %3150 = vmatprep.mubr.bf16.mxu1 %v2748_v23  ;;  %v1681_v23 = vshll.u32 %v2857_v40, 16  ;;  %v2749_v51 = vcombine.low %v612_v62, %v622_v61  ;;  %v1670_v47 = vor.u32 %v1669_v42, %v1665_v19  ;;  %v1687_v33 = vshll.u32 %v2858_v48, 16 }
  0x61   : > { %v1660_v27 = vor.u32 %v1659_v15, %v1656_v52  ;;  %v1691_v32 = vshrl.u32 %v2858_v48, 16  ;;  %v1697_v7 = vshll.u32 %v2859_v54, 16  ;;  %v1702_v35 = vshrl.u32 %v2860_v59, 16  ;;  %v2863_v15 = vld [vmem:[%s3539_s10 + $0x30] sm:$0xf] }
  0x62   : > { %v1683_v30 = vrot.slane %v1681_v23, 5  ;;  %v1671_v2 = vrot.slane %v1670_v47, 4  ;;  %v1689_v31 = vrot.slane %v1687_v33, 5  ;;  %v1705_v56 = vshll.u32 %v2860_v59, 16 }
  0x63   : > { %v1661_v26 = vrot.slane %v1660_v27, 4  ;;  %3151 = vmatmul.mubr.bf16.gmra.mrb[28].mxu1 %v2749_v51  ;;  %v1693_v11 = vrot.slane %v1691_v32, 4  ;;  %v1699_v28 = vrot.slane %v1697_v7, 5  ;;  %v1704_v52 = vrot.slane %v1702_v35, 4  ;;  %v2866_v51 = vld [vmem:[%s3539_s10 + $0x3c] sm:$0xf] }
  0x64   : > { %3170 = vmatprep.mubr.bf16.mxu1 %v2758_v22  ;;  %v1684_v48 = vor.u32 %v1683_v30, %v1680_v24  ;;  %v1676_v54 = vsel %vm3580_vm2, %v1671_v2, %v1675_v14  ;;  %v1707_v32 = vrot.slane %v1705_v56, 5  ;;  %v1711_v62 = vshll.u32 %v2861_v17, 16  ;;  %v2865_v30 = vld [vmem:[%s3539_s10 + $0x38] sm:$0x1] }
  0x65   : > { %v1666_v40 = vsel %vm3580_vm2, %v1661_v26, %v1665_v19  ;;  %v1694_v50 = vor.u32 %v1693_v11, %v1689_v31  ;;  %v1715_v61 = vshrl.u32 %v2861_v17, 16  ;;  %v1726_v19 = vshrl.u32 %v2863_v15, 16 }
  0x66   : > { %v2918_v42 = vcombine.low %v1666_v40, %v1676_v54  ;;  %v1685_v59 = vrot.slane %v1684_v48, 4  ;;  %v1708_v27 = vor.u32 %v1707_v32, %v1704_v52  ;;  %v1713_v26 = vrot.slane %v1711_v62, 5  ;;  %v2867_v40 = vld [vmem:[%s3539_s10 + $0x40] sm:$0xf] }
  0x67   : > { %v1695_v22 = vrot.slane %v1694_v50, 4  ;;  %v1717_v14 = vrot.slane %v1715_v61, 4  ;;  %v1723_v11 = vrot.slane %v1721_v12, 5  ;;  %v1729_v23 = vshll.u32 %v2863_v15, 16 }
  0x68   : > { %3266 = vmatprep.mubr.bf16.mxu0 %v2918_v42  ;;  %v1690_v24 = vsel %vm3580_vm2, %v1685_v59, %v1689_v31  ;;  %v1709_v33 = vrot.slane %v1708_v27, 4  ;;  %v1728_v41 = vrot.slane %v1726_v19, 4  ;;  %v1735_v7 = vshll.u32 %v2864_v13, 16  ;;  %v2868_v42 = vld [vmem:[%s3539_s10 + $0x44] sm:$0x1] }
  0x69   : > { %v1700_v47 = vsel %vm3580_vm2, %v1695_v22, %v1699_v28  ;;  %v1718_v35 = vor.u32 %v1717_v14, %v1713_v26  ;;  %v1731_v2 = vrot.slane %v1729_v23, 5  ;;  %v1739_v56 = vshrl.u32 %v2864_v13, 16  ;;  %v2869_v13 = vld [vmem:[%s3539_s10 + $0x48] sm:$0xf] }
  0x6a   : > { %v2919_v17 = vcombine.low %v1690_v24, %v1700_v47  ;;  %v4177_v48 = vcombine.low %v3565_v25, %v3568_v29  ;;  %v1714_v31 = vsel %vm3580_vm2, %v1709_v33, %v1713_v26  ;;  %v1737_v52 = vrot.slane %v1735_v7, 5  ;;  %v2871_v33 = vld [vmem:[%s3539_s10 + $0x50] sm:$0x1] }
  0x6b   : > { %v1745_v15 = vshll.u32 %v2865_v30, 16  ;;  %v1750_v28 = vshrl.u32 %v2866_v51, 16  ;;  %v4178_v54 = vcombine.low %v3595_v53, %v3600_v55  ;;  %v1719_v50 = vrot.slane %v1718_v35, 4  ;;  %v2870_v53 = vld [vmem:[%s3539_s10 + $0x4c] sm:$0xf] }
  0x6c   : > { %3171 = vmatmul.mubr.bf16.vlgmr.msra.gmra.mrb[0].mxu1 %v4177_v48  ;;  %3267 = vmatmul.mubr.bf16.vlgmr.msra.gmra.mrb[0].mxu0 %v2919_v17  ;;  %v1732_v32 = vor.u32 %v1731_v2, %v1728_v41  ;;  %v1741_v62 = vrot.slane %v1739_v56, 4  ;;  %v1753_v59 = vshll.u32 %v2866_v51, 16  ;;  %v1759_v61 = vshll.u32 %v2867_v40, 16  ;;  %v2872_v2 = vld [vmem:[%s3539_s10 + $0x54] sm:$0xf] }
  0x6d   : > { %3174 = vmatprep.mubr.bf16.mxu1 %v4178_v54  ;;  %v1747_v25 = vrot.slane %v1745_v15, 5  ;;  %v1752_v29 = vrot.slane %v1750_v28, 4  ;;  %v1763_v12 = vshrl.u32 %v2867_v40, 16  ;;  %v1724_v22 = vsel %vm3580_vm2, %v1719_v50, %v1723_v11  ;;  %v2873_v15 = vld [vmem:[%s3539_s10 + $0x58] sm:$0xf] }
  0x6e   : > { %v1733_v27 = vrot.slane %v1732_v32, 4  ;;  %v1742_v26 = vor.u32 %v1741_v62, %v1737_v52  ;;  %v1755_v30 = vrot.slane %v1753_v59, 5  ;;  %v2920_v55 = vcombine.low %v1714_v31, %v1724_v22  ;;  %v2875_v22 = vld [vmem:[%s3539_s10 + $0x60] sm:$0xf] }
  0x6f   : > { %v1761_v19 = vrot.slane %v1759_v61, 5  ;;  %v1765_v24 = vrot.slane %v1763_v12, 4  ;;  %v1769_v14 = vshll.u32 %v2868_v42, 16  ;;  %v1774_v41 = vshrl.u32 %v2869_v13, 16  ;;  %v2874_v61 = vld [vmem:[%s3539_s10 + $0x5c] sm:$0x1] }
  0x70   : > { %v1738_v23 = vsel %vm3580_vm2, %v1733_v27, %v1737_v52  ;;  %v1743_v51 = vrot.slane %v1742_v26, 4  ;;  %v1756_v47 = vor.u32 %v1755_v30, %v1752_v29  ;;  %3270 = vmatprep.mubr.bf16.mxu0 %v2920_v55  ;;  %v1777_v17 = vshll.u32 %v2869_v13, 16  ;;  %v2876_v30 = vld [vmem:[%s3539_s10 + $0x64] sm:$0xf] }
  0x71   : > { %v1766_v7 = vor.u32 %v1765_v24, %v1761_v19  ;;  %v1771_v11 = vrot.slane %v1769_v14, 5  ;;  %v1783_v35 = vshll.u32 %v2870_v53, 16  ;;  %v1776_v48 = vrot.slane %v1774_v41, 4 }
  0x72   : > { %v1748_v56 = vsel %vm3580_vm2, %v1743_v51, %v1747_v25  ;;  %v1757_v40 = vrot.slane %v1756_v47, 4  ;;  %v1787_v31 = vshrl.u32 %v2870_v53, 16  ;;  %v4179_v52 = vcombine.low %v3619_v9, %v3622_v10 }
  0x73   : > { %v2921_v28 = vcombine.low %v1738_v23, %v1748_v56  ;;  %v1767_v54 = vrot.slane %v1766_v7, 4  ;;  %v1779_v50 = vrot.slane %v1777_v17, 5  ;;  %v1785_v32 = vrot.slane %v1783_v35, 5  ;;  %v2878_v35 = vld [vmem:[%s3539_s10 + $0x6c] sm:$0xf] }
  0x74   : > { %3175 = vmatmul.mubr.bf16.gmra.mrb[4].mxu1 %v4179_v52  ;;  %v4180_v62 = vcombine.low %v3643_v44, %v3646_v45  ;;  %v1762_v42 = vsel %vm3580_vm2, %v1757_v40, %v1761_v19  ;;  %v1789_v59 = vrot.slane %v1787_v31, 4  ;;  %v1793_v25 = vshll.u32 %v2871_v33, 16  ;;  %v2879_v31 = vld [vmem:[%s3539_s10 + $0x70] sm:$0xf] }
  0x75   : > { %v1798_v29 = vshrl.u32 %v2872_v2, 16  ;;  %3271 = vmatmul.mubr.bf16.gmra.mrb[4].mxu0 %v2921_v28  ;;  %v1772_v9 = vsel %vm3580_vm2, %v1767_v54, %v1771_v11  ;;  %v1780_v10 = vor.u32 %v1779_v50, %v1776_v48  ;;  %v1801_v12 = vshll.u32 %v2872_v2, 16  ;;  %v2877_v11 = vld [vmem:[%s3539_s10 + $0x68] sm:$0x1] }
  0x76   : > { %3178 = vmatprep.mubr.bf16.mxu1 %v4180_v62  ;;  %v1807_v13 = vshll.u32 %v2873_v15, 16  ;;  %v2922_v27 = vcombine.low %v1762_v42, %v1772_v9  ;;  %v1790_v26 = vor.u32 %v1789_v59, %v1785_v32  ;;  %v1795_v44 = vrot.slane %v1793_v25, 5 }
  0x77   : > { %v1800_v45 = vrot.slane %v1798_v29, 4  ;;  %v1781_v53 = vrot.slane %v1780_v10, 4  ;;  %v1803_v55 = vrot.slane %v1801_v12, 5  ;;  %v1811_v24 = vshrl.u32 %v2873_v15, 16 }
  0x78   : > { %v1809_v19 = vrot.slane %v1807_v13, 5  ;;  %3274 = vmatprep.mubr.bf16.mxu0 %v2922_v27  ;;  %v1791_v14 = vrot.slane %v1790_v26, 4  ;;  %v1817_v23 = vshll.u32 %v2874_v61, 16  ;;  %v1822_v51 = vshrl.u32 %v2875_v22, 16 }
  0x79   : > { %v1825_v47 = vshll.u32 %v2875_v22, 16  ;;  %v1786_v33 = vsel %vm3580_vm2, %v1781_v53, %v1785_v32  ;;  %v1804_v41 = vor.u32 %v1803_v55, %v1800_v45  ;;  %v1813_v7 = vrot.slane %v1811_v24, 4  ;;  %v2882_v45 = vld [vmem:[%s3539_s10 + $0x7c] sm:$0xf] }
  0x7a   : > { %v1831_v17 = vshll.u32 %v2876_v30, 16  ;;  %v1796_v2 = vsel %vm3580_vm2, %v1791_v14, %v1795_v44  ;;  %v1819_v56 = vrot.slane %v1817_v23, 5  ;;  %v1824_v40 = vrot.slane %v1822_v51, 4  ;;  %v2883_v23 = vld [vmem:[%s3539_s10 + $0x80] sm:$0x1] }
  0x7b   : > { %v1827_v48 = vrot.slane %v1825_v47, 5  ;;  %v4181_v15 = vcombine.low %v3661_v0, %v3668_v4  ;;  %v2923_v52 = vcombine.low %v1786_v33, %v1796_v2  ;;  %v1805_v28 = vrot.slane %v1804_v41, 4  ;;  %v2880_v4 = vld [vmem:[%s3539_s10 + $0x74] sm:$0x1] }
  0x7c   : > { %v1814_v54 = vor.u32 %v1813_v7, %v1809_v19  ;;  %v1833_v50 = vrot.slane %v1831_v17, 5  ;;  %v4182_v32 = vcombine.low %v3685_v36, %v3694_v43  ;;  %v1835_v42 = vshrl.u32 %v2876_v30, 16  ;;  %v2881_v43 = vld [vmem:[%s3539_s10 + $0x78] sm:$0xf] }
  0x7d   : > { %3179 = vmatmul.mubr.bf16.gmra.mrb[8].mxu1 %v4181_v15  ;;  %v1828_v62 = vor.u32 %v1827_v48, %v1824_v40  ;;  %v1841_v59 = vshll.u32 %v2877_v11, 16  ;;  %v1846_v25 = vshrl.u32 %v2878_v35, 16  ;;  %3275 = vmatmul.mubr.bf16.gmra.mrb[8].mxu0 %v2923_v52  ;;  %v1810_v29 = vsel %vm3580_vm2, %v1805_v28, %v1809_v19  ;;  %v2884_v48 = vld [vmem:[%s3539_s10 + $0x84] sm:$0xf] }
  0x7e   : > { %3182 = vmatprep.mubr.bf16.mxu1 %v4182_v32  ;;  %v1815_v0 = vrot.slane %v1814_v54, 4  ;;  %v1849_v9 = vshll.u32 %v2878_v35, 16  ;;  %v1855_v10 = vshll.u32 %v2879_v31, 16  ;;  %v1837_v12 = vrot.slane %v1835_v42, 4 }
  0x7f   : > { %v1829_v61 = vrot.slane %v1828_v62, 4  ;;  %v1843_v13 = vrot.slane %v1841_v59, 5  ;;  %v1848_v36 = vrot.slane %v1846_v25, 4  ;;  %v1859_v44 = vshrl.u32 %v2879_v31, 16  ;;  %v2886_v25 = vld [vmem:[%s3539_s10 + $0x8c] sm:$0x1] }
  0x80   : > { %v1820_v22 = vsel %vm3580_vm2, %v1815_v0, %v1819_v56  ;;  %v1851_v27 = vrot.slane %v1849_v9, 5  ;;  %v1857_v26 = vrot.slane %v1855_v10, 5  ;;  %v1838_v55 = vor.u32 %v1837_v12, %v1833_v50  ;;  %v2887_v10 = vld [vmem:[%s3539_s10 + $0x90] sm:$0xf] }
  0x81   : > { %v2924_v30 = vcombine.low %v1810_v29, %v1820_v22  ;;  %v1834_v53 = vsel %vm3580_vm2, %v1829_v61, %v1833_v50  ;;  %v1865_v19 = vshll.u32 %v2880_v4, 16  ;;  %v1861_v14 = vrot.slane %v1859_v44, 4  ;;  %v2885_v50 = vld [vmem:[%s3539_s10 + $0x88] sm:$0xf] }
  0x82   : > { %v1852_v24 = vor.u32 %v1851_v27, %v1848_v36  ;;  %v1870_v51 = vshrl.u32 %v2881_v43, 16  ;;  %v1873_v47 = vshll.u32 %v2881_v43, 16  ;;  %v1839_v33 = vrot.slane %v1838_v55, 4  ;;  %v2888_v43 = vld [vmem:[%s3539_s10 + $0x94] sm:$0xf] }
  0x83   : > { %3278 = vmatprep.mubr.bf16.mxu0 %v2924_v30  ;;  %v1867_v41 = vrot.slane %v1865_v19, 5  ;;  %v1879_v7 = vshll.u32 %v2882_v45, 16  ;;  %v1883_v11 = vshrl.u32 %v2882_v45, 16  ;;  %v4183_v17 = vcombine.low %v3705_v63, %v3708_v1 }
  0x84   : > { %v1853_v35 = vrot.slane %v1852_v24, 4  ;;  %v1862_v2 = vor.u32 %v1861_v14, %v1857_v26  ;;  %v1872_v56 = vrot.slane %v1870_v51, 4  ;;  %v1875_v40 = vrot.slane %v1873_v47, 5  ;;  %v2890_v24 = vld [vmem:[%s3539_s10 + $0x9c] sm:$0xf] }
  0x85   : > { %3183 = vmatmul.mubr.bf16.gmra.mrb[12].mxu1 %v4183_v17  ;;  %v1844_v31 = vsel %vm3580_vm2, %v1839_v33, %v1843_v13  ;;  %v4184_v15 = vcombine.low %v3728_v39, %v3733_v46  ;;  %v1881_v52 = vrot.slane %v1879_v7, 5  ;;  %v1885_v28 = vrot.slane %v1883_v11, 4 }
  0x86   : > { %v1889_v54 = vshll.u32 %v2883_v23, 16  ;;  %v2925_v63 = vcombine.low %v1834_v53, %v1844_v31  ;;  %v1858_v1 = vsel %vm3580_vm2, %v1853_v35, %v1857_v26  ;;  %v1863_v32 = vrot.slane %v1862_v2, 4  ;;  %v2889_v53 = vld [vmem:[%s3539_s10 + $0x98] sm:$0x1]  ;;  %v2891_v2 = vld [vmem:[%s3539_s10 + $0xa0] sm:$0xf] }
  0x87   : > { %3186 = vmatprep.mubr.bf16.mxu1 %v4184_v15  ;;  %v1876_v62 = vor.u32 %v1875_v40, %v1872_v56  ;;  %v1886_v42 = vor.u32 %v1885_v28, %v1881_v52  ;;  %v1894_v29 = vshrl.u32 %v2884_v48, 16  ;;  %v1897_v0 = vshll.u32 %v2884_v48, 16 }
  0x88   : > { %v1891_v59 = vrot.slane %v1889_v54, 5  ;;  %3279 = vmatmul.mubr.bf16.gmra.mrb[12].mxu0 %v2925_v63  ;;  %v1868_v39 = vsel %vm3580_vm2, %v1863_v32, %v1867_v41  ;;  %v1903_v4 = vshll.u32 %v2885_v50, 16  ;;  %v1907_v9 = vshrl.u32 %v2885_v50, 16 }
  0x89   : > { %v1877_v46 = vrot.slane %v1876_v62, 4  ;;  %v2926_v61 = vcombine.low %v1858_v1, %v1868_v39  ;;  %v1887_v12 = vrot.slane %v1886_v42, 4  ;;  %v1896_v13 = vrot.slane %v1894_v29, 4 }
  0x8a   : > { %v1899_v36 = vrot.slane %v1897_v0, 5  ;;  %v1905_v27 = vrot.slane %v1903_v4, 5  ;;  %v1909_v26 = vrot.slane %v1907_v9, 4  ;;  %v1913_v44 = vshll.u32 %v2886_v25, 16 }
  0x8b   : > { %v1882_v22 = vsel %vm3580_vm2, %v1877_v46, %v1881_v52  ;;  %3282 = vmatprep.mubr.bf16.mxu0 %v2926_v61  ;;  %v1892_v45 = vsel %vm3580_vm2, %v1887_v12, %v1891_v59  ;;  %v1918_v55 = vshrl.u32 %v2887_v10, 16  ;;  %v1921_v19 = vshll.u32 %v2887_v10, 16  ;;  %v2892_v52 = vld [vmem:[%s3539_s10 + $0xa4] sm:$0x1]  ;;  %v2894_v59 = vld [vmem:[%s3539_s10 + $0xac] sm:$0xf] }
  0x8c   : > { %v1900_v30 = vor.u32 %v1899_v36, %v1896_v13  ;;  %v4185_v14 = vcombine.low %v3745_v6, %v3752_v16  ;;  %v2927_v23 = vcombine.low %v1882_v22, %v1892_v45  ;;  %v1910_v51 = vor.u32 %v1909_v26, %v1905_v27  ;;  %v2895_v10 = vld [vmem:[%s3539_s10 + $0xb0] sm:$0x1] }
  0x8d   : > { %v1915_v47 = vrot.slane %v1913_v44, 5  ;;  %v1927_v33 = vshll.u32 %v2888_v43, 16  ;;  %v4186_v41 = vcombine.low %v3773_v57, %v3776_v58  ;;  %v1920_v11 = vrot.slane %v1918_v55, 4  ;;  %v2893_v57 = vld [vmem:[%s3539_s10 + $0xa8] sm:$0xf] }
  0x8e   : > { %3187 = vmatmul.mubr.bf16.gmra.mrb[16].mxu1 %v4185_v14  ;;  %v1901_v7 = vrot.slane %v1900_v30, 4  ;;  %v1923_v17 = vrot.slane %v1921_v19, 5  ;;  %v1931_v35 = vshrl.u32 %v2888_v43, 16  ;;  %v1911_v56 = vrot.slane %v1910_v51, 4  ;;  %v2897_v55 = vld [vmem:[%s3539_s10 + $0xb8] sm:$0xf] }
  0x8f   : > { %3190 = vmatprep.mubr.bf16.mxu1 %v4186_v41  ;;  %v1929_v40 = vrot.slane %v1927_v33, 5  ;;  %v1937_v48 = vshll.u32 %v2889_v53, 16  ;;  %v1942_v6 = vshrl.u32 %v2890_v24, 16  ;;  %v1945_v28 = vshll.u32 %v2890_v24, 16 }
  0x90   : > { %v1906_v16 = vsel %vm3580_vm2, %v1901_v7, %v1905_v27  ;;  %v1924_v31 = vor.u32 %v1923_v17, %v1920_v11  ;;  %v1933_v15 = vrot.slane %v1931_v35, 4  ;;  %3283 = vmatmul.mubr.bf16.gmra.mrb[16].mxu0 %v2927_v23  ;;  %v1916_v58 = vsel %vm3580_vm2, %v1911_v56, %v1915_v47  ;;  %v2896_v27 = vld [vmem:[%s3539_s10 + $0xb4] sm:$0xf]  ;;  %v2898_v47 = vld [vmem:[%s3539_s10 + $0xbc] sm:$0x1] }
  0x91   : > { %v1939_v54 = vrot.slane %v1937_v48, 5  ;;  %v1944_v50 = vrot.slane %v1942_v6, 4  ;;  %v1951_v63 = vshll.u32 %v2891_v2, 16  ;;  %v2928_v1 = vcombine.low %v1906_v16, %v1916_v58  ;;  %v2899_v56 = vld [vmem:[%s3539_s10 + $0xc0] sm:$0xf] }
  0x92   : > { %v1925_v32 = vrot.slane %v1924_v31, 4  ;;  %v1934_v62 = vor.u32 %v1933_v15, %v1929_v40  ;;  %v1947_v42 = vrot.slane %v1945_v28, 5  ;;  %v1955_v29 = vshrl.u32 %v2891_v2, 16  ;;  %v2900_v31 = vld [vmem:[%s3539_s10 + $0xc4] sm:$0xf] }
  0x93   : > { %v1953_v25 = vrot.slane %v1951_v63, 5  ;;  %v1961_v0 = vshll.u32 %v2892_v52, 16  ;;  %v1966_v39 = vshrl.u32 %v2893_v57, 16  ;;  %3286 = vmatprep.mubr.bf16.mxu0 %v2928_v1  ;;  %v1969_v61 = vshll.u32 %v2893_v57, 16  ;;  %v2901_v63 = vld [vmem:[%s3539_s10 + $0xc8] sm:$0x1] }
  0x94   : > { %v1930_v46 = vsel %vm3580_vm2, %v1925_v32, %v1929_v40  ;;  %v1935_v4 = vrot.slane %v1934_v62, 4  ;;  %v1948_v9 = vor.u32 %v1947_v42, %v1944_v50  ;;  %v4187_v12 = vcombine.low %v3787_v21, %v3794_v34 }
  0x95   : > { %v1957_v13 = vrot.slane %v1955_v29, 4  ;;  %v1963_v36 = vrot.slane %v1961_v0, 5  ;;  %v1968_v43 = vrot.slane %v1966_v39, 4  ;;  %v1975_v22 = vshll.u32 %v2894_v59, 16 }
  0x96   : > { %3191 = vmatmul.mubr.bf16.gmra.mrb[20].mxu1 %v4187_v12  ;;  %v1940_v26 = vsel %vm3580_vm2, %v1935_v4, %v1939_v54  ;;  %v4188_v44 = vcombine.low %v3813_v20, %v3821_v38  ;;  %v1949_v45 = vrot.slane %v1948_v9, 4  ;;  %v1971_v30 = vrot.slane %v1969_v61, 5 }
  0x97   : > { %v1979_v53 = vshrl.u32 %v2894_v59, 16  ;;  %v2929_v19 = vcombine.low %v1930_v46, %v1940_v26  ;;  %v1958_v21 = vor.u32 %v1957_v13, %v1953_v25  ;;  %v1977_v34 = vrot.slane %v1975_v22, 5 }
  0x98   : > { %3194 = vmatprep.mubr.bf16.mxu1 %v4188_v44  ;;  %v1985_v24 = vshll.u32 %v2895_v10, 16  ;;  %v1954_v14 = vsel %vm3580_vm2, %v1949_v45, %v1953_v25  ;;  %v1972_v23 = vor.u32 %v1971_v30, %v1968_v43  ;;  %v1990_v33 = vshrl.u32 %v2896_v27, 16 }
  0x99   : > { %v1981_v51 = vrot.slane %v1979_v53, 4  ;;  %3287 = vmatmul.mubr.bf16.gmra.mrb[20].mxu0 %v2929_v19  ;;  %v1959_v20 = vrot.slane %v1958_v21, 4  ;;  %v1993_v41 = vshll.u32 %v2896_v27, 16  ;;  %v1999_v7 = vshll.u32 %v2897_v55, 16 }
  0x9a   : > { %v1987_v38 = vrot.slane %v1985_v24, 5  ;;  %v1973_v11 = vrot.slane %v1972_v23, 4  ;;  %v1992_v35 = vrot.slane %v1990_v33, 4  ;;  %v2003_v2 = vshrl.u32 %v2897_v55, 16  ;;  %v4064_v55 = vld [vmem:[%s4173_s2] ss:$0 sm:$0xff] }
  0x9b   : > { %v1982_v17 = vor.u32 %v1981_v51, %v1977_v34  ;;  %v1964_v40 = vsel %vm3580_vm2, %v1959_v20, %v1963_v36  ;;  %v1995_v48 = vrot.slane %v1993_v41, 5  ;;  %v2001_v6 = vrot.slane %v1999_v7, 5 }
  0x9c   : > { %v2009_v16 = vshll.u32 %v2898_v47, 16  ;;  %v2930_v15 = vcombine.low %v1954_v14, %v1964_v40  ;;  %v1978_v52 = vsel %vm3580_vm2, %v1973_v11, %v1977_v34  ;;  %v2005_v57 = vrot.slane %v2003_v2, 4 }
  0x9d   : > { %v1983_v28 = vrot.slane %v1982_v17, 4  ;;  %v4189_v58 = vcombine.low %v3831_v3, %v3834_v8  ;;  %v1996_v54 = vor.u32 %v1995_v48, %v1992_v35  ;;  %v2014_v1 = vshrl.u32 %v2899_v56, 16 }
  0x9e   : > { %v2011_v50 = vrot.slane %v2009_v16, 5  ;;  %v2017_v32 = vshll.u32 %v2899_v56, 16  ;;  %3290 = vmatprep.mubr.bf16.mxu0 %v2930_v15  ;;  %v4190_v42 = vcombine.low %v3854_v18, %v3859_v5  ;;  %v2006_v59 = vor.u32 %v2005_v57, %v2001_v6 }
  0x9f   : > { %3195 = vmatmul.mubr.bf16.gmra.mrb[24].mxu1 %v4189_v58  ;;  %v1988_v62 = vsel %vm3580_vm2, %v1983_v28, %v1987_v38  ;;  %v2023_v25 = vshll.u32 %v2900_v31, 16  ;;  %v2027_v29 = vshrl.u32 %v2900_v31, 16  ;;  %v1997_v39 = vrot.slane %v1996_v54, 4 }
  0xa0   : > { %3198 = vmatprep.mubr.bf16.mxu1 %v4190_v42  ;;  %v2931_v0 = vcombine.low %v1978_v52, %v1988_v62  ;;  %v2016_v3 = vrot.slane %v2014_v1, 4  ;;  %v2019_v8 = vrot.slane %v2017_v32, 5  ;;  %v2007_v46 = vrot.slane %v2006_v59, 4 }
  0xa1   : > { %v2025_v4 = vrot.slane %v2023_v25, 5  ;;  %v2029_v9 = vrot.slane %v2027_v29, 4  ;;  %v2033_v10 = vshll.u32 %v2901_v63, 16  ;;  %v2002_v61 = vsel %vm3580_vm2, %v1997_v39, %v2001_v6 }
  0xa2   : > { %3291 = vmatmul.mubr.bf16.gmra.mrb[24].mxu0 %v2931_v0  ;;  %v2020_v12 = vor.u32 %v2019_v8, %v2016_v3  ;;  %v2012_v18 = vsel %vm3580_vm2, %v2007_v46, %v2011_v50  ;;  %v4191_v27 = vcombine.low %v3871_v60, %v3879_v49 }
  0xa3   : > { %v2030_v5 = vor.u32 %v2029_v9, %v2025_v4  ;;  %v2035_v13 = vrot.slane %v2033_v10, 5  ;;  %v2932_v36 = vcombine.low %v2002_v61, %v2012_v18 }
  0xa4   : > { %v2021_v43 = vrot.slane %v2020_v12, 4 }
  0xa5   : > { %v2031_v22 = vrot.slane %v2030_v5, 4  ;;  %3294 = vmatprep.mubr.bf16.mxu0 %v2932_v36 }
  0xa6   : > { %v2026_v26 = vsel %vm3580_vm2, %v2021_v43, %v2025_v4 }
  0xa7   : > { %3199 = vmatmul.mubr.bf16.gmra.mrb[28].mxu1 %v4191_v27  ;;  %v2036_v44 = vsel %vm3580_vm2, %v2031_v22, %v2035_v13 }
  0xa8   : > { %v2933_v45 = vcombine.low %v2026_v26, %v2036_v44 }
  0xaa   : > { %3295 = vmatmul.mubr.bf16.gmra.mrb[28].mxu0 %v2933_v45 }
 0x13f   : > { %v3172_v30 = vpop.f32.mrb[0].mxu1  ;;  %v3268_v53 = vpop.f32.mrb[0].mxu0 }
 0x140   : > { %v1091_v19 = vpop.f32.mrb[1].mxu1  ;;  %v3298_v21 = vadd.f32 %v3268_v53, %v3172_v30  ;;  %v2200_v60 = vpop.f32.mrb[1].mxu0 }
 0x141   : > { %v3173_v49 = vpop.f32.mrb[2].mxu1  ;;  %v3299_v34 = vadd.f32 %v2200_v60, %v1091_v19  ;;  %v3269_v24 = vpop.f32.mrb[2].mxu0 }
 0x142   : > { %v1094_v14 = vpop.f32.mrb[3].mxu1  ;;  %v2368_v37 = vadd.f32 %v3298_v21, %v4064_v55  ;;  %v3300_v23 = vadd.f32 %v3269_v24, %v3173_v49  ;;  %v2203_v51 = vpop.f32.mrb[3].mxu0 }
 0x143   : > { %v2366_v47 = vadd.f32 %v3299_v34, %v4064_v55  ;;  %v3301_v33 = vadd.f32 %v2203_v51, %v1094_v14 }
 0x144   : > { %vm2400_vm3 = vcmp.ge.f32.partialorder %v2368_v37, 0.0  ;;  %v2432_v20 = vmul.f32 0.2, %v2368_v37  ;;  %v2369_v38 = vadd.f32 %v3300_v23, %v4064_v55 }
 0x145   : > { %vm2398_vm4 = vcmp.ge.f32.partialorder %v2366_v47, 0.0  ;;  %v2430_v41 = vmul.f32 0.2, %v2366_v47  ;;  %v2367_v7 = vadd.f32 %v3301_v33, %v4064_v55 }
 0x146   : > { %v2464_v11 = vsel %vm2400_vm3, %v2368_v37, %v2432_v20  ;;  %vm2401_vm6 = vcmp.ge.f32.partialorder %v2369_v38, 0.0  ;;  %v2433_v17 = vmul.f32 0.2, %v2369_v38 }
 0x147   : > { %v3176_v35 = vpop.f32.mrb[4].mxu1  ;;  %v2980_v2 = vpack.c.bf16 %v2464_v11, %v2464_v11  ;;  %v2462_v56 = vsel %vm2398_vm4, %v2366_v47, %v2430_v41  ;;  %vm2399_vm7 = vcmp.ge.f32.partialorder %v2367_v7, 0.0  ;;  %v2431_v40 = vmul.f32 0.2, %v2367_v7 }
 0x148   : > { %v1107_v48 = vpop.f32.mrb[5].mxu1  ;;  %v2978_v6 = vpack.c.bf16 %v2462_v56, %v2462_v56  ;;  %v2465_v16 = vsel %vm2401_vm6, %v2369_v38, %v2433_v17  ;;  %v3272_v31 = vpop.f32.mrb[4].mxu0 }
 0x149   : > { %v3177_v15 = vpop.f32.mrb[6].mxu1  ;;  %2625 = vst.msk [vmem:[%s4074_s11 + $0x8] sm:$0xf] %vm2622_vm5, %v2980_v2  ;;  %v2981_v52 = vpack.c.bf16 %v2465_v16, %v2465_v16  ;;  %v2463_v28 = vsel %vm2399_vm7, %v2367_v7, %v2431_v40  ;;  %v3302_v57 = vadd.f32 %v3272_v31, %v3176_v35  ;;  %v2216_v58 = vpop.f32.mrb[5].mxu0 }
 0x14a   : > { %v1110_v54 = vpop.f32.mrb[7].mxu1  ;;  %2623 = vst.msk [vmem:[%s4074_s11] sm:$0xf] %vm2622_vm5, %v2978_v6  ;;  %v2979_v50 = vpack.c.bf16 %v2463_v28, %v2463_v28  ;;  %v3303_v63 = vadd.f32 %v2216_v58, %v1107_v48  ;;  %v3273_v1 = vpop.f32.mrb[6].mxu0 }
 0x14b   : > { %2626 = vst.msk [vmem:[%s4074_s11 + $0xc] sm:$0xf] %vm2622_vm5, %v2981_v52  ;;  %v2372_v32 = vadd.f32 %v3302_v57, %v4064_v55  ;;  %v3304_v62 = vadd.f32 %v3273_v1, %v3177_v15  ;;  %v2219_v42 = vpop.f32.mrb[7].mxu0 }
 0x14c   : > { %2624 = vst.msk [vmem:[%s4074_s11 + $0x4] sm:$0xf] %vm2622_vm5, %v2979_v50  ;;  %v2370_v59 = vadd.f32 %v3303_v63, %v4064_v55  ;;  %v3305_v25 = vadd.f32 %v2219_v42, %v1110_v54 }
 0x14d   : > { %vm2404_vm8 = vcmp.ge.f32.partialorder %v2372_v32, 0.0  ;;  %v2436_v29 = vmul.f32 0.2, %v2372_v32  ;;  %v2373_v0 = vadd.f32 %v3304_v62, %v4064_v55 }
 0x14e   : > { %vm2402_vm9 = vcmp.ge.f32.partialorder %v2370_v59, 0.0  ;;  %v2434_v39 = vmul.f32 0.2, %v2370_v59  ;;  %v2371_v3 = vadd.f32 %v3305_v25, %v4064_v55 }
 0x14f   : > { %v2468_v46 = vsel %vm2404_vm8, %v2372_v32, %v2436_v29  ;;  %vm2405_vm10 = vcmp.ge.f32.partialorder %v2373_v0, 0.0  ;;  %v2437_v4 = vmul.f32 0.2, %v2373_v0 }
 0x150   : > { %v3180_v8 = vpop.f32.mrb[8].mxu1  ;;  %v2984_v10 = vpack.c.bf16 %v2468_v46, %v2468_v46  ;;  %v2466_v61 = vsel %vm2402_vm9, %v2370_v59, %v2434_v39  ;;  %vm2403_vm11 = vcmp.ge.f32.partialorder %v2371_v3, 0.0  ;;  %v2435_v12 = vmul.f32 0.2, %v2371_v3  ;;  %v3276_v18 = vpop.f32.mrb[8].mxu0 }
 0x151   : > { %v1123_v9 = vpop.f32.mrb[9].mxu1  ;;  %v2982_v13 = vpack.c.bf16 %v2466_v61, %v2466_v61  ;;  %v2469_v36 = vsel %vm2405_vm10, %v2373_v0, %v2437_v4  ;;  %v3306_v43 = vadd.f32 %v3276_v18, %v3180_v8  ;;  %v2232_v22 = vpop.f32.mrb[9].mxu0 }
 0x152   : > { %v3181_v5 = vpop.f32.mrb[10].mxu1  ;;  %2629 = vst.msk [vmem:[%s4074_s11 + $0x18] sm:$0xf] %vm2622_vm5, %v2984_v10  ;;  %v2985_v26 = vpack.c.bf16 %v2469_v36, %v2469_v36  ;;  %v2467_v44 = vsel %vm2403_vm11, %v2371_v3, %v2435_v12  ;;  %v3307_v45 = vadd.f32 %v2232_v22, %v1123_v9  ;;  %v3277_v30 = vpop.f32.mrb[10].mxu0 }
 0x153   : > { %v1126_v27 = vpop.f32.mrb[11].mxu1  ;;  %2627 = vst.msk [vmem:[%s4074_s11 + $0x10] sm:$0xf] %vm2622_vm5, %v2982_v13  ;;  %v2983_v53 = vpack.c.bf16 %v2467_v44, %v2467_v44  ;;  %v2376_v19 = vadd.f32 %v3306_v43, %v4064_v55  ;;  %v3308_v21 = vadd.f32 %v3277_v30, %v3181_v5  ;;  %v2235_v60 = vpop.f32.mrb[11].mxu0 }
 0x154   : > { %2630 = vst.msk [vmem:[%s4074_s11 + $0x1c] sm:$0xf] %vm2622_vm5, %v2985_v26  ;;  %v2374_v49 = vadd.f32 %v3307_v45, %v4064_v55  ;;  %v3309_v34 = vadd.f32 %v2235_v60, %v1126_v27 }
 0x155   : > { %2628 = vst.msk [vmem:[%s4074_s11 + $0x14] sm:$0xf] %vm2622_vm5, %v2983_v53  ;;  %vm2408_vm12 = vcmp.ge.f32.partialorder %v2376_v19, 0.0  ;;  %v2440_v24 = vmul.f32 0.2, %v2376_v19  ;;  %v2377_v14 = vadd.f32 %v3308_v21, %v4064_v55 }
 0x156   : > { %vm2406_vm13 = vcmp.ge.f32.partialorder %v2374_v49, 0.0  ;;  %v2438_v37 = vmul.f32 0.2, %v2374_v49  ;;  %v2375_v23 = vadd.f32 %v3309_v34, %v4064_v55 }
 0x157   : > { %v2472_v47 = vsel %vm2408_vm12, %v2376_v19, %v2440_v24  ;;  %vm2409_vm14 = vcmp.ge.f32.partialorder %v2377_v14, 0.0  ;;  %v2441_v33 = vmul.f32 0.2, %v2377_v14 }
 0x158   : > { %v3184_v51 = vpop.f32.mrb[12].mxu1  ;;  %v2988_v38 = vpack.c.bf16 %v2472_v47, %v2472_v47  ;;  %v2470_v41 = vsel %vm2406_vm13, %v2374_v49, %v2438_v37  ;;  %vm2407_vm15 = vcmp.ge.f32.partialorder %v2375_v23, 0.0  ;;  %v2439_v7 = vmul.f32 0.2, %v2375_v23 }
 0x159   : > { %v1139_v20 = vpop.f32.mrb[13].mxu1  ;;  %v2986_v17 = vpack.c.bf16 %v2470_v41, %v2470_v41  ;;  %v2473_v35 = vsel %vm2409_vm14, %v2377_v14, %v2441_v33 }
 0x15a   : > { %v3185_v11 = vpop.f32.mrb[14].mxu1  ;;  %2633 = vst.msk [vmem:[%s4074_s11 + $0x28] sm:$0xf] %vm2622_vm5, %v2988_v38  ;;  %v2989_v56 = vpack.c.bf16 %v2473_v35, %v2473_v35  ;;  %v2471_v40 = vsel %vm2407_vm15, %v2375_v23, %v2439_v7 }
 0x15b   : > { %v1142_v2 = vpop.f32.mrb[15].mxu1  ;;  %v3280_v48 = vpop.f32.mrb[12].mxu0  ;;  %2631 = vst.msk [vmem:[%s4074_s11 + $0x20] sm:$0xf] %vm2622_vm5, %v2986_v17  ;;  %v2987_v6 = vpack.c.bf16 %v2471_v40, %v2471_v40 }
 0x15c   : > { %v3310_v16 = vadd.f32 %v3280_v48, %v3184_v51  ;;  %v2248_v31 = vpop.f32.mrb[13].mxu0  ;;  %2634 = vst.msk [vmem:[%s4074_s11 + $0x2c] sm:$0xf] %vm2622_vm5, %v2989_v56 }
 0x15d   : > { %v3311_v15 = vadd.f32 %v2248_v31, %v1139_v20  ;;  %v3281_v52 = vpop.f32.mrb[14].mxu0  ;;  %2632 = vst.msk [vmem:[%s4074_s11 + $0x24] sm:$0xf] %vm2622_vm5, %v2987_v6 }
 0x15e   : > { %v2380_v28 = vadd.f32 %v3310_v16, %v4064_v55  ;;  %v3312_v57 = vadd.f32 %v3281_v52, %v3185_v11  ;;  %v2251_v58 = vpop.f32.mrb[15].mxu0 }
 0x15f   : > { %v2378_v54 = vadd.f32 %v3311_v15, %v4064_v55  ;;  %v3313_v50 = vadd.f32 %v2251_v58, %v1142_v2 }
 0x160   : > { %vm2412_vm0 = vcmp.ge.f32.partialorder %v2380_v28, 0.0  ;;  %v2444_v1 = vmul.f32 0.2, %v2380_v28  ;;  %v2381_v32 = vadd.f32 %v3312_v57, %v4064_v55 }
 0x161   : > { %v3188_v63 = vpop.f32.mrb[16].mxu1  ;;  %vm2410_vm1 = vcmp.ge.f32.partialorder %v2378_v54, 0.0  ;;  %v2442_v42 = vmul.f32 0.2, %v2378_v54  ;;  %v2379_v59 = vadd.f32 %v3313_v50, %v4064_v55 }
 0x162   : > { %v1155_v62 = vpop.f32.mrb[17].mxu1  ;;  %v2476_v29 = vsel %vm2412_vm0, %v2380_v28, %v2444_v1  ;;  %vm2413_vm2 = vcmp.ge.f32.partialorder %v2381_v32, 0.0  ;;  %v2445_v0 = vmul.f32 0.2, %v2381_v32 }
 0x163   : > { %v3189_v25 = vpop.f32.mrb[18].mxu1  ;;  %v2992_v3 = vpack.c.bf16 %v2476_v29, %v2476_v29  ;;  %v2474_v8 = vsel %vm2410_vm1, %v2378_v54, %v2442_v42  ;;  %vm2411_vm3 = vcmp.ge.f32.partialorder %v2379_v59, 0.0  ;;  %v2443_v46 = vmul.f32 0.2, %v2379_v59  ;;  %v3284_v4 = vpop.f32.mrb[16].mxu0 }
 0x164   : > { %v1158_v39 = vpop.f32.mrb[19].mxu1  ;;  %v2990_v9 = vpack.c.bf16 %v2474_v8, %v2474_v8  ;;  %v2477_v10 = vsel %vm2413_vm2, %v2381_v32, %v2445_v0  ;;  %v3314_v61 = vadd.f32 %v3284_v4, %v3188_v63  ;;  %v2264_v12 = vpop.f32.mrb[17].mxu0 }
 0x165   : > { %2637 = vst.msk [vmem:[%s4074_s11 + $0x38] sm:$0xf] %vm2622_vm5, %v2992_v3  ;;  %v2993_v18 = vpack.c.bf16 %v2477_v10, %v2477_v10  ;;  %v2475_v5 = vsel %vm2411_vm3, %v2379_v59, %v2443_v46  ;;  %v3315_v13 = vadd.f32 %v2264_v12, %v1155_v62  ;;  %v3285_v36 = vpop.f32.mrb[18].mxu0 }
 0x166   : > { %2635 = vst.msk [vmem:[%s4074_s11 + $0x30] sm:$0xf] %vm2622_vm5, %v2990_v9  ;;  %v2991_v43 = vpack.c.bf16 %v2475_v5, %v2475_v5  ;;  %v2384_v22 = vadd.f32 %v3314_v61, %v4064_v55  ;;  %v3316_v27 = vadd.f32 %v3285_v36, %v3189_v25  ;;  %v2267_v26 = vpop.f32.mrb[19].mxu0 }
 0x167   : > { %2638 = vst.msk [vmem:[%s4074_s11 + $0x3c] sm:$0xf] %vm2622_vm5, %v2993_v18  ;;  %v2382_v44 = vadd.f32 %v3315_v13, %v4064_v55  ;;  %v3317_v45 = vadd.f32 %v2267_v26, %v1158_v39 }
 0x168   : > { %2636 = vst.msk [vmem:[%s4074_s11 + $0x34] sm:$0xf] %vm2622_vm5, %v2991_v43  ;;  %vm2416_vm4 = vcmp.ge.f32.partialorder %v2384_v22, 0.0  ;;  %v2448_v53 = vmul.f32 0.2, %v2384_v22  ;;  %v2385_v19 = vadd.f32 %v3316_v27, %v4064_v55 }
 0x169   : > { %v3192_v30 = vpop.f32.mrb[20].mxu1  ;;  %vm2414_vm6 = vcmp.ge.f32.partialorder %v2382_v44, 0.0  ;;  %v2446_v60 = vmul.f32 0.2, %v2382_v44  ;;  %v2383_v49 = vadd.f32 %v3317_v45, %v4064_v55 }
 0x16a   : > { %v1171_v21 = vpop.f32.mrb[21].mxu1  ;;  %v2480_v24 = vsel %vm2416_vm4, %v2384_v22, %v2448_v53  ;;  %vm2417_vm7 = vcmp.ge.f32.partialorder %v2385_v19, 0.0  ;;  %v2449_v14 = vmul.f32 0.2, %v2385_v19 }
 0x16b   : > { %v3193_v34 = vpop.f32.mrb[22].mxu1  ;;  %v2996_v23 = vpack.c.bf16 %v2480_v24, %v2480_v24  ;;  %v2478_v51 = vsel %vm2414_vm6, %v2382_v44, %v2446_v60  ;;  %vm2415_vm8 = vcmp.ge.f32.partialorder %v2383_v49, 0.0  ;;  %v2447_v47 = vmul.f32 0.2, %v2383_v49 }
 0x16c   : > { %v1174_v37 = vpop.f32.mrb[23].mxu1  ;;  %v3288_v33 = vpop.f32.mrb[20].mxu0  ;;  %v2994_v20 = vpack.c.bf16 %v2478_v51, %v2478_v51  ;;  %v2481_v38 = vsel %vm2417_vm7, %v2385_v19, %v2449_v14 }
 0x16d   : > { %v3318_v41 = vadd.f32 %v3288_v33, %v3192_v30  ;;  %v2280_v7 = vpop.f32.mrb[21].mxu0  ;;  %2641 = vst.msk [vmem:[%s4074_s11 + $0x48] sm:$0xf] %vm2622_vm5, %v2996_v23  ;;  %v2997_v11 = vpack.c.bf16 %v2481_v38, %v2481_v38  ;;  %v2479_v17 = vsel %vm2415_vm8, %v2383_v49, %v2447_v47 }
 0x16e   : > { %v3319_v35 = vadd.f32 %v2280_v7, %v1171_v21  ;;  %v3289_v2 = vpop.f32.mrb[22].mxu0  ;;  %2639 = vst.msk [vmem:[%s4074_s11 + $0x40] sm:$0xf] %vm2622_vm5, %v2994_v20  ;;  %v2995_v56 = vpack.c.bf16 %v2479_v17, %v2479_v17 }
 0x16f   : > { %v2388_v40 = vadd.f32 %v3318_v41, %v4064_v55  ;;  %v3320_v48 = vadd.f32 %v3289_v2, %v3193_v34  ;;  %v2283_v6 = vpop.f32.mrb[23].mxu0  ;;  %2642 = vst.msk [vmem:[%s4074_s11 + $0x4c] sm:$0xf] %vm2622_vm5, %v2997_v11 }
 0x170   : > { %v2386_v16 = vadd.f32 %v3319_v35, %v4064_v55  ;;  %v3321_v31 = vadd.f32 %v2283_v6, %v1174_v37  ;;  %2640 = vst.msk [vmem:[%s4074_s11 + $0x44] sm:$0xf] %vm2622_vm5, %v2995_v56 }
 0x171   : > { %vm2420_vm9 = vcmp.ge.f32.partialorder %v2388_v40, 0.0  ;;  %v2452_v52 = vmul.f32 0.2, %v2388_v40  ;;  %v2389_v28 = vadd.f32 %v3320_v48, %v4064_v55 }
 0x172   : > { %v3196_v15 = vpop.f32.mrb[24].mxu1  ;;  %vm2418_vm10 = vcmp.ge.f32.partialorder %v2386_v16, 0.0  ;;  %v2450_v58 = vmul.f32 0.2, %v2386_v16  ;;  %v2387_v54 = vadd.f32 %v3321_v31, %v4064_v55 }
 0x173   : > { %v1187_v57 = vpop.f32.mrb[25].mxu1  ;;  %v2484_v63 = vsel %vm2420_vm9, %v2388_v40, %v2452_v52  ;;  %vm2421_vm11 = vcmp.ge.f32.partialorder %v2389_v28, 0.0  ;;  %v2453_v1 = vmul.f32 0.2, %v2389_v28 }
 0x174   : > { %v3197_v50 = vpop.f32.mrb[26].mxu1  ;;  %v3000_v62 = vpack.c.bf16 %v2484_v63, %v2484_v63  ;;  %v2482_v42 = vsel %vm2418_vm10, %v2386_v16, %v2450_v58  ;;  %vm2419_vm12 = vcmp.ge.f32.partialorder %v2387_v54, 0.0  ;;  %v2451_v59 = vmul.f32 0.2, %v2387_v54 }
 0x175   : > { %v1190_v32 = vpop.f32.mrb[27].mxu1  ;;  %v3292_v25 = vpop.f32.mrb[24].mxu0  ;;  %v2998_v29 = vpack.c.bf16 %v2482_v42, %v2482_v42  ;;  %v2485_v0 = vsel %vm2421_vm11, %v2389_v28, %v2453_v1 }
 0x176   : > { %v3322_v39 = vadd.f32 %v3292_v25, %v3196_v15  ;;  %v2296_v3 = vpop.f32.mrb[25].mxu0  ;;  %2645 = vst.msk [vmem:[%s4074_s11 + $0x58] sm:$0xf] %vm2622_vm5, %v3000_v62  ;;  %v3001_v8 = vpack.c.bf16 %v2485_v0, %v2485_v0  ;;  %v2483_v46 = vsel %vm2419_vm12, %v2387_v54, %v2451_v59 }
 0x177   : > { %v3323_v4 = vadd.f32 %v2296_v3, %v1187_v57  ;;  %v3293_v9 = vpop.f32.mrb[26].mxu0  ;;  %2643 = vst.msk [vmem:[%s4074_s11 + $0x50] sm:$0xf] %vm2622_vm5, %v2998_v29  ;;  %v2999_v10 = vpack.c.bf16 %v2483_v46, %v2483_v46 }
 0x178   : > { %v2392_v61 = vadd.f32 %v3322_v39, %v4064_v55  ;;  %v3324_v12 = vadd.f32 %v3293_v9, %v3197_v50  ;;  %v2299_v18 = vpop.f32.mrb[27].mxu0  ;;  %2646 = vst.msk [vmem:[%s4074_s11 + $0x5c] sm:$0xf] %vm2622_vm5, %v3001_v8 }
 0x179   : > { %v2390_v5 = vadd.f32 %v3323_v4, %v4064_v55  ;;  %v3325_v13 = vadd.f32 %v2299_v18, %v1190_v32  ;;  %2644 = vst.msk [vmem:[%s4074_s11 + $0x54] sm:$0xf] %vm2622_vm5, %v2999_v10 }
 0x17a   : > { %v3200_v36 = vpop.f32.mrb[28].mxu1  ;;  %vm2424_vm13 = vcmp.ge.f32.partialorder %v2392_v61, 0.0  ;;  %v2456_v43 = vmul.f32 0.2, %v2392_v61  ;;  %v2393_v22 = vadd.f32 %v3324_v12, %v4064_v55 }
 0x17b   : > { %v1203_v27 = vpop.f32.mrb[29].mxu1  ;;  %vm2422_vm14 = vcmp.ge.f32.partialorder %v2390_v5, 0.0  ;;  %v2454_v26 = vmul.f32 0.2, %v2390_v5  ;;  %v2391_v44 = vadd.f32 %v3325_v13, %v4064_v55 }
 0x17c   : > { %v3201_v45 = vpop.f32.mrb[30].mxu1  ;;  %v2488_v30 = vsel %vm2424_vm13, %v2392_v61, %v2456_v43  ;;  %vm2425_vm15 = vcmp.ge.f32.partialorder %v2393_v22, 0.0  ;;  %v2457_v53 = vmul.f32 0.2, %v2393_v22 }
 0x17d   : > { %v1206_v19 = vpop.f32.mrb[31].mxu1  ;;  %v3004_v21 = vpack.c.bf16 %v2488_v30, %v2488_v30  ;;  %v2486_v60 = vsel %vm2422_vm14, %v2390_v5, %v2454_v26  ;;  %vm2423_vm0 = vcmp.ge.f32.partialorder %v2391_v44, 0.0  ;;  %v2455_v49 = vmul.f32 0.2, %v2391_v44  ;;  %v3296_v34 = vpop.f32.mrb[28].mxu0 }
 0x17e   : > { %v3002_v24 = vpack.c.bf16 %v2486_v60, %v2486_v60  ;;  %v2489_v14 = vsel %vm2425_vm15, %v2393_v22, %v2457_v53  ;;  %v3326_v37 = vadd.f32 %v3296_v34, %v3200_v36  ;;  %v2312_v23 = vpop.f32.mrb[29].mxu0 }
 0x17f   : > { %2649 = vst.msk [vmem:[%s4074_s11 + $0x68] sm:$0xf] %vm2622_vm5, %v3004_v21  ;;  %v3005_v51 = vpack.c.bf16 %v2489_v14, %v2489_v14  ;;  %v2487_v47 = vsel %vm2423_vm0, %v2391_v44, %v2455_v49  ;;  %v3327_v33 = vadd.f32 %v2312_v23, %v1203_v27  ;;  %v3297_v20 = vpop.f32.mrb[30].mxu0 }
 0x180   : > { %2647 = vst.msk [vmem:[%s4074_s11 + $0x60] sm:$0xf] %vm2622_vm5, %v3002_v24  ;;  %v3003_v38 = vpack.c.bf16 %v2487_v47, %v2487_v47  ;;  %v2396_v41 = vadd.f32 %v3326_v37, %v4064_v55  ;;  %v3328_v7 = vadd.f32 %v3297_v20, %v3201_v45  ;;  %v2315_v11 = vpop.f32.mrb[31].mxu0 }
 0x181   : > { %2650 = vst.msk [vmem:[%s4074_s11 + $0x6c] sm:$0xf] %vm2622_vm5, %v3005_v51  ;;  %v2394_v17 = vadd.f32 %v3327_v33, %v4064_v55  ;;  %v3329_v35 = vadd.f32 %v2315_v11, %v1206_v19 }
 0x182   : > { %2648 = vst.msk [vmem:[%s4074_s11 + $0x64] sm:$0xf] %vm2622_vm5, %v3003_v38  ;;  %vm2428_vm1 = vcmp.ge.f32.partialorder %v2396_v41, 0.0  ;;  %v2460_v2 = vmul.f32 0.2, %v2396_v41  ;;  %v2397_v56 = vadd.f32 %v3328_v7, %v4064_v55 }
 0x183   : > { %vm2426_vm2 = vcmp.ge.f32.partialorder %v2394_v17, 0.0  ;;  %v2458_v40 = vmul.f32 0.2, %v2394_v17  ;;  %v2395_v48 = vadd.f32 %v3329_v35, %v4064_v55 }
 0x184   : > { %v2492_v6 = vsel %vm2428_vm1, %v2396_v41, %v2460_v2  ;;  %vm2429_vm3 = vcmp.ge.f32.partialorder %v2397_v56, 0.0  ;;  %v2461_v16 = vmul.f32 0.2, %v2397_v56 }
 0x185   : > { %v3008_v31 = vpack.c.bf16 %v2492_v6, %v2492_v6  ;;  %v2490_v15 = vsel %vm2426_vm2, %v2394_v17, %v2458_v40  ;;  %vm2427_vm4 = vcmp.ge.f32.partialorder %v2395_v48, 0.0  ;;  %v2459_v52 = vmul.f32 0.2, %v2395_v48 }
 0x186   : > { %v3006_v28 = vpack.c.bf16 %v2490_v15, %v2490_v15  ;;  %v2493_v57 = vsel %vm2429_vm3, %v2397_v56, %v2461_v16 }
 0x187   : > { %2653 = vst.msk [vmem:[%s4074_s11 + $0x78] sm:$0xf] %vm2622_vm5, %v3008_v31  ;;  %v3009_v58 = vpack.c.bf16 %v2493_v57, %v2493_v57  ;;  %v2491_v54 = vsel %vm2427_vm4, %v2395_v48, %v2459_v52 }
 0x188   : > { %2651 = vst.msk [vmem:[%s4074_s11 + $0x70] sm:$0xf] %vm2622_vm5, %v3006_v28  ;;  %v3007_v50 = vpack.c.bf16 %v2491_v54, %v2491_v54 }
 0x189   : > { %2654 = vst.msk [vmem:[%s4074_s11 + $0x7c] sm:$0xf] %vm2622_vm5, %v3009_v58 }
 0x18a   : > { %2652 = vst.msk [vmem:[%s4074_s11 + $0x74] sm:$0xf] %vm2622_vm5, %v3007_v50 }
 0x18b PF: > { %s13_s12 = sadd.s32 1, %s3473_s12  }
 0x18c   : > { %p10_p4 = scmp.ge.s32.totalorder %s13_s12, 4  }
 0x18e   :  { %12 = sbr.rel (!%p10_p4) target bundleno = 1 (0x1), region = 66 }

// kernel: fc_discriminator_forward.7
= control target key start
LH: loop header
LB: loop body
LE: loop exit
PB: predicated region body
PF: predicated region fallthrough
CT: control target
= control target key end

     0   :  { %s2013_s12 = smov 0   ;;  %s2412_s0 = inlined_call_operand.vmem [shape: bf16[2,9,9,256], index: 0, kind: input, shape index: {}]   ;;  %s2413_s1 = inlined_call_operand.vmem [shape: bf16[2,2,256,128], index: 1, kind: input, shape index: {}]   ;;  %s2414_s2 = inlined_call_operand.vmem [shape: f32[1,128], index: 2, kind: input, shape index: {}]   ;;  %s2415_s3 = inlined_call_operand.vmem [shape: bf16[2,8,8,128], index: 3, kind: output, shape index: {}]  }
   0x1 LB: > { %s1485_s13 = sadd.s32 4294967295, %s1991_s12   ;;  %p1489_p0 = scmp.ge.s32.totalorder %s1991_s12, 1  ;;  %s1991_s12 = sphi %s2013_s12, %s13_s12  }
   0x2   : > { %p137_p1 = scmp.lt.s32.totalorder %s1991_s12, 3 }
   0x4   : > { %p138_p2 = pnand %p1489_p0, %p137_p1 }
   0x5   : > { %v1905_v0 = vld [vmem:[%s2413_s1 + $0xc0] sm:$0xff] (!%p138_p2)   ;;  %v1909_v4 = vld [vmem:[%s2413_s1 + $0xc8] sm:$0xff] (!%p138_p2)   ;;  %v1913_v8 = vld [vmem:[%s2413_s1 + $0xd0] sm:$0xff] (!%p138_p2)   ;;  %p161_p3 = scmp.lt.s32.totalorder (!%p138_p2), %s1485_s13, 1  ;;  %vm220_vm0 = vsmask.f32 (!%p138_p2), 3328 }
   0x6   : > { %141 = sbr.rel (%p138_p2) target bundleno = 324 (0x144), region = 32  ;;  %v1906_v1 = vld [vmem:[%s2413_s1 + $0x40] sm:$0xff] (!%p138_p2)   ;;  %1736 = vmatprep.subr.bf16.mxu0 (!%p138_p2), %v1905_v0  ;;  %v1910_v5 = vld [vmem:[%s2413_s1 + $0x48] sm:$0xff] (!%p138_p2)   ;;  %v1914_v9 = vld [vmem:[%s2413_s1 + $0x50] sm:$0xff] (!%p138_p2)   ;;  %vm221_vm1 = vsmask.f32 (!%p138_p2), 7440 }
   0x7   : > { %v1907_v2 = vld [vmem:[%s2413_s1 + $0x80] sm:$0xff] (!%p138_p2)   ;;  %1776 = vmatprep.subr.bf16.mxu1 (!%p138_p2), %v1906_v1  ;;  %v1911_v6 = vld [vmem:[%s2413_s1 + $0x88] sm:$0xff] (!%p138_p2)   ;;  %v1915_v10 = vld [vmem:[%s2413_s1 + $0x90] sm:$0xff] (!%p138_p2)  }
   0x8   : > { %v1908_v3 = vld [vmem:[%s2413_s1] sm:$0xff] (!%p138_p2)   ;;  %1737 = vmatpush3.bf16.msra.mxu0 (!%p138_p2), %v1907_v2  ;;  %v1912_v7 = vld [vmem:[%s2413_s1 + $0x8] sm:$0xff] (!%p138_p2)   ;;  %v1916_v11 = vld [vmem:[%s2413_s1 + $0x10] sm:$0xff] (!%p138_p2)  }
   0x9   : > { %1777 = vmatpush3.bf16.msra.mxu1 (!%p138_p2), %v1908_v3  ;;  %1738 = vmatprep.subr.bf16.mxu0 (!%p138_p2), %v1909_v4  ;;  %v1917_v12 = vld [vmem:[%s2413_s1 + $0xd8] sm:$0xff] (!%p138_p2)   ;;  %v1921_v16 = vld [vmem:[%s2413_s1 + $0xe0] sm:$0xff] (!%p138_p2)   ;;  %v1925_v20 = vld [vmem:[%s2413_s1 + $0xe8] sm:$0xff] (!%p138_p2)  }
   0xa   : > { %1778 = vmatprep.subr.bf16.mxu1 (!%p138_p2), %v1910_v5  ;;  %v1918_v13 = vld [vmem:[%s2413_s1 + $0x58] sm:$0xff] (!%p138_p2)   ;;  %v1922_v17 = vld [vmem:[%s2413_s1 + $0x60] sm:$0xff] (!%p138_p2)   ;;  %v1926_v21 = vld [vmem:[%s2413_s1 + $0x68] sm:$0xff] (!%p138_p2)  }
   0xb   : > { %v1919_v14 = vld [vmem:[%s2413_s1 + $0x98] sm:$0xff] (!%p138_p2)   ;;  %v1923_v18 = vld [vmem:[%s2413_s1 + $0xa0] sm:$0xff] (!%p138_p2)   ;;  %v1927_v22 = vld [vmem:[%s2413_s1 + $0xa8] sm:$0xff] (!%p138_p2)  }
   0xc   : > { %1739 = vmatpush3.bf16.msra.mxu0 (!%p138_p2), %v1911_v6  ;;  %v1920_v15 = vld [vmem:[%s2413_s1 + $0x18] sm:$0xff] (!%p138_p2)   ;;  %v1924_v19 = vld [vmem:[%s2413_s1 + $0x20] sm:$0xff] (!%p138_p2)   ;;  %v1928_v23 = vld [vmem:[%s2413_s1 + $0x28] sm:$0xff] (!%p138_p2)  }
   0xd   : > { %1779 = vmatpush3.bf16.msra.mxu1 %v1912_v7  ;;  %1740 = vmatprep.subr.bf16.mxu0 %v1913_v8  ;;  %s2419_s13 = smov (!%p161_p3, %s1485_s13), 1  ;;  %v1929_v24 = vld [vmem:[%s2413_s1 + $0xf0] sm:$0xff]   ;;  %v1933_v28 = vld [vmem:[%s2413_s1 + $0xf8] sm:$0xff]   ;;  %v1939_v46 = vld [vmem:[%s2413_s1 + $0x140] sm:$0xff]  }
   0xe   : > { %1780 = vmatprep.subr.bf16.mxu1 %v1914_v9  ;;  %v1930_v25 = vld [vmem:[%s2413_s1 + $0x70] sm:$0xff]   ;;  %s1896_s16 = smul.u32 144, %s2419_s13  ;;  %v1934_v29 = vld [vmem:[%s2413_s1 + $0x78] sm:$0xff]   ;;  %v1940_v47 = vld [vmem:[%s2413_s1 + $0x1c0] sm:$0xff]   ;;  %s1712_s24 = sshll.u32 %s2419_s13, 5 }
   0xf   : > { %v1931_v26 = vld [vmem:[%s2413_s1 + $0xb0] sm:$0xff]   ;;  %v1935_v30 = vld [vmem:[%s2413_s1 + $0xb8] sm:$0xff]   ;;  %vm2147_vm2 = vmor %vm220_vm0, %vm221_vm1  ;;  %s2392_s28 = scalar_lea.vmem %s2415_s3, %s1712_s24 }
  0x10   : > { %1741 = vmatpush3.bf16.msra.mxu0 %v1915_v10  ;;  %v1932_v27 = vld [vmem:[%s2413_s1 + $0x30] sm:$0xff]   ;;  %s2121_s27 = scalar_lea.vmem %s2412_s0, %s1896_s16  ;;  %v1936_v31 = vld [vmem:[%s2413_s1 + $0x38] sm:$0xff]   ;;  %v1942_v56 = vld [vmem:[%s2413_s1 + $0x180] sm:$0xff]  }
  0x11   : > { %1781 = vmatpush3.bf16.msra.mxu1 %v1916_v11  ;;  %1742 = vmatprep.subr.bf16.mxu0 %v1917_v12  ;;  %v172_v32 = vld [vmem:[%s2121_s27] sm:$0xff]  ;;  %v2131_v33 = vld [vmem:[%s2121_s27 + $0x10] sm:$0xff]  ;;  %v212_v34 = vld [vmem:[%s2121_s27 + $0x8] sm:$0x11] }
  0x12   : > { %1782 = vmatprep.subr.bf16.mxu1 %v1918_v13  ;;  %v213_v35 = vld [vmem:[%s2121_s27 + $0x18] sm:$0x11]  ;;  %v224_v36 = vshrl.u32 %v172_v32, 16  ;;  %v227_v37 = vshll.u32 %v172_v32, 16  ;;  %v1550_v38 = vcombine.high %v172_v32, %v2131_v33  ;;  %v233_v39 = vshll.u32 %v212_v34, 16  ;;  %v1941_v59 = vld [vmem:[%s2413_s1 + $0x100] sm:$0xff]  }
  0x13   : > { %v238_v40 = vshrl.u32 %v2131_v33, 16  ;;  %v241_v41 = vshll.u32 %v2131_v33, 16  ;;  %v247_v42 = vshll.u32 %v213_v35, 16  ;;  %v1549_v45 = vcombine.low %v172_v32, %v2131_v33  ;;  %v1944_v60 = vld [vmem:[%s2413_s1 + $0x1c8] sm:$0xff]   ;;  %v2174_v2 = vld [vmem:[%s2121_s27 + $0x20] sm:$0xff]  ;;  %v2177_v3 = vld [vmem:[%s2121_s27 + $0x30] sm:$0xff] }
  0x14   : > { %1743 = vmatpush3.bf16.msra.mxu0 %v1919_v14  ;;  %v226_v43 = vrot.slane %v224_v36, 4  ;;  %v229_v44 = vrot.slane %v227_v37, 5  ;;  %729 = vmatprep.mubr.bf16.mxu1 %v1550_v38  ;;  %v235_v48 = vrot.slane %v233_v39, 5  ;;  %v1943_v62 = vld [vmem:[%s2413_s1 + $0x148] sm:$0xff]   ;;  %v215_v5 = vld [vmem:[%s2121_s27 + $0x38] sm:$0x11]  ;;  %v1552_v8 = vcombine.high %v2174_v2, %v2177_v3 }
  0x15   : > { %1783 = vmatpush3.bf16.msra.mxu1 %v1920_v15  ;;  %1744 = vmatprep.subr.bf16.mxu0 %v1921_v16  ;;  %v240_v49 = vrot.slane %v238_v40, 4  ;;  %v243_v50 = vrot.slane %v241_v41, 5  ;;  %v249_v54 = vrot.slane %v247_v42, 5  ;;  %v1946_v1 = vld [vmem:[%s2413_s1 + $0x188] sm:$0xff]   ;;  %v252_v6 = vshrl.u32 %v2174_v2, 16  ;;  %v1955_v34 = vld [vmem:[%s2413_s1 + $0x118] sm:$0xff]  }
  0x16   : > { %1784 = vmatprep.subr.bf16.mxu1 %v1922_v17  ;;  %v230_v51 = vor.u32 %v229_v44, %v226_v43  ;;  %v214_v4 = vld [vmem:[%s2121_s27 + $0x28] sm:$0x11]  ;;  %v255_v7 = vshll.u32 %v2174_v2, 16  ;;  %v1551_v9 = vcombine.low %v2174_v2, %v2177_v3  ;;  %v266_v11 = vshrl.u32 %v2177_v3, 16  ;;  %v1950_v17 = vld [vmem:[%s2413_s1 + $0x1d0] sm:$0xff]   ;;  %v1956_v37 = vld [vmem:[%s2413_s1 + $0x198] sm:$0xff]  }
  0x17   : > { %v244_v53 = vor.u32 %v243_v50, %v240_v49  ;;  %v261_v10 = vshll.u32 %v214_v4, 16  ;;  %v269_v12 = vshll.u32 %v2177_v3, 16  ;;  %v275_v13 = vshll.u32 %v215_v5, 16  ;;  %v1945_v14 = vld [vmem:[%s2413_s1 + $0x108] sm:$0xff]   ;;  %v2227_v38 = vld [vmem:[%s2121_s27 + $0x40] sm:$0xff]  ;;  %v2230_v39 = vld [vmem:[%s2121_s27 + $0x50] sm:$0xff] }
  0x18   : > { %1745 = vmatpush3.bf16.msra.mxu0 %v1923_v18  ;;  %v231_v55 = vrot.slane %v230_v51, 4  ;;  %v254_v15 = vrot.slane %v252_v6, 4  ;;  %v257_v16 = vrot.slane %v255_v7, 5  ;;  %v216_v40 = vld [vmem:[%s2121_s27 + $0x48] sm:$0x11]  ;;  %v280_v42 = vshrl.u32 %v2227_v38, 16 }
  0x19   : > { %1785 = vmatpush3.bf16.msra.mxu1 %v1924_v19  ;;  %1746 = vmatprep.subr.bf16.mxu0 %v1925_v20  ;;  %v2154_v57 = vrot.slane %v244_v53, 4  ;;  %v263_v18 = vrot.slane %v261_v10, 5  ;;  %v268_v19 = vrot.slane %v266_v11, 4  ;;  %v271_v20 = vrot.slane %v269_v12, 5  ;;  %v217_v41 = vld [vmem:[%s2121_s27 + $0x58] sm:$0x11] }
  0x1a   : > { %1786 = vmatprep.subr.bf16.mxu1 %v1926_v21  ;;  %v236_v58 = vsel %vm2147_vm2, %v231_v55, %v235_v48  ;;  %v1949_v21 = vld [vmem:[%s2413_s1 + $0x150] sm:$0xff]   ;;  %v283_v43 = vshll.u32 %v2227_v38, 16  ;;  %v1554_v44 = vcombine.high %v2227_v38, %v2230_v39  ;;  %v297_v48 = vshll.u32 %v2230_v39, 16  ;;  %v1959_v53 = vld [vmem:[%s2413_s1 + $0x160] sm:$0xff]   ;;  %v1963_v4 = vld [vmem:[%s2413_s1 + $0x168] sm:$0xff]  }
  0x1b   : > { %v250_v61 = vsel %vm2147_vm2, %v2154_v57, %v249_v54  ;;  %v303_v49 = vshll.u32 %v217_v41, 16  ;;  %v282_v50 = vrot.slane %v280_v42, 4  ;;  %v1960_v54 = vld [vmem:[%s2413_s1 + $0x1e0] sm:$0xff]   ;;  %v1964_v6 = vld [vmem:[%s2413_s1 + $0x1e8] sm:$0xff]   ;;  %v1972_v41 = vld [vmem:[%s2413_s1 + $0x1b0] sm:$0xff]  }
  0x1c   : > { %1747 = vmatpush3.bf16.msra.mxu0 %v1927_v22  ;;  %v1525_v63 = vcombine.low %v236_v58, %v250_v61  ;;  %v1526_v0 = vcombine.high %v236_v58, %v250_v61  ;;  %v258_v22 = vor.u32 %v257_v16, %v254_v15  ;;  %v285_v51 = vrot.slane %v283_v43, 5  ;;  %v1966_v11 = vld [vmem:[%s2413_s1 + $0x1a8] sm:$0xff]   ;;  %v2277_v12 = vld [vmem:[%s2121_s27 + $0x60] sm:$0xff]  ;;  %v219_v15 = vld [vmem:[%s2121_s27 + $0x78] sm:$0x11] }
  0x1d   : > { %1787 = vmatpush3.bf16.msra.mxu1 %v1928_v23  ;;  %1748 = vmatprep.subr.bf16.mxu0 %v1929_v24  ;;  %v272_v23 = vor.u32 %v271_v20, %v268_v19  ;;  %v277_v24 = vrot.slane %v275_v13, 5  ;;  %v299_v58 = vrot.slane %v297_v48, 5  ;;  %v305_v61 = vrot.slane %v303_v49, 5  ;;  %v2280_v13 = vld [vmem:[%s2121_s27 + $0x70] sm:$0xff]  ;;  %v1973_v43 = vld [vmem:[%s2413_s1 + $0x178] sm:$0xff]  }
  0x1e   : > { %1788 = vmatprep.subr.bf16.mxu1 %v1930_v25  ;;  %528 = vmatprep.mubr.bf16.mxu0 %v1526_v0  ;;  %v1951_v25 = vld [vmem:[%s2413_s1 + $0x110] sm:$0xff]   ;;  %v1962_v0 = vld [vmem:[%s2413_s1 + $0x1a0] sm:$0xff]   ;;  %v308_v16 = vshrl.u32 %v2277_v12, 16  ;;  %v1555_v19 = vcombine.low %v2277_v12, %v2280_v13 }
  0x20   : > { %1749 = vmatpush3.bf16.msra.mxu0 %v1931_v26  ;;  %v2201_v26 = vrot.slane %v258_v22, 4  ;;  %v325_v22 = vshll.u32 %v2280_v13, 16 }
  0x21   : > { %1789 = vmatpush3.bf16.msra.mxu1 %v1932_v27  ;;  %1750 = vmatprep.subr.bf16.mxu0 %v1933_v28  ;;  %v1952_v27 = vld [vmem:[%s2413_s1 + $0x190] sm:$0xff]   ;;  %v2206_v28 = vrot.slane %v272_v23, 4  ;;  %v331_v23 = vshll.u32 %v219_v15, 16  ;;  %v1580_v15 = vld [vmem:[%s2121_s27 + $0x80] sm:$0xff] }
  0x22   : > { %1790 = vmatprep.subr.bf16.mxu1 %v1934_v29  ;;  %v1953_v29 = vld [vmem:[%s2413_s1 + $0x158] sm:$0xff]  }
  0x23   : > { %v278_v32 = vsel %vm2147_vm2, %v2206_v28, %v277_v24  ;;  %v310_v24 = vrot.slane %v308_v16, 4 }
  0x24   : > { %1751 = vmatpush3.bf16.msra.mxu0 %v1935_v30  ;;  %v264_v30 = vsel %vm2147_vm2, %v2201_v26, %v263_v18  ;;  %v1556_v18 = vcombine.high %v2277_v12, %v2280_v13 }
  0x25   : > { %1791 = vmatpush3.bf16.msra.mxu1 %v1936_v31  ;;  %1816 = vmatprep.subr.bf16.mxu0 %v1939_v46  ;;  %v1954_v31 = vld [vmem:[%s2413_s1 + $0x1d8] sm:$0xff]   ;;  %v1528_v35 = vcombine.high %v264_v30, %v278_v32  ;;  %v1527_v36 = vcombine.low %v264_v30, %v278_v32  ;;  %v289_v46 = vshll.u32 %v216_v40, 16  ;;  %v327_v32 = vrot.slane %v325_v22, 5 }
  0x26   : > { %1856 = vmatprep.subr.bf16.mxu1 %v1940_v47  ;;  %v294_v47 = vshrl.u32 %v2230_v39, 16  ;;  %v1650_v22 = vld [vmem:[%s2121_s27 + $0x78] sm:$0x11] }
  0x27   : > { %529 = vmatmul.mubr.bf16.vlgmr.msra.gmra.mrb[0].mxu0 %v1525_v63  ;;  %v291_v55 = vrot.slane %v289_v46, 5 }
  0x28   : > { %730 = vmatmul.mubr.bf16.vlgmr.msra.gmra.mrb[0].mxu1 %v1549_v45  ;;  %1817 = vmatpush3.bf16.msra.mxu0 %v1941_v59  ;;  %v1553_v45 = vcombine.low %v2227_v38, %v2230_v39  ;;  %v286_v59 = vor.u32 %v285_v51, %v282_v50  ;;  %v1976_v50 = vld [vmem:[%s2413_s1 + $0x1b8] sm:$0xff]   ;;  %v1614_v51 = vcombine.high %v2131_v33, %v2174_v2 }
  0x29   : > { %1857 = vmatpush3.bf16.msra.mxu1 %v1942_v56  ;;  %737 = vmatprep.mubr.bf16.mxu1 %v1552_v8  ;;  %v296_v56 = vrot.slane %v294_v47, 4  ;;  %v1965_v8 = vld [vmem:[%s2413_s1 + $0x128] sm:$0xff]   ;;  %v1975_v47 = vld [vmem:[%s2413_s1 + $0x138] sm:$0xff]  }
  0x2a   : > { %1858 = vmatprep.subr.bf16.mxu1 %v1944_v60  ;;  %1818 = vmatprep.subr.bf16.mxu0 %v1943_v62  ;;  %v1961_v62 = vld [vmem:[%s2413_s1 + $0x120] sm:$0xff]   ;;  %v2251_v63 = vrot.slane %v286_v59, 4  ;;  %v1644_v59 = vld [vmem:[%s2121_s27 + $0x48] sm:$0x11] }
  0x2b   : > { %536 = vmatprep.mubr.bf16.mxu0 %v1528_v35  ;;  %v300_v60 = vor.u32 %v299_v58, %v296_v56  ;;  %v1642_v58 = vld [vmem:[%s2121_s27 + $0x38] sm:$0x11] }
  0x2c   : > { %1819 = vmatpush3.bf16.msra.mxu0 %v1945_v14  ;;  %v292_v5 = vsel %vm2147_vm2, %v2251_v63, %v291_v55  ;;  %v218_v14 = vld [vmem:[%s2121_s27 + $0x68] sm:$0x11] }
  0x2d   : > { %1859 = vmatpush3.bf16.msra.mxu1 %v1946_v1  ;;  %1820 = vmatprep.subr.bf16.mxu0 %v1949_v21  ;;  %v2256_v1 = vrot.slane %v300_v60, 4  ;;  %v317_v20 = vshll.u32 %v218_v14, 16  ;;  %v322_v21 = vshrl.u32 %v2280_v13, 16  ;;  %v1067_v60 = vshll.u32 %v1642_v58, 16 }
  0x2e   : > { %1860 = vmatprep.subr.bf16.mxu1 %v1950_v17  ;;  %v311_v17 = vshll.u32 %v2277_v12, 16 }
  0x2f   : > { %537 = vmatmul.mubr.bf16.gmra.mrb[4].mxu0 %v1527_v36  ;;  %v306_v7 = vsel %vm2147_vm2, %v2256_v1, %v305_v61  ;;  %v319_v30 = vrot.slane %v317_v20, 5  ;;  %v333_v36 = vrot.slane %v331_v23, 5  ;;  %v1081_v61 = vshll.u32 %v1644_v59, 16  ;;  %v1652_v23 = vld [vmem:[%s2121_s27 + $0x88] sm:$0x11] }
  0x30   : > { %738 = vmatmul.mubr.bf16.gmra.mrb[4].mxu1 %v1551_v9  ;;  %1821 = vmatpush3.bf16.msra.mxu0 %v1951_v25  ;;  %v1530_v9 = vcombine.high %v292_v5, %v306_v7  ;;  %v1529_v10 = vcombine.low %v292_v5, %v306_v7  ;;  %v313_v25 = vrot.slane %v311_v17, 5  ;;  %v1613_v20 = vcombine.low %v2131_v33, %v2174_v2 }
  0x31   : > { %1861 = vmatpush3.bf16.msra.mxu1 %v1952_v27  ;;  %1822 = vmatprep.subr.bf16.mxu0 %v1953_v29  ;;  %v1969_v27 = vld [vmem:[%s2413_s1 + $0x170] sm:$0xff]   ;;  %v1123_v2 = vshll.u32 %v1650_v22, 16 }
  0x32   : > { %1862 = vmatprep.subr.bf16.mxu1 %v1954_v31  ;;  %745 = vmatprep.mubr.bf16.mxu1 %v1554_v44  ;;  %v1970_v29 = vld [vmem:[%s2413_s1 + $0x1f0] sm:$0xff]   ;;  %v324_v31 = vrot.slane %v322_v21, 4 }
  0x33   : > { %544 = vmatprep.mubr.bf16.mxu0 %v1530_v9  ;;  %v1083_v9 = vrot.slane %v1081_v61, 5 }
  0x34   : > { %1823 = vmatpush3.bf16.msra.mxu0 %v1955_v34  ;;  %v314_v34 = vor.u32 %v313_v25, %v310_v24  ;;  %v328_v35 = vor.u32 %v327_v32, %v324_v31  ;;  %v1128_v24 = vshrl.u32 %v1580_v15, 16  ;;  %v1131_v25 = vshll.u32 %v1580_v15, 16 }
  0x35   : > { %1863 = vmatpush3.bf16.msra.mxu1 %v1956_v37  ;;  %1824 = vmatprep.subr.bf16.mxu0 %v1959_v53  ;;  %v1971_v37 = vld [vmem:[%s2413_s1 + $0x130] sm:$0xff]   ;;  %v1638_v53 = vld [vmem:[%s2121_s27 + $0x18] sm:$0x11] }
  0x36   : > { %1864 = vmatprep.subr.bf16.mxu1 %v1960_v54  ;;  %v315_v40 = vrot.slane %v314_v34, 4  ;;  %v2304_v42 = vrot.slane %v328_v35, 4  ;;  %v1640_v54 = vld [vmem:[%s2121_s27 + $0x28] sm:$0x11]  ;;  %v1039_v55 = vshll.u32 %v1638_v53, 16  ;;  %v1615_v34 = vcombine.low %v2177_v3, %v2227_v38 }
  0x37   : > { %545 = vmatmul.mubr.bf16.gmra.mrb[8].mxu0 %v1529_v10  ;;  %v1053_v56 = vshll.u32 %v1640_v54, 16  ;;  %v1125_v35 = vrot.slane %v1123_v2, 5 }
  0x38   : > { %746 = vmatmul.mubr.bf16.gmra.mrb[8].mxu1 %v1553_v45  ;;  %1825 = vmatpush3.bf16.msra.mxu0 %v1961_v62  ;;  %v320_v44 = vsel %vm2147_vm2, %v315_v40, %v319_v30  ;;  %v1974_v45 = vld [vmem:[%s2413_s1 + $0x1f8] sm:$0xff]   ;;  %v334_v46 = vsel %vm2147_vm2, %v2304_v42, %v333_v36 }
  0x39   : > { %1865 = vmatpush3.bf16.msra.mxu1 %v1962_v0  ;;  %1826 = vmatprep.subr.bf16.mxu0 %v1963_v4  ;;  %v1532_v48 = vcombine.high %v320_v44, %v334_v46  ;;  %v1531_v49 = vcombine.low %v320_v44, %v334_v46  ;;  %v1646_v62 = vld [vmem:[%s2121_s27 + $0x58] sm:$0x11]  ;;  %v1648_v0 = vld [vmem:[%s2121_s27 + $0x68] sm:$0x11]  ;;  %v1041_v4 = vrot.slane %v1039_v55, 5  ;;  %v1055_v5 = vrot.slane %v1053_v56, 5 }
  0x3a   : > { %1866 = vmatprep.subr.bf16.mxu1 %v1964_v6  ;;  %753 = vmatprep.mubr.bf16.mxu1 %v1556_v18  ;;  %v1095_v6 = vshll.u32 %v1646_v62, 16  ;;  %v1109_v7 = vshll.u32 %v1648_v0, 16  ;;  %v1619_v46 = vcombine.low %v2280_v13, %v1580_v15 }
  0x3b   : > { %552 = vmatprep.mubr.bf16.mxu0 %v1532_v48  ;;  %v1042_v10 = vsel %vm2147_vm2, %v2154_v57, %v1041_v4 }
  0x3c   : > { %1827 = vmatpush3.bf16.msra.mxu0 %v1965_v8  ;;  %v1069_v8 = vrot.slane %v1067_v60, 5  ;;  %v1097_v14 = vrot.slane %v1095_v6, 5  ;;  %v1111_v21 = vrot.slane %v1109_v7, 5 }
  0x3d   : > { %1867 = vmatpush3.bf16.msra.mxu1 %v1966_v11  ;;  %1828 = vmatprep.subr.bf16.mxu0 %v1969_v27  ;;  %v1056_v11 = vsel %vm2147_vm2, %v2201_v26, %v1055_v5  ;;  %v1616_v26 = vcombine.high %v2177_v3, %v2227_v38  ;;  %v1133_v27 = vrot.slane %v1131_v25, 5  ;;  %v1617_v3 = vcombine.low %v2230_v39, %v2277_v12 }
  0x3e   : > { %1868 = vmatprep.subr.bf16.mxu1 %v1970_v29  ;;  %v1685_v16 = vcombine.low %v1042_v10, %v1056_v11  ;;  %v1686_v17 = vcombine.high %v1042_v10, %v1056_v11  ;;  %v1070_v18 = vsel %vm2147_vm2, %v2206_v28, %v1069_v8  ;;  %v1098_v28 = vsel %vm2147_vm2, %v2256_v1, %v1097_v14 }
  0x3f   : > { %553 = vmatmul.mubr.bf16.gmra.mrb[12].mxu0 %v1531_v49  ;;  %v1112_v33 = vsel %vm2147_vm2, %v315_v40, %v1111_v21  ;;  %v1137_v29 = vshll.u32 %v1652_v23, 16  ;;  %v1618_v1 = vcombine.high %v2230_v39, %v2277_v12  ;;  %v1126_v40 = vsel %vm2147_vm2, %v2304_v42, %v1125_v35 }
  0x40   : > { %754 = vmatmul.mubr.bf16.gmra.mrb[12].mxu1 %v1555_v19  ;;  %1829 = vmatpush3.bf16.msra.mxu0 %v1971_v37  ;;  %v1084_v19 = vsel %vm2147_vm2, %v2251_v63, %v1083_v9  ;;  %v1130_v63 = vrot.slane %v1128_v24, 4  ;;  %v1690_v32 = vcombine.high %v1098_v28, %v1112_v33  ;;  %v1620_v38 = vcombine.high %v2280_v13, %v1580_v15 }
  0x41   : > { %1869 = vmatpush3.bf16.msra.mxu1 %v1972_v41  ;;  %1830 = vmatprep.subr.bf16.mxu0 %v1973_v43  ;;  %v1688_v57 = vcombine.high %v1070_v18, %v1084_v19  ;;  %v1687_v30 = vcombine.low %v1070_v18, %v1084_v19  ;;  %v1139_v37 = vrot.slane %v1137_v29, 5  ;;  %v1689_v43 = vcombine.low %v1098_v28, %v1112_v33 }
  0x42   : > { %1870 = vmatprep.subr.bf16.mxu1 %v1974_v45  ;;  %972 = vmatprep.mubr.bf16.mxu0 %v1614_v51  ;;  %v1134_v31 = vor.u32 %v1133_v27, %v1130_v63 }
  0x43   : > { %1334 = vmatprep.mubr.bf16.mxu1 %v1686_v17 }
  0x44   : > { %1831 = vmatpush3.bf16.msra.mxu0 %v1975_v47  ;;  %v1135_v36 = vrot.slane %v1134_v31, 4 }
  0x45   : > { %1871 = vmatpush3.bf16.msra.mxu1 %v1976_v50 }
  0x46   : > { %v1140_v41 = vsel %vm2147_vm2, %v1135_v36, %v1139_v37 }
  0x47   : > { %973 = vmatmul.mubr.bf16.vlgmr.msra.gmra.mrb[16].mxu0 %v1613_v20  ;;  %v1692_v44 = vcombine.high %v1126_v40, %v1140_v41  ;;  %v1691_v45 = vcombine.low %v1126_v40, %v1140_v41 }
  0x48   : > { %1335 = vmatmul.mubr.bf16.vlgmr.msra.gmra.mrb[16].mxu1 %v1685_v16  ;;  %980 = vmatprep.mubr.bf16.mxu0 %v1616_v26 }
  0x49   : > { %1342 = vmatprep.mubr.bf16.mxu1 %v1688_v57 }
  0x4f   : > { %981 = vmatmul.mubr.bf16.gmra.mrb[20].mxu0 %v1615_v34 }
  0x50   : > { %1343 = vmatmul.mubr.bf16.gmra.mrb[20].mxu1 %v1687_v30  ;;  %988 = vmatprep.mubr.bf16.mxu0 %v1618_v1 }
  0x51   : > { %1350 = vmatprep.mubr.bf16.mxu1 %v1690_v32 }
  0x57   : > { %989 = vmatmul.mubr.bf16.gmra.mrb[24].mxu0 %v1617_v3 }
  0x58   : > { %1351 = vmatmul.mubr.bf16.gmra.mrb[24].mxu1 %v1689_v43  ;;  %996 = vmatprep.mubr.bf16.mxu0 %v1620_v38 }
  0x59   : > { %1358 = vmatprep.mubr.bf16.mxu1 %v1692_v44 }
  0x5f   : > { %997 = vmatmul.mubr.bf16.gmra.mrb[28].mxu0 %v1619_v46 }
  0x60   : > { %1359 = vmatmul.mubr.bf16.gmra.mrb[28].mxu1 %v1691_v45 }
  0xfa   : > { %v1752_v51 = vpop.f32.mrb[0].mxu0 }
  0xfb   : > { %v1792_v42 = vpop.f32.mrb[0].mxu1  ;;  %v1753_v53 = vpop.f32.mrb[1].mxu0 }
  0xfc   : > { %v1793_v52 = vpop.f32.mrb[1].mxu1  ;;  %v1754_v12 = vadd.f32 %v1753_v53, %v1752_v51  ;;  %v1755_v54 = vpop.f32.mrb[2].mxu0 }
  0xfd   : > { %v1794_v47 = vadd.f32 %v1793_v52, %v1792_v42  ;;  %v1795_v48 = vpop.f32.mrb[2].mxu1  ;;  %v1756_v56 = vpop.f32.mrb[3].mxu0 }
  0xfe   : > { %v1796_v49 = vpop.f32.mrb[3].mxu1  ;;  %v1757_v61 = vadd.f32 %v1756_v56, %v1755_v54 }
  0xff   : > { %v1797_v50 = vadd.f32 %v1796_v49, %v1795_v48  ;;  %v732_v60 = vadd.f32 %v1794_v47, %v1754_v12 }
 0x101   : > { %v735_v0 = vadd.f32 %v1797_v50, %v1757_v61  ;;  %v2383_v50 = vld [vmem:[%s2414_s2] ss:$0 sm:$0xff] }
 0x102   : > { %v1758_v4 = vpop.f32.mrb[4].mxu0 }
 0x103   : > { %v1798_v39 = vpop.f32.mrb[4].mxu1  ;;  %v1759_v5 = vpop.f32.mrb[5].mxu0 }
 0x104   : > { %v1799_v55 = vpop.f32.mrb[5].mxu1  ;;  %v1760_v6 = vadd.f32 %v1759_v5, %v1758_v4  ;;  %v1761_v7 = vpop.f32.mrb[6].mxu0 }
 0x105   : > { %v1800_v58 = vadd.f32 %v1799_v55, %v1798_v39  ;;  %v1801_v59 = vpop.f32.mrb[6].mxu1  ;;  %v1762_v9 = vpop.f32.mrb[7].mxu0 }
 0x106   : > { %v1802_v13 = vpop.f32.mrb[7].mxu1  ;;  %v1763_v14 = vadd.f32 %v1762_v9, %v1761_v7 }
 0x107   : > { %v1803_v62 = vadd.f32 %v1802_v13, %v1801_v59  ;;  %v2368_v11 = vadd.f32 %v1800_v58, %v1760_v6 }
 0x109   : > { %v2370_v18 = vadd.f32 %v1803_v62, %v1763_v14 }
 0x10a   : > { %v1764_v20 = vpop.f32.mrb[8].mxu0 }
 0x10b   : > { %v1804_v8 = vpop.f32.mrb[8].mxu1  ;;  %v1765_v57 = vpop.f32.mrb[9].mxu0 }
 0x10c   : > { %v1805_v10 = vpop.f32.mrb[9].mxu1  ;;  %v1766_v21 = vadd.f32 %v1765_v57, %v1764_v20  ;;  %v1767_v26 = vpop.f32.mrb[10].mxu0 }
 0x10d   : > { %v1806_v15 = vadd.f32 %v1805_v10, %v1804_v8  ;;  %v1807_v16 = vpop.f32.mrb[10].mxu1  ;;  %v1768_v23 = vpop.f32.mrb[11].mxu0 }
 0x10e   : > { %v1808_v17 = vpop.f32.mrb[11].mxu1  ;;  %v1769_v28 = vadd.f32 %v1768_v23, %v1767_v26 }
 0x10f   : > { %v1809_v19 = vadd.f32 %v1808_v17, %v1807_v16  ;;  %v2372_v25 = vadd.f32 %v1806_v15, %v1766_v21 }
 0x111   : > { %v2374_v27 = vadd.f32 %v1809_v19, %v1769_v28 }
 0x112   : > { %v1770_v30 = vpop.f32.mrb[12].mxu0 }
 0x113   : > { %v1810_v22 = vpop.f32.mrb[12].mxu1  ;;  %v1771_v31 = vpop.f32.mrb[13].mxu0 }
 0x114   : > { %v1811_v24 = vpop.f32.mrb[13].mxu1  ;;  %v1772_v32 = vadd.f32 %v1771_v31, %v1770_v30  ;;  %v1773_v34 = vpop.f32.mrb[14].mxu0 }
 0x115   : > { %v1812_v63 = vadd.f32 %v1811_v24, %v1810_v22  ;;  %v1813_v33 = vpop.f32.mrb[14].mxu1  ;;  %v1774_v35 = vpop.f32.mrb[15].mxu0 }
 0x116   : > { %v1814_v2 = vpop.f32.mrb[15].mxu1  ;;  %v1775_v37 = vadd.f32 %v1774_v35, %v1773_v34 }
 0x117   : > { %v1815_v29 = vadd.f32 %v1814_v2, %v1813_v33  ;;  %v2376_v36 = vadd.f32 %v1812_v63, %v1772_v32 }
 0x119   : > { %v2378_v1 = vadd.f32 %v1815_v29, %v1775_v37 }
 0x11a   : > { %v1832_v43 = vpop.f32.mrb[16].mxu0 }
 0x11b   : > { %v1872_v40 = vpop.f32.mrb[16].mxu1  ;;  %v1833_v38 = vpop.f32.mrb[17].mxu0 }
 0x11c   : > { %v1873_v41 = vpop.f32.mrb[17].mxu1  ;;  %v1834_v46 = vadd.f32 %v1833_v38, %v1832_v43  ;;  %v1835_v42 = vpop.f32.mrb[18].mxu0 }
 0x11d   : > { %v1874_v44 = vadd.f32 %v1873_v41, %v1872_v40  ;;  %v1875_v3 = vpop.f32.mrb[18].mxu1  ;;  %v1836_v47 = vpop.f32.mrb[19].mxu0 }
 0x11e   : > { %v1876_v45 = vpop.f32.mrb[19].mxu1  ;;  %v1005_v48 = vadd.f32 %v1834_v46, %v732_v60  ;;  %v1837_v49 = vadd.f32 %v1836_v47, %v1835_v42 }
 0x11f   : > { %v1877_v52 = vadd.f32 %v1876_v45, %v1875_v3 }
 0x120   : > { %v1367_v51 = vadd.f32 %v1874_v44, %v1005_v48  ;;  %v1006_v53 = vadd.f32 %v1837_v49, %v735_v0 }
 0x122   : > { %v1382_v54 = vadd.f32 %v2383_v50, %v1367_v51  ;;  %v1368_v55 = vadd.f32 %v1877_v52, %v1006_v53  ;;  %v1838_v56 = vpop.f32.mrb[20].mxu0 }
 0x123   : > { %v1878_v39 = vpop.f32.mrb[20].mxu1  ;;  %v1839_v61 = vpop.f32.mrb[21].mxu0 }
 0x124   : > { %v1879_v12 = vpop.f32.mrb[21].mxu1  ;;  %v1398_v60 = vmul.f32 0.2, %v1382_v54  ;;  %v1383_v62 = vadd.f32 %v2383_v50, %v1368_v55  ;;  %v1840_v4 = vadd.f32 %v1839_v61, %v1838_v56  ;;  %v1841_v5 = vpop.f32.mrb[22].mxu0  ;;  %vm1390_vm3 = vcmp.ge.f32.partialorder %v1382_v54, 0.0 }
 0x125   : > { %v1880_v58 = vadd.f32 %v1879_v12, %v1878_v39  ;;  %v1881_v59 = vpop.f32.mrb[22].mxu1  ;;  %v1842_v6 = vpop.f32.mrb[23].mxu0 }
 0x126   : > { %v1882_v13 = vpop.f32.mrb[23].mxu1  ;;  %vm1391_vm4 = vcmp.ge.f32.partialorder %v1383_v62, 0.0  ;;  %v1399_v0 = vmul.f32 0.2, %v1383_v62  ;;  %v1007_v8 = vadd.f32 %v1840_v4, %v2368_v11  ;;  %v1843_v9 = vadd.f32 %v1842_v6, %v1841_v5 }
 0x127   : > { %v1883_v7 = vadd.f32 %v1882_v13, %v1881_v59  ;;  %v1406_v10 = vsel %vm1390_vm3, %v1382_v54, %v1398_v60 }
 0x128   : > { %v1407_v14 = vsel %vm1391_vm4, %v1383_v62, %v1399_v0  ;;  %v1369_v15 = vadd.f32 %v1880_v58, %v1007_v8  ;;  %v1008_v19 = vadd.f32 %v1843_v9, %v2370_v18 }
 0x129   : > { %v1716_v17 = vpack.c.bf16 %v1407_v14, %v1406_v10 }
 0x12a   : > { %v1384_v57 = vadd.f32 %v2383_v50, %v1369_v15  ;;  %v1844_v21 = vpop.f32.mrb[24].mxu0  ;;  %v1370_v22 = vadd.f32 %v1883_v7, %v1008_v19 }
 0x12b   : > { %v1884_v16 = vpop.f32.mrb[24].mxu1  ;;  %1717 = vst [vmem:[%s2392_s28] sm:$0xff] %v1716_v17   ;;  %v1845_v23 = vpop.f32.mrb[25].mxu0 }
 0x12c   : > { %v1885_v20 = vpop.f32.mrb[25].mxu1  ;;  %v1846_v28 = vadd.f32 %v1845_v23, %v1844_v21  ;;  %v1847_v63 = vpop.f32.mrb[26].mxu0  ;;  %v1400_v2 = vmul.f32 0.2, %v1384_v57  ;;  %v1385_v29 = vadd.f32 %v2383_v50, %v1370_v22  ;;  %vm1392_vm5 = vcmp.ge.f32.partialorder %v1384_v57, 0.0 }
 0x12d   : > { %v1886_v26 = vadd.f32 %v1885_v20, %v1884_v16  ;;  %v1887_v11 = vpop.f32.mrb[26].mxu1  ;;  %v1848_v30 = vpop.f32.mrb[27].mxu0 }
 0x12e   : > { %v1888_v24 = vpop.f32.mrb[27].mxu1  ;;  %v1009_v18 = vadd.f32 %v1846_v28, %v2372_v25  ;;  %v1849_v31 = vadd.f32 %v1848_v30, %v1847_v63  ;;  %vm1393_vm6 = vcmp.ge.f32.partialorder %v1385_v29, 0.0  ;;  %v1401_v32 = vmul.f32 0.2, %v1385_v29 }
 0x12f   : > { %v1889_v33 = vadd.f32 %v1888_v24, %v1887_v11  ;;  %v1408_v40 = vsel %vm1392_vm5, %v1384_v57, %v1400_v2 }
 0x130   : > { %v1371_v34 = vadd.f32 %v1886_v26, %v1009_v18  ;;  %v1010_v35 = vadd.f32 %v1849_v31, %v2374_v27  ;;  %v1409_v41 = vsel %vm1393_vm6, %v1385_v29, %v1401_v32 }
 0x131   : > { %v1721_v44 = vpack.c.bf16 %v1409_v41, %v1408_v40 }
 0x132   : > { %v1386_v3 = vadd.f32 %v2383_v50, %v1371_v34  ;;  %v1372_v38 = vadd.f32 %v1889_v33, %v1010_v35  ;;  %v1850_v45 = vpop.f32.mrb[28].mxu0 }
 0x133   : > { %v1890_v37 = vpop.f32.mrb[28].mxu1  ;;  %v1851_v52 = vpop.f32.mrb[29].mxu0  ;;  %1733 = vst [vmem:[%s2392_s28 + $0x8] sm:$0xff] %v1721_v44  }
 0x134   : > { %v1891_v43 = vpop.f32.mrb[29].mxu1  ;;  %v1402_v47 = vmul.f32 0.2, %v1386_v3  ;;  %v1387_v48 = vadd.f32 %v2383_v50, %v1372_v38  ;;  %v1852_v49 = vadd.f32 %v1851_v52, %v1850_v45  ;;  %v1853_v27 = vpop.f32.mrb[30].mxu0  ;;  %vm1394_vm7 = vcmp.ge.f32.partialorder %v1386_v3, 0.0 }
 0x135   : > { %v1892_v46 = vadd.f32 %v1891_v43, %v1890_v37  ;;  %v1893_v42 = vpop.f32.mrb[30].mxu1  ;;  %v1854_v51 = vpop.f32.mrb[31].mxu0 }
 0x136   : > { %v1894_v25 = vpop.f32.mrb[31].mxu1  ;;  %vm1395_vm8 = vcmp.ge.f32.partialorder %v1387_v48, 0.0  ;;  %v1403_v39 = vmul.f32 0.2, %v1387_v48  ;;  %v1011_v12 = vadd.f32 %v1852_v49, %v2376_v36  ;;  %v1855_v54 = vadd.f32 %v1854_v51, %v1853_v27 }
 0x137   : > { %v1895_v53 = vadd.f32 %v1894_v25, %v1893_v42  ;;  %v1410_v55 = vsel %vm1394_vm7, %v1386_v3, %v1402_v47 }
 0x138   : > { %v1411_v56 = vsel %vm1395_vm8, %v1387_v48, %v1403_v39  ;;  %v1373_v58 = vadd.f32 %v1892_v46, %v1011_v12  ;;  %v1012_v61 = vadd.f32 %v1855_v54, %v2378_v1 }
 0x139   : > { %v1726_v59 = vpack.c.bf16 %v1411_v56, %v1410_v55 }
 0x13a   : > { %v1388_v13 = vadd.f32 %v2383_v50, %v1373_v58  ;;  %v1374_v60 = vadd.f32 %v1895_v53, %v1012_v61 }
 0x13b   : > { %1734 = vst [vmem:[%s2392_s28 + $0x10] sm:$0xff] %v1726_v59  }
 0x13c   : > { %v1404_v62 = vmul.f32 0.2, %v1388_v13  ;;  %v1389_v4 = vadd.f32 %v2383_v50, %v1374_v60  ;;  %vm1396_vm9 = vcmp.ge.f32.partialorder %v1388_v13, 0.0 }
 0x13e   : > { %vm1397_vm10 = vcmp.ge.f32.partialorder %v1389_v4, 0.0  ;;  %v1405_v5 = vmul.f32 0.2, %v1389_v4  ;;  %v1412_v6 = vsel %vm1396_vm9, %v1388_v13, %v1404_v62 }
 0x140   : > { %v1413_v36 = vsel %vm1397_vm10, %v1389_v4, %v1405_v5 }
 0x141   : > { %v1731_v7 = vpack.c.bf16 %v1413_v36, %v1412_v6 }
 0x143   : > { %1735 = vst [vmem:[%s2392_s28 + $0x18] sm:$0xff] %v1731_v7  }
 0x144 PF: > { %s13_s12 = sadd.s32 1, %s1991_s12  }
 0x145   : > { %p10_p4 = scmp.ge.s32.totalorder %s13_s12, 4  }
 0x147   :  { %12 = sbr.rel (!%p10_p4) target bundleno = 1 (0x1), region = 66 }

// kernel: fc_discriminator_forward.8
= control target key start
LH: loop header
LB: loop body
LE: loop exit
PB: predicated region body
PF: predicated region fallthrough
CT: control target
= control target key end

     0   :  { %s3791_s12 = smov 0   ;;  %s4760_s0 = inlined_call_operand.vmem [shape: bf16[2,5,5,512], index: 0, kind: input, shape index: {}]   ;;  %s4761_s1 = inlined_call_operand.vmem [shape: bf16[2,2,512,256], index: 1, kind: input, shape index: {}]   ;;  %s4762_s2 = inlined_call_operand.vmem [shape: f32[1,256], index: 2, kind: input, shape index: {}]   ;;  %s4763_s3 = inlined_call_operand.vmem [shape: bf16[2,4,4,256], index: 3, kind: output, shape index: {}]  }
   0x1 LB: > { %s2813_s13 = sadd.s32 4294967295, %s3768_s12   ;;  %p2817_p0 = scmp.ge.s32.totalorder %s3768_s12, 1  ;;  %s3768_s12 = sphi %s3791_s12, %s13_s12  }
   0x2   : > { %p137_p1 = scmp.lt.s32.totalorder %s3768_s12, 3 }
   0x4   : > { %p138_p2 = pnand %p2817_p0, %p137_p1 }
   0x5   : > { %v3378_v0 = vld [vmem:[%s4761_s1 + $0x204] ss:$8 sps:$4 sm:$0xff] (!%p138_p2)   ;;  %v3382_v2 = vld [vmem:[%s4761_s1 + $0x200] ss:$8 sps:$4 sm:$0xff] (!%p138_p2)   ;;  %v3384_v4 = vld [vmem:[%s4761_s1 + $0x214] ss:$8 sps:$4 sm:$0xff] (!%p138_p2)   ;;  %v526_v45 = vlaneseq (!%p138_p2) }
   0x6   : > { %141 = sbr.rel (%p138_p2) target bundleno = 492 (0x1ec), region = 32  ;;  %v3380_v1 = vld [vmem:[%s4761_s1 + $0x404] ss:$8 sps:$4 sm:$0xff] (!%p138_p2)   ;;  %879 = vmatprep.subr.bf16.mxu1 (!%p138_p2), %v3378_v0  ;;  %v3383_v3 = vld [vmem:[%s4761_s1 + $0x400] ss:$8 sps:$4 sm:$0xff] (!%p138_p2)   ;;  %p161_p3 = scmp.lt.s32.totalorder (!%p138_p2), %s2813_s13, 1 }
   0x7   : > { %1913 = vmatprep.subr.bf16.mxu0 (!%p138_p2), %v3380_v1  ;;  %880 = vmatpush1.bf16.msra.mxu1 (!%p138_p2), %v3382_v2  ;;  %v3386_v5 = vld [vmem:[%s4761_s1 + $0x414] ss:$8 sps:$4 sm:$0xff] (!%p138_p2)   ;;  %v3388_v6 = vld [vmem:[%s4761_s1 + $0x210] ss:$8 sps:$4 sm:$0xff] (!%p138_p2)   ;;  %v3390_v8 = vld [vmem:[%s4761_s1 + $0x224] ss:$8 sps:$4 sm:$0xff] (!%p138_p2)  }
   0x8   : > { %1914 = vmatpush1.bf16.msra.mxu0 (!%p138_p2), %v3383_v3  ;;  %881 = vmatprep.subr.bf16.mxu1 (!%p138_p2), %v3384_v4  ;;  %v3389_v7 = vld [vmem:[%s4761_s1 + $0x410] ss:$8 sps:$4 sm:$0xff] (!%p138_p2)   ;;  %v3392_v9 = vld [vmem:[%s4761_s1 + $0x424] ss:$8 sps:$4 sm:$0xff] (!%p138_p2)   ;;  %v3394_v10 = vld [vmem:[%s4761_s1 + $0x220] ss:$8 sps:$4 sm:$0xff] (!%p138_p2)  }
   0x9   : > { %1915 = vmatprep.subr.bf16.mxu0 (!%p138_p2), %v3386_v5  ;;  %v3395_v11 = vld [vmem:[%s4761_s1 + $0x420] ss:$8 sps:$4 sm:$0xff] (!%p138_p2)   ;;  %v3396_v12 = vld [vmem:[%s4761_s1 + $0x234] ss:$8 sps:$4 sm:$0xff] (!%p138_p2)   ;;  %v3400_v14 = vld [vmem:[%s4761_s1 + $0x230] ss:$8 sps:$4 sm:$0xff] (!%p138_p2)  }
   0xa   : > { %v3398_v13 = vld [vmem:[%s4761_s1 + $0x434] ss:$8 sps:$4 sm:$0xff] (!%p138_p2)   ;;  %v3401_v15 = vld [vmem:[%s4761_s1 + $0x430] ss:$8 sps:$4 sm:$0xff] (!%p138_p2)   ;;  %v3402_v16 = vld [vmem:[%s4761_s1 + $0x244] ss:$8 sps:$4 sm:$0xff] (!%p138_p2)  }
   0xb   : > { %882 = vmatpush1.bf16.msra.mxu1 (!%p138_p2), %v3388_v6  ;;  %v3404_v17 = vld [vmem:[%s4761_s1 + $0x444] ss:$8 sps:$4 sm:$0xff] (!%p138_p2)   ;;  %v3406_v18 = vld [vmem:[%s4761_s1 + $0x240] ss:$8 sps:$4 sm:$0xff] (!%p138_p2)   ;;  %v3408_v20 = vld [vmem:[%s4761_s1 + $0x254] ss:$8 sps:$4 sm:$0xff] (!%p138_p2)  }
   0xc   : > { %1916 = vmatpush1.bf16.msra.mxu0 (!%p138_p2), %v3389_v7  ;;  %883 = vmatprep.subr.bf16.mxu1 (!%p138_p2), %v3390_v8  ;;  %v3407_v19 = vld [vmem:[%s4761_s1 + $0x440] ss:$8 sps:$4 sm:$0xff] (!%p138_p2)   ;;  %v3410_v21 = vld [vmem:[%s4761_s1 + $0x454] ss:$8 sps:$4 sm:$0xff] (!%p138_p2)   ;;  %v3412_v22 = vld [vmem:[%s4761_s1 + $0x250] ss:$8 sps:$4 sm:$0xff] (!%p138_p2)  }
   0xd   : > { %1917 = vmatprep.subr.bf16.mxu0 %v3392_v9  ;;  %v3413_v23 = vld [vmem:[%s4761_s1 + $0x450] ss:$8 sps:$4 sm:$0xff]   ;;  %v3414_v24 = vld [vmem:[%s4761_s1 + $0x264] ss:$8 sps:$4 sm:$0xff]   ;;  %v3418_v26 = vld [vmem:[%s4761_s1 + $0x260] ss:$8 sps:$4 sm:$0xff]  }
   0xe   : > { %v3416_v25 = vld [vmem:[%s4761_s1 + $0x464] ss:$8 sps:$4 sm:$0xff]   ;;  %v3419_v27 = vld [vmem:[%s4761_s1 + $0x460] ss:$8 sps:$4 sm:$0xff]   ;;  %v3420_v28 = vld [vmem:[%s4761_s1 + $0x274] ss:$8 sps:$4 sm:$0xff]  }
   0xf   : > { %884 = vmatpush1.bf16.msra.mxu1 %v3394_v10  ;;  %v3422_v29 = vld [vmem:[%s4761_s1 + $0x474] ss:$8 sps:$4 sm:$0xff]   ;;  %v3424_v30 = vld [vmem:[%s4761_s1 + $0x270] ss:$8 sps:$4 sm:$0xff]   ;;  %v3426_v32 = vld [vmem:[%s4761_s1 + $0x284] ss:$8 sps:$4 sm:$0xff]  }
  0x10   : > { %1918 = vmatpush1.bf16.msra.mxu0 %v3395_v11  ;;  %885 = vmatprep.subr.bf16.mxu1 %v3396_v12  ;;  %v3425_v31 = vld [vmem:[%s4761_s1 + $0x470] ss:$8 sps:$4 sm:$0xff]   ;;  %v3428_v33 = vld [vmem:[%s4761_s1 + $0x484] ss:$8 sps:$4 sm:$0xff]   ;;  %v3430_v34 = vld [vmem:[%s4761_s1 + $0x280] ss:$8 sps:$4 sm:$0xff]  }
  0x11   : > { %1919 = vmatprep.subr.bf16.mxu0 %v3398_v13  ;;  %v3431_v35 = vld [vmem:[%s4761_s1 + $0x480] ss:$8 sps:$4 sm:$0xff]   ;;  %v3432_v36 = vld [vmem:[%s4761_s1 + $0x294] ss:$8 sps:$4 sm:$0xff]   ;;  %s4771_s13 = smov (!%p161_p3, %s2813_s13), 1  ;;  %v3960_v52 = vshrl.u32 %v526_v45, 7 }
  0x12   : > { %v3434_v37 = vld [vmem:[%s4761_s1 + $0x494] ss:$8 sps:$4 sm:$0xff]   ;;  %v3436_v38 = vld [vmem:[%s4761_s1 + $0x290] ss:$8 sps:$4 sm:$0xff]   ;;  %v3438_v40 = vld [vmem:[%s4761_s1 + $0x2a4] ss:$8 sps:$4 sm:$0xff]  }
  0x13   : > { %886 = vmatpush1.bf16.msra.mxu1 %v3400_v14  ;;  %v3437_v39 = vld [vmem:[%s4761_s1 + $0x490] ss:$8 sps:$4 sm:$0xff]   ;;  %s3368_s21 = smul.u32 80, %s4771_s13  ;;  %v3440_v41 = vld [vmem:[%s4761_s1 + $0x4a4] ss:$8 sps:$4 sm:$0xff]   ;;  %s3339_s18 = sshll.u32 %s4771_s13, 4 }
  0x14   : > { %1920 = vmatpush1.bf16.msra.mxu0 %v3401_v15  ;;  %887 = vmatprep.subr.bf16.mxu1 %v3402_v16  ;;  %v3442_v42 = vld [vmem:[%s4761_s1 + $0x2a0] ss:$8 sps:$4 sm:$0xff]   ;;  %vm391_vm0 = vsmask.f32 1280  ;;  %v3444_v44 = vld [vmem:[%s4761_s1 + $0x2b4] ss:$8 sps:$4 sm:$0xff]  }
  0x15   : > { %1921 = vmatprep.subr.bf16.mxu0 %v3404_v17  ;;  %v3443_v43 = vld [vmem:[%s4761_s1 + $0x4a0] ss:$8 sps:$4 sm:$0xff]   ;;  %s3944_s5 = scalar_lea.vmem %s4760_s0, %s3368_s21  ;;  %vm392_vm1 = vsmask.f32 3336  ;;  %v3446_v46 = vld [vmem:[%s4761_s1 + $0x4b4] ss:$8 sps:$4 sm:$0xff]   ;;  %s170_s21 = scalar_lea.vmem %s4763_s3, %s3339_s18 }
  0x16   : > { %vm394_vm2 = vsmask.f32 5392  ;;  %v3448_v47 = vld [vmem:[%s4761_s1 + $0x2b0] ss:$8 sps:$4 sm:$0xff]   ;;  %v3450_v49 = vld [vmem:[%s4761_s1 + $0x2c4] ss:$8 sps:$4 sm:$0xff]   ;;  %vm3983_vm4 = vmor %vm391_vm0, %vm392_vm1 }
  0x17   : > { %888 = vmatpush1.bf16.msra.mxu1 %v3406_v18  ;;  %v3449_v48 = vld [vmem:[%s4761_s1 + $0x4b0] ss:$8 sps:$4 sm:$0xff]   ;;  %v2829_v50 = vld.sshfl [vmem:[%s3944_s5] sm:$0x5f pattern:$0x76325410]  ;;  %vm3998_vm5 = vmor %vm3983_vm4, %vm394_vm2 }
  0x18   : > { %1922 = vmatpush1.bf16.msra.mxu0 %v3407_v19  ;;  %889 = vmatprep.subr.bf16.mxu1 %v3408_v20  ;;  %vm396_vm3 = vsmask.f32 7448  ;;  %v2830_v51 = vld.sshfl [vmem:[%s3944_s5 + $0x8] sm:$0x5f pattern:$0x76325410] }
  0x19   : > { %1923 = vmatprep.subr.bf16.mxu0 %v3410_v21  ;;  %v3452_v53 = vld [vmem:[%s4761_s1 + $0x4c4] ss:$8 sps:$4 sm:$0xff]   ;;  %v2831_v54 = vld.sshfl [vmem:[%s3944_s5 + $0x10] sm:$0x5f pattern:$0x76325410]  ;;  %v341_v55 = vcombine.low %v2829_v50, %v2830_v51  ;;  %v342_v56 = vcombine.high %v2829_v50, %v2830_v51  ;;  %vm4020_vm6 = vmor %vm3998_vm5, %vm396_vm3 }
  0x1a   : > { %v3454_v57 = vld [vmem:[%s4761_s1 + $0x2c0] ss:$8 sps:$4 sm:$0xff]   ;;  %v2832_v59 = vld.sshfl [vmem:[%s3944_s5 + $0x18] sm:$0x5f pattern:$0x76325410] }
  0x1b   : > { %890 = vmatpush1.bf16.msra.mxu1 %v3412_v22  ;;  %v3455_v58 = vld [vmem:[%s4761_s1 + $0x4c0] ss:$8 sps:$4 sm:$0xff]   ;;  %v3770_v60 = vmov 1983009808   ;;  %v3456_v62 = vld [vmem:[%s4761_s1 + $0x2d4] ss:$8 sps:$4 sm:$0xff]   ;;  %v357_v1 = vcombine.low %v2831_v54, %v2832_v59  ;;  %v358_v5 = vcombine.high %v2831_v54, %v2832_v59 }
  0x1c   : > { %1924 = vmatpush1.bf16.msra.mxu0 %v3413_v23  ;;  %891 = vmatprep.subr.bf16.mxu1 %v3414_v24  ;;  %v524_v61 = vunpack.c.l.s4 %v3770_v60  ;;  %v3458_v63 = vld [vmem:[%s4761_s1 + $0x4d4] ss:$8 sps:$4 sm:$0xff]   ;;  %v2833_v0 = vld.sshfl [vmem:[%s3944_s5 + $0x20] sm:$0x5f pattern:$0x76325410] }
  0x1d   : > { %1925 = vmatprep.subr.bf16.mxu0 %v3416_v25  ;;  %v399_v2 = vshrl.u32 %v341_v55, 16  ;;  %v402_v3 = vshll.u32 %v341_v55, 16  ;;  %v2834_v4 = vld.sshfl [vmem:[%s3944_s5 + $0x28] sm:$0x5f pattern:$0x76325410] }
  0x1e   : > { %v408_v7 = vshll.u32 %v342_v56, 16  ;;  %v2835_v8 = vld.sshfl [vmem:[%s3944_s5 + $0x30] sm:$0x5f pattern:$0x76325410]  ;;  %v373_v9 = vcombine.low %v2833_v0, %v2834_v4  ;;  %v374_v10 = vcombine.high %v2833_v0, %v2834_v4  ;;  %v413_v17 = vshrl.u32 %v357_v1, 16 }
  0x1f   : > { %892 = vmatpush1.bf16.msra.mxu1 %v3418_v26  ;;  %v401_v11 = vrot.slane %v399_v2, 6  ;;  %v404_v12 = vrot.slane %v402_v3, 7  ;;  %v3460_v13 = vld [vmem:[%s4761_s1 + $0x2d0] ss:$8 sps:$4 sm:$0xff]   ;;  %v525_v18 = vunpack.c.0.s8 %v524_v61  ;;  %v416_v23 = vshll.u32 %v357_v1, 16 }
  0x20   : > { %1926 = vmatpush1.bf16.msra.mxu0 %v3419_v27  ;;  %893 = vmatprep.subr.bf16.mxu1 %v3420_v28  ;;  %v3461_v14 = vld [vmem:[%s4761_s1 + $0x4d0] ss:$8 sps:$4 sm:$0xff]   ;;  %v410_v16 = vrot.slane %v408_v7, 7  ;;  %v3462_v25 = vld [vmem:[%s4761_s1 + $0x2e4] ss:$8 sps:$4 sm:$0xff]   ;;  %v415_v26 = vrot.slane %v413_v17, 6 }
  0x21   : > { %1927 = vmatprep.subr.bf16.mxu0 %v3422_v29  ;;  %v2836_v15 = vld.sshfl [vmem:[%s3944_s5 + $0x38] sm:$0x5f pattern:$0x76325410]  ;;  %v405_v22 = vor.u32 %v404_v12, %v401_v11  ;;  %v422_v27 = vshll.u32 %v358_v5, 16  ;;  %v427_v28 = vshrl.u32 %v373_v9, 16 }
  0x22   : > { %v389_v19 = vcombine.low %v2835_v8, %v2836_v15  ;;  %v390_v20 = vcombine.high %v2835_v8, %v2836_v15  ;;  %v4003_v24 = vld.sshfl [vmem:[%s3944_s5 + $0x10] sm:$0xf pattern:$0x76325410]  ;;  %v430_v29 = vshll.u32 %v373_v9, 16 }
  0x23   : > { %894 = vmatpush1.bf16.msra.mxu1 %v3424_v30  ;;  %v3464_v30 = vld [vmem:[%s4761_s1 + $0x4e4] ss:$8 sps:$4 sm:$0xff]   ;;  %v3473_v1 = vld [vmem:[%s4761_s1 + $0x4f0] ss:$8 sps:$4 sm:$0xff]  }
  0x24   : > { %1928 = vmatpush1.bf16.msra.mxu0 %v3425_v31  ;;  %895 = vmatprep.subr.bf16.mxu1 %v3426_v32  ;;  %v406_v31 = vrot.slane %v405_v22, 2  ;;  %v418_v32 = vrot.slane %v416_v23, 7  ;;  %v450_v51 = vshll.u32 %v390_v20, 16  ;;  %v3476_v6 = vld [vmem:[%s4761_s1 + $0x304] ss:$8 sps:$4 sm:$0xff]  }
  0x25   : > { %1929 = vmatprep.subr.bf16.mxu0 %v3428_v33  ;;  %v436_v33 = vshll.u32 %v374_v10, 16  ;;  %v3479_v10 = vld [vmem:[%s4761_s1 + $0x504] ss:$8 sps:$4 sm:$0xff]   ;;  %v3474_v22 = vld [vmem:[%s4761_s1 + $0x300] ss:$8 sps:$4 sm:$0xff]  }
  0x26   : > { %v411_v55 = vsel %vm4020_vm6, %v406_v31, %v410_v16  ;;  %v452_v60 = vrot.slane %v450_v51, 7  ;;  %v3477_v16 = vld [vmem:[%s4761_s1 + $0x500] ss:$8 sps:$4 sm:$0xff]   ;;  %v3488_v31 = vld [vmem:[%s4761_s1 + $0x324] ss:$8 sps:$4 sm:$0xff]  }
  0x27   : > { %896 = vmatpush1.bf16.msra.mxu1 %v3430_v34  ;;  %v441_v34 = vshrl.u32 %v389_v19, 16  ;;  %v438_v45 = vrot.slane %v436_v33, 7  ;;  %v3497_v33 = vld [vmem:[%s4761_s1 + $0x534] ss:$8 sps:$4 sm:$0xff]   ;;  %v3513_v51 = vld [vmem:[%s4761_s1 + $0x560] ss:$8 sps:$4 sm:$0xff]  }
  0x28   : > { %1930 = vmatpush1.bf16.msra.mxu0 %v3431_v35  ;;  %897 = vmatprep.subr.bf16.mxu1 %v3432_v36  ;;  %v3466_v35 = vld [vmem:[%s4761_s1 + $0x2e0] ss:$8 sps:$4 sm:$0xff]  }
  0x29   : > { %1931 = vmatprep.subr.bf16.mxu0 %v3434_v37  ;;  %v3467_v36 = vld [vmem:[%s4761_s1 + $0x4e0] ss:$8 sps:$4 sm:$0xff]   ;;  %v3620_v37 = vld [vmem:[%s4761_s1 + $0x84] ss:$8 sps:$4 sm:$0xff]  }
  0x2b   : > { %898 = vmatpush1.bf16.msra.mxu1 %v3436_v38  ;;  %v424_v38 = vrot.slane %v422_v27, 7 }
  0x2c   : > { %1932 = vmatpush1.bf16.msra.mxu0 %v3437_v39  ;;  %899 = vmatprep.subr.bf16.mxu1 %v3438_v40  ;;  %v429_v39 = vrot.slane %v427_v28, 6  ;;  %v432_v40 = vrot.slane %v430_v29, 7  ;;  %v3483_v28 = vld [vmem:[%s4761_s1 + $0x510] ss:$8 sps:$4 sm:$0xff]   ;;  %v3491_v29 = vld [vmem:[%s4761_s1 + $0x524] ss:$8 sps:$4 sm:$0xff]  }
  0x2d   : > { %1933 = vmatprep.subr.bf16.mxu0 %v3440_v41  ;;  %v444_v41 = vshll.u32 %v389_v19, 16  ;;  %v3485_v19 = vld [vmem:[%s4761_s1 + $0x514] ss:$8 sps:$4 sm:$0xff]  }
  0x2f   : > { %900 = vmatpush1.bf16.msra.mxu1 %v3442_v42  ;;  %v3468_v42 = vld [vmem:[%s4761_s1 + $0x2f4] ss:$8 sps:$4 sm:$0xff]   ;;  %v446_v50 = vrot.slane %v444_v41, 7  ;;  %v3501_v41 = vld [vmem:[%s4761_s1 + $0x540] ss:$8 sps:$4 sm:$0xff]  }
  0x30   : > { %1934 = vmatpush1.bf16.msra.mxu0 %v3443_v43  ;;  %901 = vmatprep.subr.bf16.mxu1 %v3444_v44  ;;  %v3470_v43 = vld [vmem:[%s4761_s1 + $0x4f4] ss:$8 sps:$4 sm:$0xff]   ;;  %v419_v44 = vor.u32 %v418_v32, %v415_v26  ;;  %v3489_v32 = vld [vmem:[%s4761_s1 + $0x520] ss:$8 sps:$4 sm:$0xff]  }
  0x31   : > { %1935 = vmatprep.subr.bf16.mxu0 %v3446_v46  ;;  %v443_v46 = vrot.slane %v441_v34, 6  ;;  %v3486_v34 = vld [vmem:[%s4761_s1 + $0x320] ss:$8 sps:$4 sm:$0xff]  }
  0x32   : > { %v420_v56 = vrot.slane %v419_v44, 2  ;;  %v3506_v44 = vld [vmem:[%s4761_s1 + $0x354] ss:$8 sps:$4 sm:$0xff]  }
  0x33   : > { %902 = vmatpush1.bf16.msra.mxu1 %v3448_v47  ;;  %v4031_v47 = vsub.s32 %v525_v18, %v3960_v52  ;;  %v447_v59 = vor.u32 %v446_v50, %v443_v46  ;;  %v3515_v46 = vld [vmem:[%s4761_s1 + $0x564] ss:$8 sps:$4 sm:$0xff]  }
  0x34   : > { %1936 = vmatpush1.bf16.msra.mxu0 %v3449_v48  ;;  %903 = vmatprep.subr.bf16.mxu1 %v3450_v49  ;;  %v4034_v48 = vld.sshfl [vmem:[%s3944_s5 + $0x20] sm:$0xf pattern:$0x76325410]  ;;  %v433_v49 = vor.u32 %v432_v40, %v429_v39  ;;  %v3492_v39 = vld [vmem:[%s4761_s1 + $0x330] ss:$8 sps:$4 sm:$0xff]  }
  0x35   : > { %1937 = vmatprep.subr.bf16.mxu0 %v3452_v53  ;;  %v4037_v53 = vld.sshfl [vmem:[%s3944_s5 + $0x30] sm:$0xf pattern:$0x76325410]  ;;  %v3113_v54 = vcombine.low %v4003_v24, %v4034_v48  ;;  %v448_v3 = vrot.slane %v447_v59, 2 }
  0x36   : > { %v2967_v17 = vcombine.low %v4034_v48, %v4037_v53  ;;  %v3500_v40 = vld [vmem:[%s4761_s1 + $0x344] ss:$8 sps:$4 sm:$0xff]   ;;  %v3516_v59 = vld [vmem:[%s4761_s1 + $0x370] ss:$8 sps:$4 sm:$0xff]  }
  0x37   : > { %904 = vmatpush1.bf16.msra.mxu1 %v3454_v57  ;;  %v3047_v57 = vld.sshfl [vmem:[%s3944_s5 + $0x40] sm:$0xf pattern:$0x76325410]  ;;  %v1563_v0 = vrot.slane %v3113_v54, %v4031_v47  ;;  %v4068_v8 = vsel %vm4020_vm6, %v448_v3, %v452_v60  ;;  %v3521_v54 = vld [vmem:[%s4761_s1 + $0x574] ss:$8 sps:$4 sm:$0xff]  }
  0x38   : > { %1938 = vmatpush1.bf16.msra.mxu0 %v3455_v58  ;;  %905 = vmatprep.subr.bf16.mxu1 %v3456_v62  ;;  %v434_v58 = vrot.slane %v433_v49, 2  ;;  %v3115_v61 = vcombine.low %v4037_v53, %v3047_v57  ;;  %v3472_v62 = vld [vmem:[%s4761_s1 + $0x2f0] ss:$8 sps:$4 sm:$0xff]   ;;  %v3512_v50 = vld [vmem:[%s4761_s1 + $0x364] ss:$8 sps:$4 sm:$0xff]  }
  0x39   : > { %1939 = vmatprep.subr.bf16.mxu0 %v3458_v63  ;;  %v4050_v63 = vsel %vm4020_vm6, %v420_v56, %v424_v38  ;;  %v3503_v38 = vld [vmem:[%s4761_s1 + $0x544] ss:$8 sps:$4 sm:$0xff]   ;;  %v3504_v49 = vld [vmem:[%s4761_s1 + $0x350] ss:$8 sps:$4 sm:$0xff]   ;;  %v3518_v56 = vld [vmem:[%s4761_s1 + $0x374] ss:$8 sps:$4 sm:$0xff]  }
  0x3a   : > { %v4058_v2 = vsel %vm4020_vm6, %v434_v58, %v438_v45  ;;  %v519_v4 = vcombine.low %v411_v55, %v4050_v63  ;;  %v520_v5 = vcombine.high %v411_v55, %v4050_v63  ;;  %v1577_v7 = vrot.slane %v3115_v61, %v4031_v47  ;;  %v3507_v45 = vld [vmem:[%s4761_s1 + $0x550] ss:$8 sps:$4 sm:$0xff]   ;;  %v3510_v55 = vld [vmem:[%s4761_s1 + $0x360] ss:$8 sps:$4 sm:$0xff]   ;;  %v3527_v58 = vld [vmem:[%s4761_s1 + $0x584] ss:$8 sps:$4 sm:$0xff]  }
  0x3b   : > { %906 = vmatpush1.bf16.msra.mxu1 %v3460_v13  ;;  %v521_v12 = vcombine.low %v4058_v2, %v4068_v8  ;;  %v522_v13 = vcombine.high %v4058_v2, %v4068_v8  ;;  %v3519_v57 = vld [vmem:[%s4761_s1 + $0x570] ss:$8 sps:$4 sm:$0xff]   ;;  %v3524_v60 = vld [vmem:[%s4761_s1 + $0x384] ss:$8 sps:$4 sm:$0xff]   ;;  %v3525_v61 = vld [vmem:[%s4761_s1 + $0x580] ss:$8 sps:$4 sm:$0xff]  }
  0x3c   : > { %1940 = vmatpush1.bf16.msra.mxu0 %v3461_v14  ;;  %907 = vmatprep.subr.bf16.mxu1 %v3462_v25  ;;  %v529_v9 = vrot.slane %v519_v4, %v4031_v47  ;;  %v4075_v11 = vrot.slane %v520_v5, %v4031_v47  ;;  %v1586_v14 = vcombine.high %v1563_v0, %v1577_v7  ;;  %v3482_v25 = vld [vmem:[%s4761_s1 + $0x314] ss:$8 sps:$4 sm:$0xff]   ;;  %v3531_v4 = vld [vmem:[%s4761_s1 + $0x590] ss:$8 sps:$4 sm:$0xff]  }
  0x3d   : > { %1941 = vmatprep.subr.bf16.mxu0 %v3464_v30  ;;  %v1585_v15 = vcombine.low %v1563_v0, %v1577_v7  ;;  %v543_v18 = vrot.slane %v521_v12, %v4031_v47  ;;  %v4091_v20 = vrot.slane %v522_v13, %v4031_v47  ;;  %v3480_v30 = vld [vmem:[%s4761_s1 + $0x310] ss:$8 sps:$4 sm:$0xff]   ;;  %v3522_v0 = vld [vmem:[%s4761_s1 + $0x380] ss:$8 sps:$4 sm:$0xff]   ;;  %v3602_v53 = vld [vmem:[%s4761_s1 + $0x54] ss:$8 sps:$4 sm:$0xff]  }
  0x3e   : > { %1945 = vmatprep.mubr.bf16.mxu0 %v1586_v14  ;;  %v4200_v3 = vld.sshfl [vmem:[%s3944_s5 + $0x18] sm:$0xf pattern:$0x76325410] }
  0x3f   : > { %908 = vmatpush1.bf16.msra.mxu1 %v3466_v35  ;;  %v552_v21 = vcombine.high %v529_v9, %v543_v18  ;;  %v551_v23 = vcombine.low %v529_v9, %v543_v18  ;;  %v554_v26 = vcombine.high %v4075_v11, %v4091_v20  ;;  %v553_v27 = vcombine.low %v4075_v11, %v4091_v20  ;;  %v3494_v35 = vld [vmem:[%s4761_s1 + $0x334] ss:$8 sps:$4 sm:$0xff]   ;;  %v4206_v5 = vld.sshfl [vmem:[%s3944_s5 + $0x28] sm:$0xf pattern:$0x76325410] }
  0x40   : > { %1942 = vmatpush1.bf16.msra.mxu0 %v3467_v36  ;;  %909 = vmatprep.subr.bf16.mxu1 %v3468_v42  ;;  %v3495_v36 = vld [vmem:[%s4761_s1 + $0x530] ss:$8 sps:$4 sm:$0xff]   ;;  %v3509_v42 = vld [vmem:[%s4761_s1 + $0x554] ss:$8 sps:$4 sm:$0xff]   ;;  %v3114_v9 = vcombine.low %v4200_v3, %v4206_v5  ;;  %v3582_v20 = vld [vmem:[%s4761_s1 + $0x20] ss:$8 sps:$4 sm:$0xff]  }
  0x41   : > { %1943 = vmatprep.subr.bf16.mxu0 %v3470_v43  ;;  %911 = vmatprep.mubr.bf16.mxu1 %v552_v21  ;;  %v3498_v43 = vld [vmem:[%s4761_s1 + $0x340] ss:$8 sps:$4 sm:$0xff]   ;;  %v4212_v7 = vld.sshfl [vmem:[%s3944_s5 + $0x38] sm:$0xf pattern:$0x76325410] }
  0x42   : > { %v3528_v12 = vld [vmem:[%s4761_s1 + $0x390] ss:$8 sps:$4 sm:$0xff]   ;;  %v1570_v14 = vrot.slane %v3114_v9, %v4031_v47  ;;  %v3545_v18 = vld [vmem:[%s4761_s1 + $0x5b4] ss:$8 sps:$4 sm:$0xff]   ;;  %v3534_v21 = vld [vmem:[%s4761_s1 + $0x3a0] ss:$8 sps:$4 sm:$0xff]  }
  0x43   : > { %910 = vmatpush1.bf16.msra.mxu1 %v3472_v62  ;;  %v3533_v62 = vld [vmem:[%s4761_s1 + $0x594] ss:$8 sps:$4 sm:$0xff]   ;;  %v3597_v9 = vld [vmem:[%s4761_s1 + $0x640] ss:$8 sps:$4 sm:$0xff]  }
  0x44   : > { %1944 = vmatpush1.bf16.msra.mxu0 %v3473_v1  ;;  %922 = vmatprep.subr.bf16.mxu1 %v3476_v6  ;;  %v3530_v1 = vld [vmem:[%s4761_s1 + $0x394] ss:$8 sps:$4 sm:$0xff]   ;;  %v3539_v6 = vld [vmem:[%s4761_s1 + $0x5a4] ss:$8 sps:$4 sm:$0xff]  }
  0x45   : > { %1956 = vmatprep.subr.bf16.mxu0 %v3479_v10  ;;  %v3048_v10 = vld.sshfl [vmem:[%s3944_s5 + $0x48] sm:$0xf pattern:$0x76325410]  ;;  %v3593_v11 = vld [vmem:[%s4761_s1 + $0x634] ss:$8 sps:$4 sm:$0xff]  }
  0x46   : > { %912 = vmatmul.mubr.bf16.vlgmr.msra.gmra.mrb[0].mxu1 %v551_v23  ;;  %v3116_v13 = vcombine.low %v4212_v7, %v3048_v10  ;;  %v3542_v23 = vld [vmem:[%s4761_s1 + $0x3b4] ss:$8 sps:$4 sm:$0xff]  }
  0x47   : > { %1946 = vmatmul.mubr.bf16.vlgmr.msra.gmra.mrb[0].mxu0 %v1585_v15  ;;  %923 = vmatpush1.bf16.msra.mxu1 %v3474_v22  ;;  %v3536_v15 = vld [vmem:[%s4761_s1 + $0x3a4] ss:$8 sps:$4 sm:$0xff]  }
  0x48   : > { %1957 = vmatpush1.bf16.msra.mxu0 %v3477_v16  ;;  %954 = vmatprep.mubr.bf16.mxu1 %v554_v26  ;;  %v3537_v16 = vld [vmem:[%s4761_s1 + $0x5a0] ss:$8 sps:$4 sm:$0xff]   ;;  %v3551_v26 = vld [vmem:[%s4761_s1 + $0x5c4] ss:$8 sps:$4 sm:$0xff]  }
  0x49   : > { %1958 = vmatprep.subr.bf16.mxu0 %v3485_v19  ;;  %924 = vmatprep.subr.bf16.mxu1 %v3482_v25  ;;  %v1584_v19 = vrot.slane %v3116_v13, %v4031_v47  ;;  %v3543_v25 = vld [vmem:[%s4761_s1 + $0x5b0] ss:$8 sps:$4 sm:$0xff]   ;;  %v3195_v13 = vld.sshfl [vmem:[%s3944_s5 + $0x40] sm:$0x5f pattern:$0x76325410] }
  0x4b   : > { %925 = vmatpush1.bf16.msra.mxu1 %v3480_v30  ;;  %v1588_v22 = vcombine.high %v1570_v14, %v1584_v19  ;;  %v3549_v30 = vld [vmem:[%s4761_s1 + $0x5c0] ss:$8 sps:$4 sm:$0xff]  }
  0x4c   : > { %1959 = vmatpush1.bf16.msra.mxu0 %v3483_v28  ;;  %926 = vmatprep.subr.bf16.mxu1 %v3488_v31  ;;  %v3540_v28 = vld [vmem:[%s4761_s1 + $0x3b0] ss:$8 sps:$4 sm:$0xff]   ;;  %v3557_v31 = vld [vmem:[%s4761_s1 + $0x5d4] ss:$8 sps:$4 sm:$0xff]  }
  0x4d   : > { %1960 = vmatprep.subr.bf16.mxu0 %v3491_v29  ;;  %1988 = vmatprep.mubr.bf16.mxu0 %v1588_v22  ;;  %v3548_v29 = vld [vmem:[%s4761_s1 + $0x3c4] ss:$8 sps:$4 sm:$0xff]  }
  0x4f   : > { %927 = vmatpush1.bf16.msra.mxu1 %v3486_v34  ;;  %v3555_v34 = vld [vmem:[%s4761_s1 + $0x5d0] ss:$8 sps:$4 sm:$0xff]  }
  0x50   : > { %1961 = vmatpush1.bf16.msra.mxu0 %v3489_v32  ;;  %928 = vmatprep.subr.bf16.mxu1 %v3494_v35  ;;  %v3546_v32 = vld [vmem:[%s4761_s1 + $0x3c0] ss:$8 sps:$4 sm:$0xff]   ;;  %v3563_v35 = vld [vmem:[%s4761_s1 + $0x5e4] ss:$8 sps:$4 sm:$0xff]  }
  0x51   : > { %1962 = vmatprep.subr.bf16.mxu0 %v3497_v33  ;;  %v3554_v33 = vld [vmem:[%s4761_s1 + $0x3d4] ss:$8 sps:$4 sm:$0xff]  }
  0x53   : > { %929 = vmatpush1.bf16.msra.mxu1 %v3492_v39  ;;  %v3561_v39 = vld [vmem:[%s4761_s1 + $0x5e0] ss:$8 sps:$4 sm:$0xff]  }
  0x54   : > { %1963 = vmatpush1.bf16.msra.mxu0 %v3495_v36  ;;  %930 = vmatprep.subr.bf16.mxu1 %v3500_v40  ;;  %v3552_v36 = vld [vmem:[%s4761_s1 + $0x3d0] ss:$8 sps:$4 sm:$0xff]   ;;  %v3569_v40 = vld [vmem:[%s4761_s1 + $0x5f4] ss:$8 sps:$4 sm:$0xff]  }
  0x55   : > { %1964 = vmatprep.subr.bf16.mxu0 %v3503_v38  ;;  %v3560_v38 = vld [vmem:[%s4761_s1 + $0x3e4] ss:$8 sps:$4 sm:$0xff]  }
  0x57   : > { %931 = vmatpush1.bf16.msra.mxu1 %v3498_v43  ;;  %v3567_v43 = vld [vmem:[%s4761_s1 + $0x5f0] ss:$8 sps:$4 sm:$0xff]  }
  0x58   : > { %1965 = vmatpush1.bf16.msra.mxu0 %v3501_v41  ;;  %932 = vmatprep.subr.bf16.mxu1 %v3506_v44  ;;  %v3558_v41 = vld [vmem:[%s4761_s1 + $0x3e0] ss:$8 sps:$4 sm:$0xff]   ;;  %v3575_v44 = vld [vmem:[%s4761_s1 + $0x604] ss:$8 sps:$4 sm:$0xff]  }
  0x59   : > { %1966 = vmatprep.subr.bf16.mxu0 %v3509_v42  ;;  %v3566_v42 = vld [vmem:[%s4761_s1 + $0x3f4] ss:$8 sps:$4 sm:$0xff]  }
  0x5b   : > { %933 = vmatpush1.bf16.msra.mxu1 %v3504_v49  ;;  %v2968_v49 = vcombine.low %v4206_v5, %v4212_v7  ;;  %v3668_v7 = vld [vmem:[%s4761_s1 + $0x104] ss:$8 sps:$4 sm:$0xff]  }
  0x5c   : > { %1967 = vmatpush1.bf16.msra.mxu0 %v3507_v45  ;;  %934 = vmatprep.subr.bf16.mxu1 %v3512_v50  ;;  %v3564_v45 = vld [vmem:[%s4761_s1 + $0x3f0] ss:$8 sps:$4 sm:$0xff]   ;;  %v3572_v50 = vld [vmem:[%s4761_s1 + $0x4] ss:$8 sps:$4 sm:$0xff]  }
  0x5d   : > { %1968 = vmatprep.subr.bf16.mxu0 %v3515_v46  ;;  %v1587_v46 = vcombine.low %v1570_v14, %v1584_v19  ;;  %v3605_v14 = vld [vmem:[%s4761_s1 + $0x654] ss:$8 sps:$4 sm:$0xff]   ;;  %v3603_v19 = vld [vmem:[%s4761_s1 + $0x650] ss:$8 sps:$4 sm:$0xff]  }
  0x5f   : > { %935 = vmatpush1.bf16.msra.mxu1 %v3510_v55  ;;  %v3570_v55 = vld [vmem:[%s4761_s1] ss:$8 sps:$4 sm:$0xff]  }
  0x60   : > { %1969 = vmatpush1.bf16.msra.mxu0 %v3513_v51  ;;  %936 = vmatprep.subr.bf16.mxu1 %v3518_v56  ;;  %v3573_v51 = vld [vmem:[%s4761_s1 + $0x600] ss:$8 sps:$4 sm:$0xff]   ;;  %v3578_v56 = vld [vmem:[%s4761_s1 + $0x14] ss:$8 sps:$4 sm:$0xff]  }
  0x61   : > { %1970 = vmatprep.subr.bf16.mxu0 %v3521_v54  ;;  %v3581_v54 = vld [vmem:[%s4761_s1 + $0x614] ss:$8 sps:$4 sm:$0xff]  }
  0x63   : > { %937 = vmatpush1.bf16.msra.mxu1 %v3516_v59  ;;  %v3576_v59 = vld [vmem:[%s4761_s1 + $0x10] ss:$8 sps:$4 sm:$0xff]  }
  0x64   : > { %1971 = vmatpush1.bf16.msra.mxu0 %v3519_v57  ;;  %938 = vmatprep.subr.bf16.mxu1 %v3524_v60  ;;  %v3579_v57 = vld [vmem:[%s4761_s1 + $0x610] ss:$8 sps:$4 sm:$0xff]   ;;  %v3584_v60 = vld [vmem:[%s4761_s1 + $0x24] ss:$8 sps:$4 sm:$0xff]  }
  0x65   : > { %1972 = vmatprep.subr.bf16.mxu0 %v3527_v58  ;;  %v3587_v58 = vld [vmem:[%s4761_s1 + $0x624] ss:$8 sps:$4 sm:$0xff]  }
  0x67   : > { %939 = vmatpush1.bf16.msra.mxu1 %v3522_v0  ;;  %v3588_v0 = vld [vmem:[%s4761_s1 + $0x30] ss:$8 sps:$4 sm:$0xff]  }
  0x68   : > { %1973 = vmatpush1.bf16.msra.mxu0 %v3525_v61  ;;  %940 = vmatprep.subr.bf16.mxu1 %v3530_v1  ;;  %v3585_v61 = vld [vmem:[%s4761_s1 + $0x620] ss:$8 sps:$4 sm:$0xff]   ;;  %v3599_v1 = vld [vmem:[%s4761_s1 + $0x644] ss:$8 sps:$4 sm:$0xff]  }
  0x69   : > { %1974 = vmatprep.subr.bf16.mxu0 %v3533_v62  ;;  %v3591_v62 = vld [vmem:[%s4761_s1 + $0x630] ss:$8 sps:$4 sm:$0xff]  }
  0x6b   : > { %941 = vmatpush1.bf16.msra.mxu1 %v3528_v12  ;;  %v4360_v12 = vrot.slane %v2967_v17, %v4031_v47 }
  0x6c   : > { %1975 = vmatpush1.bf16.msra.mxu0 %v3531_v4  ;;  %942 = vmatprep.subr.bf16.mxu1 %v3536_v15  ;;  %v2821_v4 = vld.sshfl [vmem:[%s3944_s5] sm:$0xf pattern:$0x76325410] }
  0x6d   : > { %1976 = vmatprep.subr.bf16.mxu0 %v3539_v6  ;;  %v3596_v6 = vld [vmem:[%s4761_s1 + $0x44] ss:$8 sps:$4 sm:$0xff]   ;;  %v2965_v10 = vcombine.low %v2821_v4, %v4003_v24  ;;  %v3594_v24 = vld [vmem:[%s4761_s1 + $0x40] ss:$8 sps:$4 sm:$0xff]  }
  0x6e   : > { %v3644_v4 = vld [vmem:[%s4761_s1 + $0xc4] ss:$8 sps:$4 sm:$0xff]  }
  0x6f   : > { %943 = vmatpush1.bf16.msra.mxu1 %v3534_v21  ;;  %v4367_v15 = vrot.slane %v2965_v10, %v4031_v47  ;;  %v3642_v10 = vld [vmem:[%s4761_s1 + $0xc0] ss:$8 sps:$4 sm:$0xff]  }
  0x70   : > { %1977 = vmatpush1.bf16.msra.mxu0 %v3537_v16  ;;  %944 = vmatprep.subr.bf16.mxu1 %v3542_v23  ;;  %v3196_v16 = vld.sshfl [vmem:[%s3944_s5 + $0x48] sm:$0x5f pattern:$0x76325410] }
  0x71   : > { %1978 = vmatprep.subr.bf16.mxu0 %v3545_v18  ;;  %v2081_v18 = vcombine.low %v3195_v13, %v3196_v16  ;;  %v2082_v48 = vcombine.high %v3195_v13, %v3196_v16  ;;  %v998_v17 = vcombine.high %v4367_v15, %v4360_v12  ;;  %v3650_v13 = vld [vmem:[%s4761_s1 + $0xd4] ss:$8 sps:$4 sm:$0xff]   ;;  %v3659_v16 = vld [vmem:[%s4761_s1 + $0x6e4] ss:$8 sps:$4 sm:$0xff]  }
  0x73   : > { %945 = vmatpush1.bf16.msra.mxu1 %v3540_v28  ;;  %v2126_v21 = vshrl.u32 %v2081_v18, 16  ;;  %v2129_v22 = vshll.u32 %v2081_v18, 16  ;;  %v2135_v23 = vshll.u32 %v2082_v48, 16  ;;  %v3656_v18 = vld [vmem:[%s4761_s1 + $0xe4] ss:$8 sps:$4 sm:$0xff]  }
  0x74   : > { %1979 = vmatpush1.bf16.msra.mxu0 %v3543_v25  ;;  %946 = vmatprep.subr.bf16.mxu1 %v3548_v29  ;;  %v3611_v25 = vld [vmem:[%s4761_s1 + $0x664] ss:$8 sps:$4 sm:$0xff]   ;;  %v3600_v29 = vld [vmem:[%s4761_s1 + $0x50] ss:$8 sps:$4 sm:$0xff]   ;;  %v3657_v48 = vld [vmem:[%s4761_s1 + $0x6e0] ss:$8 sps:$4 sm:$0xff]  }
  0x75   : > { %1980 = vmatprep.subr.bf16.mxu0 %v3551_v26  ;;  %v2128_v26 = vrot.slane %v2126_v21, 6  ;;  %v2131_v28 = vrot.slane %v2129_v22, 7  ;;  %v3654_v21 = vld [vmem:[%s4761_s1 + $0xe0] ss:$8 sps:$4 sm:$0xff]  }
  0x76   : > { %v2822_v22 = vld.sshfl [vmem:[%s3944_s5 + $0x8] sm:$0xf pattern:$0x76325410] }
  0x77   : > { %947 = vmatpush1.bf16.msra.mxu1 %v3546_v32  ;;  %v2132_v32 = vor.u32 %v2131_v28, %v2128_v26 }
  0x78   : > { %1981 = vmatpush1.bf16.msra.mxu0 %v3549_v30  ;;  %948 = vmatprep.subr.bf16.mxu1 %v3554_v33  ;;  %v3608_v30 = vld [vmem:[%s4761_s1 + $0x64] ss:$8 sps:$4 sm:$0xff]   ;;  %v2137_v33 = vrot.slane %v2135_v23, 7  ;;  %v3662_v23 = vld [vmem:[%s4761_s1 + $0xf4] ss:$8 sps:$4 sm:$0xff]  }
  0x79   : > { %1982 = vmatprep.subr.bf16.mxu0 %v3557_v31  ;;  %v3609_v31 = vld [vmem:[%s4761_s1 + $0x660] ss:$8 sps:$4 sm:$0xff]  }
  0x7b   : > { %949 = vmatpush1.bf16.msra.mxu1 %v3552_v36  ;;  %v2133_v36 = vrot.slane %v2132_v32, 2  ;;  %v997_v32 = vcombine.low %v4367_v15, %v4360_v12  ;;  %v3683_v12 = vld [vmem:[%s4761_s1 + $0x724] ss:$8 sps:$4 sm:$0xff]   ;;  %v3672_v15 = vld [vmem:[%s4761_s1 + $0x110] ss:$8 sps:$4 sm:$0xff]  }
  0x7c   : > { %1983 = vmatpush1.bf16.msra.mxu0 %v3555_v34  ;;  %950 = vmatprep.subr.bf16.mxu1 %v3560_v38  ;;  %v3617_v34 = vld [vmem:[%s4761_s1 + $0x674] ss:$8 sps:$4 sm:$0xff]   ;;  %v3606_v38 = vld [vmem:[%s4761_s1 + $0x60] ss:$8 sps:$4 sm:$0xff]  }
  0x7d   : > { %1984 = vmatprep.subr.bf16.mxu0 %v3563_v35  ;;  %v2204_v35 = vcombine.low %v4050_v63, %v4058_v2 }
  0x7f   : > { %951 = vmatpush1.bf16.msra.mxu1 %v3558_v41  ;;  %v4409_v41 = vsel %vm4020_vm6, %v2133_v36, %v2137_v33  ;;  %v3666_v33 = vld [vmem:[%s4761_s1 + $0x100] ss:$8 sps:$4 sm:$0xff]   ;;  %v3675_v36 = vld [vmem:[%s4761_s1 + $0x710] ss:$8 sps:$4 sm:$0xff]  }
  0x80   : > { %1985 = vmatpush1.bf16.msra.mxu0 %v3561_v39  ;;  %952 = vmatprep.subr.bf16.mxu1 %v3566_v42  ;;  %v3614_v39 = vld [vmem:[%s4761_s1 + $0x74] ss:$8 sps:$4 sm:$0xff]   ;;  %v3623_v42 = vld [vmem:[%s4761_s1 + $0x684] ss:$8 sps:$4 sm:$0xff]  }
  0x81   : > { %1986 = vmatprep.subr.bf16.mxu0 %v3569_v40  ;;  %v3615_v40 = vld [vmem:[%s4761_s1 + $0x670] ss:$8 sps:$4 sm:$0xff]  }
  0x83   : > { %953 = vmatpush1.bf16.msra.mxu1 %v3564_v45  ;;  %v3612_v45 = vld [vmem:[%s4761_s1 + $0x70] ss:$8 sps:$4 sm:$0xff]  }
  0x84   : > { %1987 = vmatpush1.bf16.msra.mxu0 %v3567_v43  ;;  %1325 = vmatprep.subr.bf16.mxu1 %v3572_v50  ;;  %v2206_v43 = vcombine.low %v4068_v8, %v4409_v41  ;;  %v3621_v50 = vld [vmem:[%s4761_s1 + $0x680] ss:$8 sps:$4 sm:$0xff]  }
  0x85   : > { %2564 = vmatprep.subr.bf16.mxu0 %v3575_v44  ;;  %v4417_v44 = vrot.slane %v2204_v35, %v4031_v47  ;;  %v3674_v35 = vld [vmem:[%s4761_s1 + $0x114] ss:$8 sps:$4 sm:$0xff]  }
  0x86   : > { %955 = vmatmul.mubr.bf16.vlgmr.msra.gmra.mrb[0].mxu1 %v553_v27  ;;  %v3590_v27 = vld [vmem:[%s4761_s1 + $0x34] ss:$8 sps:$4 sm:$0xff]  }
  0x87   : > { %1989 = vmatmul.mubr.bf16.vlgmr.msra.gmra.mrb[0].mxu0 %v1587_v46  ;;  %1326 = vmatpush1.bf16.msra.mxu1 %v3570_v55  ;;  %v4426_v46 = vrot.slane %v2206_v43, %v4031_v47  ;;  %v3618_v55 = vld [vmem:[%s4761_s1 + $0x80] ss:$8 sps:$4 sm:$0xff]   ;;  %v3687_v43 = vld [vmem:[%s4761_s1 + $0x730] ss:$8 sps:$4 sm:$0xff]  }
  0x88   : > { %2565 = vmatpush1.bf16.msra.mxu0 %v3573_v51  ;;  %1327 = vmatprep.subr.bf16.mxu1 %v3578_v56  ;;  %v3629_v51 = vld [vmem:[%s4761_s1 + $0x694] ss:$8 sps:$4 sm:$0xff]  }
  0x89   : > { %2566 = vmatprep.subr.bf16.mxu0 %v3581_v54  ;;  %1357 = vmatprep.mubr.bf16.mxu1 %v998_v17  ;;  %v2237_v54 = vcombine.high %v4417_v44, %v4426_v46  ;;  %v3626_v56 = vld [vmem:[%s4761_s1 + $0x94] ss:$8 sps:$4 sm:$0xff]   ;;  %v2205_v17 = vcombine.high %v4050_v63, %v4058_v2  ;;  %v2966_v63 = vcombine.low %v2822_v22, %v4200_v3  ;;  %v3660_v3 = vld [vmem:[%s4761_s1 + $0xf0] ss:$8 sps:$4 sm:$0xff]   ;;  %v3740_v22 = vld [vmem:[%s4761_s1 + $0x1c4] ss:$8 sps:$4 sm:$0xff]  }
  0x8a   : > { %v4527_v2 = vrot.slane %v2968_v49, %v4031_v47  ;;  %v2236_v5 = vcombine.low %v4417_v44, %v4426_v46  ;;  %v3669_v49 = vld [vmem:[%s4761_s1 + $0x700] ss:$8 sps:$4 sm:$0xff]   ;;  %v3695_v44 = vld [vmem:[%s4761_s1 + $0x744] ss:$8 sps:$4 sm:$0xff]  }
  0x8b   : > { %1328 = vmatpush1.bf16.msra.mxu1 %v3576_v59  ;;  %2596 = vmatprep.mubr.bf16.mxu0 %v2237_v54  ;;  %v3624_v59 = vld [vmem:[%s4761_s1 + $0x90] ss:$8 sps:$4 sm:$0xff]   ;;  %v4533_v26 = vrot.slane %v2205_v17, %v4031_v47  ;;  %v3693_v46 = vld [vmem:[%s4761_s1 + $0x740] ss:$8 sps:$4 sm:$0xff]   ;;  %v3698_v54 = vld [vmem:[%s4761_s1 + $0x154] ss:$8 sps:$4 sm:$0xff]  }
  0x8c   : > { %2567 = vmatpush1.bf16.msra.mxu0 %v3579_v57  ;;  %1329 = vmatprep.subr.bf16.mxu1 %v3584_v60  ;;  %v3627_v57 = vld [vmem:[%s4761_s1 + $0x690] ss:$8 sps:$4 sm:$0xff]   ;;  %v3632_v60 = vld [vmem:[%s4761_s1 + $0xa4] ss:$8 sps:$4 sm:$0xff]  }
  0x8d   : > { %2568 = vmatprep.subr.bf16.mxu0 %v3587_v58  ;;  %v3635_v58 = vld [vmem:[%s4761_s1 + $0x6a4] ss:$8 sps:$4 sm:$0xff]   ;;  %v3735_v17 = vld [vmem:[%s4761_s1 + $0x7b0] ss:$8 sps:$4 sm:$0xff]  }
  0x8f   : > { %1330 = vmatpush1.bf16.msra.mxu1 %v3582_v20  ;;  %v3630_v20 = vld [vmem:[%s4761_s1 + $0xa0] ss:$8 sps:$4 sm:$0xff]  }
  0x90   : > { %2569 = vmatpush1.bf16.msra.mxu0 %v3585_v61  ;;  %1331 = vmatprep.subr.bf16.mxu1 %v3590_v27  ;;  %v3633_v61 = vld [vmem:[%s4761_s1 + $0x6a0] ss:$8 sps:$4 sm:$0xff]   ;;  %v3638_v27 = vld [vmem:[%s4761_s1 + $0xb4] ss:$8 sps:$4 sm:$0xff]  }
  0x91   : > { %2570 = vmatprep.subr.bf16.mxu0 %v3593_v11  ;;  %v3641_v11 = vld [vmem:[%s4761_s1 + $0x6b4] ss:$8 sps:$4 sm:$0xff]  }
  0x93   : > { %1332 = vmatpush1.bf16.msra.mxu1 %v3588_v0  ;;  %v3647_v0 = vld [vmem:[%s4761_s1 + $0x6c4] ss:$8 sps:$4 sm:$0xff]  }
  0x94   : > { %2571 = vmatpush1.bf16.msra.mxu0 %v3591_v62  ;;  %1333 = vmatprep.subr.bf16.mxu1 %v3596_v6  ;;  %v3639_v62 = vld [vmem:[%s4761_s1 + $0x6b0] ss:$8 sps:$4 sm:$0xff]   ;;  %v3645_v6 = vld [vmem:[%s4761_s1 + $0x6c0] ss:$8 sps:$4 sm:$0xff]  }
  0x95   : > { %2572 = vmatprep.subr.bf16.mxu0 %v3599_v1  ;;  %v3636_v1 = vld [vmem:[%s4761_s1 + $0xb0] ss:$8 sps:$4 sm:$0xff]  }
  0x97   : > { %1334 = vmatpush1.bf16.msra.mxu1 %v3594_v24  ;;  %v3648_v24 = vld [vmem:[%s4761_s1 + $0xd0] ss:$8 sps:$4 sm:$0xff]  }
  0x98   : > { %2573 = vmatpush1.bf16.msra.mxu0 %v3597_v9  ;;  %1335 = vmatprep.subr.bf16.mxu1 %v3602_v53  ;;  %v3653_v9 = vld [vmem:[%s4761_s1 + $0x6d4] ss:$8 sps:$4 sm:$0xff]  }
  0x99   : > { %2574 = vmatprep.subr.bf16.mxu0 %v3605_v14  ;;  %v3651_v14 = vld [vmem:[%s4761_s1 + $0x6d0] ss:$8 sps:$4 sm:$0xff]   ;;  %v3665_v53 = vld [vmem:[%s4761_s1 + $0x6f4] ss:$8 sps:$4 sm:$0xff]  }
  0x9b   : > { %1336 = vmatpush1.bf16.msra.mxu1 %v3600_v29  ;;  %v4539_v29 = vrot.slane %v2966_v63, %v4031_v47  ;;  %v3738_v63 = vld [vmem:[%s4761_s1 + $0x1c0] ss:$8 sps:$4 sm:$0xff]  }
  0x9c   : > { %2575 = vmatpush1.bf16.msra.mxu0 %v3603_v19  ;;  %1337 = vmatprep.subr.bf16.mxu1 %v3608_v30  ;;  %v2207_v19 = vcombine.high %v4068_v8, %v4409_v41  ;;  %v3671_v8 = vld [vmem:[%s4761_s1 + $0x704] ss:$8 sps:$4 sm:$0xff]   ;;  %v3677_v30 = vld [vmem:[%s4761_s1 + $0x714] ss:$8 sps:$4 sm:$0xff]   ;;  %v3678_v41 = vld [vmem:[%s4761_s1 + $0x120] ss:$8 sps:$4 sm:$0xff]  }
  0x9d   : > { %2576 = vmatprep.subr.bf16.mxu0 %v3611_v25  ;;  %v3663_v25 = vld [vmem:[%s4761_s1 + $0x6f0] ss:$8 sps:$4 sm:$0xff]  }
  0x9e   : > { %v4536_v28 = vrot.slane %v2207_v19, %v4031_v47  ;;  %v999_v47 = vcombine.low %v4539_v29, %v4527_v2  ;;  %v3743_v19 = vld [vmem:[%s4761_s1 + $0x7c4] ss:$8 sps:$4 sm:$0xff]  }
  0x9f   : > { %1338 = vmatpush1.bf16.msra.mxu1 %v3606_v38  ;;  %v3680_v38 = vld [vmem:[%s4761_s1 + $0x124] ss:$8 sps:$4 sm:$0xff]  }
  0xa0   : > { %2577 = vmatpush1.bf16.msra.mxu0 %v3609_v31  ;;  %1339 = vmatprep.subr.bf16.mxu1 %v3614_v39  ;;  %v2239_v31 = vcombine.high %v4533_v26, %v4536_v28  ;;  %v3681_v39 = vld [vmem:[%s4761_s1 + $0x720] ss:$8 sps:$4 sm:$0xff]  }
  0xa1   : > { %2578 = vmatprep.subr.bf16.mxu0 %v3617_v34  ;;  %v1000_v34 = vcombine.high %v4539_v29, %v4527_v2 }
  0xa3   : > { %1340 = vmatpush1.bf16.msra.mxu1 %v3612_v45  ;;  %v3684_v45 = vld [vmem:[%s4761_s1 + $0x130] ss:$8 sps:$4 sm:$0xff]  }
  0xa4   : > { %2579 = vmatpush1.bf16.msra.mxu0 %v3615_v40  ;;  %1341 = vmatprep.subr.bf16.mxu1 %v3620_v37  ;;  %v3689_v40 = vld [vmem:[%s4761_s1 + $0x734] ss:$8 sps:$4 sm:$0xff]   ;;  %v3692_v37 = vld [vmem:[%s4761_s1 + $0x144] ss:$8 sps:$4 sm:$0xff]  }
  0xa5   : > { %2580 = vmatprep.subr.bf16.mxu0 %v3623_v42  ;;  %v3686_v42 = vld [vmem:[%s4761_s1 + $0x134] ss:$8 sps:$4 sm:$0xff]  }
  0xa7   : > { %1342 = vmatpush1.bf16.msra.mxu1 %v3618_v55  ;;  %v3699_v55 = vld [vmem:[%s4761_s1 + $0x750] ss:$8 sps:$4 sm:$0xff]  }
  0xa8   : > { %2581 = vmatpush1.bf16.msra.mxu0 %v3621_v50  ;;  %1343 = vmatprep.subr.bf16.mxu1 %v3626_v56  ;;  %v3701_v50 = vld [vmem:[%s4761_s1 + $0x754] ss:$8 sps:$4 sm:$0xff]   ;;  %v3707_v56 = vld [vmem:[%s4761_s1 + $0x764] ss:$8 sps:$4 sm:$0xff]  }
  0xa9   : > { %2582 = vmatprep.subr.bf16.mxu0 %v3629_v51  ;;  %v3690_v51 = vld [vmem:[%s4761_s1 + $0x140] ss:$8 sps:$4 sm:$0xff]  }
  0xab   : > { %1344 = vmatpush1.bf16.msra.mxu1 %v3624_v59  ;;  %v3705_v59 = vld [vmem:[%s4761_s1 + $0x760] ss:$8 sps:$4 sm:$0xff]  }
  0xac   : > { %2583 = vmatpush1.bf16.msra.mxu0 %v3627_v57  ;;  %1345 = vmatprep.subr.bf16.mxu1 %v3632_v60  ;;  %v3696_v57 = vld [vmem:[%s4761_s1 + $0x150] ss:$8 sps:$4 sm:$0xff]   ;;  %v3713_v60 = vld [vmem:[%s4761_s1 + $0x774] ss:$8 sps:$4 sm:$0xff]  }
  0xad   : > { %2584 = vmatprep.subr.bf16.mxu0 %v3635_v58  ;;  %v3704_v58 = vld [vmem:[%s4761_s1 + $0x164] ss:$8 sps:$4 sm:$0xff]  }
  0xaf   : > { %1346 = vmatpush1.bf16.msra.mxu1 %v3630_v20  ;;  %v3711_v20 = vld [vmem:[%s4761_s1 + $0x770] ss:$8 sps:$4 sm:$0xff]  }
  0xb0   : > { %2585 = vmatpush1.bf16.msra.mxu0 %v3633_v61  ;;  %1347 = vmatprep.subr.bf16.mxu1 %v3638_v27  ;;  %v3702_v61 = vld [vmem:[%s4761_s1 + $0x160] ss:$8 sps:$4 sm:$0xff]   ;;  %v3719_v27 = vld [vmem:[%s4761_s1 + $0x784] ss:$8 sps:$4 sm:$0xff]  }
  0xb1   : > { %2586 = vmatprep.subr.bf16.mxu0 %v3641_v11  ;;  %v3710_v11 = vld [vmem:[%s4761_s1 + $0x174] ss:$8 sps:$4 sm:$0xff]  }
  0xb3   : > { %1348 = vmatpush1.bf16.msra.mxu1 %v3636_v1  ;;  %v3717_v1 = vld [vmem:[%s4761_s1 + $0x780] ss:$8 sps:$4 sm:$0xff]  }
  0xb4   : > { %2587 = vmatpush1.bf16.msra.mxu0 %v3639_v62  ;;  %1349 = vmatprep.subr.bf16.mxu1 %v3644_v4  ;;  %v3708_v62 = vld [vmem:[%s4761_s1 + $0x170] ss:$8 sps:$4 sm:$0xff]   ;;  %v3725_v4 = vld [vmem:[%s4761_s1 + $0x794] ss:$8 sps:$4 sm:$0xff]  }
  0xb5   : > { %2588 = vmatprep.subr.bf16.mxu0 %v3647_v0  ;;  %v3716_v0 = vld [vmem:[%s4761_s1 + $0x184] ss:$8 sps:$4 sm:$0xff]  }
  0xb7   : > { %1350 = vmatpush1.bf16.msra.mxu1 %v3642_v10  ;;  %v3723_v10 = vld [vmem:[%s4761_s1 + $0x790] ss:$8 sps:$4 sm:$0xff]  }
  0xb8   : > { %2589 = vmatpush1.bf16.msra.mxu0 %v3645_v6  ;;  %1351 = vmatprep.subr.bf16.mxu1 %v3650_v13  ;;  %v3714_v6 = vld [vmem:[%s4761_s1 + $0x180] ss:$8 sps:$4 sm:$0xff]   ;;  %v3731_v13 = vld [vmem:[%s4761_s1 + $0x7a4] ss:$8 sps:$4 sm:$0xff]  }
  0xb9   : > { %2590 = vmatprep.subr.bf16.mxu0 %v3653_v9  ;;  %v3722_v9 = vld [vmem:[%s4761_s1 + $0x194] ss:$8 sps:$4 sm:$0xff]  }
  0xbb   : > { %1352 = vmatpush1.bf16.msra.mxu1 %v3648_v24  ;;  %v3729_v24 = vld [vmem:[%s4761_s1 + $0x7a0] ss:$8 sps:$4 sm:$0xff]  }
  0xbc   : > { %2591 = vmatpush1.bf16.msra.mxu0 %v3651_v14  ;;  %1353 = vmatprep.subr.bf16.mxu1 %v3656_v18  ;;  %v3720_v14 = vld [vmem:[%s4761_s1 + $0x190] ss:$8 sps:$4 sm:$0xff]   ;;  %v3737_v18 = vld [vmem:[%s4761_s1 + $0x7b4] ss:$8 sps:$4 sm:$0xff]  }
  0xbd   : > { %2592 = vmatprep.subr.bf16.mxu0 %v3659_v16  ;;  %v3728_v16 = vld [vmem:[%s4761_s1 + $0x1a4] ss:$8 sps:$4 sm:$0xff]  }
  0xbf   : > { %1354 = vmatpush1.bf16.msra.mxu1 %v3654_v21  ;;  %v3732_v21 = vld [vmem:[%s4761_s1 + $0x1b0] ss:$8 sps:$4 sm:$0xff]  }
  0xc0   : > { %2593 = vmatpush1.bf16.msra.mxu0 %v3657_v48  ;;  %1355 = vmatprep.subr.bf16.mxu1 %v3662_v23  ;;  %v3726_v48 = vld [vmem:[%s4761_s1 + $0x1a0] ss:$8 sps:$4 sm:$0xff]  }
  0xc1   : > { %2594 = vmatprep.subr.bf16.mxu0 %v3665_v53  ;;  %v3734_v53 = vld [vmem:[%s4761_s1 + $0x1b4] ss:$8 sps:$4 sm:$0xff]   ;;  %v3741_v23 = vld [vmem:[%s4761_s1 + $0x7c0] ss:$8 sps:$4 sm:$0xff]  }
  0xc3   : > { %1356 = vmatpush1.bf16.msra.mxu1 %v3660_v3  ;;  %v3747_v3 = vld [vmem:[%s4761_s1 + $0x7d0] ss:$8 sps:$4 sm:$0xff]  }
  0xc4   : > { %2595 = vmatpush1.bf16.msra.mxu0 %v3663_v25  ;;  %1368 = vmatprep.subr.bf16.mxu1 %v3668_v7  ;;  %v3749_v25 = vld [vmem:[%s4761_s1 + $0x7d4] ss:$8 sps:$4 sm:$0xff]   ;;  %v3744_v7 = vld [vmem:[%s4761_s1 + $0x1d0] ss:$8 sps:$4 sm:$0xff]  }
  0xc5   : > { %2607 = vmatprep.subr.bf16.mxu0 %v3671_v8  ;;  %v3746_v8 = vld [vmem:[%s4761_s1 + $0x1d4] ss:$8 sps:$4 sm:$0xff]  }
  0xc6   : > { %1358 = vmatmul.mubr.bf16.vlgmr.msra.gmra.mrb[0].mxu1 %v997_v32  ;;  %v3750_v32 = vld [vmem:[%s4761_s1 + $0x1e0] ss:$8 sps:$4 sm:$0xff]  }
  0xc7   : > { %2597 = vmatmul.mubr.bf16.vlgmr.msra.gmra.mrb[0].mxu0 %v2236_v5  ;;  %1369 = vmatpush1.bf16.msra.mxu1 %v3666_v33  ;;  %v3755_v5 = vld [vmem:[%s4761_s1 + $0x7e4] ss:$8 sps:$4 sm:$0xff]   ;;  %v3758_v33 = vld [vmem:[%s4761_s1 + $0x1f4] ss:$8 sps:$4 sm:$0xff]  }
  0xc8   : > { %2608 = vmatpush1.bf16.msra.mxu0 %v3669_v49  ;;  %2639 = vmatprep.mubr.bf16.mxu0 %v2239_v31  ;;  %v3752_v49 = vld [vmem:[%s4761_s1 + $0x1e4] ss:$8 sps:$4 sm:$0xff]   ;;  %v3761_v31 = vld [vmem:[%s4761_s1 + $0x7f4] ss:$8 sps:$4 sm:$0xff]  }
  0xc9   : > { %2609 = vmatprep.subr.bf16.mxu0 %v3677_v30  ;;  %1400 = vmatprep.mubr.bf16.mxu1 %v1000_v34  ;;  %v3753_v30 = vld [vmem:[%s4761_s1 + $0x7e0] ss:$8 sps:$4 sm:$0xff]   ;;  %v3759_v34 = vld [vmem:[%s4761_s1 + $0x7f0] ss:$8 sps:$4 sm:$0xff]  }
  0xca   : > { %1370 = vmatprep.subr.bf16.mxu1 %v3674_v35  ;;  %v3756_v35 = vld [vmem:[%s4761_s1 + $0x1f0] ss:$8 sps:$4 sm:$0xff]  }
  0xcb   : > { %1371 = vmatpush1.bf16.msra.mxu1 %v3672_v15  ;;  %v2654_v15 = vld [vmem:[%s4762_s2] sm:$0x3] }
  0xcc   : > { %2610 = vmatpush1.bf16.msra.mxu0 %v3675_v36  ;;  %1372 = vmatprep.subr.bf16.mxu1 %v3680_v38  ;;  %v2238_v36 = vcombine.low %v4533_v26, %v4536_v28  ;;  %v2662_v38 = vsub.s32 1, %v3960_v52 }
  0xcd   : > { %2611 = vmatprep.subr.bf16.mxu0 %v3683_v12  ;;  %v2658_v12 = vsub.s32 0, %v3960_v52 }
  0xcf   : > { %1373 = vmatpush1.bf16.msra.mxu1 %v3678_v41  ;;  %v2659_v41 = vrot.slane %v2654_v15, %v2658_v12 }
  0xd0   : > { %2612 = vmatpush1.bf16.msra.mxu0 %v3681_v39  ;;  %1374 = vmatprep.subr.bf16.mxu1 %v3686_v42  ;;  %v2663_v42 = vrot.slane %v2654_v15, %v2662_v38 }
  0xd1   : > { %2613 = vmatprep.subr.bf16.mxu0 %v3689_v40 }
  0xd3   : > { %1375 = vmatpush1.bf16.msra.mxu1 %v3684_v45 }
  0xd4   : > { %2614 = vmatpush1.bf16.msra.mxu0 %v3687_v43  ;;  %1376 = vmatprep.subr.bf16.mxu1 %v3692_v37 }
  0xd5   : > { %2615 = vmatprep.subr.bf16.mxu0 %v3695_v44 }
  0xd7   : > { %1377 = vmatpush1.bf16.msra.mxu1 %v3690_v51 }
  0xd8   : > { %2616 = vmatpush1.bf16.msra.mxu0 %v3693_v46  ;;  %1378 = vmatprep.subr.bf16.mxu1 %v3698_v54 }
  0xd9   : > { %2617 = vmatprep.subr.bf16.mxu0 %v3701_v50 }
  0xdb   : > { %1379 = vmatpush1.bf16.msra.mxu1 %v3696_v57 }
  0xdc   : > { %2618 = vmatpush1.bf16.msra.mxu0 %v3699_v55  ;;  %1380 = vmatprep.subr.bf16.mxu1 %v3704_v58 }
  0xdd   : > { %2619 = vmatprep.subr.bf16.mxu0 %v3707_v56 }
  0xdf   : > { %1381 = vmatpush1.bf16.msra.mxu1 %v3702_v61 }
  0xe0   : > { %2620 = vmatpush1.bf16.msra.mxu0 %v3705_v59  ;;  %1382 = vmatprep.subr.bf16.mxu1 %v3710_v11 }
  0xe1   : > { %2621 = vmatprep.subr.bf16.mxu0 %v3713_v60 }
  0xe3   : > { %1383 = vmatpush1.bf16.msra.mxu1 %v3708_v62 }
  0xe4   : > { %2622 = vmatpush1.bf16.msra.mxu0 %v3711_v20  ;;  %1384 = vmatprep.subr.bf16.mxu1 %v3716_v0 }
  0xe5   : > { %2623 = vmatprep.subr.bf16.mxu0 %v3719_v27 }
  0xe7   : > { %1385 = vmatpush1.bf16.msra.mxu1 %v3714_v6 }
  0xe8   : > { %2624 = vmatpush1.bf16.msra.mxu0 %v3717_v1  ;;  %1386 = vmatprep.subr.bf16.mxu1 %v3722_v9 }
  0xe9   : > { %2625 = vmatprep.subr.bf16.mxu0 %v3725_v4 }
  0xeb   : > { %1387 = vmatpush1.bf16.msra.mxu1 %v3720_v14 }
  0xec   : > { %2626 = vmatpush1.bf16.msra.mxu0 %v3723_v10  ;;  %1388 = vmatprep.subr.bf16.mxu1 %v3728_v16 }
  0xed   : > { %2627 = vmatprep.subr.bf16.mxu0 %v3731_v13 }
  0xef   : > { %1389 = vmatpush1.bf16.msra.mxu1 %v3726_v48 }
  0xf0   : > { %2628 = vmatpush1.bf16.msra.mxu0 %v3729_v24  ;;  %1390 = vmatprep.subr.bf16.mxu1 %v3734_v53 }
  0xf1   : > { %2629 = vmatprep.subr.bf16.mxu0 %v3737_v18 }
  0xf3   : > { %1391 = vmatpush1.bf16.msra.mxu1 %v3732_v21 }
  0xf4   : > { %2630 = vmatpush1.bf16.msra.mxu0 %v3735_v17  ;;  %1392 = vmatprep.subr.bf16.mxu1 %v3740_v22 }
  0xf5   : > { %2631 = vmatprep.subr.bf16.mxu0 %v3743_v19 }
  0xf7   : > { %1393 = vmatpush1.bf16.msra.mxu1 %v3738_v63 }
  0xf8   : > { %2632 = vmatpush1.bf16.msra.mxu0 %v3741_v23  ;;  %1394 = vmatprep.subr.bf16.mxu1 %v3746_v8 }
  0xf9   : > { %2633 = vmatprep.subr.bf16.mxu0 %v3749_v25 }
  0xfb   : > { %1395 = vmatpush1.bf16.msra.mxu1 %v3744_v7 }
  0xfc   : > { %2634 = vmatpush1.bf16.msra.mxu0 %v3747_v3  ;;  %1396 = vmatprep.subr.bf16.mxu1 %v3752_v49 }
  0xfd   : > { %2635 = vmatprep.subr.bf16.mxu0 %v3755_v5 }
  0xff   : > { %1397 = vmatpush1.bf16.msra.mxu1 %v3750_v32 }
 0x100   : > { %2636 = vmatpush1.bf16.msra.mxu0 %v3753_v30  ;;  %1398 = vmatprep.subr.bf16.mxu1 %v3758_v33 }
 0x101   : > { %2637 = vmatprep.subr.bf16.mxu0 %v3761_v31 }
 0x103   : > { %1399 = vmatpush1.bf16.msra.mxu1 %v3756_v35 }
 0x104   : > { %2638 = vmatpush1.bf16.msra.mxu0 %v3759_v34 }
 0x106   : > { %1401 = vmatmul.mubr.bf16.vlgmr.msra.gmra.mrb[0].mxu1 %v999_v47 }
 0x107   : > { %2640 = vmatmul.mubr.bf16.vlgmr.msra.gmra.mrb[0].mxu0 %v2238_v36 }
 0x1d9   : > { %v1402_v28 = vpop.f32.mrb[0].mxu1 }
 0x1da   : > { %v2641_v39 = vpop.f32.mrb[0].mxu0  ;;  %v1404_v45 = vpop.f32.mrb[1].mxu1 }
 0x1db   : > { %v2643_v40 = vpop.f32.mrb[1].mxu0  ;;  %v3340_v44 = vadd.f32 %v2641_v39, %v1402_v28  ;;  %v1406_v29 = vpop.f32.mrb[2].mxu1 }
 0x1dc   : > { %v2645_v26 = vpop.f32.mrb[2].mxu0  ;;  %v3341_v2 = vadd.f32 %v2643_v40, %v1404_v45  ;;  %v1408_v46 = vpop.f32.mrb[3].mxu1 }
 0x1dd   : > { %v2647_v43 = vpop.f32.mrb[3].mxu0  ;;  %v2666_v47 = vadd.f32 %v3340_v44, %v2659_v41  ;;  %v3342_v37 = vadd.f32 %v2645_v26, %v1406_v29 }
 0x1de   : > { %v2667_v50 = vadd.f32 %v3341_v2, %v2663_v42  ;;  %v3343_v51 = vadd.f32 %v2647_v43, %v1408_v46 }
 0x1df   : > { %vm2670_vm7 = vcmp.ge.f32.partialorder %v2666_v47, 0.0  ;;  %v2674_v54 = vmul.f32 0.2, %v2666_v47  ;;  %v2668_v52 = vadd.f32 %v3342_v37, %v2659_v41 }
 0x1e0   : > { %vm2671_vm8 = vcmp.ge.f32.partialorder %v2667_v50, 0.0  ;;  %v2675_v55 = vmul.f32 0.2, %v2667_v50  ;;  %v2669_v56 = vadd.f32 %v3343_v51, %v2663_v42 }
 0x1e1   : > { %v2678_v57 = vsel %vm2670_vm7, %v2666_v47, %v2674_v54  ;;  %vm2672_vm9 = vcmp.ge.f32.partialorder %v2668_v52, 0.0  ;;  %v2676_v58 = vmul.f32 0.2, %v2668_v52 }
 0x1e2   : > { %v2679_v59 = vsel %vm2671_vm8, %v2667_v50, %v2675_v55  ;;  %vm2673_vm10 = vcmp.ge.f32.partialorder %v2669_v56, 0.0  ;;  %v2677_v60 = vmul.f32 0.2, %v2669_v56 }
 0x1e3   : > { %v2686_v61 = vcombine.low %v2678_v57, %v2679_v59  ;;  %v2687_v11 = vcombine.high %v2678_v57, %v2679_v59  ;;  %v3325_v20 = vcombine.low %v2679_v59, %v2679_v59  ;;  %v3326_v27 = vcombine.high %v2679_v59, %v2679_v59 }
 0x1e4   : > { %v2680_v62 = vsel %vm2672_vm9, %v2668_v52, %v2676_v58  ;;  %v2681_v0 = vsel %vm2673_vm10, %v2669_v56, %v2677_v60 }
 0x1e5   : > { %v3329_v1 = vpack.c.bf16 %v3325_v20, %v2686_v61  ;;  %v3330_v4 = vpack.c.bf16 %v3326_v27, %v2687_v11  ;;  %v2688_v6 = vcombine.low %v2680_v62, %v2681_v0  ;;  %v2689_v9 = vcombine.high %v2680_v62, %v2681_v0 }
 0x1e6   : > { %v3327_v10 = vcombine.low %v2681_v0, %v2681_v0  ;;  %v3328_v13 = vcombine.high %v2681_v0, %v2681_v0 }
 0x1e7   : > { %3333 = vst.sshfl [vmem:[%s170_s21] sm:$0x33 pattern:$0x76325410] %v3329_v1 }
 0x1e8   : > { %3334 = vst.sshfl [vmem:[%s170_s21 + $0x4] sm:$0x33 pattern:$0x76325410] %v3330_v4  ;;  %v3331_v14 = vpack.c.bf16 %v3327_v10, %v2688_v6  ;;  %v3332_v16 = vpack.c.bf16 %v3328_v13, %v2689_v9 }
 0x1ea   : > { %3335 = vst.sshfl [vmem:[%s170_s21 + $0x8] sm:$0x33 pattern:$0x76325410] %v3331_v14 }
 0x1eb   : > { %3336 = vst.sshfl [vmem:[%s170_s21 + $0xc] sm:$0x33 pattern:$0x76325410] %v3332_v16 }
 0x1ec PF: > { %s13_s12 = sadd.s32 1, %s3768_s12  }
 0x1ed   : > { %p10_p4 = scmp.ge.s32.totalorder %s13_s12, 4  }
 0x1ef   :  { %12 = sbr.rel (!%p10_p4) target bundleno = 1 (0x1), region = 66 }

// kernel: fc_discriminator_forward.9
= control target key start
LH: loop header
LB: loop body
LE: loop exit
PB: predicated region body
PF: predicated region fallthrough
CT: control target
= control target key end

     0   :  { %s4715_s12 = smov 0   ;;  %s5588_s0 = inlined_call_operand.vmem [shape: bf16[2,3,3,1024], index: 0, kind: input, shape index: {}]   ;;  %s5589_s1 = inlined_call_operand.vmem [shape: bf16[2,2,1024,128], index: 1, kind: input, shape index: {}]   ;;  %s5590_s2 = inlined_call_operand.vmem [shape: f32[1,128], index: 2, kind: input, shape index: {}]   ;;  %s5591_s3 = inlined_call_operand.vmem [shape: f32[2,2,2,128], index: 3, kind: output, shape index: {}]  }
   0x1 LB: > { %s3381_s13 = sadd.s32 4294967295, %s4691_s12   ;;  %p3385_p0 = scmp.ge.s32.totalorder %s4691_s12, 1  ;;  %s4691_s12 = sphi %s4715_s12, %s13_s12  }
   0x2   : > { %p137_p1 = scmp.lt.s32.totalorder %s4691_s12, 3 }
   0x4   : > { %p138_p2 = pnand %p3385_p0, %p137_p1 }
   0x5   : > { %v4429_v0 = vld [vmem:[%s5589_s1 + $0x240] sm:$0xff] (!%p138_p2)   ;;  %v4433_v4 = vld [vmem:[%s5589_s1 + $0x248] sm:$0xff] (!%p138_p2)   ;;  %v4437_v8 = vld [vmem:[%s5589_s1 + $0x250] sm:$0xff] (!%p138_p2)   ;;  %p161_p3 = scmp.lt.s32.totalorder (!%p138_p2), %s3381_s13, 1  ;;  %vm378_vm0 = vsmask.f32 (!%p138_p2), 256  ;;  %v545_v40 = vlaneseq (!%p138_p2) }
   0x6   : > { %141 = sbr.rel (%p138_p2) target bundleno = 491 (0x1eb), region = 32  ;;  %v4430_v1 = vld [vmem:[%s5589_s1 + $0x2c0] sm:$0xff] (!%p138_p2)   ;;  %4066 = vmatprep.subr.bf16.mxu0 (!%p138_p2), %v4429_v0  ;;  %v4434_v5 = vld [vmem:[%s5589_s1 + $0x2c8] sm:$0xff] (!%p138_p2)   ;;  %v4438_v9 = vld [vmem:[%s5589_s1 + $0x2d0] sm:$0xff] (!%p138_p2)   ;;  %vm379_vm1 = vsmask.f32 (!%p138_p2), 1284 }
   0x7   : > { %v4431_v2 = vld [vmem:[%s5589_s1 + $0x200] sm:$0xff] (!%p138_p2)   ;;  %4088 = vmatprep.subr.bf16.mxu1 (!%p138_p2), %v4430_v1  ;;  %v4435_v6 = vld [vmem:[%s5589_s1 + $0x208] sm:$0xff] (!%p138_p2)   ;;  %v4439_v10 = vld [vmem:[%s5589_s1 + $0x210] sm:$0xff] (!%p138_p2)   ;;  %vm381_vm3 = vsmask.f32 (!%p138_p2), 2312  ;;  %v4838_v48 = vshrl.u32 (!%p138_p2), %v545_v40, 7 }
   0x8   : > { %v4432_v3 = vld [vmem:[%s5589_s1 + $0x280] sm:$0xff] (!%p138_p2)   ;;  %4067 = vmatpush3.bf16.msra.mxu0 (!%p138_p2), %v4431_v2  ;;  %v4436_v7 = vld [vmem:[%s5589_s1 + $0x288] sm:$0xff] (!%p138_p2)   ;;  %v4440_v11 = vld [vmem:[%s5589_s1 + $0x290] sm:$0xff] (!%p138_p2)   ;;  %vm383_vm4 = vsmask.f32 (!%p138_p2), 3340 }
   0x9   : > { %4089 = vmatpush3.bf16.msra.mxu1 (!%p138_p2), %v4432_v3  ;;  %4068 = vmatprep.subr.bf16.mxu0 (!%p138_p2), %v4433_v4  ;;  %v4441_v12 = vld [vmem:[%s5589_s1 + $0x258] sm:$0xff] (!%p138_p2)   ;;  %v4445_v16 = vld [vmem:[%s5589_s1 + $0x260] sm:$0xff] (!%p138_p2)   ;;  %v4449_v20 = vld [vmem:[%s5589_s1 + $0x268] sm:$0xff] (!%p138_p2)   ;;  %vm385_vm5 = vsmask.f32 (!%p138_p2), 4368 }
   0xa   : > { %4090 = vmatprep.subr.bf16.mxu1 (!%p138_p2), %v4434_v5  ;;  %v4442_v13 = vld [vmem:[%s5589_s1 + $0x2d8] sm:$0xff] (!%p138_p2)   ;;  %v4446_v17 = vld [vmem:[%s5589_s1 + $0x2e0] sm:$0xff] (!%p138_p2)   ;;  %v4450_v21 = vld [vmem:[%s5589_s1 + $0x2e8] sm:$0xff] (!%p138_p2)   ;;  %vm387_vm7 = vsmask.f32 (!%p138_p2), 5396 }
   0xb   : > { %v4443_v14 = vld [vmem:[%s5589_s1 + $0x218] sm:$0xff] (!%p138_p2)   ;;  %v4447_v18 = vld [vmem:[%s5589_s1 + $0x220] sm:$0xff] (!%p138_p2)   ;;  %v4451_v22 = vld [vmem:[%s5589_s1 + $0x228] sm:$0xff] (!%p138_p2)   ;;  %vm389_vm8 = vsmask.f32 (!%p138_p2), 6424 }
   0xc   : > { %4069 = vmatpush3.bf16.msra.mxu0 (!%p138_p2), %v4435_v6  ;;  %v4444_v15 = vld [vmem:[%s5589_s1 + $0x298] sm:$0xff] (!%p138_p2)   ;;  %v4448_v19 = vld [vmem:[%s5589_s1 + $0x2a0] sm:$0xff] (!%p138_p2)   ;;  %v4452_v23 = vld [vmem:[%s5589_s1 + $0x2a8] sm:$0xff] (!%p138_p2)   ;;  %vm391_vm9 = vsmask.f32 (!%p138_p2), 7452 }
   0xd   : > { %4091 = vmatpush3.bf16.msra.mxu1 %v4436_v7  ;;  %4070 = vmatprep.subr.bf16.mxu0 %v4437_v8  ;;  %s5595_s13 = smov (!%p161_p3, %s3381_s13), 1  ;;  %v4453_v24 = vld [vmem:[%s5589_s1 + $0x270] sm:$0xff]   ;;  %v4457_v28 = vld [vmem:[%s5589_s1 + $0x278] sm:$0xff]   ;;  %vm380_vm2 = vmor %vm378_vm0, %vm379_vm1  ;;  %v4693_v46 = vmov 1966171168  }
   0xe   : > { %4092 = vmatprep.subr.bf16.mxu1 %v4438_v9  ;;  %v4454_v25 = vld [vmem:[%s5589_s1 + $0x2f0] sm:$0xff]   ;;  %s4418_s16 = smul.u32 48, %s5595_s13  ;;  %v4458_v29 = vld [vmem:[%s5589_s1 + $0x2f8] sm:$0xff]   ;;  %vm382_vm6 = vmor %vm380_vm2, %vm381_vm3  ;;  %v543_v47 = vunpack.c.l.s4 %v4693_v46  ;;  %s4065_s20 = sshll.u32 %s5595_s13, 2 }
   0xf   : > { %v4455_v26 = vld [vmem:[%s5589_s1 + $0x230] sm:$0xff]   ;;  %v4459_v30 = vld [vmem:[%s5589_s1 + $0x238] sm:$0xff]   ;;  %vm384_vm10 = vmor %vm382_vm6, %vm383_vm4  ;;  %s170_s25 = scalar_lea.vmem %s5591_s3, %s4065_s20 }
  0x10   : > { %4071 = vmatpush3.bf16.msra.mxu0 %v4439_v10  ;;  %v4456_v27 = vld [vmem:[%s5589_s1 + $0x2b0] sm:$0xff]   ;;  %s4823_s27 = scalar_lea.vmem %s5588_s0, %s4418_s16  ;;  %v4460_v31 = vld [vmem:[%s5589_s1 + $0x2b8] sm:$0xff]   ;;  %vm386_vm11 = vmor %vm384_vm10, %vm385_vm5  ;;  %v544_v51 = vunpack.c.0.s8 %v543_v47 }
  0x11   : > { %4093 = vmatpush3.bf16.msra.mxu1 %v4440_v11  ;;  %4072 = vmatprep.subr.bf16.mxu0 %v4441_v12  ;;  %v3393_v32 = vld.sshfl [vmem:[%s4823_s27] sm:$0xff pattern:$0x75316420]  ;;  %v3394_v33 = vld.sshfl [vmem:[%s4823_s27 + $0x8] sm:$0xff pattern:$0x75316420]  ;;  %vm388_vm12 = vmor %vm386_vm11, %vm387_vm7 }
  0x12   : > { %4094 = vmatprep.subr.bf16.mxu1 %v4442_v13  ;;  %v3395_v34 = vld.sshfl [vmem:[%s4823_s27 + $0x10] sm:$0xff pattern:$0x75316420]  ;;  %v3396_v35 = vld.sshfl [vmem:[%s4823_s27 + $0x18] sm:$0xff pattern:$0x75316420]  ;;  %v360_v36 = vcombine.low %v3393_v32, %v3394_v33  ;;  %v361_v37 = vcombine.high %v3393_v32, %v3394_v33  ;;  %vm390_vm13 = vmor %vm388_vm12, %vm389_vm8  ;;  %v4853_v56 = vsub.s32 %v544_v51, %v4838_v48 }
  0x13   : > { %v376_v38 = vcombine.low %v3395_v34, %v3396_v35  ;;  %v377_v39 = vcombine.high %v3395_v34, %v3396_v35  ;;  %v4461_v45 = vld [vmem:[%s5589_s1 + $0x340] sm:$0xff]   ;;  %vm4844_vm14 = vmor %vm390_vm13, %vm391_vm9  ;;  %v4465_v3 = vld [vmem:[%s5589_s1 + $0x348] sm:$0xff]  }
  0x14   : > { %4073 = vmatpush3.bf16.msra.mxu0 %v4443_v14  ;;  %v394_v41 = vshrl.u32 %v360_v36, 16  ;;  %v399_v42 = vshll.u32 %v361_v37, 16  ;;  %v4462_v49 = vld [vmem:[%s5589_s1 + $0x3c0] sm:$0xff]   ;;  %v4466_v5 = vld [vmem:[%s5589_s1 + $0x3c8] sm:$0xff]   ;;  %v4469_v9 = vld [vmem:[%s5589_s1 + $0x350] sm:$0xff]  }
  0x15   : > { %4095 = vmatpush3.bf16.msra.mxu1 %v4444_v15  ;;  %4074 = vmatprep.subr.bf16.mxu0 %v4445_v16  ;;  %v403_v43 = vshrl.u32 %v376_v38, 16  ;;  %v408_v44 = vshll.u32 %v377_v39, 16  ;;  %v4463_v62 = vld [vmem:[%s5589_s1 + $0x300] sm:$0xff]   ;;  %v4467_v6 = vld [vmem:[%s5589_s1 + $0x308] sm:$0xff]   ;;  %v4470_v10 = vld [vmem:[%s5589_s1 + $0x3d0] sm:$0xff]  }
  0x16   : > { %4096 = vmatprep.subr.bf16.mxu1 %v4446_v17  ;;  %v401_v52 = vsel %vm4844_vm14, %v394_v41, %v399_v42  ;;  %v4464_v0 = vld [vmem:[%s5589_s1 + $0x380] sm:$0xff]   ;;  %v4468_v8 = vld [vmem:[%s5589_s1 + $0x388] sm:$0xff]   ;;  %v4471_v11 = vld [vmem:[%s5589_s1 + $0x310] sm:$0xff]  }
  0x17   : > { %v410_v53 = vsel %vm4844_vm14, %v403_v43, %v408_v44  ;;  %v4472_v12 = vld [vmem:[%s5589_s1 + $0x390] sm:$0xff]   ;;  %v4473_v13 = vld [vmem:[%s5589_s1 + $0x358] sm:$0xff]   ;;  %v4477_v17 = vld [vmem:[%s5589_s1 + $0x360] sm:$0xff]  }
  0x18   : > { %4075 = vmatpush3.bf16.msra.mxu0 %v4447_v18  ;;  %v540_v54 = vcombine.low %v401_v52, %v410_v53  ;;  %v541_v55 = vcombine.high %v401_v52, %v410_v53  ;;  %v4474_v14 = vld [vmem:[%s5589_s1 + $0x3d8] sm:$0xff]   ;;  %v4478_v18 = vld [vmem:[%s5589_s1 + $0x3e0] sm:$0xff]   ;;  %v4497_v39 = vld [vmem:[%s5589_s1 + $0x48] sm:$0xff]  }
  0x19   : > { %4097 = vmatpush3.bf16.msra.mxu1 %v4448_v19  ;;  %4076 = vmatprep.subr.bf16.mxu0 %v4449_v20  ;;  %v4475_v15 = vld [vmem:[%s5589_s1 + $0x318] sm:$0xff]   ;;  %v4479_v19 = vld [vmem:[%s5589_s1 + $0x320] sm:$0xff]   ;;  %v4498_v40 = vld [vmem:[%s5589_s1 + $0xc8] sm:$0xff]  }
  0x1a   : > { %4098 = vmatprep.subr.bf16.mxu1 %v4450_v21  ;;  %v548_v57 = vrot.slane %v540_v54, %v4853_v56  ;;  %v4857_v58 = vrot.slane %v541_v55, %v4853_v56  ;;  %v4476_v16 = vld [vmem:[%s5589_s1 + $0x398] sm:$0xff]   ;;  %v4480_v20 = vld [vmem:[%s5589_s1 + $0x3a0] sm:$0xff]   ;;  %v4481_v21 = vld [vmem:[%s5589_s1 + $0x368] sm:$0xff]  }
  0x1b   : > { %v4492_v32 = vld [vmem:[%s5589_s1 + $0x3b8] sm:$0xff]   ;;  %v4493_v34 = vld [vmem:[%s5589_s1 + $0x40] sm:$0xff]   ;;  %v4499_v41 = vld [vmem:[%s5589_s1 + $0x8] sm:$0xff]  }
  0x1c   : > { %4077 = vmatpush3.bf16.msra.mxu0 %v4451_v22  ;;  %v556_v59 = vcombine.high %v548_v57, %v548_v57  ;;  %v564_v60 = vrot.slane %v548_v57, %v4853_v56  ;;  %v557_v61 = vcombine.high %v4857_v58, %v4857_v58  ;;  %v4482_v22 = vld [vmem:[%s5589_s1 + $0x3e8] sm:$0xff]   ;;  %v571_v33 = vrot.slane %v4857_v58, %v4853_v56  ;;  %v4494_v35 = vld [vmem:[%s5589_s1 + $0xc0] sm:$0xff]   ;;  %v4501_v43 = vld [vmem:[%s5589_s1 + $0x50] sm:$0xff]  }
  0x1d   : > { %4099 = vmatpush3.bf16.msra.mxu1 %v4452_v23  ;;  %4078 = vmatprep.subr.bf16.mxu0 %v4453_v24  ;;  %v4483_v23 = vld [vmem:[%s5589_s1 + $0x328] sm:$0xff]   ;;  %v4495_v36 = vld [vmem:[%s5589_s1] sm:$0xff]   ;;  %v4502_v44 = vld [vmem:[%s5589_s1 + $0xd0] sm:$0xff]  }
  0x1e   : > { %4100 = vmatprep.subr.bf16.mxu1 %v4454_v25  ;;  %v578_v63 = vrot.slane %v556_v59, %v4853_v56  ;;  %v585_v1 = vrot.slane %v557_v61, %v4853_v56  ;;  %v586_v2 = vcombine.high %v564_v60, %v564_v60  ;;  %v4484_v24 = vld [vmem:[%s5589_s1 + $0x3a8] sm:$0xff]   ;;  %v4485_v25 = vld [vmem:[%s5589_s1 + $0x370] sm:$0xff]   ;;  %v4496_v37 = vld [vmem:[%s5589_s1 + $0x80] sm:$0xff]   ;;  %v587_v38 = vcombine.high %v571_v33, %v571_v33 }
  0x1f   : > { %v4500_v42 = vld [vmem:[%s5589_s1 + $0x88] sm:$0xff]   ;;  %v4504_v46 = vld [vmem:[%s5589_s1 + $0x90] sm:$0xff]   ;;  %v4505_v47 = vld [vmem:[%s5589_s1 + $0x58] sm:$0xff]  }
  0x20   : > { %4079 = vmatpush3.bf16.msra.mxu0 %v4455_v26  ;;  %1014 = vmatprep.mubr.bf16.mxu0 %v578_v63  ;;  %v588_v4 = vcombine.high %v578_v63, %v578_v63  ;;  %v589_v7 = vcombine.high %v585_v1, %v585_v1  ;;  %v4486_v26 = vld [vmem:[%s5589_s1 + $0x3f0] sm:$0xff]   ;;  %v4507_v51 = vld [vmem:[%s5589_s1 + $0x18] sm:$0xff]   ;;  %v4509_v53 = vld [vmem:[%s5589_s1 + $0x60] sm:$0xff]  }
  0x21   : > { %4101 = vmatpush3.bf16.msra.mxu1 %v4456_v27  ;;  %4080 = vmatprep.subr.bf16.mxu0 %v4457_v28  ;;  %v4487_v27 = vld [vmem:[%s5589_s1 + $0x330] sm:$0xff]   ;;  %v4508_v52 = vld [vmem:[%s5589_s1 + $0x98] sm:$0xff]   ;;  %v4510_v54 = vld [vmem:[%s5589_s1 + $0xe0] sm:$0xff]  }
  0x22   : > { %4102 = vmatprep.subr.bf16.mxu1 %v4458_v29  ;;  %1054 = vmatprep.mubr.bf16.mxu1 %v588_v4  ;;  %v4488_v28 = vld [vmem:[%s5589_s1 + $0x3b0] sm:$0xff]   ;;  %v4489_v29 = vld [vmem:[%s5589_s1 + $0x378] sm:$0xff]   ;;  %v4511_v55 = vld [vmem:[%s5589_s1 + $0x20] sm:$0xff]  }
  0x23   : > { %v4512_v57 = vld [vmem:[%s5589_s1 + $0xa0] sm:$0xff]   ;;  %v4513_v58 = vld [vmem:[%s5589_s1 + $0x68] sm:$0xff]  }
  0x24   : > { %4081 = vmatpush3.bf16.msra.mxu0 %v4459_v30  ;;  %v4490_v30 = vld [vmem:[%s5589_s1 + $0x3f8] sm:$0xff]   ;;  %v4514_v59 = vld [vmem:[%s5589_s1 + $0xe8] sm:$0xff]   ;;  %v3389_v63 = vld.sshfl [vmem:[%s4823_s27] sm:$0xf pattern:$0x75316420] }
  0x25   : > { %4103 = vmatpush3.bf16.msra.mxu1 %v4460_v31  ;;  %4110 = vmatprep.subr.bf16.mxu0 %v4461_v45  ;;  %v4491_v31 = vld [vmem:[%s5589_s1 + $0x338] sm:$0xff]   ;;  %v4503_v45 = vld [vmem:[%s5589_s1 + $0x10] sm:$0xff]   ;;  %v4516_v61 = vld [vmem:[%s5589_s1 + $0xa8] sm:$0xff]  }
  0x26   : > { %4132 = vmatprep.subr.bf16.mxu1 %v4462_v49  ;;  %v4506_v49 = vld [vmem:[%s5589_s1 + $0xd8] sm:$0xff]  }
  0x27   : > { %1015 = vmatmul.mubr.bf16.vlgmr.msra.gmra.mrb[0].mxu0 %v564_v60  ;;  %v4515_v60 = vld [vmem:[%s5589_s1 + $0x28] sm:$0xff]  }
  0x28   : > { %4111 = vmatpush3.bf16.msra.mxu0 %v4463_v62  ;;  %1055 = vmatmul.mubr.bf16.vlgmr.msra.gmra.mrb[0].mxu1 %v586_v2  ;;  %v4517_v62 = vld [vmem:[%s5589_s1 + $0x70] sm:$0xff]  }
  0x29   : > { %4112 = vmatprep.subr.bf16.mxu0 %v4465_v3  ;;  %4133 = vmatpush3.bf16.msra.mxu1 %v4464_v0  ;;  %v4518_v0 = vld [vmem:[%s5589_s1 + $0xf0] sm:$0xff]  }
  0x2a   : > { %1094 = vmatprep.mubr.bf16.mxu0 %v585_v1  ;;  %4134 = vmatprep.subr.bf16.mxu1 %v4466_v5  ;;  %v4519_v1 = vld [vmem:[%s5589_s1 + $0x30] sm:$0xff]   ;;  %v4521_v5 = vld [vmem:[%s5589_s1 + $0x78] sm:$0xff]  }
  0x2b   : > { %1134 = vmatprep.mubr.bf16.mxu1 %v589_v7  ;;  %v5039_v2 = vld.sshfl [vmem:[%s4823_s27 + $0x10] sm:$0xf pattern:$0x75316420] }
  0x2c   : > { %4113 = vmatpush3.bf16.msra.mxu0 %v4467_v6  ;;  %v4520_v3 = vld [vmem:[%s5589_s1 + $0xb0] sm:$0xff]   ;;  %v3591_v4 = vcombine.low %v3389_v63, %v5039_v2  ;;  %v4522_v6 = vld [vmem:[%s5589_s1 + $0xf8] sm:$0xff]   ;;  %v4561_v63 = vld [vmem:[%s5589_s1 + $0x448] sm:$0xff]  }
  0x2d   : > { %4114 = vmatprep.subr.bf16.mxu0 %v4469_v9  ;;  %4135 = vmatpush3.bf16.msra.mxu1 %v4468_v8  ;;  %v4523_v8 = vld [vmem:[%s5589_s1 + $0x38] sm:$0xff]  }
  0x2e   : > { %4136 = vmatprep.subr.bf16.mxu1 %v4470_v10  ;;  %v1150_v7 = vrot.slane %v3591_v4, %v4853_v56  ;;  %v4524_v9 = vld [vmem:[%s5589_s1 + $0xb8] sm:$0xff]   ;;  %v4565_v4 = vld [vmem:[%s5589_s1 + $0x450] sm:$0xff]  }
  0x30   : > { %4115 = vmatpush3.bf16.msra.mxu0 %v4471_v11  ;;  %v1158_v10 = vcombine.high %v1150_v7, %v1150_v7  ;;  %v1166_v11 = vrot.slane %v1150_v7, %v4853_v56  ;;  %v4568_v7 = vld [vmem:[%s5589_s1 + $0x490] sm:$0xff]  }
  0x31   : > { %4116 = vmatprep.subr.bf16.mxu0 %v4473_v13  ;;  %4137 = vmatpush3.bf16.msra.mxu1 %v4472_v12  ;;  %v4525_v12 = vld [vmem:[%s5589_s1 + $0x140] sm:$0xff]  }
  0x32   : > { %4138 = vmatprep.subr.bf16.mxu1 %v4474_v14  ;;  %v1180_v13 = vrot.slane %v1158_v10, %v4853_v56  ;;  %v4526_v14 = vld [vmem:[%s5589_s1 + $0x1c0] sm:$0xff]   ;;  %v4571_v10 = vld [vmem:[%s5589_s1 + $0x418] sm:$0xff]  }
  0x34   : > { %4117 = vmatpush3.bf16.msra.mxu0 %v4475_v15  ;;  %v4527_v15 = vld [vmem:[%s5589_s1 + $0x100] sm:$0xff]  }
  0x35   : > { %4118 = vmatprep.subr.bf16.mxu0 %v4477_v17  ;;  %4139 = vmatpush3.bf16.msra.mxu1 %v4476_v16  ;;  %v1190_v16 = vcombine.high %v1180_v13, %v1180_v13  ;;  %v4528_v17 = vld [vmem:[%s5589_s1 + $0x180] sm:$0xff]  }
  0x36   : > { %4140 = vmatprep.subr.bf16.mxu1 %v4478_v18  ;;  %v1188_v18 = vcombine.high %v1166_v11, %v1166_v11 }
  0x38   : > { %4119 = vmatpush3.bf16.msra.mxu0 %v4479_v19  ;;  %v4529_v19 = vld [vmem:[%s5589_s1 + $0x148] sm:$0xff]  }
  0x39   : > { %4120 = vmatprep.subr.bf16.mxu0 %v4481_v21  ;;  %4141 = vmatpush3.bf16.msra.mxu1 %v4480_v20  ;;  %v4530_v20 = vld [vmem:[%s5589_s1 + $0x1c8] sm:$0xff]  }
  0x3a   : > { %4142 = vmatprep.subr.bf16.mxu1 %v4482_v22  ;;  %v4531_v21 = vld [vmem:[%s5589_s1 + $0x108] sm:$0xff]  }
  0x3b   : > { %v4532_v22 = vld [vmem:[%s5589_s1 + $0x188] sm:$0xff]  }
  0x3c   : > { %4121 = vmatpush3.bf16.msra.mxu0 %v4483_v23  ;;  %v4533_v23 = vld [vmem:[%s5589_s1 + $0x150] sm:$0xff]  }
  0x3d   : > { %4122 = vmatprep.subr.bf16.mxu0 %v4485_v25  ;;  %4143 = vmatpush3.bf16.msra.mxu1 %v4484_v24  ;;  %v4534_v24 = vld [vmem:[%s5589_s1 + $0x1d0] sm:$0xff]  }
  0x3e   : > { %4144 = vmatprep.subr.bf16.mxu1 %v4486_v26  ;;  %v4535_v25 = vld [vmem:[%s5589_s1 + $0x110] sm:$0xff]  }
  0x3f   : > { %v4536_v26 = vld [vmem:[%s5589_s1 + $0x190] sm:$0xff]  }
  0x40   : > { %4123 = vmatpush3.bf16.msra.mxu0 %v4487_v27  ;;  %v4537_v27 = vld [vmem:[%s5589_s1 + $0x158] sm:$0xff]  }
  0x41   : > { %4124 = vmatprep.subr.bf16.mxu0 %v4489_v29  ;;  %4145 = vmatpush3.bf16.msra.mxu1 %v4488_v28  ;;  %v4538_v28 = vld [vmem:[%s5589_s1 + $0x1d8] sm:$0xff]  }
  0x42   : > { %4146 = vmatprep.subr.bf16.mxu1 %v4490_v30  ;;  %v4539_v29 = vld [vmem:[%s5589_s1 + $0x118] sm:$0xff]  }
  0x43   : > { %v4540_v30 = vld [vmem:[%s5589_s1 + $0x198] sm:$0xff]  }
  0x44   : > { %4125 = vmatpush3.bf16.msra.mxu0 %v4491_v31  ;;  %v4541_v31 = vld [vmem:[%s5589_s1 + $0x160] sm:$0xff]  }
  0x45   : > { %4154 = vmatprep.subr.bf16.mxu0 %v4493_v34  ;;  %4147 = vmatpush3.bf16.msra.mxu1 %v4492_v32  ;;  %v4542_v32 = vld [vmem:[%s5589_s1 + $0x1e0] sm:$0xff]  }
  0x46   : > { %4176 = vmatprep.subr.bf16.mxu1 %v4494_v35  ;;  %v4544_v34 = vld [vmem:[%s5589_s1 + $0x1a0] sm:$0xff]   ;;  %v4545_v35 = vld [vmem:[%s5589_s1 + $0x168] sm:$0xff]  }
  0x47   : > { %1095 = vmatmul.mubr.bf16.vlgmr.msra.gmra.mrb[4].mxu0 %v571_v33  ;;  %v4543_v33 = vld [vmem:[%s5589_s1 + $0x120] sm:$0xff]  }
  0x48   : > { %4155 = vmatpush3.bf16.msra.mxu0 %v4495_v36  ;;  %1135 = vmatmul.mubr.bf16.vlgmr.msra.gmra.mrb[4].mxu1 %v587_v38  ;;  %v4546_v36 = vld [vmem:[%s5589_s1 + $0x1e8] sm:$0xff]  }
  0x49   : > { %4156 = vmatprep.subr.bf16.mxu0 %v4497_v39  ;;  %4177 = vmatpush3.bf16.msra.mxu1 %v4496_v37  ;;  %v4547_v37 = vld [vmem:[%s5589_s1 + $0x128] sm:$0xff]   ;;  %v4549_v39 = vld [vmem:[%s5589_s1 + $0x170] sm:$0xff]  }
  0x4a   : > { %4178 = vmatprep.subr.bf16.mxu1 %v4498_v40  ;;  %1616 = vmatprep.mubr.bf16.mxu0 %v1180_v13  ;;  %v4548_v38 = vld [vmem:[%s5589_s1 + $0x1a8] sm:$0xff]   ;;  %v4550_v40 = vld [vmem:[%s5589_s1 + $0x1f0] sm:$0xff]   ;;  %v4574_v13 = vld [vmem:[%s5589_s1 + $0x4e0] sm:$0xff]  }
  0x4b   : > { %1656 = vmatprep.mubr.bf16.mxu1 %v1190_v16  ;;  %v4577_v16 = vld [vmem:[%s5589_s1 + $0x468] sm:$0xff]  }
  0x4c   : > { %4157 = vmatpush3.bf16.msra.mxu0 %v4499_v41  ;;  %v4551_v41 = vld [vmem:[%s5589_s1 + $0x130] sm:$0xff]  }
  0x4d   : > { %4158 = vmatprep.subr.bf16.mxu0 %v4501_v43  ;;  %4179 = vmatpush3.bf16.msra.mxu1 %v4500_v42  ;;  %v3390_v42 = vld.sshfl [vmem:[%s4823_s27 + $0x8] sm:$0xf pattern:$0x75316420]  ;;  %v4552_v43 = vld [vmem:[%s5589_s1 + $0x1b0] sm:$0xff]  }
  0x4e   : > { %4180 = vmatprep.subr.bf16.mxu1 %v4502_v44  ;;  %v4553_v44 = vld [vmem:[%s5589_s1 + $0x178] sm:$0xff]  }
  0x50   : > { %4159 = vmatpush3.bf16.msra.mxu0 %v4503_v45  ;;  %v5149_v45 = vld.sshfl [vmem:[%s4823_s27 + $0x18] sm:$0xf pattern:$0x75316420] }
  0x51   : > { %4160 = vmatprep.subr.bf16.mxu0 %v4505_v47  ;;  %4181 = vmatpush3.bf16.msra.mxu1 %v4504_v46  ;;  %v3592_v46 = vcombine.low %v3390_v42, %v5149_v45  ;;  %v4554_v47 = vld [vmem:[%s5589_s1 + $0x1f8] sm:$0xff]   ;;  %v4596_v42 = vld [vmem:[%s5589_s1 + $0x588] sm:$0xff]  }
  0x52   : > { %4182 = vmatprep.subr.bf16.mxu1 %v4506_v49  ;;  %v4555_v49 = vld [vmem:[%s5589_s1 + $0x138] sm:$0xff]  }
  0x54   : > { %4161 = vmatpush3.bf16.msra.mxu0 %v4507_v51  ;;  %v1157_v51 = vrot.slane %v3592_v46, %v4853_v56  ;;  %v4599_v46 = vld [vmem:[%s5589_s1 + $0x510] sm:$0xff]  }
  0x55   : > { %4162 = vmatprep.subr.bf16.mxu0 %v4509_v53  ;;  %4183 = vmatpush3.bf16.msra.mxu1 %v4508_v52  ;;  %v4556_v52 = vld [vmem:[%s5589_s1 + $0x1b8] sm:$0xff]  }
  0x56   : > { %4184 = vmatprep.subr.bf16.mxu1 %v4510_v54  ;;  %v1159_v53 = vcombine.high %v1157_v51, %v1157_v51  ;;  %v1173_v54 = vrot.slane %v1157_v51, %v4853_v56  ;;  %v4602_v51 = vld [vmem:[%s5589_s1 + $0x5d8] sm:$0xff]  }
  0x58   : > { %4163 = vmatpush3.bf16.msra.mxu0 %v4511_v55  ;;  %v4557_v55 = vld [vmem:[%s5589_s1 + $0x440] sm:$0xff]  }
  0x59   : > { %4164 = vmatprep.subr.bf16.mxu0 %v4513_v58  ;;  %4185 = vmatpush3.bf16.msra.mxu1 %v4512_v57  ;;  %v4558_v57 = vld [vmem:[%s5589_s1 + $0x4c0] sm:$0xff]   ;;  %v1187_v58 = vrot.slane %v1159_v53, %v4853_v56  ;;  %v4604_v53 = vld [vmem:[%s5589_s1 + $0x598] sm:$0xff]  }
  0x5a   : > { %4186 = vmatprep.subr.bf16.mxu1 %v4514_v59  ;;  %v4559_v59 = vld [vmem:[%s5589_s1 + $0x400] sm:$0xff]  }
  0x5c   : > { %4165 = vmatpush3.bf16.msra.mxu0 %v4515_v60  ;;  %v4560_v60 = vld [vmem:[%s5589_s1 + $0x480] sm:$0xff]  }
  0x5d   : > { %4166 = vmatprep.subr.bf16.mxu0 %v4517_v62  ;;  %4187 = vmatpush3.bf16.msra.mxu1 %v4516_v61  ;;  %v1191_v61 = vcombine.high %v1187_v58, %v1187_v58  ;;  %v1189_v62 = vcombine.high %v1173_v54, %v1173_v54 }
  0x5e   : > { %4188 = vmatprep.subr.bf16.mxu1 %v4518_v0  ;;  %v4562_v0 = vld [vmem:[%s5589_s1 + $0x4c8] sm:$0xff]  }
  0x60   : > { %4167 = vmatpush3.bf16.msra.mxu0 %v4519_v1  ;;  %v4563_v1 = vld [vmem:[%s5589_s1 + $0x408] sm:$0xff]  }
  0x61   : > { %4168 = vmatprep.subr.bf16.mxu0 %v4521_v5  ;;  %4189 = vmatpush3.bf16.msra.mxu1 %v4520_v3  ;;  %v4564_v3 = vld [vmem:[%s5589_s1 + $0x488] sm:$0xff]   ;;  %v4566_v5 = vld [vmem:[%s5589_s1 + $0x4d0] sm:$0xff]  }
  0x62   : > { %4190 = vmatprep.subr.bf16.mxu1 %v4522_v6  ;;  %v4567_v6 = vld [vmem:[%s5589_s1 + $0x410] sm:$0xff]  }
  0x64   : > { %4169 = vmatpush3.bf16.msra.mxu0 %v4523_v8  ;;  %v4569_v8 = vld [vmem:[%s5589_s1 + $0x458] sm:$0xff]  }
  0x65   : > { %4198 = vmatprep.subr.bf16.mxu0 %v4525_v12  ;;  %4191 = vmatpush3.bf16.msra.mxu1 %v4524_v9  ;;  %v4570_v9 = vld [vmem:[%s5589_s1 + $0x4d8] sm:$0xff]   ;;  %v4573_v12 = vld [vmem:[%s5589_s1 + $0x460] sm:$0xff]  }
  0x66   : > { %4220 = vmatprep.subr.bf16.mxu1 %v4526_v14  ;;  %v4575_v14 = vld [vmem:[%s5589_s1 + $0x420] sm:$0xff]  }
  0x67   : > { %1617 = vmatmul.mubr.bf16.vlgmr.msra.gmra.mrb[8].mxu0 %v1166_v11  ;;  %v4572_v11 = vld [vmem:[%s5589_s1 + $0x498] sm:$0xff]  }
  0x68   : > { %4199 = vmatpush3.bf16.msra.mxu0 %v4527_v15  ;;  %1657 = vmatmul.mubr.bf16.vlgmr.msra.gmra.mrb[8].mxu1 %v1188_v18  ;;  %v4576_v15 = vld [vmem:[%s5589_s1 + $0x4a0] sm:$0xff]   ;;  %v4579_v18 = vld [vmem:[%s5589_s1 + $0x428] sm:$0xff]  }
  0x69   : > { %4200 = vmatprep.subr.bf16.mxu0 %v4529_v19  ;;  %4221 = vmatpush3.bf16.msra.mxu1 %v4528_v17  ;;  %v4578_v17 = vld [vmem:[%s5589_s1 + $0x4e8] sm:$0xff]  }
  0x6a   : > { %4222 = vmatprep.subr.bf16.mxu1 %v4530_v20  ;;  %1696 = vmatprep.mubr.bf16.mxu0 %v1187_v58  ;;  %v4580_v19 = vld [vmem:[%s5589_s1 + $0x4a8] sm:$0xff]   ;;  %v4581_v20 = vld [vmem:[%s5589_s1 + $0x470] sm:$0xff]   ;;  %v4608_v58 = vld [vmem:[%s5589_s1 + $0x5a0] sm:$0xff]  }
  0x6b   : > { %1736 = vmatprep.mubr.bf16.mxu1 %v1191_v61  ;;  %v4611_v61 = vld [vmem:[%s5589_s1 + $0x528] sm:$0xff]  }
  0x6c   : > { %4201 = vmatpush3.bf16.msra.mxu0 %v4531_v21  ;;  %v4582_v21 = vld [vmem:[%s5589_s1 + $0x4f0] sm:$0xff]  }
  0x6d   : > { %4202 = vmatprep.subr.bf16.mxu0 %v4533_v23  ;;  %4223 = vmatpush3.bf16.msra.mxu1 %v4532_v22  ;;  %v4583_v22 = vld [vmem:[%s5589_s1 + $0x430] sm:$0xff]  }
  0x6e   : > { %4224 = vmatprep.subr.bf16.mxu1 %v4534_v24  ;;  %v4584_v23 = vld [vmem:[%s5589_s1 + $0x4b0] sm:$0xff]   ;;  %v3663_v24 = vld.sshfl [vmem:[%s4823_s27 + $0x20] sm:$0xf pattern:$0x75316420] }
  0x70   : > { %4203 = vmatpush3.bf16.msra.mxu0 %v4535_v25  ;;  %v4585_v25 = vld [vmem:[%s5589_s1 + $0x478] sm:$0xff]  }
  0x71   : > { %4204 = vmatprep.subr.bf16.mxu0 %v4537_v27  ;;  %4225 = vmatpush3.bf16.msra.mxu1 %v4536_v26  ;;  %v3793_v26 = vcombine.low %v5039_v2, %v3663_v24  ;;  %v4586_v27 = vld [vmem:[%s5589_s1 + $0x4f8] sm:$0xff]   ;;  %v4630_v24 = vld [vmem:[%s5589_s1 + $0x6d0] sm:$0xff]  }
  0x72   : > { %4226 = vmatprep.subr.bf16.mxu1 %v4538_v28  ;;  %v4587_v28 = vld [vmem:[%s5589_s1 + $0x438] sm:$0xff]  }
  0x74   : > { %4205 = vmatpush3.bf16.msra.mxu0 %v4539_v29  ;;  %v1920_v29 = vrot.slane %v3793_v26, %v4853_v56  ;;  %v4632_v26 = vld [vmem:[%s5589_s1 + $0x690] sm:$0xff]  }
  0x75   : > { %4206 = vmatprep.subr.bf16.mxu0 %v4541_v31  ;;  %4227 = vmatpush3.bf16.msra.mxu1 %v4540_v30  ;;  %v4588_v30 = vld [vmem:[%s5589_s1 + $0x4b8] sm:$0xff]  }
  0x76   : > { %4228 = vmatprep.subr.bf16.mxu1 %v4542_v32  ;;  %v1928_v31 = vcombine.high %v1920_v29, %v1920_v29  ;;  %v1936_v2 = vrot.slane %v1920_v29, %v4853_v56  ;;  %v4589_v32 = vld [vmem:[%s5589_s1 + $0x540] sm:$0xff]   ;;  %v4635_v29 = vld [vmem:[%s5589_s1 + $0x618] sm:$0xff]  }
  0x78   : > { %4207 = vmatpush3.bf16.msra.mxu0 %v4543_v33  ;;  %v4590_v33 = vld [vmem:[%s5589_s1 + $0x5c0] sm:$0xff]  }
  0x79   : > { %4208 = vmatprep.subr.bf16.mxu0 %v4545_v35  ;;  %4229 = vmatpush3.bf16.msra.mxu1 %v4544_v34  ;;  %v1950_v34 = vrot.slane %v1928_v31, %v4853_v56  ;;  %v4591_v35 = vld [vmem:[%s5589_s1 + $0x500] sm:$0xff]  }
  0x7a   : > { %4230 = vmatprep.subr.bf16.mxu1 %v4546_v36  ;;  %v4592_v36 = vld [vmem:[%s5589_s1 + $0x580] sm:$0xff]  }
  0x7b   : > { %v4637_v31 = vld [vmem:[%s5589_s1 + $0x660] sm:$0xff]  }
  0x7c   : > { %4209 = vmatpush3.bf16.msra.mxu0 %v4547_v37  ;;  %v1960_v37 = vcombine.high %v1950_v34, %v1950_v34 }
  0x7d   : > { %4210 = vmatprep.subr.bf16.mxu0 %v4549_v39  ;;  %4231 = vmatpush3.bf16.msra.mxu1 %v4548_v38  ;;  %v1958_v38 = vcombine.high %v1936_v2, %v1936_v2  ;;  %v4593_v39 = vld [vmem:[%s5589_s1 + $0x548] sm:$0xff]  }
  0x7e   : > { %4232 = vmatprep.subr.bf16.mxu1 %v4550_v40  ;;  %v4594_v40 = vld [vmem:[%s5589_s1 + $0x5c8] sm:$0xff]  }
  0x80   : > { %4211 = vmatpush3.bf16.msra.mxu0 %v4551_v41  ;;  %v4595_v41 = vld [vmem:[%s5589_s1 + $0x508] sm:$0xff]  }
  0x81   : > { %4212 = vmatprep.subr.bf16.mxu0 %v4553_v44  ;;  %4233 = vmatpush3.bf16.msra.mxu1 %v4552_v43  ;;  %v4597_v43 = vld [vmem:[%s5589_s1 + $0x550] sm:$0xff]  }
  0x82   : > { %4234 = vmatprep.subr.bf16.mxu1 %v4554_v47  ;;  %v4598_v44 = vld [vmem:[%s5589_s1 + $0x5d0] sm:$0xff]  }
  0x83   : > { %v4600_v47 = vld [vmem:[%s5589_s1 + $0x590] sm:$0xff]  }
  0x84   : > { %4213 = vmatpush3.bf16.msra.mxu0 %v4555_v49  ;;  %v4601_v49 = vld [vmem:[%s5589_s1 + $0x558] sm:$0xff]  }
  0x85   : > { %4242 = vmatprep.subr.bf16.mxu0 %v4557_v55  ;;  %4235 = vmatpush3.bf16.msra.mxu1 %v4556_v52  ;;  %v4603_v52 = vld [vmem:[%s5589_s1 + $0x518] sm:$0xff]   ;;  %v4606_v55 = vld [vmem:[%s5589_s1 + $0x5e0] sm:$0xff]  }
  0x86   : > { %4264 = vmatprep.subr.bf16.mxu1 %v4558_v57  ;;  %v4607_v57 = vld [vmem:[%s5589_s1 + $0x520] sm:$0xff]  }
  0x87   : > { %1697 = vmatmul.mubr.bf16.vlgmr.msra.gmra.mrb[12].mxu0 %v1173_v54  ;;  %v4605_v54 = vld [vmem:[%s5589_s1 + $0x560] sm:$0xff]  }
  0x88   : > { %4243 = vmatpush3.bf16.msra.mxu0 %v4559_v59  ;;  %1737 = vmatmul.mubr.bf16.vlgmr.msra.gmra.mrb[12].mxu1 %v1189_v62  ;;  %v4609_v59 = vld [vmem:[%s5589_s1 + $0x568] sm:$0xff]  }
  0x89   : > { %4244 = vmatprep.subr.bf16.mxu0 %v4561_v63  ;;  %4265 = vmatpush3.bf16.msra.mxu1 %v4560_v60  ;;  %v4610_v60 = vld [vmem:[%s5589_s1 + $0x5e8] sm:$0xff]   ;;  %v4613_v63 = vld [vmem:[%s5589_s1 + $0x570] sm:$0xff]  }
  0x8a   : > { %4266 = vmatprep.subr.bf16.mxu1 %v4562_v0  ;;  %2386 = vmatprep.mubr.bf16.mxu0 %v1950_v34  ;;  %v4612_v62 = vld [vmem:[%s5589_s1 + $0x5a8] sm:$0xff]   ;;  %v4614_v0 = vld [vmem:[%s5589_s1 + $0x5f0] sm:$0xff]  }
  0x8b   : > { %2426 = vmatprep.mubr.bf16.mxu1 %v1960_v37  ;;  %v4641_v34 = vld [vmem:[%s5589_s1 + $0x668] sm:$0xff]  }
  0x8c   : > { %4245 = vmatpush3.bf16.msra.mxu0 %v4563_v1  ;;  %v4615_v1 = vld [vmem:[%s5589_s1 + $0x530] sm:$0xff]   ;;  %v4644_v37 = vld [vmem:[%s5589_s1 + $0x6a8] sm:$0xff]  }
  0x8d   : > { %4246 = vmatprep.subr.bf16.mxu0 %v4565_v4  ;;  %4267 = vmatpush3.bf16.msra.mxu1 %v4564_v3  ;;  %v4616_v3 = vld [vmem:[%s5589_s1 + $0x5b0] sm:$0xff]   ;;  %v4617_v4 = vld [vmem:[%s5589_s1 + $0x578] sm:$0xff]  }
  0x8e   : > { %4268 = vmatprep.subr.bf16.mxu1 %v4566_v5  ;;  %v3664_v5 = vld.sshfl [vmem:[%s4823_s27 + $0x28] sm:$0xf pattern:$0x75316420] }
  0x90   : > { %4247 = vmatpush3.bf16.msra.mxu0 %v4567_v6  ;;  %v3794_v6 = vcombine.low %v5149_v45, %v3664_v5 }
  0x91   : > { %4248 = vmatprep.subr.bf16.mxu0 %v4569_v8  ;;  %4269 = vmatpush3.bf16.msra.mxu1 %v4568_v7  ;;  %v4618_v7 = vld [vmem:[%s5589_s1 + $0x5f8] sm:$0xff]  }
  0x92   : > { %4270 = vmatprep.subr.bf16.mxu1 %v4570_v9  ;;  %v4619_v8 = vld [vmem:[%s5589_s1 + $0x538] sm:$0xff]   ;;  %v1927_v9 = vrot.slane %v3794_v6, %v4853_v56 }
  0x94   : > { %4249 = vmatpush3.bf16.msra.mxu0 %v4571_v10  ;;  %v4620_v10 = vld [vmem:[%s5589_s1 + $0x5b8] sm:$0xff]   ;;  %v1943_v45 = vrot.slane %v1927_v9, %v4853_v56 }
  0x95   : > { %4250 = vmatprep.subr.bf16.mxu0 %v4573_v12  ;;  %4271 = vmatpush3.bf16.msra.mxu1 %v4572_v11  ;;  %v1929_v11 = vcombine.high %v1927_v9, %v1927_v9  ;;  %v4621_v12 = vld [vmem:[%s5589_s1 + $0x640] sm:$0xff]  }
  0x96   : > { %4272 = vmatprep.subr.bf16.mxu1 %v4574_v13  ;;  %v4622_v13 = vld [vmem:[%s5589_s1 + $0x6c0] sm:$0xff]  }
  0x98   : > { %4251 = vmatpush3.bf16.msra.mxu0 %v4575_v14  ;;  %v1957_v14 = vrot.slane %v1929_v11, %v4853_v56 }
  0x99   : > { %4252 = vmatprep.subr.bf16.mxu0 %v4577_v16  ;;  %4273 = vmatpush3.bf16.msra.mxu1 %v4576_v15  ;;  %v4623_v15 = vld [vmem:[%s5589_s1 + $0x600] sm:$0xff]  }
  0x9a   : > { %4274 = vmatprep.subr.bf16.mxu1 %v4578_v17  ;;  %v4624_v16 = vld [vmem:[%s5589_s1 + $0x680] sm:$0xff]   ;;  %v1961_v17 = vcombine.high %v1957_v14, %v1957_v14 }
  0x9c   : > { %4253 = vmatpush3.bf16.msra.mxu0 %v4579_v18  ;;  %v1959_v18 = vcombine.high %v1943_v45, %v1943_v45 }
  0x9d   : > { %4254 = vmatprep.subr.bf16.mxu0 %v4581_v20  ;;  %4275 = vmatpush3.bf16.msra.mxu1 %v4580_v19  ;;  %v4625_v19 = vld [vmem:[%s5589_s1 + $0x648] sm:$0xff]  }
  0x9e   : > { %4276 = vmatprep.subr.bf16.mxu1 %v4582_v21  ;;  %v4626_v20 = vld [vmem:[%s5589_s1 + $0x6c8] sm:$0xff]  }
  0x9f   : > { %v4627_v21 = vld [vmem:[%s5589_s1 + $0x608] sm:$0xff]  }
  0xa0   : > { %4255 = vmatpush3.bf16.msra.mxu0 %v4583_v22  ;;  %v4628_v22 = vld [vmem:[%s5589_s1 + $0x688] sm:$0xff]  }
  0xa1   : > { %4256 = vmatprep.subr.bf16.mxu0 %v4585_v25  ;;  %4277 = vmatpush3.bf16.msra.mxu1 %v4584_v23  ;;  %v4629_v23 = vld [vmem:[%s5589_s1 + $0x650] sm:$0xff]  }
  0xa2   : > { %4278 = vmatprep.subr.bf16.mxu1 %v4586_v27  ;;  %v4631_v25 = vld [vmem:[%s5589_s1 + $0x610] sm:$0xff]   ;;  %v4633_v27 = vld [vmem:[%s5589_s1 + $0x658] sm:$0xff]  }
  0xa4   : > { %4257 = vmatpush3.bf16.msra.mxu0 %v4587_v28  ;;  %v4634_v28 = vld [vmem:[%s5589_s1 + $0x6d8] sm:$0xff]  }
  0xa5   : > { %4286 = vmatprep.subr.bf16.mxu0 %v4589_v32  ;;  %4279 = vmatpush3.bf16.msra.mxu1 %v4588_v30  ;;  %v4636_v30 = vld [vmem:[%s5589_s1 + $0x698] sm:$0xff]   ;;  %v4639_v32 = vld [vmem:[%s5589_s1 + $0x620] sm:$0xff]  }
  0xa6   : > { %4308 = vmatprep.subr.bf16.mxu1 %v4590_v33  ;;  %v4640_v33 = vld [vmem:[%s5589_s1 + $0x6a0] sm:$0xff]  }
  0xa7   : > { %2387 = vmatmul.mubr.bf16.vlgmr.msra.gmra.mrb[16].mxu0 %v1936_v2  ;;  %v4638_v2 = vld [vmem:[%s5589_s1 + $0x6e0] sm:$0xff]  }
  0xa8   : > { %4287 = vmatpush3.bf16.msra.mxu0 %v4591_v35  ;;  %2427 = vmatmul.mubr.bf16.vlgmr.msra.gmra.mrb[16].mxu1 %v1958_v38  ;;  %v4642_v35 = vld [vmem:[%s5589_s1 + $0x6e8] sm:$0xff]   ;;  %v4645_v38 = vld [vmem:[%s5589_s1 + $0x670] sm:$0xff]  }
  0xa9   : > { %4288 = vmatprep.subr.bf16.mxu0 %v4593_v39  ;;  %4309 = vmatpush3.bf16.msra.mxu1 %v4592_v36  ;;  %v4643_v36 = vld [vmem:[%s5589_s1 + $0x628] sm:$0xff]   ;;  %v4646_v39 = vld [vmem:[%s5589_s1 + $0x6f0] sm:$0xff]  }
  0xaa   : > { %4310 = vmatprep.subr.bf16.mxu1 %v4594_v40  ;;  %2466 = vmatprep.mubr.bf16.mxu0 %v1957_v14  ;;  %v4647_v40 = vld [vmem:[%s5589_s1 + $0x630] sm:$0xff]   ;;  %v4656_v14 = vld [vmem:[%s5589_s1 + $0x780] sm:$0xff]  }
  0xab   : > { %2506 = vmatprep.mubr.bf16.mxu1 %v1961_v17  ;;  %v4659_v17 = vld [vmem:[%s5589_s1 + $0x708] sm:$0xff]  }
  0xac   : > { %4289 = vmatpush3.bf16.msra.mxu0 %v4595_v41  ;;  %v4648_v41 = vld [vmem:[%s5589_s1 + $0x6b0] sm:$0xff]  }
  0xad   : > { %4290 = vmatprep.subr.bf16.mxu0 %v4597_v43  ;;  %4311 = vmatpush3.bf16.msra.mxu1 %v4596_v42  ;;  %v4649_v42 = vld [vmem:[%s5589_s1 + $0x678] sm:$0xff]   ;;  %v3863_v43 = vld.sshfl [vmem:[%s4823_s27 + $0x10] sm:$0xff pattern:$0x75316420] }
  0xae   : > { %4312 = vmatprep.subr.bf16.mxu1 %v4598_v44  ;;  %v3864_v44 = vld.sshfl [vmem:[%s4823_s27 + $0x18] sm:$0xff pattern:$0x75316420] }
  0xb0   : > { %4291 = vmatpush3.bf16.msra.mxu0 %v4599_v46  ;;  %v3865_v46 = vld.sshfl [vmem:[%s4823_s27 + $0x20] sm:$0xff pattern:$0x75316420] }
  0xb1   : > { %4292 = vmatprep.subr.bf16.mxu0 %v4601_v49  ;;  %4313 = vmatpush3.bf16.msra.mxu1 %v4600_v47  ;;  %v4650_v47 = vld [vmem:[%s5589_s1 + $0x6f8] sm:$0xff]   ;;  %v3866_v49 = vld.sshfl [vmem:[%s4823_s27 + $0x28] sm:$0xff pattern:$0x75316420] }
  0xb2   : > { %4314 = vmatprep.subr.bf16.mxu1 %v4602_v51  ;;  %v2537_v51 = vcombine.low %v3863_v43, %v3864_v44 }
  0xb4   : > { %4293 = vmatpush3.bf16.msra.mxu0 %v4603_v52  ;;  %v2538_v52 = vcombine.high %v3863_v43, %v3864_v44  ;;  %v4677_v43 = vld [vmem:[%s5589_s1 + $0x770] sm:$0xff]  }
  0xb5   : > { %4294 = vmatprep.subr.bf16.mxu0 %v4605_v54  ;;  %4315 = vmatpush3.bf16.msra.mxu1 %v4604_v53  ;;  %v2553_v53 = vcombine.low %v3865_v46, %v3866_v49  ;;  %v2554_v54 = vcombine.high %v3865_v46, %v3866_v49  ;;  %v4676_v46 = vld [vmem:[%s5589_s1 + $0x7a8] sm:$0xff]   ;;  %v4679_v49 = vld [vmem:[%s5589_s1 + $0x730] sm:$0xff]  }
  0xb6   : > { %4316 = vmatprep.subr.bf16.mxu1 %v4606_v55  ;;  %v4651_v55 = vld [vmem:[%s5589_s1 + $0x638] sm:$0xff]  }
  0xb8   : > { %4295 = vmatpush3.bf16.msra.mxu0 %v4607_v57  ;;  %v2556_v57 = vshrl.u32 %v2537_v51, 16  ;;  %v4681_v51 = vld [vmem:[%s5589_s1 + $0x778] sm:$0xff]  }
  0xb9   : > { %4296 = vmatprep.subr.bf16.mxu0 %v4609_v59  ;;  %4317 = vmatpush3.bf16.msra.mxu1 %v4608_v58  ;;  %v2561_v58 = vshll.u32 %v2538_v52, 16  ;;  %v4653_v59 = vld [vmem:[%s5589_s1 + $0x740] sm:$0xff]   ;;  %v4680_v52 = vld [vmem:[%s5589_s1 + $0x7b0] sm:$0xff]  }
  0xba   : > { %4318 = vmatprep.subr.bf16.mxu1 %v4610_v60  ;;  %v2565_v60 = vshrl.u32 %v2553_v53, 16  ;;  %v4682_v53 = vld [vmem:[%s5589_s1 + $0x7f8] sm:$0xff]  }
  0xbc   : > { %4297 = vmatpush3.bf16.msra.mxu0 %v4611_v61  ;;  %v2570_v61 = vshll.u32 %v2554_v54, 16  ;;  %v4683_v54 = vld [vmem:[%s5589_s1 + $0x738] sm:$0xff]  }
  0xbd   : > { %4298 = vmatprep.subr.bf16.mxu0 %v4613_v63  ;;  %4319 = vmatpush3.bf16.msra.mxu1 %v4612_v62  ;;  %v4652_v62 = vld [vmem:[%s5589_s1 + $0x6b8] sm:$0xff]   ;;  %v2563_v63 = vsel %vm4844_vm14, %v2556_v57, %v2561_v58 }
  0xbe   : > { %4320 = vmatprep.subr.bf16.mxu1 %v4614_v0  ;;  %v2572_v0 = vsel %vm4844_vm14, %v2565_v60, %v2570_v61  ;;  %v4684_v57 = vld [vmem:[%s5589_s1 + $0x7b8] sm:$0xff]  }
  0xc0   : > { %4299 = vmatpush3.bf16.msra.mxu0 %v4615_v1  ;;  %v4654_v1 = vld [vmem:[%s5589_s1 + $0x7c0] sm:$0xff]  }
  0xc1   : > { %4300 = vmatprep.subr.bf16.mxu0 %v4617_v4  ;;  %4321 = vmatpush3.bf16.msra.mxu1 %v4616_v3  ;;  %v2702_v3 = vcombine.low %v2563_v63, %v2572_v0  ;;  %v2703_v4 = vcombine.high %v2563_v63, %v2572_v0 }
  0xc2   : > { %4322 = vmatprep.subr.bf16.mxu1 %v4618_v7 }
  0xc3   : > { %v2710_v5 = vrot.slane %v2702_v3, %v4853_v56  ;;  %v5478_v6 = vrot.slane %v2703_v4, %v4853_v56 }
  0xc4   : > { %4301 = vmatpush3.bf16.msra.mxu0 %v4619_v8 }
  0xc5   : > { %4330 = vmatprep.subr.bf16.mxu0 %v4621_v12  ;;  %4323 = vmatpush3.bf16.msra.mxu1 %v4620_v10  ;;  %v2718_v7 = vcombine.high %v2710_v5, %v2710_v5  ;;  %v2726_v8 = vrot.slane %v2710_v5, %v4853_v56  ;;  %v2719_v50 = vcombine.high %v5478_v6, %v5478_v6  ;;  %v4655_v10 = vld [vmem:[%s5589_s1 + $0x700] sm:$0xff]   ;;  %v4657_v12 = vld [vmem:[%s5589_s1 + $0x748] sm:$0xff]  }
  0xc6   : > { %4352 = vmatprep.subr.bf16.mxu1 %v4622_v13 }
  0xc7   : > { %2467 = vmatmul.mubr.bf16.vlgmr.msra.gmra.mrb[20].mxu0 %v1943_v45  ;;  %v2740_v9 = vrot.slane %v2718_v7, %v4853_v56  ;;  %v2747_v11 = vrot.slane %v2719_v50, %v4853_v56  ;;  %v2748_v45 = vcombine.high %v2726_v8, %v2726_v8 }
  0xc8   : > { %4331 = vmatpush3.bf16.msra.mxu0 %v4623_v15  ;;  %2507 = vmatmul.mubr.bf16.vlgmr.msra.gmra.mrb[20].mxu1 %v1959_v18  ;;  %v4658_v15 = vld [vmem:[%s5589_s1 + $0x7c8] sm:$0xff]   ;;  %v4661_v18 = vld [vmem:[%s5589_s1 + $0x750] sm:$0xff]  }
  0xc9   : > { %4332 = vmatprep.subr.bf16.mxu0 %v4625_v19  ;;  %4353 = vmatpush3.bf16.msra.mxu1 %v4624_v16  ;;  %v2750_v13 = vcombine.high %v2740_v9, %v2740_v9  ;;  %v2751_v16 = vcombine.high %v2747_v11, %v2747_v11  ;;  %v4660_v19 = vld [vmem:[%s5589_s1 + $0x788] sm:$0xff]  }
  0xca   : > { %4354 = vmatprep.subr.bf16.mxu1 %v4626_v20  ;;  %3176 = vmatprep.mubr.bf16.mxu0 %v2740_v9  ;;  %v4662_v20 = vld [vmem:[%s5589_s1 + $0x7d0] sm:$0xff]  }
  0xcb   : > { %3216 = vmatprep.mubr.bf16.mxu1 %v2750_v13 }
  0xcc   : > { %4333 = vmatpush3.bf16.msra.mxu0 %v4627_v21  ;;  %v4663_v21 = vld [vmem:[%s5589_s1 + $0x710] sm:$0xff]  }
  0xcd   : > { %4334 = vmatprep.subr.bf16.mxu0 %v4629_v23  ;;  %4355 = vmatpush3.bf16.msra.mxu1 %v4628_v22  ;;  %v4665_v22 = vld [vmem:[%s5589_s1 + $0x758] sm:$0xff]   ;;  %v4664_v23 = vld [vmem:[%s5589_s1 + $0x790] sm:$0xff]  }
  0xce   : > { %4356 = vmatprep.subr.bf16.mxu1 %v4630_v24  ;;  %v4666_v24 = vld [vmem:[%s5589_s1 + $0x7d8] sm:$0xff]  }
  0xd0   : > { %4335 = vmatpush3.bf16.msra.mxu0 %v4631_v25  ;;  %v4667_v25 = vld [vmem:[%s5589_s1 + $0x718] sm:$0xff]  }
  0xd1   : > { %4336 = vmatprep.subr.bf16.mxu0 %v4633_v27  ;;  %4357 = vmatpush3.bf16.msra.mxu1 %v4632_v26  ;;  %v4669_v26 = vld [vmem:[%s5589_s1 + $0x760] sm:$0xff]   ;;  %v4668_v27 = vld [vmem:[%s5589_s1 + $0x798] sm:$0xff]  }
  0xd2   : > { %4358 = vmatprep.subr.bf16.mxu1 %v4634_v28  ;;  %v4670_v28 = vld [vmem:[%s5589_s1 + $0x7e0] sm:$0xff]  }
  0xd4   : > { %4337 = vmatpush3.bf16.msra.mxu0 %v4635_v29  ;;  %v4671_v29 = vld [vmem:[%s5589_s1 + $0x720] sm:$0xff]  }
  0xd5   : > { %4338 = vmatprep.subr.bf16.mxu0 %v4637_v31  ;;  %4359 = vmatpush3.bf16.msra.mxu1 %v4636_v30 }
  0xd6   : > { %4360 = vmatprep.subr.bf16.mxu1 %v4638_v2  ;;  %v4673_v2 = vld [vmem:[%s5589_s1 + $0x768] sm:$0xff]  }
  0xd8   : > { %4339 = vmatpush3.bf16.msra.mxu0 %v4639_v32  ;;  %v4672_v32 = vld [vmem:[%s5589_s1 + $0x7a0] sm:$0xff]  }
  0xd9   : > { %4340 = vmatprep.subr.bf16.mxu0 %v4641_v34  ;;  %4361 = vmatpush3.bf16.msra.mxu1 %v4640_v33 }
  0xda   : > { %4362 = vmatprep.subr.bf16.mxu1 %v4642_v35  ;;  %v4674_v35 = vld [vmem:[%s5589_s1 + $0x7e8] sm:$0xff]  }
  0xdc   : > { %4341 = vmatpush3.bf16.msra.mxu0 %v4643_v36 }
  0xdd   : > { %4342 = vmatprep.subr.bf16.mxu0 %v4645_v38  ;;  %4363 = vmatpush3.bf16.msra.mxu1 %v4644_v37 }
  0xde   : > { %4364 = vmatprep.subr.bf16.mxu1 %v4646_v39 }
  0xe0   : > { %4343 = vmatpush3.bf16.msra.mxu0 %v4647_v40 }
  0xe1   : > { %4344 = vmatprep.subr.bf16.mxu0 %v4649_v42  ;;  %4365 = vmatpush3.bf16.msra.mxu1 %v4648_v41  ;;  %v4675_v41 = vld [vmem:[%s5589_s1 + $0x728] sm:$0xff]  }
  0xe2   : > { %4366 = vmatprep.subr.bf16.mxu1 %v4650_v47  ;;  %v4678_v47 = vld [vmem:[%s5589_s1 + $0x7f0] sm:$0xff]  }
  0xe4   : > { %4345 = vmatpush3.bf16.msra.mxu0 %v4651_v55  ;;  %v2733_v55 = vrot.slane %v5478_v6, %v4853_v56 }
  0xe5   : > { %4374 = vmatprep.subr.bf16.mxu0 %v4653_v59  ;;  %4367 = vmatpush3.bf16.msra.mxu1 %v4652_v62 }
  0xe6   : > { %4396 = vmatprep.subr.bf16.mxu1 %v4654_v1  ;;  %v2749_v58 = vcombine.high %v2733_v55, %v2733_v55 }
  0xe7   : > { %3177 = vmatmul.mubr.bf16.vlgmr.msra.gmra.mrb[24].mxu0 %v2726_v8 }
  0xe8   : > { %4375 = vmatpush3.bf16.msra.mxu0 %v4655_v10  ;;  %3217 = vmatmul.mubr.bf16.vlgmr.msra.gmra.mrb[24].mxu1 %v2748_v45 }
  0xe9   : > { %4376 = vmatprep.subr.bf16.mxu0 %v4657_v12  ;;  %4397 = vmatpush3.bf16.msra.mxu1 %v4656_v14 }
  0xea   : > { %3256 = vmatprep.mubr.bf16.mxu0 %v2747_v11  ;;  %4398 = vmatprep.subr.bf16.mxu1 %v4658_v15 }
  0xeb   : > { %3296 = vmatprep.mubr.bf16.mxu1 %v2751_v16 }
  0xec   : > { %4377 = vmatpush3.bf16.msra.mxu0 %v4659_v17 }
  0xed   : > { %4378 = vmatprep.subr.bf16.mxu0 %v4661_v18  ;;  %4399 = vmatpush3.bf16.msra.mxu1 %v4660_v19 }
  0xee   : > { %4400 = vmatprep.subr.bf16.mxu1 %v4662_v20 }
  0xf0   : > { %4379 = vmatpush3.bf16.msra.mxu0 %v4663_v21 }
  0xf1   : > { %4380 = vmatprep.subr.bf16.mxu0 %v4665_v22  ;;  %4401 = vmatpush3.bf16.msra.mxu1 %v4664_v23 }
  0xf2   : > { %4402 = vmatprep.subr.bf16.mxu1 %v4666_v24 }
  0xf4   : > { %4381 = vmatpush3.bf16.msra.mxu0 %v4667_v25 }
  0xf5   : > { %4382 = vmatprep.subr.bf16.mxu0 %v4669_v26  ;;  %4403 = vmatpush3.bf16.msra.mxu1 %v4668_v27 }
  0xf6   : > { %4404 = vmatprep.subr.bf16.mxu1 %v4670_v28 }
  0xf8   : > { %4383 = vmatpush3.bf16.msra.mxu0 %v4671_v29 }
  0xf9   : > { %4384 = vmatprep.subr.bf16.mxu0 %v4673_v2  ;;  %4405 = vmatpush3.bf16.msra.mxu1 %v4672_v32 }
  0xfa   : > { %v4082_v30 = vpop.f32.mrb[0].mxu0  ;;  %4406 = vmatprep.subr.bf16.mxu1 %v4674_v35 }
  0xfb   : > { %v4083_v31 = vpop.f32.mrb[1].mxu0  ;;  %v4104_v33 = vpop.f32.mrb[0].mxu1 }
  0xfc   : > { %v4084_v34 = vadd.f32 %v4083_v31, %v4082_v30  ;;  %v4085_v36 = vpop.f32.mrb[2].mxu0  ;;  %v4105_v37 = vpop.f32.mrb[1].mxu1  ;;  %4385 = vmatpush3.bf16.msra.mxu0 %v4675_v41 }
  0xfd   : > { %v4086_v38 = vpop.f32.mrb[3].mxu0  ;;  %v4106_v39 = vadd.f32 %v4105_v37, %v4104_v33  ;;  %v4107_v40 = vpop.f32.mrb[2].mxu1  ;;  %4386 = vmatprep.subr.bf16.mxu0 %v4677_v43  ;;  %4407 = vmatpush3.bf16.msra.mxu1 %v4676_v46 }
  0xfe   : > { %v4108_v42 = vpop.f32.mrb[3].mxu1  ;;  %4408 = vmatprep.subr.bf16.mxu1 %v4678_v47 }
  0xff   : > { %v1057_v44 = vadd.f32 %v4106_v39, %v4084_v34 }
 0x100   : > { %4387 = vmatpush3.bf16.msra.mxu0 %v4679_v49 }
 0x101   : > { %4388 = vmatprep.subr.bf16.mxu0 %v4681_v51  ;;  %4409 = vmatpush3.bf16.msra.mxu1 %v4680_v52 }
 0x102   : > { %4410 = vmatprep.subr.bf16.mxu1 %v4682_v53 }
 0x104   : > { %4389 = vmatpush3.bf16.msra.mxu0 %v4683_v54 }
 0x105   : > { %4411 = vmatpush3.bf16.msra.mxu1 %v4684_v57 }
 0x107   : > { %3257 = vmatmul.mubr.bf16.vlgmr.msra.gmra.mrb[28].mxu0 %v2733_v55 }
 0x108   : > { %3297 = vmatmul.mubr.bf16.vlgmr.msra.gmra.mrb[28].mxu1 %v2749_v58 }
 0x11a   : > { %v4126_v59 = vpop.f32.mrb[4].mxu0 }
 0x11b   : > { %v4127_v60 = vpop.f32.mrb[5].mxu0  ;;  %v4148_v61 = vpop.f32.mrb[4].mxu1 }
 0x11c   : > { %v4128_v62 = vadd.f32 %v4127_v60, %v4126_v59  ;;  %v4129_v63 = vpop.f32.mrb[6].mxu0  ;;  %v4149_v0 = vpop.f32.mrb[5].mxu1 }
 0x11d   : > { %v4130_v1 = vpop.f32.mrb[7].mxu0  ;;  %v4150_v56 = vadd.f32 %v4149_v0, %v4148_v61  ;;  %v4151_v4 = vpop.f32.mrb[6].mxu1 }
 0x11e   : > { %v1097_v3 = vadd.f32 %v4128_v62, %v1057_v44  ;;  %v4152_v5 = vpop.f32.mrb[7].mxu1  ;;  %v4694_v4 = vmov 1983009808  }
 0x11f   : > { %v3315_v5 = vunpack.c.l.s4 %v4694_v4 }
 0x120   : > { %v1137_v6 = vadd.f32 %v4150_v56, %v1097_v3 }
 0x13a   : > { %v4170_v7 = vpop.f32.mrb[8].mxu0 }
 0x13b   : > { %v4171_v8 = vpop.f32.mrb[9].mxu0  ;;  %v4192_v50 = vpop.f32.mrb[8].mxu1 }
 0x13c   : > { %v4172_v9 = vadd.f32 %v4171_v8, %v4170_v7  ;;  %v4173_v10 = vpop.f32.mrb[10].mxu0  ;;  %v4193_v11 = vpop.f32.mrb[9].mxu1 }
 0x13d   : > { %v4174_v45 = vpop.f32.mrb[11].mxu0  ;;  %v4194_v13 = vadd.f32 %v4193_v11, %v4192_v50  ;;  %v4195_v14 = vpop.f32.mrb[10].mxu1 }
 0x13e   : > { %v1619_v12 = vadd.f32 %v4172_v9, %v1137_v6  ;;  %v4196_v15 = vpop.f32.mrb[11].mxu1 }
 0x140   : > { %v1659_v16 = vadd.f32 %v4194_v13, %v1619_v12  ;;  %v3316_v12 = vunpack.c.0.s8 %v3315_v5 }
 0x15a   : > { %v4214_v17 = vpop.f32.mrb[12].mxu0 }
 0x15b   : > { %v4215_v18 = vpop.f32.mrb[13].mxu0  ;;  %v4236_v19 = vpop.f32.mrb[12].mxu1 }
 0x15c   : > { %v4216_v20 = vadd.f32 %v4215_v18, %v4214_v17  ;;  %v4217_v21 = vpop.f32.mrb[14].mxu0  ;;  %v4237_v22 = vpop.f32.mrb[13].mxu1  ;;  %v3319_v18 = vsub.s32 %v3316_v12, %v4838_v48 }
 0x15d   : > { %v4218_v23 = vpop.f32.mrb[15].mxu0  ;;  %v4238_v25 = vadd.f32 %v4237_v22, %v4236_v19  ;;  %v4239_v26 = vpop.f32.mrb[14].mxu1 }
 0x15e   : > { %v1699_v24 = vadd.f32 %v4216_v20, %v1659_v16  ;;  %v4240_v27 = vpop.f32.mrb[15].mxu1  ;;  %v4061_v16 = vld [vmem:[%s5590_s2] ss:$0 sm:$0xff] }
 0x160   : > { %v1739_v28 = vadd.f32 %v4238_v25, %v1699_v24 }
 0x17a   : > { %v4258_v29 = vpop.f32.mrb[16].mxu0 }
 0x17b   : > { %v4259_v30 = vpop.f32.mrb[17].mxu0  ;;  %v4280_v31 = vpop.f32.mrb[16].mxu1 }
 0x17c   : > { %v4260_v2 = vadd.f32 %v4259_v30, %v4258_v29  ;;  %v4261_v32 = vpop.f32.mrb[18].mxu0  ;;  %v4281_v33 = vpop.f32.mrb[17].mxu1 }
 0x17d   : > { %v4262_v34 = vpop.f32.mrb[19].mxu0  ;;  %v4282_v35 = vadd.f32 %v4281_v33, %v4280_v31  ;;  %v4283_v36 = vpop.f32.mrb[18].mxu1 }
 0x17e   : > { %v4284_v37 = vpop.f32.mrb[19].mxu1 }
 0x17f   : > { %v2429_v38 = vadd.f32 %v4282_v35, %v4260_v2 }
 0x19a   : > { %v4302_v39 = vpop.f32.mrb[20].mxu0 }
 0x19b   : > { %v4303_v40 = vpop.f32.mrb[21].mxu0  ;;  %v4324_v41 = vpop.f32.mrb[20].mxu1 }
 0x19c   : > { %v4304_v42 = vadd.f32 %v4303_v40, %v4302_v39  ;;  %v4305_v43 = vpop.f32.mrb[22].mxu0  ;;  %v4325_v44 = vpop.f32.mrb[21].mxu1 }
 0x19d   : > { %v4306_v46 = vpop.f32.mrb[23].mxu0  ;;  %v4326_v49 = vadd.f32 %v4325_v44, %v4324_v41  ;;  %v4327_v51 = vpop.f32.mrb[22].mxu1 }
 0x19e   : > { %v2469_v47 = vadd.f32 %v4304_v42, %v2429_v38  ;;  %v4328_v52 = vpop.f32.mrb[23].mxu1 }
 0x1a0   : > { %v2509_v53 = vadd.f32 %v4326_v49, %v2469_v47 }
 0x1a2   : > { %v2514_v54 = vadd.f32 %v2509_v53, %v1739_v28 }
 0x1ba   : > { %v4346_v55 = vpop.f32.mrb[24].mxu0 }
 0x1bb   : > { %v4347_v57 = vpop.f32.mrb[25].mxu0  ;;  %v4368_v58 = vpop.f32.mrb[24].mxu1 }
 0x1bc   : > { %v4348_v59 = vadd.f32 %v4347_v57, %v4346_v55  ;;  %v4349_v60 = vpop.f32.mrb[26].mxu0  ;;  %v4369_v61 = vpop.f32.mrb[25].mxu1 }
 0x1bd   : > { %v4350_v62 = vpop.f32.mrb[27].mxu0  ;;  %v4370_v63 = vadd.f32 %v4369_v61, %v4368_v58  ;;  %v4371_v0 = vpop.f32.mrb[26].mxu1 }
 0x1be   : > { %v4372_v1 = vpop.f32.mrb[27].mxu1 }
 0x1bf   : > { %v3219_v3 = vadd.f32 %v4370_v63, %v4348_v59 }
 0x1da   : > { %v4390_v56 = vpop.f32.mrb[28].mxu0 }
 0x1db   : > { %v4391_v6 = vpop.f32.mrb[29].mxu0  ;;  %v4412_v7 = vpop.f32.mrb[28].mxu1 }
 0x1dc   : > { %v4392_v8 = vadd.f32 %v4391_v6, %v4390_v56  ;;  %v4393_v50 = vpop.f32.mrb[30].mxu0  ;;  %v4413_v9 = vpop.f32.mrb[29].mxu1 }
 0x1dd   : > { %v4394_v10 = vpop.f32.mrb[31].mxu0  ;;  %v4414_v45 = vadd.f32 %v4413_v9, %v4412_v7  ;;  %v4415_v13 = vpop.f32.mrb[30].mxu1 }
 0x1de   : > { %v3259_v11 = vadd.f32 %v4392_v8, %v3219_v3  ;;  %v4416_v14 = vpop.f32.mrb[31].mxu1 }
 0x1e0   : > { %v3299_v15 = vadd.f32 %v4414_v45, %v3259_v11 }
 0x1e2   : > { %v3304_v17 = vadd.f32 %v3299_v15, %v2514_v54 }
 0x1e4   : > { %v3312_v19 = vadd.f32 %v4061_v16, %v3304_v17 }
 0x1e6   : > { %v3320_v20 = vrot.slane %v3312_v19, %v3319_v18  ;;  %4062 = vst.sshfl [vmem:[%s170_s25] sm:$0x3 pattern:$0x76325410] %v3312_v19 }
 0x1e8   : > { %v3321_v21 = vcombine.high %v3320_v20, %v3320_v20 }
 0x1ea   : > { %3325 = vst [vmem:[%s170_s25 + $0x2] sm:$0x3] %v3321_v21 }
 0x1eb PF: > { %s13_s12 = sadd.s32 1, %s4691_s12  }
 0x1ec   : > { %p10_p4 = scmp.ge.s32.totalorder %s13_s12, 4  }
 0x1ee   :  { %12 = sbr.rel (!%p10_p4) target bundleno = 1 (0x1), region = 66 }

</bundles_post_ra>
